<compile_context>
chip_gen: v7x
topology: tpu7x:2x2x1
jax: 0.10.0
libtpu: 0.0.40
codegen_flags: <defaults>
</compile_context>

<pallas_src>
from collections import OrderedDict
from functools import reduce
import operator

import jax
import jax.numpy as jnp
from jax.experimental import pallas as pl
from jax.experimental.pallas import tpu as pltpu


# ----------------------------- configuration ------------------------------
N_NODES = 10
EMBEDDING_DIM = 32
IN_CHANNELS = 3          # CIFAR branch of CNNHyper
N_KERNELS = 6
OUT_DIM = 10
HIDDEN_DIM = 100         # logical hidden dim (PyTorch hidden_dim=100)
HP = 128                 # hidden dim zero-padded to the 128-lane width
N_HIDDEN = 3             # number of (ReLU, Linear) blocks after the first Linear
TN = 13312               # heads output-column tile; 104*128, grid = 4 steps.

HEAD_SHAPES = OrderedDict([
    ("conv1.weight", (N_KERNELS, IN_CHANNELS, 5, 5)),
    ("conv1.bias",   (N_KERNELS,)),
    ("conv2.weight", (2 * N_KERNELS, N_KERNELS, 5, 5)),
    ("conv2.bias",   (2 * N_KERNELS,)),
    ("fc1.weight",   (120, 2 * N_KERNELS * 5 * 5)),
    ("fc1.bias",     (120,)),
    ("fc2.weight",   (84, 120)),
    ("fc2.bias",     (84,)),
    ("fc3.weight",   (OUT_DIM, 84)),
    ("fc3.bias",     (OUT_DIM,)),
])


def _prod(t):
    return reduce(operator.mul, t, 1)


TOTAL = sum(_prod(s) for s in HEAD_SHAPES.values())       # 49402
TOTAL_PAD = pl.cdiv(TOTAL, TN) * TN                       # 53248 -> 4 tiles
assert TOTAL_PAD % TN == 0 and TOTAL_PAD // TN == 4
assert HP >= HIDDEN_DIM + 1                               # room for the bias row


# ------------------------------ Pallas kernel ------------------------------
def hyper_kernel(idx_ref, emb_ref, w1_ref, b1_ref, w2_ref, b2_ref,
                 w3_ref, b3_ref, w4_ref, b4_ref, hw_ref, out_ref):
    """Fused embedding gather + MLP + one (HP, TN) heads-matmul column tile.

    The embedding table and MLP blocks never move (DMA'd once); the tiny MLP
    is recomputed each of the 4 grid steps and hides under the 3.25 MB bf16
    weight-tile DMA. This keeps the kernel a single launch and correct under
    megacore "parallel" grid sharding.
    """
    # Embedding row gather: idx is scalar-prefetched into SMEM; select the row
    # from the (tiny) resident table with a masked cross-sublane sum.
    row_ids = jax.lax.broadcasted_iota(jnp.int32, (N_NODES, EMBEDDING_DIM), 0)
    emb = jnp.sum(jnp.where(row_ids == idx_ref[0], emb_ref[...], 0.0),
                  axis=0, keepdims=True)                              # (1, E)

    h = jnp.dot(emb, w1_ref[...],
                preferred_element_type=jnp.float32) + b1_ref[...]
    h = jnp.maximum(h, 0.0)
    h = jnp.dot(h, w2_ref[...], preferred_element_type=jnp.float32) + b2_ref[...]
    h = jnp.maximum(h, 0.0)
    h = jnp.dot(h, w3_ref[...], preferred_element_type=jnp.float32) + b3_ref[...]
    h = jnp.maximum(h, 0.0)
    feat = jnp.dot(h, w4_ref[...], preferred_element_type=jnp.float32) + b4_ref[...]

    # Fold the heads bias in: lane HIDDEN_DIM of feat is exactly 0 (zero
    # padding); set it to 1.0 so it selects the bias row of heads_w.
    lane = jax.lax.broadcasted_iota(jnp.int32, (1, HP), 1)
    feat = jnp.where(lane == HIDDEN_DIM, 1.0, feat)

    # Feed bf16 directly to the MXU (f32 accumulation). Two-pass hi/lo split
    # of feat keeps near-f32 accuracy while reusing the SAME resident bf16
    # weight tile — no f32 upcast temporary, no extra HBM traffic.
    f_hi = feat.astype(jnp.bfloat16)
    f_lo = (feat - f_hi.astype(jnp.float32)).astype(jnp.bfloat16)
    w = hw_ref[...]                                                   # bf16
    out_ref[...] = (jnp.dot(f_hi, w, preferred_element_type=jnp.float32)
                    + jnp.dot(f_lo, w, preferred_element_type=jnp.float32))


# ------------------------------ wrapper ------------------------------------
def cnn_hyper_forward(params, idx):
    """Pallas implementation of CNNHyper.forward for a scalar node index."""
    idx_arr = jnp.asarray(idx, dtype=jnp.int32).reshape((1,))
    (w1, b1), (w2, b2), (w3, b3), (w4, b4) = params["mlp"]

    fixed = lambda j, idx_ref: (0, 0)     # blocks that never move (DMA'd once)
    col = lambda j, idx_ref: (0, j)       # column-tiled blocks

    flat = pl.pallas_call(
        hyper_kernel,
        out_shape=jax.ShapeDtypeStruct((1, TOTAL_PAD), jnp.float32),
        grid_spec=pltpu.PrefetchScalarGridSpec(
            num_scalar_prefetch=1,                       # idx -> SMEM
            grid=(TOTAL_PAD // TN,),                     # 4 steps
            in_specs=[
                pl.BlockSpec((N_NODES, EMBEDDING_DIM), fixed),   # full table
                pl.BlockSpec((EMBEDDING_DIM, HP), fixed),
                pl.BlockSpec((1, HP), fixed),
                pl.BlockSpec((HP, HP), fixed),
                pl.BlockSpec((1, HP), fixed),
                pl.BlockSpec((HP, HP), fixed),
                pl.BlockSpec((1, HP), fixed),
                pl.BlockSpec((HP, HP), fixed),
                pl.BlockSpec((1, HP), fixed),
                pl.BlockSpec((HP, TN), col),   # bf16 weight slab (the cost)
            ],
            out_specs=pl.BlockSpec((1, TN), col),
        ),
        compiler_params=pltpu.CompilerParams(
            dimension_semantics=("parallel",)),  # 2 tiles per TC on v7x megacore
    )(idx_arr, params["embedding"], w1, b1, w2, b2, w3, b3, w4, b4,
      params["heads_w"])                                          # (1, TOTAL_PAD)

    flat = flat[0, :TOTAL]

    # Slice + reshape into the OrderedDict (same keys/shapes as PyTorch).
    weights = OrderedDict()
    off = 0
    for name, shape in HEAD_SHAPES.items():
        n = _prod(shape)
        weights[name] = flat[off:off + n].reshape(shape)
        off += n
    return weights


# --------------------------- parameter creation ----------------------------
def init_params(key):
    keys = jax.random.split(key, 64)
    k_iter = iter(keys)

    def lin(in_f, out_f):
        # PyTorch nn.Linear default: U(-1/sqrt(in), 1/sqrt(in)) for W and b.
        bound = 1.0 / (float(in_f) ** 0.5)
        w = jax.random.uniform(next(k_iter), (in_f, out_f),
                               minval=-bound, maxval=bound, dtype=jnp.float32)
        b = jax.random.uniform(next(k_iter), (out_f,),
                               minval=-bound, maxval=bound, dtype=jnp.float32)
        return w, b

    def pad_lin(w, b, pad_in, pad_out):
        in_f, out_f = w.shape
        w = jnp.pad(w, ((0, pad_in - in_f), (0, pad_out - out_f)))
        b = jnp.pad(b, ((0, pad_out - out_f)))[None, :]
        return w, b

    params = {}
    params["embedding"] = jax.random.normal(
        next(k_iter), (N_NODES, EMBEDDING_DIM), dtype=jnp.float32)

    # MLP, zero-padded from hidden=100 to HP=128 (mathematically identical).
    mlp = [pad_lin(*lin(EMBEDDING_DIM, HIDDEN_DIM), EMBEDDING_DIM, HP)]
    for _ in range(N_HIDDEN):
        mlp.append(pad_lin(*lin(HIDDEN_DIM, HIDDEN_DIM), HP, HP))
    params["mlp"] = mlp

    # One Linear head per output tensor; concatenate along the output dim.
    # The bias is folded in as row HIDDEN_DIM (=100) of the weight slab, then
    # everything is pre-padded ONCE at init (rows 101->128, cols TOTAL->
    # TOTAL_PAD) and stored in bf16 (halves the dominant HBM read).
    head_ws, head_bs = [], []
    for shape in HEAD_SHAPES.values():
        w, b = lin(HIDDEN_DIM, _prod(shape))
        head_ws.append(w)
        head_bs.append(b)
    heads_w = jnp.concatenate(head_ws, axis=1)                    # (100, TOTAL)
    heads_b = jnp.concatenate(head_bs, axis=0)[None, :]           # (1, TOTAL)
    heads = jnp.concatenate([heads_w, heads_b], axis=0)           # (101, TOTAL)
    heads = jnp.pad(heads, ((0, HP - HIDDEN_DIM - 1), (0, TOTAL_PAD - TOTAL)))
    params["heads_w"] = heads.astype(jnp.bfloat16)                # (HP, TOTAL_PAD)
    return params


# ----------------------------- pure-JAX reference ---------------------------
def reference_forward(params, idx):
    hp = jax.lax.Precision.HIGHEST
    x = params["embedding"][idx][None, :]
    (w1, b1), (w2, b2), (w3, b3), (w4, b4) = params["mlp"]
    h = jnp.maximum(jnp.dot(x, w1, precision=hp) + b1, 0.0)
    h = jnp.maximum(jnp.dot(h, w2, precision=hp) + b2, 0.0)
    h = jnp.maximum(jnp.dot(h, w3, precision=hp) + b3, 0.0)
    feat = jnp.dot(h, w4, precision=hp) + b4
    feat = feat.at[0, HIDDEN_DIM].set(1.0)        # selects the folded bias row
    flat = jnp.dot(feat, params["heads_w"].astype(jnp.float32),
                   precision=hp)[0, :TOTAL]
    out = OrderedDict()
    off = 0
    for name, shape in HEAD_SHAPES.items():
        n = _prod(shape)
        out[name] = flat[off:off + n].reshape(shape)
        off += n
    return out


# --------------------------------- main -------------------------------------
if __name__ == "__main__":
    key = jax.random.PRNGKey(0)
    params = init_params(key)
    idx = jnp.int32(3)   # scalar node index, as in the PyTorch forward

    weights = cnn_hyper_forward(params, idx)
    jax.block_until_ready(weights)

    ref = reference_forward(params, idx)
    for name in HEAD_SHAPES:
        assert weights[name].shape == ref[name].shape, name
        assert jnp.allclose(weights[name], ref[name], atol=1e-3, rtol=1e-3), name

    print("KERNEL_OK")
</pallas_src>

<mosaic_0001>
module attributes {stable_mosaic.version = 11 : i64} {
  func.func @hyper_kernel(%arg0: i32, %arg1: memref<1xi32, #tpu.memory_space<smem>>, %arg2: memref<10x32xf32, #tpu.memory_space<vmem>>, %arg3: memref<32x128xf32, #tpu.memory_space<vmem>>, %arg4: memref<1x128xf32, #tpu.memory_space<vmem>>, %arg5: memref<128x128xf32, #tpu.memory_space<vmem>>, %arg6: memref<1x128xf32, #tpu.memory_space<vmem>>, %arg7: memref<128x128xf32, #tpu.memory_space<vmem>>, %arg8: memref<1x128xf32, #tpu.memory_space<vmem>>, %arg9: memref<128x128xf32, #tpu.memory_space<vmem>>, %arg10: memref<1x128xf32, #tpu.memory_space<vmem>>, %arg11: memref<128x13312xbf16, #tpu.memory_space<vmem>>, %arg12: memref<1x13312xf32, #tpu.memory_space<vmem>>) attributes {dimension_semantics = [#tpu.dimension_semantics<parallel>], iteration_bounds = array<i64: 4>, scalar_prefetch = 1 : i64, scratch_operands = 0 : i64, tpu.core_type = #tpu.core_type<tc>, window_params = [{pipeline_mode = #tpu.pipeline_mode<synchronous>, transform_indices = @transform_0, window_bounds = array<i64: 10, 32>}, {pipeline_mode = #tpu.pipeline_mode<synchronous>, transform_indices = @transform_1, window_bounds = array<i64: 32, 128>}, {pipeline_mode = #tpu.pipeline_mode<synchronous>, transform_indices = @transform_2, window_bounds = array<i64: 1, 128>}, {pipeline_mode = #tpu.pipeline_mode<synchronous>, transform_indices = @transform_3, window_bounds = array<i64: 128, 128>}, {pipeline_mode = #tpu.pipeline_mode<synchronous>, transform_indices = @transform_4, window_bounds = array<i64: 1, 128>}, {pipeline_mode = #tpu.pipeline_mode<synchronous>, transform_indices = @transform_5, window_bounds = array<i64: 128, 128>}, {pipeline_mode = #tpu.pipeline_mode<synchronous>, transform_indices = @transform_6, window_bounds = array<i64: 1, 128>}, {pipeline_mode = #tpu.pipeline_mode<synchronous>, transform_indices = @transform_7, window_bounds = array<i64: 128, 128>}, {pipeline_mode = #tpu.pipeline_mode<synchronous>, transform_indices = @transform_8, window_bounds = array<i64: 1, 128>}, {transform_indices = @transform_9, window_bounds = array<i64: 128, 13312>}, {transform_indices = @transform_10, window_bounds = array<i64: 1, 13312>}]} {
    %0 = tpu.iota {dimensions = array<i32: 0>} : vector<10x32xi32>
    %c0 = arith.constant 0 : index
    %1 = memref.load %arg1[%c0] : memref<1xi32, #tpu.memory_space<smem>>
    %2 = vector.broadcast %1 : i32 to vector<10x32xi32>
    %3 = arith.cmpi eq, %0, %2 : vector<10x32xi32>
    %c0_0 = arith.constant 0 : index
    %c0_1 = arith.constant 0 : index
    %4 = vector.load %arg2[%c0_0, %c0_1] : memref<10x32xf32, #tpu.memory_space<vmem>>, vector<10x32xf32>
    %cst = arith.constant 0.000000e+00 : f32
    %5 = vector.broadcast %cst : f32 to vector<10x32xf32>
    %6 = arith.select %3, %4, %5 : vector<10x32xi1>, vector<10x32xf32>
    %cst_2 = arith.constant dense<0.000000e+00> : vector<32xf32>
    %7 = vector.multi_reduction <add>, %6, %cst_2 [0] : vector<10x32xf32> to vector<32xf32>
    %8 = vector.shape_cast %7 : vector<32xf32> to vector<1x32xf32>
    %c0_3 = arith.constant 0 : index
    %c0_4 = arith.constant 0 : index
    %9 = vector.load %arg3[%c0_3, %c0_4] : memref<32x128xf32, #tpu.memory_space<vmem>>, vector<32x128xf32>
    %cst_5 = arith.constant dense<0.000000e+00> : vector<1x128xf32>
    %10 = tpu.matmul %8, %9, %cst_5 {dimension_numbers = #tpu.dot_dimension_numbers<[1], [0], [0], [1], [0, 0, 1, 1], [], []>} : vector<1x32xf32>, vector<32x128xf32>, vector<1x128xf32> -> vector<1x128xf32>
    %c0_6 = arith.constant 0 : index
    %c0_7 = arith.constant 0 : index
    %11 = vector.load %arg4[%c0_6, %c0_7] : memref<1x128xf32, #tpu.memory_space<vmem>>, vector<1x128xf32>
    %12 = arith.addf %10, %11 : vector<1x128xf32>
    %cst_8 = arith.constant 0.000000e+00 : f32
    %13 = vector.broadcast %cst_8 : f32 to vector<1x128xf32>
    %14 = arith.maximumf %12, %13 : vector<1x128xf32>
    %c0_9 = arith.constant 0 : index
    %c0_10 = arith.constant 0 : index
    %15 = vector.load %arg5[%c0_9, %c0_10] : memref<128x128xf32, #tpu.memory_space<vmem>>, vector<128x128xf32>
    %cst_11 = arith.constant dense<0.000000e+00> : vector<1x128xf32>
    %16 = tpu.matmul %14, %15, %cst_11 {dimension_numbers = #tpu.dot_dimension_numbers<[1], [0], [0], [1], [0, 0, 1, 1], [], []>} : vector<1x128xf32>, vector<128x128xf32>, vector<1x128xf32> -> vector<1x128xf32>
    %c0_12 = arith.constant 0 : index
    %c0_13 = arith.constant 0 : index
    %17 = vector.load %arg6[%c0_12, %c0_13] : memref<1x128xf32, #tpu.memory_space<vmem>>, vector<1x128xf32>
    %18 = arith.addf %16, %17 : vector<1x128xf32>
    %cst_14 = arith.constant 0.000000e+00 : f32
    %19 = vector.broadcast %cst_14 : f32 to vector<1x128xf32>
    %20 = arith.maximumf %18, %19 : vector<1x128xf32>
    %c0_15 = arith.constant 0 : index
    %c0_16 = arith.constant 0 : index
    %21 = vector.load %arg7[%c0_15, %c0_16] : memref<128x128xf32, #tpu.memory_space<vmem>>, vector<128x128xf32>
    %cst_17 = arith.constant dense<0.000000e+00> : vector<1x128xf32>
    %22 = tpu.matmul %20, %21, %cst_17 {dimension_numbers = #tpu.dot_dimension_numbers<[1], [0], [0], [1], [0, 0, 1, 1], [], []>} : vector<1x128xf32>, vector<128x128xf32>, vector<1x128xf32> -> vector<1x128xf32>
    %c0_18 = arith.constant 0 : index
    %c0_19 = arith.constant 0 : index
    %23 = vector.load %arg8[%c0_18, %c0_19] : memref<1x128xf32, #tpu.memory_space<vmem>>, vector<1x128xf32>
    %24 = arith.addf %22, %23 : vector<1x128xf32>
    %cst_20 = arith.constant 0.000000e+00 : f32
    %25 = vector.broadcast %cst_20 : f32 to vector<1x128xf32>
    %26 = arith.maximumf %24, %25 : vector<1x128xf32>
    %c0_21 = arith.constant 0 : index
    %c0_22 = arith.constant 0 : index
    %27 = vector.load %arg9[%c0_21, %c0_22] : memref<128x128xf32, #tpu.memory_space<vmem>>, vector<128x128xf32>
    %cst_23 = arith.constant dense<0.000000e+00> : vector<1x128xf32>
    %28 = tpu.matmul %26, %27, %cst_23 {dimension_numbers = #tpu.dot_dimension_numbers<[1], [0], [0], [1], [0, 0, 1, 1], [], []>} : vector<1x128xf32>, vector<128x128xf32>, vector<1x128xf32> -> vector<1x128xf32>
    %c0_24 = arith.constant 0 : index
    %c0_25 = arith.constant 0 : index
    %29 = vector.load %arg10[%c0_24, %c0_25] : memref<1x128xf32, #tpu.memory_space<vmem>>, vector<1x128xf32>
    %30 = arith.addf %28, %29 : vector<1x128xf32>
    %31 = tpu.iota {dimensions = array<i32: 1>} : vector<1x128xi32>
    %c100_i32 = arith.constant 100 : i32
    %32 = vector.broadcast %c100_i32 : i32 to vector<1x128xi32>
    %33 = arith.cmpi eq, %31, %32 : vector<1x128xi32>
    %cst_26 = arith.constant 1.000000e+00 : f32
    %34 = vector.broadcast %cst_26 : f32 to vector<1x128xf32>
    %35 = arith.select %33, %34, %30 : vector<1x128xi1>, vector<1x128xf32>
    %36 = arith.truncf %35 : vector<1x128xf32> to vector<1x128xbf16>
    %37 = arith.extf %36 : vector<1x128xbf16> to vector<1x128xf32>
    %38 = arith.subf %35, %37 : vector<1x128xf32>
    %39 = arith.truncf %38 : vector<1x128xf32> to vector<1x128xbf16>
    %c0_27 = arith.constant 0 : index
    %c0_28 = arith.constant 0 : index
    %40 = vector.load %arg11[%c0_27, %c0_28] : memref<128x13312xbf16, #tpu.memory_space<vmem>>, vector<128x13312xbf16>
    %cst_29 = arith.constant dense<0.000000e+00> : vector<1x13312xf32>
    %41 = tpu.matmul %36, %40, %cst_29 {dimension_numbers = #tpu.dot_dimension_numbers<[1], [0], [0], [1], [0, 0, 1, 1], [], []>} : vector<1x128xbf16>, vector<128x13312xbf16>, vector<1x13312xf32> -> vector<1x13312xf32>
    %cst_30 = arith.constant dense<0.000000e+00> : vector<1x13312xf32>
    %42 = tpu.matmul %39, %40, %cst_30 {dimension_numbers = #tpu.dot_dimension_numbers<[1], [0], [0], [1], [0, 0, 1, 1], [], []>} : vector<1x128xbf16>, vector<128x13312xbf16>, vector<1x13312xf32> -> vector<1x13312xf32>
    %43 = arith.addf %41, %42 : vector<1x13312xf32>
    %c0_31 = arith.constant 0 : index
    %c0_32 = arith.constant 0 : index
    %44 = vector.load %arg12[%c0_31, %c0_32] : memref<1x13312xf32, #tpu.memory_space<vmem>>, vector<1x13312xf32>
    tpu.vector_store %arg12[%c0_31, %c0_32], %43 {strides = array<i32>} : memref<1x13312xf32, #tpu.memory_space<vmem>>, vector<1x13312xf32>,
    return
  }
  func.func @transform_0(%arg0: i32, %arg1: memref<1xi32, #tpu.memory_space<smem>>) -> (i32, i32) {
    %c0_i32 = arith.constant 0 : i32
    %c0_i32_0 = arith.constant 0 : i32
    %c0_i32_1 = arith.constant 0 : i32
    return %c0_i32, %c0_i32_0 : i32, i32
  }
  func.func @transform_1(%arg0: i32, %arg1: memref<1xi32, #tpu.memory_space<smem>>) -> (i32, i32) {
    %c0_i32 = arith.constant 0 : i32
    %c0_i32_0 = arith.constant 0 : i32
    %c0_i32_1 = arith.constant 0 : i32
    return %c0_i32, %c0_i32_0 : i32, i32
  }
  func.func @transform_2(%arg0: i32, %arg1: memref<1xi32, #tpu.memory_space<smem>>) -> (i32, i32) {
    %c0_i32 = arith.constant 0 : i32
    %c0_i32_0 = arith.constant 0 : i32
    %c0_i32_1 = arith.constant 0 : i32
    return %c0_i32, %c0_i32_0 : i32, i32
  }
  func.func @transform_3(%arg0: i32, %arg1: memref<1xi32, #tpu.memory_space<smem>>) -> (i32, i32) {
    %c0_i32 = arith.constant 0 : i32
    %c0_i32_0 = arith.constant 0 : i32
    %c0_i32_1 = arith.constant 0 : i32
    return %c0_i32, %c0_i32_0 : i32, i32
  }
  func.func @transform_4(%arg0: i32, %arg1: memref<1xi32, #tpu.memory_space<smem>>) -> (i32, i32) {
    %c0_i32 = arith.constant 0 : i32
    %c0_i32_0 = arith.constant 0 : i32
    %c0_i32_1 = arith.constant 0 : i32
    return %c0_i32, %c0_i32_0 : i32, i32
  }
  func.func @transform_5(%arg0: i32, %arg1: memref<1xi32, #tpu.memory_space<smem>>) -> (i32, i32) {
    %c0_i32 = arith.constant 0 : i32
    %c0_i32_0 = arith.constant 0 : i32
    %c0_i32_1 = arith.constant 0 : i32
    return %c0_i32, %c0_i32_0 : i32, i32
  }
  func.func @transform_6(%arg0: i32, %arg1: memref<1xi32, #tpu.memory_space<smem>>) -> (i32, i32) {
    %c0_i32 = arith.constant 0 : i32
    %c0_i32_0 = arith.constant 0 : i32
    %c0_i32_1 = arith.constant 0 : i32
    return %c0_i32, %c0_i32_0 : i32, i32
  }
  func.func @transform_7(%arg0: i32, %arg1: memref<1xi32, #tpu.memory_space<smem>>) -> (i32, i32) {
    %c0_i32 = arith.constant 0 : i32
    %c0_i32_0 = arith.constant 0 : i32
    %c0_i32_1 = arith.constant 0 : i32
    return %c0_i32, %c0_i32_0 : i32, i32
  }
  func.func @transform_8(%arg0: i32, %arg1: memref<1xi32, #tpu.memory_space<smem>>) -> (i32, i32) {
    %c0_i32 = arith.constant 0 : i32
    %c0_i32_0 = arith.constant 0 : i32
    %c0_i32_1 = arith.constant 0 : i32
    return %c0_i32, %c0_i32_0 : i32, i32
  }
  func.func @transform_9(%arg0: i32, %arg1: memref<1xi32, #tpu.memory_space<smem>>) -> (i32, i32) {
    %c0_i32 = arith.constant 0 : i32
    %c0_i32_0 = arith.constant 0 : i32
    return %c0_i32, %arg0 : i32, i32
  }
  func.func @transform_10(%arg0: i32, %arg1: memref<1xi32, #tpu.memory_space<smem>>) -> (i32, i32) {
    %c0_i32 = arith.constant 0 : i32
    %c0_i32_0 = arith.constant 0 : i32
    return %c0_i32, %arg0 : i32, i32
  }
}

</mosaic_0001>

<bundles_post_ra>
// kernel: tpu_custom_call.1
= control target key start
LH: loop header
LB: loop body
LE: loop exit
PB: predicated region body
PF: predicated region fallthrough
CT: control target
= control target key end

     0   :  { %s17904_s0 = inlined_call_operand.<no memory space> [shape: s32[1], index: 0, kind: input, shape index: {}]   ;;  %s17905_s1 = inlined_call_operand.hbm [shape: f32[10,32], index: 1, kind: input, shape index: {}]   ;;  %s17906_s2 = inlined_call_operand.hbm [shape: f32[32,128], index: 2, kind: input, shape index: {}]   ;;  %s17907_s3 = inlined_call_operand.hbm [shape: f32[1,128], index: 3, kind: input, shape index: {}]   ;;  %s17908_s4 = inlined_call_operand.hbm [shape: f32[128,128], index: 4, kind: input, shape index: {}]   ;;  %s17909_s5 = inlined_call_operand.hbm [shape: f32[1,128], index: 5, kind: input, shape index: {}]   ;;  %s17910_s6 = inlined_call_operand.hbm [shape: f32[128,128], index: 6, kind: input, shape index: {}]   ;;  %s17911_s7 = inlined_call_operand.hbm [shape: f32[1,128], index: 7, kind: input, shape index: {}]   ;;  %s17912_s8 = inlined_call_operand.hbm [shape: f32[128,128], index: 8, kind: input, shape index: {}]   ;;  %s17913_s9 = inlined_call_operand.hbm [shape: f32[1,128], index: 9, kind: input, shape index: {}]   ;;  %s17914_s10 = inlined_call_operand.hbm [shape: bf16[128,53248], index: 10, kind: input, shape index: {}]   ;;  %s17915_s11 = inlined_call_operand.hbm [shape: f32[1,53248], index: 11, kind: output, shape index: {}]  }
   0x1   :  { %18703 = sst [smem:[#allocation810_spill]] %s17905_s1 }
   0x2   :  { %18704 = sst [smem:[#allocation811_spill]] %s17906_s2 }
   0x3   :  { %18705 = sst [smem:[#allocation812_spill]] %s17915_s11 }
   0x4   :  { %16 = sst [smem:[#allocation3]] %s17904_s0 }
   0x5   :  { %17 = vsyncpa [#allocation5], 0 }
   0x6   :  { %18 = vsyncpa [#allocation8], 0 }
   0x7   :  { %19 = vsyncpa [#allocation11], 0 }
   0x8   :  { %20 = vsyncpa [#allocation14], 0 }
   0x9   :  { %21 = vsyncpa [#allocation17], 0 }
   0xa   :  { %22 = vsyncpa [#allocation20], 0 }
   0xb   :  { %24 = vsyncpa [#allocation20 + $0x1], 0 }
   0xc   :  { %25 = vsyncpa [#allocation6], 0 }
   0xd   :  { %27 = vsyncpa [#allocation6 + $0x1], 0  ;;  %s12997_s19 = smov 0   ;;  %s12999_s20 = smov 0  }
   0xe   :  { %s13001_s21 = smov 0   ;;  %s13003_s22 = smov 0  }
   0xf LB: > { %s13018_s0 = sadd.s32 4294967295, %s12911_s22   ;;  %p11075_p0 = scmp.ge.s32.totalorder %s12911_s22, 1  ;;  %s12911_s22 = sphi %s13003_s22, %s20296_s22   ;;  %s12907_s21 = sphi %s13001_s21, %s20295_s21   ;;  %s12903_s20 = sphi %s12999_s20, %s20294_s20   ;;  %s12899_s19 = sphi %s12997_s19, %s20293_s19  }
  0x10   : > { %p17918_p1 = scmp.eq.s32.totalorder %s13018_s0, 0  ;;  %p279_p2 = scmp.lt.s32.totalorder %s12911_s22, 5 }
  0x11   : > { %s12913_s24 = smov [#allocation7]   ;;  %s12914_s26 = smov [#allocation10]  }
  0x12   : > { %p13023_p3 = pnand %p11075_p0, %p279_p2  ;;  %s304_s25 = sshll.u32 %s12913_s24, 4  ;;  %s13027_s25 = int_to_ptr.vmem [resolvable:$true] %s304_s25 }
  0x13   : > { %s328_s27 = sshll.u32 %s12914_s26, 4  ;;  %s12915_s29 = smov [#allocation13]   ;;  %s13037_s27 = int_to_ptr.vmem [resolvable:$true] %s328_s27 }
  0x14   : > { %s18706_s23 = scalar_select %p13023_p3, 1, 0 }
  0x15   : > { %p12436_p4 = pneg %p13023_p3  ;;  %s352_s30 = sshll.u32 %s12915_s29, 4  ;;  %s13039_s30 = int_to_ptr.vmem [resolvable:$true] %s352_s30 }
  0x16   : > { %18707 = sst [smem:[#allocation29_spill]] %s18706_s23  ;;  %s18709_s2 = sld [smem:[#allocation811_spill]] }
  0x17   : > { %p13033_p5 = pnand %p12436_p4, %p17918_p1 }
  0x19   : > { %p13049_p7 = pneg %p13033_p5 }
  0x1c   : > { %s12543_s14 = scalar_lea.hbm %s18709_s2, 512 }
  0x1d   : > { %p12544_p6 = scmp.ne.s32.totalorder %s18709_s2, %s12543_s14  ;;  %p12550_p10 = scmp.lt.u32.totalorder %s12543_s14, %s18709_s2 }
  0x1f   : > { %p12546_p8 = pnand %p13049_p7, %p12544_p6 }
  0x21   : > { %p12547_p9 = pneg %p12546_p8 }
  0x23   : > { %p12552_p11 = pnand %p12550_p10, %p12547_p9 }
  0x25   : > { %12555 = shalt.err (!%p12552_p11)
}
  0x26   : > { %s12556_s26 = scalar_lea.vmem %s13027_s25, 512  ;;  %p12564_p2 = scmp.lt.s32.totalorder %s13027_s25, %s13027_s25 }
  0x27   : > { %p12557_p12 = scmp.ne.s32.totalorder %s13027_s25, %s12556_s26  ;;  %p12565_p4 = scmp.lt.s32.totalorder %s12556_s26, %s12556_s26 }
  0x29   : > { %p12559_p13 = pnand %p12557_p12, %p13049_p7  ;;  %p12566_p6 = por %p12565_p4, %p12564_p2 }
  0x2b   : > { %p12560_p0 = pneg %p12559_p13 }
  0x2d   : > { %p12567_p8 = pnand %p12566_p6, %p12560_p0 }
  0x2f   : > { %12570 = shalt.err (!%p12567_p8)
}
  0x30   : > { %s12916_s29 = smov 128   ;;  %s12917_s12 = smov 8  }
  0x31   : > { %12442 = dma.hbm_to_vmem [thread:$0]  (!%p13033_p5), %s18709_s2, 512, %s13027_s25, [#allocation8], %s12916_s29, %s12916_s29, %s12917_s12  }
  0x32   : > { %s12571_s18 = scalar_lea.hbm %s17908_s4, 2048 }
  0x33   : > { %p12572_p9 = scmp.ne.s32.totalorder %s17908_s4, %s12571_s18  ;;  %p12578_p12 = scmp.lt.u32.totalorder %s12571_s18, %s17908_s4 }
  0x35   : > { %p12574_p10 = pnand %p12572_p9, %p13049_p7 }
  0x37   : > { %p12575_p11 = pneg %p12574_p10 }
  0x39   : > { %p12580_p13 = pnand %p12578_p12, %p12575_p11 }
  0x3b   : > { %12583 = shalt.err (!%p12580_p13)
}
  0x3c   : > { %s12584_s25 = scalar_lea.vmem %s13037_s27, 2048  ;;  %p12592_p6 = scmp.lt.s32.totalorder %s13037_s27, %s13037_s27 }
  0x3d   : > { %p12585_p0 = scmp.ne.s32.totalorder %s13037_s27, %s12584_s25  ;;  %p12593_p8 = scmp.lt.s32.totalorder %s12584_s25, %s12584_s25 }
  0x3f   : > { %p12587_p2 = pnand %p12585_p0, %p13049_p7  ;;  %p12594_p9 = por %p12593_p8, %p12592_p6 }
  0x41   : > { %p12588_p4 = pneg %p12587_p2 }
  0x43   : > { %p12595_p10 = pnand %p12594_p9, %p12588_p4 }
  0x45   : > { %12598 = shalt.err (!%p12595_p10)
}
  0x46   : > { %12448 = dma.hbm_to_vmem [thread:$0]  (!%p13033_p5), %s17908_s4, 2048, %s13037_s27, [#allocation11], %s12916_s29, %s12916_s29, %s12917_s12  }
  0x47   : > { %s12599_s15 = scalar_lea.hbm %s17910_s6, 2048 }
  0x48   : > { %p12600_p11 = scmp.ne.s32.totalorder %s17910_s6, %s12599_s15  ;;  %p12606_p0 = scmp.lt.u32.totalorder %s12599_s15, %s17910_s6 }
  0x4a   : > { %p12602_p12 = pnand %p12600_p11, %p13049_p7 }
  0x4c   : > { %p12603_p13 = pneg %p12602_p12 }
  0x4e   : > { %p12608_p2 = pnand %p12606_p0, %p12603_p13 }
  0x50   : > { %12611 = shalt.err (!%p12608_p2)
}
  0x51   : > { %s12612_s27 = scalar_lea.vmem %s13039_s30, 2048  ;;  %p12620_p9 = scmp.lt.s32.totalorder %s13039_s30, %s13039_s30 }
  0x52   : > { %p12613_p4 = scmp.ne.s32.totalorder %s13039_s30, %s12612_s27  ;;  %p12621_p10 = scmp.lt.s32.totalorder %s12612_s27, %s12612_s27 }
  0x54   : > { %p12615_p6 = pnand %p12613_p4, %p13049_p7  ;;  %p12622_p11 = por %p12621_p10, %p12620_p9 }
  0x56   : > { %p12616_p8 = pneg %p12615_p6 }
  0x58   : > { %p12623_p12 = pnand %p12622_p11, %p12616_p8 }
  0x5a   : > { %12626 = shalt.err (!%p12623_p12)
}
  0x5b   : > { %12454 = dma.hbm_to_vmem [thread:$0]  (!%p13033_p5), %s17910_s6, 2048, %s13039_s30, [#allocation14], %s12916_s29, %s12916_s29, %s12917_s12  }
  0x5c   : > { %s12918_s23 = smov [#allocation16]   ;;  %s12919_s14 = smov [#allocation4]  }
  0x5d   : > { %s376_s13 = sshll.u32 %s12918_s23, 4  ;;  %s291_s15 = sshll.u32 %s12919_s14, 4  ;;  %s377_s13 = int_to_ptr.vmem [resolvable:$true] %s376_s13  ;;  %s292_s15 = int_to_ptr.vmem [resolvable:$true] %s291_s15 }
  0x5e   : > { %s12627_s24 = scalar_lea.hbm %s17912_s8, 2048 }
  0x5f   : > { %p12628_p13 = scmp.ne.s32.totalorder %s17912_s8, %s12627_s24  ;;  %p12634_p4 = scmp.lt.u32.totalorder %s12627_s24, %s17912_s8 }
  0x61   : > { %p12630_p0 = pnand %p12628_p13, %p13049_p7 }
  0x63   : > { %p12631_p2 = pneg %p12630_p0 }
  0x65   : > { %p12636_p6 = pnand %p12634_p4, %p12631_p2 }
  0x67   : > { %12639 = shalt.err (!%p12636_p6)
}
  0x68   : > { %s12640_s30 = scalar_lea.vmem %s377_s13, 2048  ;;  %p12648_p11 = scmp.lt.s32.totalorder %s377_s13, %s377_s13 }
  0x69   : > { %p12641_p8 = scmp.ne.s32.totalorder %s377_s13, %s12640_s30  ;;  %p12649_p12 = scmp.lt.s32.totalorder %s12640_s30, %s12640_s30 }
  0x6b   : > { %p12643_p9 = pnand %p12641_p8, %p13049_p7  ;;  %p12650_p1 = por %p12649_p12, %p12648_p11 }
  0x6d   : > { %p12644_p10 = pneg %p12643_p9 }
  0x6f   : > { %p12651_p3 = pnand %p12650_p1, %p12644_p10 }
  0x71   : > { %12654 = shalt.err (!%p12651_p3)
}
  0x72   : > { %12460 = dma.hbm_to_vmem [thread:$0]  (!%p13033_p5), %s17912_s8, 2048, %s377_s13, [#allocation17], %s12916_s29, %s12916_s29, %s12917_s12  }
  0x73   : > { %s18711_s1 = sld [smem:[#allocation810_spill]] }
  0x79   : > { %s12655_s16 = scalar_lea.hbm %s18711_s1, 256 }
  0x7a   : > { %p12656_p1 = scmp.ne.s32.totalorder %s18711_s1, %s12655_s16  ;;  %p12662_p0 = scmp.lt.u32.totalorder %s12655_s16, %s18711_s1 }
  0x7c   : > { %p12658_p3 = pnand %p12656_p1, %p13049_p7 }
  0x7e   : > { %p12659_p13 = pneg %p12658_p3 }
  0x80   : > { %p12664_p2 = pnand %p12662_p0, %p12659_p13 }
  0x82   : > { %12667 = shalt.err (!%p12664_p2)
}
  0x83   : > { %s12668_s25 = scalar_lea.vmem %s292_s15, 256  ;;  %p12676_p9 = scmp.lt.s32.totalorder %s292_s15, %s292_s15 }
  0x84   : > { %p12669_p4 = scmp.ne.s32.totalorder %s292_s15, %s12668_s25  ;;  %p12677_p10 = scmp.lt.s32.totalorder %s12668_s25, %s12668_s25 }
  0x86   : > { %p12671_p6 = pnand %p12669_p4, %p13049_p7  ;;  %p12678_p11 = por %p12677_p10, %p12676_p9 }
  0x88   : > { %p12672_p8 = pneg %p12671_p6 }
  0x8a   : > { %p12679_p12 = pnand %p12678_p11, %p12672_p8 }
  0x8c   : > { %12682 = shalt.err (!%p12679_p12)
}
  0x8d   : > { %12439 = dma.hbm_to_vmem [thread:$0]  (!%p13033_p5), %s18711_s1, 256, %s292_s15, [#allocation5], %s12916_s29, %s12916_s29, %s12917_s12  }
  0x8e   : > { %s12920_s2 = smov [#allocation9]   ;;  %s12921_s23 = smov [#allocation12]  }
  0x8f   : > { %s318_s11 = sshll.u32 %s12920_s2, 4  ;;  %s342_s14 = sshll.u32 %s12921_s23, 4  ;;  %s319_s11 = int_to_ptr.vmem [resolvable:$true] %s318_s11  ;;  %s343_s14 = int_to_ptr.vmem [resolvable:$true] %s342_s14 }
  0x90   : > { %s12683_s24 = scalar_lea.hbm %s17907_s3, 16 }
  0x91   : > { %p12684_p1 = scmp.ne.s32.totalorder %s17907_s3, %s12683_s24  ;;  %p12690_p0 = scmp.lt.u32.totalorder %s12683_s24, %s17907_s3 }
  0x93   : > { %p12686_p3 = pnand %p12684_p1, %p13049_p7 }
  0x95   : > { %p12687_p13 = pneg %p12686_p3 }
  0x97   : > { %p12692_p2 = pnand %p12690_p0, %p12687_p13 }
  0x99   : > { %12695 = shalt.err (!%p12692_p2)
}
  0x9a   : > { %s12696_s29 = scalar_lea.vmem %s319_s11, 16  ;;  %s12703_s12 = scalar_lea.vmem %s319_s11, 32 }
  0x9b   : > { %p12697_p4 = scmp.ne.s32.totalorder %s319_s11, %s12696_s29  ;;  %p12704_p9 = scmp.lt.s32.totalorder %s319_s11, %s319_s11 }
  0x9c   : > { %p12705_p10 = scmp.lt.s32.totalorder %s12703_s12, %s12696_s29 }
  0x9d   : > { %p12699_p6 = pnand %p12697_p4, %p13049_p7 }
  0x9e   : > { %p12706_p11 = por %p12705_p10, %p12704_p9 }
  0x9f   : > { %p12700_p8 = pneg %p12699_p6 }
  0xa1   : > { %p12707_p12 = pnand %p12706_p11, %p12700_p8 }
  0xa3   : > { %12710 = shalt.err (!%p12707_p12)
}
  0xa4   : > { %12445 = dma.hbm_to_vmem [thread:$0]  (!%p13033_p5), %s17907_s3, 16, %s319_s11, [#allocation8]  }
  0xa5   : > { %s12711_s16 = scalar_lea.hbm %s17909_s5, 16 }
  0xa6   : > { %p12712_p1 = scmp.ne.s32.totalorder %s17909_s5, %s12711_s16  ;;  %p12718_p0 = scmp.lt.u32.totalorder %s12711_s16, %s17909_s5 }
  0xa8   : > { %p12714_p3 = pnand %p12712_p1, %p13049_p7 }
  0xaa   : > { %p12715_p13 = pneg %p12714_p3 }
  0xac   : > { %p12720_p2 = pnand %p12718_p0, %p12715_p13 }
  0xae   : > { %12723 = shalt.err (!%p12720_p2)
}
  0xaf   : > { %s12724_s25 = scalar_lea.vmem %s343_s14, 16  ;;  %s12731_s11 = scalar_lea.vmem %s343_s14, 32 }
  0xb0   : > { %p12725_p4 = scmp.ne.s32.totalorder %s343_s14, %s12724_s25  ;;  %p12732_p9 = scmp.lt.s32.totalorder %s343_s14, %s343_s14 }
  0xb1   : > { %p12733_p10 = scmp.lt.s32.totalorder %s12731_s11, %s12724_s25 }
  0xb2   : > { %p12727_p6 = pnand %p12725_p4, %p13049_p7 }
  0xb3   : > { %p12734_p11 = por %p12733_p10, %p12732_p9 }
  0xb4   : > { %p12728_p8 = pneg %p12727_p6 }
  0xb6   : > { %p12735_p12 = pnand %p12734_p11, %p12728_p8 }
  0xb8   : > { %12738 = shalt.err (!%p12735_p12)
}
  0xb9   : > { %12451 = dma.hbm_to_vmem [thread:$0]  (!%p13033_p5), %s17909_s5, 16, %s343_s14, [#allocation11]  }
  0xba   : > { %s12922_s12 = smov [#allocation15]   ;;  %s12923_s30 = smov [#allocation18]  }
  0xbb   : > { %s366_s15 = sshll.u32 %s12922_s12, 4  ;;  %s390_s2 = sshll.u32 %s12923_s30, 4  ;;  %s367_s15 = int_to_ptr.vmem [resolvable:$true] %s366_s15  ;;  %s391_s2 = int_to_ptr.vmem [resolvable:$true] %s390_s2 }
  0xbc   : > { %s12739_s18 = scalar_lea.hbm %s17911_s7, 16 }
  0xbd   : > { %p12740_p1 = scmp.ne.s32.totalorder %s17911_s7, %s12739_s18  ;;  %p12746_p0 = scmp.lt.u32.totalorder %s12739_s18, %s17911_s7 }
  0xbf   : > { %p12742_p3 = pnand %p12740_p1, %p13049_p7 }
  0xc1   : > { %p12743_p13 = pneg %p12742_p3 }
  0xc3   : > { %p12748_p2 = pnand %p12746_p0, %p12743_p13 }
  0xc5   : > { %12751 = shalt.err (!%p12748_p2)
}
  0xc6   : > { %s12752_s14 = scalar_lea.vmem %s367_s15, 16  ;;  %s12759_s11 = scalar_lea.vmem %s367_s15, 32 }
  0xc7   : > { %p12753_p4 = scmp.ne.s32.totalorder %s367_s15, %s12752_s14  ;;  %p12760_p9 = scmp.lt.s32.totalorder %s367_s15, %s367_s15 }
  0xc8   : > { %p12761_p10 = scmp.lt.s32.totalorder %s12759_s11, %s12752_s14 }
  0xc9   : > { %p12755_p6 = pnand %p12753_p4, %p13049_p7 }
  0xca   : > { %p12762_p11 = por %p12761_p10, %p12760_p9 }
  0xcb   : > { %p12756_p8 = pneg %p12755_p6 }
  0xcd   : > { %p12763_p12 = pnand %p12762_p11, %p12756_p8 }
  0xcf   : > { %12766 = shalt.err (!%p12763_p12)
}
  0xd0   : > { %12457 = dma.hbm_to_vmem [thread:$0]  (!%p13033_p5), %s17911_s7, 16, %s367_s15, [#allocation14]  }
  0xd1   : > { %s12767_s23 = scalar_lea.hbm %s17913_s9, 16 }
  0xd2   : > { %p12768_p1 = scmp.ne.s32.totalorder %s17913_s9, %s12767_s23  ;;  %p12774_p0 = scmp.lt.u32.totalorder %s12767_s23, %s17913_s9 }
  0xd4   : > { %p12770_p3 = pnand %p12768_p1, %p13049_p7 }
  0xd6   : > { %p12771_p13 = pneg %p12770_p3 }
  0xd8   : > { %p12776_p2 = pnand %p12774_p0, %p12771_p13 }
  0xda   : > { %12779 = shalt.err (!%p12776_p2)
}
  0xdb   : > { %s12780_s27 = scalar_lea.vmem %s391_s2, 16  ;;  %s12787_s15 = scalar_lea.vmem %s391_s2, 32 }
  0xdc   : > { %p12781_p4 = scmp.ne.s32.totalorder %s391_s2, %s12780_s27  ;;  %p12788_p9 = scmp.lt.s32.totalorder %s391_s2, %s391_s2 }
  0xdd   : > { %p12789_p10 = scmp.lt.s32.totalorder %s12787_s15, %s12780_s27 }
  0xde   : > { %p12783_p6 = pnand %p12781_p4, %p13049_p7 }
  0xdf   : > { %p12790_p11 = por %p12789_p10, %p12788_p9 }
  0xe0   : > { %p12784_p8 = pneg %p12783_p6 }
  0xe2   : > { %p12791_p12 = pnand %p12790_p11, %p12784_p8 }
  0xe4   : > { %12794 = shalt.err (!%p12791_p12)
}
  0xe5   : > { %12463 = dma.hbm_to_vmem [thread:$0]  (!%p13033_p5), %s17913_s9, 16, %s391_s2, [#allocation17]  }
  0xe6   : > { %s11074_s17 = sadd.s32 4294967294, %s12911_s22   ;;  %s13241_s28 = sadd.s32 1, %s12911_s22  }
  0xe7   : > { %s229_s11 = sadd.s32 1, %s12907_s21  ;;  %s226_s13 = ssub.s32 %s12911_s22, %s13241_s28 }
  0xe8   : > { %p236_p7 = scmp.ne.s32.totalorder %s12907_s21, %s12903_s20  ;;  %p227_p1 = scmp.eq.s32.totalorder %s226_s13, 0 }
  0xe9   : > { %p237_p3 = scmp.eq.s32.totalorder %s12911_s22, 0  ;;  %p242_p13 = scmp.ne.s32.totalorder %s12903_s20, %s12899_s19 }
  0xea   : > { %p266_p0 = scmp.eq.s32.totalorder %s13018_s0, 3  ;;  %p18712_p4 = scmp.eq.s32.totalorder %s13018_s0, 0 }
  0xeb   : > { %s13253_s29 = scalar_select %p227_p1, %s12907_s21, %s229_s11  }
  0xec   : > { %p238_p2 = por %p237_p3, %p236_p7  ;;  %p13257_p6 = por %p18712_p4, %p242_p13 }
  0xed   : > { %p13261_p5 = por %p266_p0, %p236_p7  ;;  %p272_p8 = scmp.eq.s32.totalorder %s11074_s17, 3 }
  0xee   : > { %p12481_p9 = scmp.lt.s32.totalorder %s12911_s22, 4  ;;  %s401_s30 = sand.u32 1, %s12907_s21  }
  0xef   : > { %s18714_s2 = scalar_select %p13261_p5, 1, 0 }
  0xf0   : > { %p13267_p10 = por %p272_p8, %p242_p13  ;;  %s12393_s16 = smul.u32 6656, %s401_s30 }
  0xf1   : > { %p13271_p11 = pnand %p12481_p9, %p238_p2  ;;  %s11933_s24 = smul.u32 6656, %s12911_s22 }
  0xf2   : > { %s18715_s23 = scalar_select %p13267_p10, 1, 0 }
  0xf3   : > { %s13279_s15 = scalar_lea.hbm %s17914_s10, %s11933_s24  ;;  %s405_s25 = scalar_lea.vmem [#allocation19], %s12393_s16 }
  0xf4   : > { %s412_s14 = sshll.u32 %s405_s25, 4  ;;  %s13283_s17 = scalar_lea.sflag [#allocation20], %s401_s30  ;;  %s13281_s14 = int_to_ptr.vmem [resolvable:$true] %s412_s14 }
  0xf5   : > { %s12795_s11 = scalar_lea.hbm %s13279_s15, 106496  ;;  %p12797_p7 = pneg %p13271_p11 }
  0xf6   : > { %p12796_p12 = scmp.ne.s32.totalorder %s13279_s15, %s12795_s11  ;;  %s12800_s26 = scalar_lea.hbm %s17914_s10, 425984 }
  0xf7   : > { %p12801_p13 = scmp.lt.u32.totalorder %s13279_s15, %s17914_s10  ;;  %p12802_p0 = scmp.lt.u32.totalorder %s12800_s26, %s12795_s11 }
  0xf8   : > { %p12798_p1 = pnand %p12797_p7, %p12796_p12  ;;  %p12804_p4 = scmp.lt.u32.totalorder %s12795_s11, %s13279_s15 }
  0xf9   : > { %p12803_p2 = por %p12802_p0, %p12801_p13 }
  0xfa   : > { %p12799_p3 = pneg %p12798_p1 }
  0xfb   : > { %p12805_p8 = por %p12804_p4, %p12803_p2 }
  0xfd   : > { %p12806_p9 = pnand %p12805_p8, %p12799_p3 }
  0xff   : > { %12809 = shalt.err (!%p12806_p9)
}
 0x100   : > { %s12810_s30 = scalar_lea.vmem %s13281_s14, 106496  ;;  %s12924_s16 = smov [#allocation19]  }
 0x101   : > { %p12811_p12 = scmp.ne.s32.totalorder %s13281_s14, %s12810_s30  ;;  %s12815_s25 = sshll.u32 %s12924_s16, 4  ;;  %s12816_s25 = int_to_ptr.vmem [resolvable:$false] %s12815_s25 }
 0x102   : > { %s12817_s1 = scalar_lea.vmem %s12816_s25, 212992  ;;  %p12818_p5 = scmp.lt.s32.totalorder %s13281_s14, %s12816_s25 }
 0x103   : > { %p12813_p1 = pnand %p12811_p12, %p12797_p7  ;;  %p12819_p13 = scmp.lt.s32.totalorder %s12817_s1, %s12810_s30 }
 0x105   : > { %p12814_p10 = pneg %p12813_p1  ;;  %p12820_p0 = por %p12819_p13, %p12818_p5 }
 0x107   : > { %p12821_p2 = pnand %p12820_p0, %p12814_p10 }
 0x109   : > { %12824 = shalt.err (!%p12821_p2)
}
 0x10a   : > { %s12925_s11 = smov 26624   ;;  %s12926_s13 = smov 6656  }
 0x10b   : > { %s12927_s24 = smov 416   ;;  %s18717_s26 = sld [smem:[#allocation29_spill]] }
 0x10c   : > { %12467 = dma.hbm_to_vmem [thread:$0]  (!%p13271_p11), %s13279_s15, 106496, %s13281_s14, %s13283_s17, %s12925_s11, %s12926_s13, %s12927_s24  }
 0x111   : > { %p18718_p7 = scmp.ne.s32.totalorder %s18717_s26, 0 }
 0x113   : > { %424 = sbr.rel (%p18718_p7) target bundleno = 3066 (0xbfa), region = 60 }
 0x11a   : > { %p18719_p3 = scmp.eq.s32.totalorder %s13018_s0, 0 }
 0x11c   : > { %12870 = dma.done.wait (%p18719_p3), [#allocation5], 256   ;;  %p18720_p4 = pmov %p18719_p3 }
 0x11d   : > { %p18721_p5 = pmov %p18719_p3 }
 0x11e   : > { %12872 = vsyncadd (%p18720_p4), [#allocation5], 4294967040 }
 0x11f   : > { %12874 = dma.done.wait (%p18721_p5), [#allocation8], 528   ;;  %p18722_p10 = pmov %p18719_p3 }
 0x120   : > { %p18723_p8 = pmov %p18719_p3 }
 0x121   : > { %12876 = vsyncadd (%p18722_p10), [#allocation8], 4294966768 }
 0x122   : > { %12878 = dma.done.wait (%p18723_p8), [#allocation11], 2064   ;;  %p18724_p11 = pmov %p18719_p3 }
 0x123   : > { %p18725_p9 = pmov %p18719_p3 }
 0x124   : > { %12880 = vsyncadd (%p18724_p11), [#allocation11], 4294965232 }
 0x125   : > { %12882 = dma.done.wait (%p18725_p9), [#allocation14], 2064   ;;  %p18726_p12 = pmov %p18719_p3 }
 0x126   : > { %p18727_p1 = pmov %p18719_p3 }
 0x127   : > { %12884 = vsyncadd (%p18726_p12), [#allocation14], 4294965232 }
 0x128   : > { %12886 = dma.done.wait (%p18727_p1), [#allocation17], 2064   ;;  %p18728_p13 = pmov %p18727_p1 }
 0x129   : > { %s13334_s18 = sand.u32 1, %s12903_s20  }
 0x12a   : > { %12888 = vsyncadd (%p18728_p13), [#allocation17], 4294965232  ;;  %s12394_s15 = smul.u32 6656, %s13334_s18  ;;  %s463_s14 = scalar_lea.sflag [#allocation20], %s13334_s18 }
 0x12c   : > { %s13338_s17 = scalar_lea.vmem [#allocation19], %s12394_s15 }
 0x12d   : > { %12890 = dma.done.wait (%p13257_p6), %s463_s14, 106496  }
 0x12e   : > { %12892 = vsyncadd (%p13257_p6), %s463_s14, 4294860800  ;;  %v506_v0 = vlaneseq  ;;  %v12928_v1 = vmov 0.0|0.0   ;;  %vm12929_vm0 = vmmov 0   ;;  %v12930_v2 = vmov 0.0   ;;  %s509_s27 = sld [smem:[#allocation3]]  ;;  %v528_v5 = vld [vmem:[#allocation7] sm:$0xff] }
 0x12f   : > { %12107 = vmatprep.subr.bf16.mxu0 %v12928_v1  ;;  %11999 = vmatprep.mubr.msk.f32.mxu0 %vm12929_vm0, %v12930_v2  ;;  %v529_v6 = vld [vmem:[#allocation7 + $0x8] sm:$0xff]  ;;  %v530_v7 = vld [vmem:[#allocation7 + $0x10] sm:$0xff]  ;;  %vm517_vm1 = vcmask 261120   ;;  %vm519_vm2 = vcmask 254976   ;;  %v531_v10 = vld [vmem:[#allocation7 + $0x18] sm:$0xff]  ;;  %s12395_s12 = smul.u32 104, %s13334_s18 }
 0x130   : > { %v13348_v3 = vshrl.u32 %v506_v0, 7  ;;  %12113 = vmatprep.subr.bf16.mxu1 %v12928_v1  ;;  %12034 = vmatprep.mubr.msk.f32.mxu1 %vm12929_vm0, %v12930_v2  ;;  %v12108_v9 = vpack.c.bf16 %v529_v6, %v528_v5  ;;  %v513_v11 = vld [vmem:[#allocation4] sm:$0xff]  ;;  %v514_v12 = vld [vmem:[#allocation4 + $0x8] sm:$0x3]  ;;  %v607_v15 = vld [vmem:[#allocation10] sm:$0xff]  ;;  %v12111_v18 = vpack.c.bf16 %v531_v10, %v530_v7  ;;  %s11934_s16 = smul.u32 1664, %s13018_s0 }
 0x131   : > { %v608_v16 = vld [vmem:[#allocation10 + $0x8] sm:$0xff]  ;;  %v609_v17 = vld [vmem:[#allocation10 + $0x10] sm:$0xff]  ;;  %v610_v22 = vld [vmem:[#allocation10 + $0x18] sm:$0xff]  ;;  %s17157_s30 = scalar_lea.vmem [#allocation21], %s12395_s12  ;;  %s20290_s13 = sld [smem:[#allocation812_spill]] }
 0x132   : > { %18729 = vst [vmem:[#allocation30_spill] sm:$0xff] %v13348_v3  ;;  %v508_v4 = vadd.s32 8, %v13348_v3  ;;  %12109 = vmatpush3.bf16.msra.mxu0 %v12108_v9  ;;  %v12114_v21 = vpack.c.bf16 %v608_v16, %v607_v15  ;;  %v12117_v24 = vpack.c.bf16 %v610_v22, %v609_v17  ;;  %v611_v26 = vld [vmem:[#allocation10 + $0x20] sm:$0xff]  ;;  %v612_v27 = vld [vmem:[#allocation10 + $0x28] sm:$0xff]  ;;  %v613_v31 = vld [vmem:[#allocation10 + $0x30] sm:$0xff]  ;;  %s10916_s25 = sshll.u32 %s17157_s30, 4  ;;  %s17862_s25 = int_to_ptr.vmem [resolvable:$true] %s10916_s25 }
 0x133   : > { %12110 = vmatprep.subr.bf16.mxu0 %v12928_v1  ;;  %v12120_v29 = vpack.c.bf16 %v612_v27, %v611_v26  ;;  %v614_v32 = vld [vmem:[#allocation10 + $0x38] sm:$0xff]  ;;  %v615_v36 = vld [vmem:[#allocation10 + $0x40] sm:$0xff]  ;;  %v616_v37 = vld [vmem:[#allocation10 + $0x48] sm:$0xff]  ;;  %s10902_s26 = scalar_lea.sflag [#allocation6], %s13334_s18  ;;  %s12825_s15 = scalar_lea.vmem %s17862_s25, 1664 }
 0x134   : > { %v510_v8 = vstv %s509_s27  ;;  %12115 = vmatpush3.bf16.msra.mxu1 %v12114_v21  ;;  %v12123_v34 = vpack.c.bf16 %v614_v32, %v613_v31  ;;  %v12126_v39 = vpack.c.bf16 %v616_v37, %v615_v36  ;;  %v617_v40 = vld [vmem:[#allocation10 + $0x50] sm:$0xff]  ;;  %v618_v41 = vld [vmem:[#allocation10 + $0x58] sm:$0xff]  ;;  %v619_v43 = vld [vmem:[#allocation10 + $0x60] sm:$0xff]  ;;  %p12826_p6 = scmp.ne.s32.totalorder %s17862_s25, %s12825_s15  ;;  %p20291_p0 = scmp.ne.s32.totalorder %s18714_s2, 0 }
 0x135   : > { %vm511_vm3 = vcmp.eq.s32.totalorder %v13348_v3, %v510_v8  ;;  %vm512_vm4 = vcmp.eq.s32.totalorder %v508_v4, %v510_v8  ;;  %12116 = vmatprep.subr.bf16.mxu1 %v12928_v1  ;;  %v12129_v42 = vpack.c.bf16 %v618_v41, %v617_v40  ;;  %v620_v44 = vld [vmem:[#allocation10 + $0x68] sm:$0xff]  ;;  %v621_v46 = vld [vmem:[#allocation10 + $0x70] sm:$0xff]  ;;  %v622_v47 = vld [vmem:[#allocation10 + $0x78] sm:$0xff]  ;;  %s12933_s0 = smov [#allocation21]  }
 0x136   : > { %v515_v13 = vsel %vm511_vm3, %v513_v11, 0.0  ;;  %v516_v14 = vsel %vm512_vm4, %v514_v12, 0.0  ;;  %12112 = vmatpush3.bf16.msra.mxu0 %v12111_v18  ;;  %v12132_v45 = vpack.c.bf16 %v620_v44, %v619_v43  ;;  %v12135_v48 = vpack.c.bf16 %v622_v47, %v621_v46  ;;  %v695_v49 = vld [vmem:[#allocation13] sm:$0xff]  ;;  %v696_v50 = vld [vmem:[#allocation13 + $0x8] sm:$0xff]  ;;  %v697_v51 = vld [vmem:[#allocation13 + $0x10] sm:$0xff]  ;;  %p12827_p2 = pnand %p12826_p6, %p20291_p0  ;;  %s12829_s14 = sshll.u32 %s12933_s0, 4  ;;  %s12830_s14 = int_to_ptr.vmem [resolvable:$false] %s12829_s14 }
 0x137   : > { %v518_v19 = vsel %vm517_vm1, %v515_v13, 0.0  ;;  %v520_v20 = vsel %vm519_vm2, %v516_v14, 0.0  ;;  %12137 = vmatprep.subr.bf16.mxu0 %v12928_v1  ;;  %v12138_v52 = vpack.c.bf16 %v696_v50, %v695_v49  ;;  %v698_v53 = vld [vmem:[#allocation13 + $0x18] sm:$0xff]  ;;  %v699_v55 = vld [vmem:[#allocation13 + $0x20] sm:$0xff]  ;;  %v700_v56 = vld [vmem:[#allocation13 + $0x28] sm:$0xff]  ;;  %s17860_s24 = scalar_lea.hbm %s20290_s13, %s11934_s16  ;;  %p12832_p3 = scmp.lt.s32.totalorder %s17862_s25, %s12830_s14 }
 0x138   : > { %v521_v23 = vadd.f32 %v520_v20, %v518_v19  ;;  %12118 = vmatpush3.bf16.msra.mxu1 %v12117_v24  ;;  %v12141_v54 = vpack.c.bf16 %v698_v53, %v697_v51  ;;  %v12144_v57 = vpack.c.bf16 %v700_v56, %v699_v55  ;;  %v701_v58 = vld [vmem:[#allocation13 + $0x30] sm:$0xff]  ;;  %v702_v59 = vld [vmem:[#allocation13 + $0x38] sm:$0xff]  ;;  %v703_v61 = vld [vmem:[#allocation13 + $0x40] sm:$0xff]  ;;  %p12828_p7 = pneg %p12827_p2 }
 0x139   : > { %12119 = vmatprep.subr.bf16.mxu1 %v12928_v1  ;;  %v12147_v60 = vpack.c.bf16 %v702_v59, %v701_v58  ;;  %v704_v62 = vld [vmem:[#allocation13 + $0x48] sm:$0xff]  ;;  %v705_v4 = vld [vmem:[#allocation13 + $0x50] sm:$0xff]  ;;  %v706_v5 = vld [vmem:[#allocation13 + $0x58] sm:$0xff] }
 0x13a   : > { %v522_v25 = vrot.slane %v521_v23, 4  ;;  %v12150_v63 = vpack.c.bf16 %v704_v62, %v703_v61  ;;  %v12153_v6 = vpack.c.bf16 %v706_v5, %v705_v4  ;;  %v707_v7 = vld [vmem:[#allocation13 + $0x60] sm:$0xff]  ;;  %v708_v8 = vld [vmem:[#allocation13 + $0x68] sm:$0xff]  ;;  %v532_v10 = vld [vmem:[#allocation9] sm:$0x1] }
 0x13b   : > { %v12156_v9 = vpack.c.bf16 %v708_v8, %v707_v7  ;;  %v709_v15 = vld [vmem:[#allocation13 + $0x70] sm:$0xff]  ;;  %v710_v16 = vld [vmem:[#allocation13 + $0x78] sm:$0xff]  ;;  %v783_v18 = vld [vmem:[#allocation16] sm:$0xff] }
 0x13c   : > { %v523_v28 = vadd.f32 %v522_v25, %v521_v23  ;;  %12121 = vmatpush3.bf16.msra.mxu1 %v12120_v29  ;;  %v12159_v17 = vpack.c.bf16 %v710_v16, %v709_v15  ;;  %v784_v19 = vld [vmem:[#allocation16 + $0x8] sm:$0xff]  ;;  %v785_v20 = vld [vmem:[#allocation16 + $0x10] sm:$0xff]  ;;  %v786_v22 = vld [vmem:[#allocation16 + $0x18] sm:$0xff] }
 0x13d   : > { %12122 = vmatprep.subr.bf16.mxu1 %v12928_v1  ;;  %v12162_v21 = vpack.c.bf16 %v784_v19, %v783_v18  ;;  %v12165_v23 = vpack.c.bf16 %v786_v22, %v785_v20  ;;  %v787_v24 = vld [vmem:[#allocation16 + $0x20] sm:$0xff]  ;;  %v788_v25 = vld [vmem:[#allocation16 + $0x28] sm:$0xff]  ;;  %v790_v27 = vld [vmem:[#allocation16 + $0x38] sm:$0xff] }
 0x13e   : > { %v524_v30 = vrot.slane %v523_v28, 2  ;;  %v12168_v26 = vpack.c.bf16 %v788_v25, %v787_v24  ;;  %v791_v29 = vld [vmem:[#allocation16 + $0x40] sm:$0xff]  ;;  %v793_v32 = vld [vmem:[#allocation16 + $0x50] sm:$0xff]  ;;  %v796_v36 = vld [vmem:[#allocation16 + $0x68] sm:$0xff] }
 0x13f   : > { %v797_v43 = vld [vmem:[#allocation16 + $0x70] sm:$0xff]  ;;  %v798_v44 = vld [vmem:[#allocation16 + $0x78] sm:$0xff]  ;;  %v878_v46 = vld [vmem:[%s13338_s17] sm:$0xff] }
 0x140   : > { %v525_v33 = vadd.f32 %v524_v30, %v523_v28  ;;  %12124 = vmatpush3.bf16.msra.mxu1 %v12123_v34  ;;  %v792_v30 = vld [vmem:[#allocation16 + $0x48] sm:$0xff]  ;;  %v1453_v3 = vld [vmem:[%s13338_s17 + $0x11f8] sm:$0xff] }
 0x141   : > { %12125 = vmatprep.subr.bf16.mxu1 %v12928_v1  ;;  %v12174_v31 = vpack.c.bf16 %v792_v30, %v791_v29  ;;  %v930_v47 = vld [vmem:[%s13338_s17 + $0x1a0] sm:$0xff]  ;;  %v931_v50 = vld [vmem:[%s13338_s17 + $0x1a8] sm:$0xff] }
 0x142   : > { %v526_v35 = vrot.slane %v525_v33, 1  ;;  %v13388_v49 = vcombine.low %v878_v46, %v930_v47  ;;  %v982_v51 = vld [vmem:[%s13338_s17 + $0x340] sm:$0xff]  ;;  %v983_v15 = vld [vmem:[%s13338_s17 + $0x348] sm:$0xff] }
 0x143   : > { %v1138_v58 = vld [vmem:[%s13338_s17 + $0x820] sm:$0xff]  ;;  %v1035_v16 = vld [vmem:[%s13338_s17 + $0x4e8] sm:$0xff] }
 0x144   : > { %v527_v38 = vadd.f32 %v526_v35, %v525_v33  ;;  %12127 = vmatpush3.bf16.msra.mxu1 %v12126_v39  ;;  %v794_v33 = vld [vmem:[#allocation16 + $0x58] sm:$0xff]  ;;  %v795_v35 = vld [vmem:[#allocation16 + $0x60] sm:$0xff]  ;;  %v13442_v20 = vcombine.high %v983_v15, %v1035_v16  ;;  %v1139_v22 = vld [vmem:[%s13338_s17 + $0x828] sm:$0xff] }
 0x145   : > { %12128 = vmatprep.subr.bf16.mxu1 %v12928_v1  ;;  %v12177_v34 = vpack.c.bf16 %v794_v33, %v793_v32  ;;  %v12180_v37 = vpack.c.bf16 %v796_v36, %v795_v35  ;;  %v1190_v61 = vld [vmem:[%s13338_s17 + $0x9c0] sm:$0xff]  ;;  %v1191_v25 = vld [vmem:[%s13338_s17 + $0x9c8] sm:$0xff] }
 0x146   : > { %12000 = vmatmul.mubr.msk.f32.vlgmr.msra.gmra.mrb[0].mxu0 %vm517_vm1, %v527_v38  ;;  %v623_v38 = vld [vmem:[#allocation12] sm:$0x1]  ;;  %v1242_v62 = vld [vmem:[%s13338_s17 + $0xb60] sm:$0xff]  ;;  %v1347_v29 = vld [vmem:[%s13338_s17 + $0xea8] sm:$0xff] }
 0x147   : > { %12069 = vmatprep.mubr.msk.f32.mxu0 %vm12929_vm0, %v12930_v2  ;;  %12139 = vmatpush3.bf16.msra.mxu0 %v12138_v52  ;;  %v1034_v52 = vld [vmem:[%s13338_s17 + $0x4e0] sm:$0xff]  ;;  %v13420_v4 = vcombine.low %v1190_v61, %v1242_v62  ;;  %v1399_v32 = vld [vmem:[%s13338_s17 + $0x1048] sm:$0xff] }
 0x148   : > { %12130 = vmatpush3.bf16.msra.mxu1 %v12129_v42  ;;  %12140 = vmatprep.subr.bf16.mxu0 %v12928_v1  ;;  %v13399_v55 = vcombine.high %v982_v51, %v1034_v52  ;;  %v13404_v56 = vcombine.low %v982_v51, %v1034_v52  ;;  %v1294_v5 = vld [vmem:[%s13338_s17 + $0xd00] sm:$0xff]  ;;  %v1451_v33 = vld [vmem:[%s13338_s17 + $0x11e8] sm:$0xff] }
 0x149   : > { %12131 = vmatprep.subr.bf16.mxu1 %v12928_v1  ;;  %v13474_v35 = vcombine.high %v1399_v32, %v1451_v33  ;;  %v13477_v36 = vcombine.low %v1399_v32, %v1451_v33  ;;  %v1037_v32 = vld [vmem:[%s13338_s17 + $0x4f8] sm:$0xff] }
 0x14b   : > { %12142 = vmatpush3.bf16.msra.mxu0 %v12141_v54 }
 0x14c   : > { %12133 = vmatpush3.bf16.msra.mxu1 %v12132_v45  ;;  %12143 = vmatprep.subr.bf16.mxu0 %v12928_v1  ;;  %v12183_v45 = vpack.c.bf16 %v798_v44, %v797_v43 }
 0x14d   : > { %12134 = vmatprep.subr.bf16.mxu1 %v12928_v1 }
 0x14f   : > { %12145 = vmatpush3.bf16.msra.mxu0 %v12144_v57  ;;  %v1086_v57 = vld [vmem:[%s13338_s17 + $0x680] sm:$0xff] }
 0x150   : > { %12136 = vmatpush3.bf16.msra.mxu1 %v12135_v48  ;;  %12146 = vmatprep.subr.bf16.mxu0 %v12928_v1  ;;  %v879_v48 = vld [vmem:[%s13338_s17 + $0x8] sm:$0xff]  ;;  %v13409_v59 = vcombine.high %v1086_v57, %v1138_v58 }
 0x151   : > { %12161 = vmatprep.subr.bf16.mxu1 %v12928_v1  ;;  %v13395_v53 = vcombine.low %v879_v48, %v931_v50  ;;  %v13397_v54 = vcombine.high %v879_v48, %v931_v50  ;;  %v1659_v50 = vld [vmem:[%s13338_s17 + $0x1868] sm:$0xff] }
 0x153   : > { %12148 = vmatpush3.bf16.msra.mxu0 %v12147_v60  ;;  %v13412_v60 = vcombine.low %v1086_v57, %v1138_v58  ;;  %v880_v58 = vld [vmem:[%s13338_s17 + $0x10] sm:$0xff] }
 0x154   : > { %12149 = vmatprep.subr.bf16.mxu0 %v12928_v1 }
 0x157   : > { %12151 = vmatpush3.bf16.msra.mxu0 %v12150_v63  ;;  %v13417_v63 = vcombine.high %v1190_v61, %v1242_v62  ;;  %v932_v61 = vld [vmem:[%s13338_s17 + $0x1b0] sm:$0xff]  ;;  %v881_v62 = vld [vmem:[%s13338_s17 + $0x18] sm:$0xff] }
 0x158   : > { %12152 = vmatprep.subr.bf16.mxu0 %v12928_v1 }
 0x15b   : > { %12154 = vmatpush3.bf16.msra.mxu0 %v12153_v6  ;;  %v1346_v6 = vld [vmem:[%s13338_s17 + $0xea0] sm:$0xff] }
 0x15c   : > { %12155 = vmatprep.subr.bf16.mxu0 %v12928_v1  ;;  %v13425_v7 = vcombine.high %v1294_v5, %v1346_v6  ;;  %v13428_v8 = vcombine.low %v1294_v5, %v1346_v6  ;;  %v13516_v5 = vcombine.high %v880_v58, %v932_v61  ;;  %v933_v6 = vld [vmem:[%s13338_s17 + $0x1b8] sm:$0xff] }
 0x15f   : > { %12157 = vmatpush3.bf16.msra.mxu0 %v12156_v9  ;;  %v1398_v9 = vld [vmem:[%s13338_s17 + $0x1040] sm:$0xff] }
 0x160   : > { %12158 = vmatprep.subr.bf16.mxu0 %v12928_v1 }
 0x163   : > { %12160 = vmatpush3.bf16.msra.mxu0 %v12159_v17 }
 0x219   : > { %v602_v11 = vpop.f32.mrb[0].mxu0 }
 0x21a   : > { %v603_v12 = vadd.f32 %v602_v11, %v532_v10  ;;  %v12001_v13 = vpop.f32.mrb[1].mxu0  ;;  %v1450_v10 = vld [vmem:[%s13338_s17 + $0x11e0] sm:$0xff] }
 0x21b   : > { %v13433_v11 = vcombine.high %v1398_v9, %v1450_v10  ;;  %v711_v13 = vld [vmem:[#allocation15] sm:$0x1] }
 0x21c   : > { %v606_v14 = vmax.f32 %v603_v12, 0.0  ;;  %v13436_v12 = vcombine.low %v1398_v9, %v1450_v10  ;;  %v13519_v9 = vcombine.low %v880_v58, %v932_v61  ;;  %v13521_v10 = vcombine.low %v881_v62, %v933_v6 }
 0x21e   : > { %12035 = vmatmul.mubr.f32.vlgmr.msra.gmra.mrb[0].mxu1 %v606_v14 }
 0x21f   : > { %12104 = vmatprep.mubr.msk.f32.mxu1 %vm12929_vm0, %v12930_v2  ;;  %12163 = vmatpush3.bf16.msra.mxu1 %v12162_v21  ;;  %v789_v2 = vld [vmem:[#allocation16 + $0x30] sm:$0xff] }
 0x220   : > { %12164 = vmatprep.subr.bf16.mxu1 %v12928_v1  ;;  %v12171_v28 = vpack.c.bf16 %v790_v27, %v789_v2  ;;  %v1087_v21 = vld [vmem:[%s13338_s17 + $0x688] sm:$0xff] }
 0x221   : > { %v13450_v24 = vcombine.high %v1087_v21, %v1139_v22  ;;  %v13455_v2 = vcombine.low %v1087_v21, %v1139_v22 }
 0x223   : > { %12166 = vmatpush3.bf16.msra.mxu1 %v12165_v23  ;;  %v13447_v23 = vcombine.low %v983_v15, %v1035_v16  ;;  %v871_v15 = vand.u32 127, %v506_v0  ;;  %v799_v16 = vld [vmem:[#allocation18] sm:$0x1] }
 0x224   : > { %12167 = vmatprep.subr.bf16.mxu1 %v12928_v1 }
 0x225   : > { %vm872_vm5 = vcmp.eq.s32.totalorder %v871_v15, 100  ;;  %v1193_v15 = vld [vmem:[%s13338_s17 + $0x9d8] sm:$0xff] }
 0x227   : > { %12169 = vmatpush3.bf16.msra.mxu1 %v12168_v26  ;;  %v1243_v26 = vld [vmem:[%s13338_s17 + $0xb68] sm:$0xff] }
 0x228   : > { %12170 = vmatprep.subr.bf16.mxu1 %v12928_v1  ;;  %v13458_v27 = vcombine.high %v1191_v25, %v1243_v26  ;;  %v13463_v30 = vcombine.low %v1191_v25, %v1243_v26  ;;  %v984_v26 = vld [vmem:[%s13338_s17 + $0x350] sm:$0xff] }
 0x22b   : > { %12172 = vmatpush3.bf16.msra.mxu1 %v12171_v28  ;;  %v1295_v28 = vld [vmem:[%s13338_s17 + $0xd08] sm:$0xff] }
 0x22c   : > { %12173 = vmatprep.subr.bf16.mxu1 %v12928_v1 }
 0x22f   : > { %12175 = vmatpush3.bf16.msra.mxu1 %v12174_v31  ;;  %v13466_v31 = vcombine.high %v1295_v28, %v1347_v29 }
 0x230   : > { %12176 = vmatprep.subr.bf16.mxu1 %v12928_v1 }
 0x233   : > { %12178 = vmatpush3.bf16.msra.mxu1 %v12177_v34  ;;  %v13471_v34 = vcombine.low %v1295_v28, %v1347_v29  ;;  %v1036_v28 = vld [vmem:[%s13338_s17 + $0x4f0] sm:$0xff]  ;;  %v985_v29 = vld [vmem:[%s13338_s17 + $0x358] sm:$0xff] }
 0x234   : > { %12179 = vmatprep.subr.bf16.mxu1 %v12928_v1 }
 0x237   : > { %12181 = vmatpush3.bf16.msra.mxu1 %v12180_v37  ;;  %v1502_v37 = vld [vmem:[%s13338_s17 + $0x1380] sm:$0xff] }
 0x238   : > { %12182 = vmatprep.subr.bf16.mxu1 %v12928_v1  ;;  %v13390_v1 = vcombine.high %v878_v46, %v930_v47  ;;  %v1658_v46 = vld [vmem:[%s13338_s17 + $0x1860] sm:$0xff]  ;;  %v1607_v47 = vld [vmem:[%s13338_s17 + $0x16c8] sm:$0xff] }
 0x239   : > { %v13505_v52 = vcombine.low %v1607_v47, %v1659_v50  ;;  %v13507_v57 = vcombine.high %v1607_v47, %v1659_v50  ;;  %v13551_v47 = vcombine.low %v984_v26, %v1036_v28  ;;  %v13553_v50 = vcombine.low %v985_v29, %v1037_v32 }
 0x23a   : > { %5870 = vmatprep.subr.bf16.mxu0 %v13390_v1 }
 0x23b   : > { %12184 = vmatpush3.bf16.msra.mxu1 %v12183_v45  ;;  %v1606_v45 = vld [vmem:[%s13338_s17 + $0x16c0] sm:$0xff] }
 0x23c   : > { %5911 = vmatprep.subr.bf16.mxu1 %v13397_v54  ;;  %v13500_v48 = vcombine.high %v1606_v45, %v1658_v46  ;;  %v13503_v51 = vcombine.low %v1606_v45, %v1658_v46  ;;  %v1089_v45 = vld [vmem:[%s13338_s17 + $0x698] sm:$0xff] }
 0x23d   : > { %v1141_v46 = vld [vmem:[%s13338_s17 + $0x838] sm:$0xff] }
 0x23e   : > { %v13559_v61 = vcombine.high %v1089_v45, %v1141_v46 }
 0x240   : > { %18730 = vst [vmem:[#allocation31_spill] sm:$0xff] %v13559_v61 }
 0x2f1   : > { %v690_v39 = vpop.f32.mrb[0].mxu1 }
 0x2f2   : > { %v691_v40 = vadd.f32 %v690_v39, %v623_v38  ;;  %v12036_v41 = vpop.f32.mrb[1].mxu1  ;;  %v1554_v38 = vld [vmem:[%s13338_s17 + $0x1520] sm:$0xff]  ;;  %v1503_v39 = vld [vmem:[%s13338_s17 + $0x1388] sm:$0xff] }
 0x2f3   : > { %v1555_v41 = vld [vmem:[%s13338_s17 + $0x1528] sm:$0xff] }
 0x2f4   : > { %v694_v42 = vmax.f32 %v691_v40, 0.0  ;;  %v13484_v40 = vcombine.high %v1502_v37, %v1554_v38  ;;  %v13489_v43 = vcombine.low %v1503_v39, %v1555_v41  ;;  %v13491_v44 = vcombine.high %v1503_v39, %v1555_v41  ;;  %v1088_v39 = vld [vmem:[%s13338_s17 + $0x690] sm:$0xff] }
 0x2f5   : > { %v1140_v41 = vld [vmem:[%s13338_s17 + $0x830] sm:$0xff] }
 0x2f6   : > { %12070 = vmatmul.mubr.f32.vlgmr.msra.gmra.mrb[2].mxu0 %v694_v42  ;;  %v13487_v42 = vcombine.low %v1502_v37, %v1554_v38  ;;  %v13539_v37 = vcombine.high %v984_v26, %v1036_v28  ;;  %v13541_v38 = vcombine.high %v985_v29, %v1037_v32  ;;  %v13557_v58 = vcombine.high %v1088_v39, %v1140_v41  ;;  %v1348_v26 = vld [vmem:[%s13338_s17 + $0xeb0] sm:$0xff]  ;;  %v1297_v28 = vld [vmem:[%s13338_s17 + $0xd18] sm:$0xff] }
 0x2f7   : > { %5871 = vmatpush1.bf16.msra.mxu0 %v13388_v49  ;;  %v1349_v29 = vld [vmem:[%s13338_s17 + $0xeb8] sm:$0xff] }
 0x2f8   : > { %5872 = vmatprep.subr.bf16.mxu0 %v13399_v55 }
 0x2fb   : > { %5873 = vmatpush1.bf16.msra.mxu0 %v13404_v56 }
 0x2fc   : > { %5874 = vmatprep.subr.bf16.mxu0 %v13409_v59 }
 0x2ff   : > { %5875 = vmatpush1.bf16.msra.mxu0 %v13412_v60 }
 0x300   : > { %5876 = vmatprep.subr.bf16.mxu0 %v13417_v63 }
 0x303   : > { %5877 = vmatpush1.bf16.msra.mxu0 %v13420_v4 }
 0x304   : > { %5878 = vmatprep.subr.bf16.mxu0 %v13425_v7 }
 0x307   : > { %5879 = vmatpush1.bf16.msra.mxu0 %v13428_v8 }
 0x308   : > { %5880 = vmatprep.subr.bf16.mxu0 %v13433_v11 }
 0x30b   : > { %5881 = vmatpush1.bf16.msra.mxu0 %v13436_v12 }
 0x30c   : > { %5882 = vmatprep.subr.bf16.mxu0 %v13484_v40 }
 0x30f   : > { %5883 = vmatpush1.bf16.msra.mxu0 %v13487_v42 }
 0x310   : > { %5884 = vmatprep.subr.bf16.mxu0 %v13500_v48 }
 0x313   : > { %5885 = vmatpush1.bf16.msra.mxu0 %v13503_v51 }
 0x314   : > { %5952 = vmatprep.subr.bf16.mxu0 %v13516_v5 }
 0x3c9   : > { %v778_v14 = vpop.f32.mrb[2].mxu0 }
 0x3ca   : > { %v779_v17 = vadd.f32 %v778_v14, %v711_v13  ;;  %v12071_v18 = vpop.f32.mrb[3].mxu0  ;;  %v13523_v13 = vcombine.high %v881_v62, %v933_v6  ;;  %v17921_v14 = vmov 0   ;;  %v1192_v62 = vld [vmem:[%s13338_s17 + $0x9d0] sm:$0xff] }
 0x3cb   : > { %5902 = vmatprep.mubr.bf16.mxu0 %v17921_v14  ;;  %v1244_v6 = vld [vmem:[%s13338_s17 + $0xb70] sm:$0xff] }
 0x3cc   : > { %v782_v19 = vmax.f32 %v779_v17, 0.0  ;;  %v13585_v32 = vcombine.low %v1192_v62, %v1244_v6 }
 0x3ce   : > { %12105 = vmatmul.mubr.f32.vlgmr.msra.gmra.mrb[2].mxu1 %v782_v19  ;;  %18735 = vst [vmem:[#allocation36_spill] sm:$0xff] %v13585_v32 }
 0x3cf   : > { %5912 = vmatpush1.bf16.msra.mxu1 %v13395_v53  ;;  %5943 = vmatprep.mubr.bf16.mxu1 %v17921_v14 }
 0x3d0   : > { %5913 = vmatprep.subr.bf16.mxu1 %v13442_v20 }
 0x3d3   : > { %5914 = vmatpush1.bf16.msra.mxu1 %v13447_v23 }
 0x3d4   : > { %5915 = vmatprep.subr.bf16.mxu1 %v13450_v24 }
 0x3d7   : > { %5916 = vmatpush1.bf16.msra.mxu1 %v13455_v2 }
 0x3d8   : > { %5917 = vmatprep.subr.bf16.mxu1 %v13458_v27 }
 0x3db   : > { %5918 = vmatpush1.bf16.msra.mxu1 %v13463_v30 }
 0x3dc   : > { %5919 = vmatprep.subr.bf16.mxu1 %v13466_v31 }
 0x3df   : > { %5920 = vmatpush1.bf16.msra.mxu1 %v13471_v34 }
 0x3e0   : > { %5921 = vmatprep.subr.bf16.mxu1 %v13474_v35 }
 0x3e3   : > { %5922 = vmatpush1.bf16.msra.mxu1 %v13477_v36 }
 0x3e4   : > { %5923 = vmatprep.subr.bf16.mxu1 %v13491_v44 }
 0x3e7   : > { %5924 = vmatpush1.bf16.msra.mxu1 %v13489_v43 }
 0x3e8   : > { %5925 = vmatprep.subr.bf16.mxu1 %v13507_v57 }
 0x3eb   : > { %5926 = vmatpush1.bf16.msra.mxu1 %v13505_v52 }
 0x3ec   : > { %5993 = vmatprep.subr.bf16.mxu1 %v13523_v13 }
 0x4a1   : > { %v866_v17 = vpop.f32.mrb[2].mxu1 }
 0x4a2   : > { %v867_v18 = vadd.f32 %v866_v17, %v799_v16  ;;  %v12106_v19 = vpop.f32.mrb[3].mxu1  ;;  %v1245_v16 = vld [vmem:[%s13338_s17 + $0xb78] sm:$0xff]  ;;  %v13569_v17 = vcombine.low %v1088_v39, %v1140_v41  ;;  %v13593_v41 = vcombine.high %v1297_v28, %v1349_v29 }
 0x4a3   : > { %v13575_v19 = vcombine.high %v1192_v62, %v1244_v6  ;;  %v13603_v6 = vcombine.low %v1297_v28, %v1349_v29 }
 0x4a4   : > { %v873_v21 = vsel %vm872_vm5, 1.0, %v867_v18  ;;  %18731 = vst [vmem:[#allocation32_spill] sm:$0xff] %v13569_v17  ;;  %v13571_v18 = vcombine.low %v1089_v45, %v1141_v46  ;;  %18738 = vst [vmem:[#allocation39_spill] sm:$0xff] %v13593_v41  ;;  %v1400_v45 = vld [vmem:[%s13338_s17 + $0x1050] sm:$0xff] }
 0x4a5   : > { %v13530_v22 = vpack.c.bf16 %v873_v21, %v873_v21  ;;  %18733 = vst [vmem:[#allocation34_spill] sm:$0xff] %v13575_v19  ;;  %v1452_v46 = vld [vmem:[%s13338_s17 + $0x11f0] sm:$0xff]  ;;  %18740 = vst [vmem:[#allocation41_spill] sm:$0xff] %v13603_v6 }
 0x4a6   : > { %18732 = vst [vmem:[#allocation33_spill] sm:$0xff] %v13571_v18 }
 0x4a7   : > { %v875_v25 = vunpack.c.l.bf16 %v13530_v22 }
 0x4a9   : > { %v876_v33 = vsub.f32 %v873_v21, %v875_v25  ;;  %v13577_v21 = vcombine.high %v1193_v15, %v1245_v16  ;;  %v1296_v25 = vld [vmem:[%s13338_s17 + $0xd10] sm:$0xff] }
 0x4aa   : > { %v13591_v39 = vcombine.high %v1296_v25, %v1348_v26  ;;  %v13601_v62 = vcombine.low %v1296_v25, %v1348_v26  ;;  %v13617_v25 = vcombine.low %v1400_v45, %v1452_v46 }
 0x4ab   : > { %v13537_v0 = vpack.c.bf16 %v876_v33, %v876_v33  ;;  %18734 = vst [vmem:[#allocation35_spill] sm:$0xff] %v13577_v21  ;;  %v13587_v33 = vcombine.low %v1193_v15, %v1245_v16  ;;  %v13607_v15 = vcombine.high %v1400_v45, %v1452_v46 }
 0x4ac   : > { %18737 = vst [vmem:[#allocation38_spill] sm:$0xff] %v13591_v39  ;;  %18739 = vst [vmem:[#allocation40_spill] sm:$0xff] %v13601_v62 }
 0x4ad   : > { %5903 = vmatmul.mubr.bf16.vlgmr.msra.gmra.mrb[4].mxu0 %v13537_v0  ;;  %5944 = vmatmul.mubr.bf16.vlgmr.msra.gmra.mrb[4].mxu1 %v13537_v0  ;;  %18736 = vst [vmem:[#allocation37_spill] sm:$0xff] %v13587_v33  ;;  %18741 = vst [vmem:[#allocation42_spill] sm:$0xff] %v13607_v15 }
 0x4ae   : > { %5953 = vmatpush1.bf16.msra.mxu0 %v13519_v9  ;;  %5994 = vmatpush1.bf16.msra.mxu1 %v13521_v10  ;;  %18743 = vst [vmem:[#allocation44_spill] sm:$0xff] %v13617_v25 }
 0x4af   : > { %5954 = vmatprep.subr.bf16.mxu0 %v13539_v37  ;;  %5995 = vmatprep.subr.bf16.mxu1 %v13541_v38 }
 0x4b0   : > { %5984 = vmatprep.mubr.bf16.mxu0 %v17921_v14  ;;  %6025 = vmatprep.mubr.bf16.mxu1 %v17921_v14  ;;  %v1401_v14 = vld [vmem:[%s13338_s17 + $0x1058] sm:$0xff] }
 0x4b1   : > { %v13609_v16 = vcombine.high %v1401_v14, %v1453_v3  ;;  %v13619_v26 = vcombine.low %v1401_v14, %v1453_v3 }
 0x4b2   : > { %5955 = vmatpush1.bf16.msra.mxu0 %v13551_v47  ;;  %5996 = vmatpush1.bf16.msra.mxu1 %v13553_v50 }
 0x4b3   : > { %5956 = vmatprep.subr.bf16.mxu0 %v13557_v58  ;;  %5997 = vmatprep.subr.bf16.mxu1 %v13559_v61  ;;  %18742 = vst [vmem:[#allocation43_spill] sm:$0xff] %v13609_v16  ;;  %18744 = vst [vmem:[#allocation45_spill] sm:$0xff] %v13619_v26  ;;  %v1709_v61 = vld [vmem:[%s13338_s17 + $0x19f8] sm:$0xff] }
 0x4b6   : > { %5957 = vmatpush1.bf16.msra.mxu0 %v13569_v17  ;;  %5998 = vmatpush1.bf16.msra.mxu1 %v13571_v18  ;;  %v1299_v18 = vld [vmem:[%s13338_s17 + $0xd28] sm:$0xff]  ;;  %v1657_v17 = vld [vmem:[%s13338_s17 + $0x1858] sm:$0xff] }
 0x4b7   : > { %5958 = vmatprep.subr.bf16.mxu0 %v13575_v19  ;;  %5999 = vmatprep.subr.bf16.mxu1 %v13577_v21  ;;  %v1504_v21 = vld [vmem:[%s13338_s17 + $0x1390] sm:$0xff]  ;;  %v1505_v19 = vld [vmem:[%s13338_s17 + $0x1398] sm:$0xff] }
 0x4ba   : > { %5959 = vmatpush1.bf16.msra.mxu0 %v13585_v32  ;;  %6000 = vmatpush1.bf16.msra.mxu1 %v13587_v33  ;;  %v1556_v32 = vld [vmem:[%s13338_s17 + $0x1530] sm:$0xff]  ;;  %v1557_v33 = vld [vmem:[%s13338_s17 + $0x1538] sm:$0xff] }
 0x4bb   : > { %5960 = vmatprep.subr.bf16.mxu0 %v13591_v39  ;;  %6001 = vmatprep.subr.bf16.mxu1 %v13593_v41  ;;  %v13623_v28 = vcombine.high %v1504_v21, %v1556_v32  ;;  %v13625_v29 = vcombine.high %v1505_v19, %v1557_v33  ;;  %v1608_v41 = vld [vmem:[%s13338_s17 + $0x16d0] sm:$0xff]  ;;  %v1609_v39 = vld [vmem:[%s13338_s17 + $0x16d8] sm:$0xff]  ;;  %v13633_v3 = vcombine.low %v1504_v21, %v1556_v32 }
 0x4bc   : > { %v13635_v14 = vcombine.low %v1505_v19, %v1557_v33 }
 0x4bd   : > { %18745 = vst [vmem:[#allocation46_spill] sm:$0xff] %v13623_v28  ;;  %18746 = vst [vmem:[#allocation47_spill] sm:$0xff] %v13625_v29 }
 0x4be   : > { %5961 = vmatpush1.bf16.msra.mxu0 %v13601_v62  ;;  %6002 = vmatpush1.bf16.msra.mxu1 %v13603_v6  ;;  %v1660_v62 = vld [vmem:[%s13338_s17 + $0x1870] sm:$0xff]  ;;  %v1661_v6 = vld [vmem:[%s13338_s17 + $0x1878] sm:$0xff]  ;;  %18747 = vst [vmem:[#allocation48_spill] sm:$0xff] %v13633_v3  ;;  %18748 = vst [vmem:[#allocation49_spill] sm:$0xff] %v13635_v14 }
 0x4bf   : > { %5962 = vmatprep.subr.bf16.mxu0 %v13607_v15  ;;  %6003 = vmatprep.subr.bf16.mxu1 %v13609_v16  ;;  %v13639_v45 = vcombine.high %v1608_v41, %v1660_v62  ;;  %v13641_v46 = vcombine.high %v1609_v39, %v1661_v6  ;;  %v882_v16 = vld [vmem:[%s13338_s17 + $0x20] sm:$0xff]  ;;  %v883_v15 = vld [vmem:[%s13338_s17 + $0x28] sm:$0xff]  ;;  %v13649_v19 = vcombine.low %v1608_v41, %v1660_v62 }
 0x4c0   : > { %v13651_v21 = vcombine.low %v1609_v39, %v1661_v6 }
 0x4c1   : > { %18749 = vst [vmem:[#allocation50_spill] sm:$0xff] %v13639_v45  ;;  %18750 = vst [vmem:[#allocation51_spill] sm:$0xff] %v13641_v46 }
 0x4c2   : > { %5963 = vmatpush1.bf16.msra.mxu0 %v13617_v25  ;;  %6004 = vmatpush1.bf16.msra.mxu1 %v13619_v26  ;;  %v934_v25 = vld [vmem:[%s13338_s17 + $0x1c0] sm:$0xff]  ;;  %v935_v26 = vld [vmem:[%s13338_s17 + $0x1c8] sm:$0xff]  ;;  %18751 = vst [vmem:[#allocation52_spill] sm:$0xff] %v13649_v19  ;;  %18752 = vst [vmem:[#allocation53_spill] sm:$0xff] %v13651_v21 }
 0x4c3   : > { %5964 = vmatprep.subr.bf16.mxu0 %v13623_v28  ;;  %6005 = vmatprep.subr.bf16.mxu1 %v13625_v29  ;;  %v13655_v32 = vcombine.high %v882_v16, %v934_v25  ;;  %v13657_v33 = vcombine.high %v883_v15, %v935_v26  ;;  %v986_v29 = vld [vmem:[%s13338_s17 + $0x360] sm:$0xff]  ;;  %v987_v28 = vld [vmem:[%s13338_s17 + $0x368] sm:$0xff]  ;;  %v13665_v39 = vcombine.low %v882_v16, %v934_v25 }
 0x4c4   : > { %v13667_v41 = vcombine.low %v883_v15, %v935_v26 }
 0x4c5   : > { %18753 = vst [vmem:[#allocation54_spill] sm:$0xff] %v13655_v32  ;;  %18754 = vst [vmem:[#allocation55_spill] sm:$0xff] %v13657_v33 }
 0x4c6   : > { %5965 = vmatpush1.bf16.msra.mxu0 %v13633_v3  ;;  %6006 = vmatpush1.bf16.msra.mxu1 %v13635_v14  ;;  %v1038_v3 = vld [vmem:[%s13338_s17 + $0x500] sm:$0xff]  ;;  %v1039_v14 = vld [vmem:[%s13338_s17 + $0x508] sm:$0xff]  ;;  %18755 = vst [vmem:[#allocation56_spill] sm:$0xff] %v13665_v39  ;;  %18756 = vst [vmem:[#allocation57_spill] sm:$0xff] %v13667_v41 }
 0x4c7   : > { %5966 = vmatprep.subr.bf16.mxu0 %v13639_v45  ;;  %6007 = vmatprep.subr.bf16.mxu1 %v13641_v46  ;;  %v13671_v62 = vcombine.high %v986_v29, %v1038_v3  ;;  %v13673_v6 = vcombine.high %v987_v28, %v1039_v14  ;;  %v1090_v46 = vld [vmem:[%s13338_s17 + $0x6a0] sm:$0xff]  ;;  %v13683_v15 = vcombine.low %v986_v29, %v1038_v3  ;;  %v18763_v29 = vmov 0  }
 0x4c8   : > { %v1142_v45 = vld [vmem:[%s13338_s17 + $0x840] sm:$0xff]  ;;  %v13685_v16 = vcombine.low %v987_v28, %v1039_v14 }
 0x4c9   : > { %18757 = vst [vmem:[#allocation58_spill] sm:$0xff] %v13671_v62  ;;  %18758 = vst [vmem:[#allocation59_spill] sm:$0xff] %v13673_v6  ;;  %v13689_v25 = vcombine.high %v1090_v46, %v1142_v45  ;;  %v13701_v28 = vcombine.low %v1090_v46, %v1142_v45 }
 0x4ca   : > { %5967 = vmatpush1.bf16.msra.mxu0 %v13649_v19  ;;  %6008 = vmatpush1.bf16.msra.mxu1 %v13651_v21  ;;  %v1091_v19 = vld [vmem:[%s13338_s17 + $0x6a8] sm:$0xff]  ;;  %18759 = vst [vmem:[#allocation60_spill] sm:$0xff] %v13683_v15  ;;  %18760 = vst [vmem:[#allocation61_spill] sm:$0xff] %v13685_v16 }
 0x4cb   : > { %6034 = vmatprep.subr.bf16.mxu0 %v13655_v32  ;;  %6075 = vmatprep.subr.bf16.mxu1 %v13657_v33  ;;  %v1143_v21 = vld [vmem:[%s13338_s17 + $0x848] sm:$0xff]  ;;  %18761 = vst [vmem:[#allocation62_spill] sm:$0xff] %v13689_v25  ;;  %v1194_v33 = vld [vmem:[%s13338_s17 + $0x9e0] sm:$0xff]  ;;  %18764 = vst [vmem:[#allocation64_spill] sm:$0xff] %v13701_v28 }
 0x4cc   : > { %v13691_v26 = vcombine.high %v1091_v19, %v1143_v21  ;;  %v1246_v32 = vld [vmem:[%s13338_s17 + $0xb80] sm:$0xff]  ;;  %v13703_v3 = vcombine.low %v1091_v19, %v1143_v21 }
 0x4cd   : > { %5985 = vmatmul.mubr.bf16.vlgmr.msra.gmra.mrb[8].mxu0 %v13537_v0  ;;  %6026 = vmatmul.mubr.bf16.vlgmr.msra.gmra.mrb[8].mxu1 %v13537_v0  ;;  %v13707_v14 = vcombine.high %v1194_v33, %v1246_v32  ;;  %v13717_v45 = vcombine.low %v1194_v33, %v1246_v32 }
 0x4ce   : > { %6035 = vmatpush1.bf16.msra.mxu0 %v13665_v39  ;;  %6076 = vmatpush1.bf16.msra.mxu1 %v13667_v41  ;;  %18762 = vst [vmem:[#allocation63_spill] sm:$0xff] %v13691_v26  ;;  %v1195_v39 = vld [vmem:[%s13338_s17 + $0x9e8] sm:$0xff]  ;;  %18765 = vst [vmem:[#allocation65_spill] sm:$0xff] %v13703_v3 }
 0x4cf   : > { %6036 = vmatprep.subr.bf16.mxu0 %v13671_v62  ;;  %6077 = vmatprep.subr.bf16.mxu1 %v13673_v6  ;;  %v1247_v41 = vld [vmem:[%s13338_s17 + $0xb88] sm:$0xff]  ;;  %18766 = vst [vmem:[#allocation66_spill] sm:$0xff] %v13707_v14  ;;  %v1298_v62 = vld [vmem:[%s13338_s17 + $0xd20] sm:$0xff]  ;;  %18768 = vst [vmem:[#allocation68_spill] sm:$0xff] %v13717_v45 }
 0x4d0   : > { %6066 = vmatprep.mubr.bf16.mxu0 %v18763_v29  ;;  %6107 = vmatprep.mubr.bf16.mxu1 %v18763_v29  ;;  %v13709_v6 = vcombine.high %v1195_v39, %v1247_v41  ;;  %v13719_v46 = vcombine.low %v1195_v39, %v1247_v41 }
 0x4d2   : > { %6037 = vmatpush1.bf16.msra.mxu0 %v13683_v15  ;;  %6078 = vmatpush1.bf16.msra.mxu1 %v13685_v16  ;;  %18767 = vst [vmem:[#allocation67_spill] sm:$0xff] %v13709_v6  ;;  %v1350_v15 = vld [vmem:[%s13338_s17 + $0xec0] sm:$0xff]  ;;  %v1351_v16 = vld [vmem:[%s13338_s17 + $0xec8] sm:$0xff]  ;;  %18769 = vst [vmem:[#allocation69_spill] sm:$0xff] %v13719_v46 }
 0x4d3   : > { %6038 = vmatprep.subr.bf16.mxu0 %v13689_v25  ;;  %6079 = vmatprep.subr.bf16.mxu1 %v13691_v26  ;;  %v13723_v19 = vcombine.high %v1298_v62, %v1350_v15  ;;  %v13725_v21 = vcombine.high %v1299_v18, %v1351_v16  ;;  %v1402_v26 = vld [vmem:[%s13338_s17 + $0x1060] sm:$0xff]  ;;  %v1403_v25 = vld [vmem:[%s13338_s17 + $0x1068] sm:$0xff]  ;;  %v13733_v32 = vcombine.low %v1298_v62, %v1350_v15 }
 0x4d4   : > { %v13735_v33 = vcombine.low %v1299_v18, %v1351_v16 }
 0x4d5   : > { %18770 = vst [vmem:[#allocation70_spill] sm:$0xff] %v13723_v19  ;;  %18771 = vst [vmem:[#allocation71_spill] sm:$0xff] %v13725_v21 }
 0x4d6   : > { %6039 = vmatpush1.bf16.msra.mxu0 %v13701_v28  ;;  %6080 = vmatpush1.bf16.msra.mxu1 %v13703_v3  ;;  %v1454_v28 = vld [vmem:[%s13338_s17 + $0x1200] sm:$0xff]  ;;  %v1455_v3 = vld [vmem:[%s13338_s17 + $0x1208] sm:$0xff]  ;;  %18772 = vst [vmem:[#allocation72_spill] sm:$0xff] %v13733_v32  ;;  %18773 = vst [vmem:[#allocation73_spill] sm:$0xff] %v13735_v33 }
 0x4d7   : > { %6040 = vmatprep.subr.bf16.mxu0 %v13707_v14  ;;  %6081 = vmatprep.subr.bf16.mxu1 %v13709_v6  ;;  %v13739_v39 = vcombine.high %v1402_v26, %v1454_v28  ;;  %v13741_v41 = vcombine.high %v1403_v25, %v1455_v3  ;;  %v1506_v6 = vld [vmem:[%s13338_s17 + $0x13a0] sm:$0xff]  ;;  %v1507_v14 = vld [vmem:[%s13338_s17 + $0x13a8] sm:$0xff]  ;;  %v13749_v18 = vcombine.low %v1402_v26, %v1454_v28 }
 0x4d8   : > { %v13751_v62 = vcombine.low %v1403_v25, %v1455_v3 }
 0x4d9   : > { %18774 = vst [vmem:[#allocation74_spill] sm:$0xff] %v13739_v39  ;;  %18775 = vst [vmem:[#allocation75_spill] sm:$0xff] %v13741_v41 }
 0x4da   : > { %6041 = vmatpush1.bf16.msra.mxu0 %v13717_v45  ;;  %6082 = vmatpush1.bf16.msra.mxu1 %v13719_v46  ;;  %v1558_v45 = vld [vmem:[%s13338_s17 + $0x1540] sm:$0xff]  ;;  %v1559_v46 = vld [vmem:[%s13338_s17 + $0x1548] sm:$0xff]  ;;  %18776 = vst [vmem:[#allocation76_spill] sm:$0xff] %v13749_v18  ;;  %18777 = vst [vmem:[#allocation77_spill] sm:$0xff] %v13751_v62 }
 0x4db   : > { %6042 = vmatprep.subr.bf16.mxu0 %v13723_v19  ;;  %6083 = vmatprep.subr.bf16.mxu1 %v13725_v21  ;;  %v13755_v15 = vcombine.high %v1506_v6, %v1558_v45  ;;  %v13757_v16 = vcombine.high %v1507_v14, %v1559_v46  ;;  %v1610_v21 = vld [vmem:[%s13338_s17 + $0x16e0] sm:$0xff]  ;;  %v1611_v19 = vld [vmem:[%s13338_s17 + $0x16e8] sm:$0xff]  ;;  %v13765_v25 = vcombine.low %v1506_v6, %v1558_v45 }
 0x4dc   : > { %v13767_v26 = vcombine.low %v1507_v14, %v1559_v46 }
 0x4dd   : > { %18778 = vst [vmem:[#allocation78_spill] sm:$0xff] %v13755_v15  ;;  %18779 = vst [vmem:[#allocation79_spill] sm:$0xff] %v13757_v16 }
 0x4de   : > { %6043 = vmatpush1.bf16.msra.mxu0 %v13733_v32  ;;  %6084 = vmatpush1.bf16.msra.mxu1 %v13735_v33  ;;  %v1662_v32 = vld [vmem:[%s13338_s17 + $0x1880] sm:$0xff]  ;;  %v1663_v33 = vld [vmem:[%s13338_s17 + $0x1888] sm:$0xff]  ;;  %18780 = vst [vmem:[#allocation80_spill] sm:$0xff] %v13765_v25  ;;  %18781 = vst [vmem:[#allocation81_spill] sm:$0xff] %v13767_v26 }
 0x4df   : > { %6044 = vmatprep.subr.bf16.mxu0 %v13739_v39  ;;  %6085 = vmatprep.subr.bf16.mxu1 %v13741_v41  ;;  %v13771_v28 = vcombine.high %v1610_v21, %v1662_v32  ;;  %v13773_v3 = vcombine.high %v1611_v19, %v1663_v33  ;;  %v884_v41 = vld [vmem:[%s13338_s17 + $0x30] sm:$0xff]  ;;  %v885_v39 = vld [vmem:[%s13338_s17 + $0x38] sm:$0xff]  ;;  %v13781_v6 = vcombine.low %v1610_v21, %v1662_v32 }
 0x4e0   : > { %v13783_v14 = vcombine.low %v1611_v19, %v1663_v33 }
 0x4e1   : > { %18782 = vst [vmem:[#allocation82_spill] sm:$0xff] %v13771_v28  ;;  %18783 = vst [vmem:[#allocation83_spill] sm:$0xff] %v13773_v3 }
 0x4e2   : > { %6045 = vmatpush1.bf16.msra.mxu0 %v13749_v18  ;;  %6086 = vmatpush1.bf16.msra.mxu1 %v13751_v62  ;;  %v936_v18 = vld [vmem:[%s13338_s17 + $0x1d0] sm:$0xff]  ;;  %v937_v62 = vld [vmem:[%s13338_s17 + $0x1d8] sm:$0xff]  ;;  %18784 = vst [vmem:[#allocation84_spill] sm:$0xff] %v13781_v6  ;;  %18785 = vst [vmem:[#allocation85_spill] sm:$0xff] %v13783_v14 }
 0x4e3   : > { %6046 = vmatprep.subr.bf16.mxu0 %v13755_v15  ;;  %6087 = vmatprep.subr.bf16.mxu1 %v13757_v16  ;;  %v13787_v45 = vcombine.high %v884_v41, %v936_v18  ;;  %v13789_v46 = vcombine.high %v885_v39, %v937_v62  ;;  %v988_v16 = vld [vmem:[%s13338_s17 + $0x370] sm:$0xff]  ;;  %v989_v15 = vld [vmem:[%s13338_s17 + $0x378] sm:$0xff]  ;;  %v13797_v19 = vcombine.low %v884_v41, %v936_v18 }
 0x4e4   : > { %v13799_v21 = vcombine.low %v885_v39, %v937_v62 }
 0x4e5   : > { %18786 = vst [vmem:[#allocation86_spill] sm:$0xff] %v13787_v45  ;;  %18787 = vst [vmem:[#allocation87_spill] sm:$0xff] %v13789_v46 }
 0x4e6   : > { %6047 = vmatpush1.bf16.msra.mxu0 %v13765_v25  ;;  %6088 = vmatpush1.bf16.msra.mxu1 %v13767_v26  ;;  %v1040_v25 = vld [vmem:[%s13338_s17 + $0x510] sm:$0xff]  ;;  %v1041_v26 = vld [vmem:[%s13338_s17 + $0x518] sm:$0xff]  ;;  %18788 = vst [vmem:[#allocation88_spill] sm:$0xff] %v13797_v19  ;;  %18789 = vst [vmem:[#allocation89_spill] sm:$0xff] %v13799_v21 }
 0x4e7   : > { %6048 = vmatprep.subr.bf16.mxu0 %v13771_v28  ;;  %6089 = vmatprep.subr.bf16.mxu1 %v13773_v3  ;;  %v13803_v32 = vcombine.high %v988_v16, %v1040_v25  ;;  %v13805_v33 = vcombine.high %v989_v15, %v1041_v26  ;;  %v1092_v3 = vld [vmem:[%s13338_s17 + $0x6b0] sm:$0xff]  ;;  %v13815_v39 = vcombine.low %v988_v16, %v1040_v25 }
 0x4e8   : > { %v1144_v28 = vld [vmem:[%s13338_s17 + $0x850] sm:$0xff]  ;;  %v13817_v41 = vcombine.low %v989_v15, %v1041_v26 }
 0x4e9   : > { %18790 = vst [vmem:[#allocation90_spill] sm:$0xff] %v13803_v32  ;;  %18791 = vst [vmem:[#allocation91_spill] sm:$0xff] %v13805_v33  ;;  %v13821_v18 = vcombine.high %v1092_v3, %v1144_v28  ;;  %v13833_v15 = vcombine.low %v1092_v3, %v1144_v28 }
 0x4ea   : > { %6049 = vmatpush1.bf16.msra.mxu0 %v13781_v6  ;;  %6090 = vmatpush1.bf16.msra.mxu1 %v13783_v14  ;;  %v1093_v6 = vld [vmem:[%s13338_s17 + $0x6b8] sm:$0xff]  ;;  %18792 = vst [vmem:[#allocation92_spill] sm:$0xff] %v13815_v39  ;;  %18793 = vst [vmem:[#allocation93_spill] sm:$0xff] %v13817_v41 }
 0x4eb   : > { %6116 = vmatprep.subr.bf16.mxu0 %v13787_v45  ;;  %6157 = vmatprep.subr.bf16.mxu1 %v13789_v46  ;;  %v1145_v14 = vld [vmem:[%s13338_s17 + $0x858] sm:$0xff]  ;;  %18794 = vst [vmem:[#allocation94_spill] sm:$0xff] %v13821_v18  ;;  %v1196_v46 = vld [vmem:[%s13338_s17 + $0x9f0] sm:$0xff]  ;;  %18796 = vst [vmem:[#allocation96_spill] sm:$0xff] %v13833_v15 }
 0x4ec   : > { %v13823_v62 = vcombine.high %v1093_v6, %v1145_v14  ;;  %v1248_v45 = vld [vmem:[%s13338_s17 + $0xb90] sm:$0xff]  ;;  %v13835_v16 = vcombine.low %v1093_v6, %v1145_v14 }
 0x4ed   : > { %6067 = vmatmul.mubr.bf16.vlgmr.msra.gmra.mrb[12].mxu0 %v13537_v0  ;;  %6108 = vmatmul.mubr.bf16.vlgmr.msra.gmra.mrb[12].mxu1 %v13537_v0  ;;  %v13839_v25 = vcombine.high %v1196_v46, %v1248_v45  ;;  %v13849_v28 = vcombine.low %v1196_v46, %v1248_v45 }
 0x4ee   : > { %6117 = vmatpush1.bf16.msra.mxu0 %v13797_v19  ;;  %6158 = vmatpush1.bf16.msra.mxu1 %v13799_v21  ;;  %18795 = vst [vmem:[#allocation95_spill] sm:$0xff] %v13823_v62  ;;  %v1197_v19 = vld [vmem:[%s13338_s17 + $0x9f8] sm:$0xff]  ;;  %18797 = vst [vmem:[#allocation97_spill] sm:$0xff] %v13835_v16 }
 0x4ef   : > { %6118 = vmatprep.subr.bf16.mxu0 %v13803_v32  ;;  %6159 = vmatprep.subr.bf16.mxu1 %v13805_v33  ;;  %v1249_v21 = vld [vmem:[%s13338_s17 + $0xb98] sm:$0xff]  ;;  %18798 = vst [vmem:[#allocation98_spill] sm:$0xff] %v13839_v25  ;;  %v1300_v33 = vld [vmem:[%s13338_s17 + $0xd30] sm:$0xff]  ;;  %18800 = vst [vmem:[#allocation100_spill] sm:$0xff] %v13849_v28 }
 0x4f0   : > { %6148 = vmatprep.mubr.bf16.mxu0 %v18763_v29  ;;  %6189 = vmatprep.mubr.bf16.mxu1 %v18763_v29  ;;  %v13841_v26 = vcombine.high %v1197_v19, %v1249_v21  ;;  %v1301_v32 = vld [vmem:[%s13338_s17 + $0xd38] sm:$0xff]  ;;  %v13851_v3 = vcombine.low %v1197_v19, %v1249_v21 }
 0x4f2   : > { %6119 = vmatpush1.bf16.msra.mxu0 %v13815_v39  ;;  %6160 = vmatpush1.bf16.msra.mxu1 %v13817_v41  ;;  %18799 = vst [vmem:[#allocation99_spill] sm:$0xff] %v13841_v26  ;;  %v1352_v39 = vld [vmem:[%s13338_s17 + $0xed0] sm:$0xff]  ;;  %v1353_v41 = vld [vmem:[%s13338_s17 + $0xed8] sm:$0xff]  ;;  %18801 = vst [vmem:[#allocation101_spill] sm:$0xff] %v13851_v3 }
 0x4f3   : > { %6120 = vmatprep.subr.bf16.mxu0 %v13821_v18  ;;  %6161 = vmatprep.subr.bf16.mxu1 %v13823_v62  ;;  %v13855_v6 = vcombine.high %v1300_v33, %v1352_v39  ;;  %v13857_v14 = vcombine.high %v1301_v32, %v1353_v41  ;;  %v1404_v62 = vld [vmem:[%s13338_s17 + $0x1070] sm:$0xff]  ;;  %v1405_v18 = vld [vmem:[%s13338_s17 + $0x1078] sm:$0xff]  ;;  %v13865_v45 = vcombine.low %v1300_v33, %v1352_v39 }
 0x4f4   : > { %v13867_v46 = vcombine.low %v1301_v32, %v1353_v41 }
 0x4f5   : > { %18802 = vst [vmem:[#allocation102_spill] sm:$0xff] %v13855_v6  ;;  %18803 = vst [vmem:[#allocation103_spill] sm:$0xff] %v13857_v14 }
 0x4f6   : > { %6121 = vmatpush1.bf16.msra.mxu0 %v13833_v15  ;;  %6162 = vmatpush1.bf16.msra.mxu1 %v13835_v16  ;;  %v1456_v15 = vld [vmem:[%s13338_s17 + $0x1210] sm:$0xff]  ;;  %v1457_v16 = vld [vmem:[%s13338_s17 + $0x1218] sm:$0xff]  ;;  %18804 = vst [vmem:[#allocation104_spill] sm:$0xff] %v13865_v45  ;;  %18805 = vst [vmem:[#allocation105_spill] sm:$0xff] %v13867_v46 }
 0x4f7   : > { %6122 = vmatprep.subr.bf16.mxu0 %v13839_v25  ;;  %6163 = vmatprep.subr.bf16.mxu1 %v13841_v26  ;;  %v13871_v19 = vcombine.high %v1404_v62, %v1456_v15  ;;  %v13873_v21 = vcombine.high %v1405_v18, %v1457_v16  ;;  %v1508_v26 = vld [vmem:[%s13338_s17 + $0x13b0] sm:$0xff]  ;;  %v1509_v25 = vld [vmem:[%s13338_s17 + $0x13b8] sm:$0xff]  ;;  %v13881_v32 = vcombine.low %v1404_v62, %v1456_v15 }
 0x4f8   : > { %v13883_v33 = vcombine.low %v1405_v18, %v1457_v16 }
 0x4f9   : > { %18806 = vst [vmem:[#allocation106_spill] sm:$0xff] %v13871_v19  ;;  %18807 = vst [vmem:[#allocation107_spill] sm:$0xff] %v13873_v21 }
 0x4fa   : > { %6123 = vmatpush1.bf16.msra.mxu0 %v13849_v28  ;;  %6164 = vmatpush1.bf16.msra.mxu1 %v13851_v3  ;;  %v1560_v28 = vld [vmem:[%s13338_s17 + $0x1550] sm:$0xff]  ;;  %v1561_v3 = vld [vmem:[%s13338_s17 + $0x1558] sm:$0xff]  ;;  %18808 = vst [vmem:[#allocation108_spill] sm:$0xff] %v13881_v32  ;;  %18809 = vst [vmem:[#allocation109_spill] sm:$0xff] %v13883_v33 }
 0x4fb   : > { %6124 = vmatprep.subr.bf16.mxu0 %v13855_v6  ;;  %6165 = vmatprep.subr.bf16.mxu1 %v13857_v14  ;;  %v13887_v39 = vcombine.high %v1508_v26, %v1560_v28  ;;  %v13889_v41 = vcombine.high %v1509_v25, %v1561_v3  ;;  %v1612_v14 = vld [vmem:[%s13338_s17 + $0x16f0] sm:$0xff]  ;;  %v1613_v6 = vld [vmem:[%s13338_s17 + $0x16f8] sm:$0xff]  ;;  %v13897_v18 = vcombine.low %v1508_v26, %v1560_v28 }
 0x4fc   : > { %v13899_v62 = vcombine.low %v1509_v25, %v1561_v3 }
 0x4fd   : > { %18810 = vst [vmem:[#allocation110_spill] sm:$0xff] %v13887_v39  ;;  %18811 = vst [vmem:[#allocation111_spill] sm:$0xff] %v13889_v41 }
 0x4fe   : > { %6125 = vmatpush1.bf16.msra.mxu0 %v13865_v45  ;;  %6166 = vmatpush1.bf16.msra.mxu1 %v13867_v46  ;;  %v1664_v45 = vld [vmem:[%s13338_s17 + $0x1890] sm:$0xff]  ;;  %v1665_v46 = vld [vmem:[%s13338_s17 + $0x1898] sm:$0xff]  ;;  %18812 = vst [vmem:[#allocation112_spill] sm:$0xff] %v13897_v18  ;;  %18813 = vst [vmem:[#allocation113_spill] sm:$0xff] %v13899_v62 }
 0x4ff   : > { %6126 = vmatprep.subr.bf16.mxu0 %v13871_v19  ;;  %6167 = vmatprep.subr.bf16.mxu1 %v13873_v21  ;;  %v13903_v15 = vcombine.high %v1612_v14, %v1664_v45  ;;  %v13905_v16 = vcombine.high %v1613_v6, %v1665_v46  ;;  %v886_v21 = vld [vmem:[%s13338_s17 + $0x40] sm:$0xff]  ;;  %v887_v19 = vld [vmem:[%s13338_s17 + $0x48] sm:$0xff]  ;;  %v13913_v25 = vcombine.low %v1612_v14, %v1664_v45 }
 0x500   : > { %v13915_v26 = vcombine.low %v1613_v6, %v1665_v46 }
 0x501   : > { %18814 = vst [vmem:[#allocation114_spill] sm:$0xff] %v13903_v15  ;;  %18815 = vst [vmem:[#allocation115_spill] sm:$0xff] %v13905_v16 }
 0x502   : > { %6127 = vmatpush1.bf16.msra.mxu0 %v13881_v32  ;;  %6168 = vmatpush1.bf16.msra.mxu1 %v13883_v33  ;;  %v938_v32 = vld [vmem:[%s13338_s17 + $0x1e0] sm:$0xff]  ;;  %v939_v33 = vld [vmem:[%s13338_s17 + $0x1e8] sm:$0xff]  ;;  %18816 = vst [vmem:[#allocation116_spill] sm:$0xff] %v13913_v25  ;;  %18817 = vst [vmem:[#allocation117_spill] sm:$0xff] %v13915_v26 }
 0x503   : > { %6128 = vmatprep.subr.bf16.mxu0 %v13887_v39  ;;  %6169 = vmatprep.subr.bf16.mxu1 %v13889_v41  ;;  %v13919_v28 = vcombine.high %v886_v21, %v938_v32  ;;  %v13921_v3 = vcombine.high %v887_v19, %v939_v33  ;;  %v990_v41 = vld [vmem:[%s13338_s17 + $0x380] sm:$0xff]  ;;  %v991_v39 = vld [vmem:[%s13338_s17 + $0x388] sm:$0xff]  ;;  %v13929_v6 = vcombine.low %v886_v21, %v938_v32 }
 0x504   : > { %v13931_v14 = vcombine.low %v887_v19, %v939_v33 }
 0x505   : > { %18818 = vst [vmem:[#allocation118_spill] sm:$0xff] %v13919_v28  ;;  %18819 = vst [vmem:[#allocation119_spill] sm:$0xff] %v13921_v3 }
 0x506   : > { %6129 = vmatpush1.bf16.msra.mxu0 %v13897_v18  ;;  %6170 = vmatpush1.bf16.msra.mxu1 %v13899_v62  ;;  %v1042_v18 = vld [vmem:[%s13338_s17 + $0x520] sm:$0xff]  ;;  %v1043_v62 = vld [vmem:[%s13338_s17 + $0x528] sm:$0xff]  ;;  %18820 = vst [vmem:[#allocation120_spill] sm:$0xff] %v13929_v6  ;;  %18821 = vst [vmem:[#allocation121_spill] sm:$0xff] %v13931_v14 }
 0x507   : > { %6130 = vmatprep.subr.bf16.mxu0 %v13903_v15  ;;  %6171 = vmatprep.subr.bf16.mxu1 %v13905_v16  ;;  %v13935_v45 = vcombine.high %v990_v41, %v1042_v18  ;;  %v13937_v46 = vcombine.high %v991_v39, %v1043_v62  ;;  %v1094_v16 = vld [vmem:[%s13338_s17 + $0x6c0] sm:$0xff]  ;;  %v13947_v19 = vcombine.low %v990_v41, %v1042_v18 }
 0x508   : > { %v1146_v15 = vld [vmem:[%s13338_s17 + $0x860] sm:$0xff]  ;;  %v13949_v21 = vcombine.low %v991_v39, %v1043_v62 }
 0x509   : > { %18822 = vst [vmem:[#allocation122_spill] sm:$0xff] %v13935_v45  ;;  %18823 = vst [vmem:[#allocation123_spill] sm:$0xff] %v13937_v46  ;;  %v13953_v32 = vcombine.high %v1094_v16, %v1146_v15  ;;  %v13965_v39 = vcombine.low %v1094_v16, %v1146_v15 }
 0x50a   : > { %6131 = vmatpush1.bf16.msra.mxu0 %v13913_v25  ;;  %6172 = vmatpush1.bf16.msra.mxu1 %v13915_v26  ;;  %v1095_v25 = vld [vmem:[%s13338_s17 + $0x6c8] sm:$0xff]  ;;  %18824 = vst [vmem:[#allocation124_spill] sm:$0xff] %v13947_v19  ;;  %18825 = vst [vmem:[#allocation125_spill] sm:$0xff] %v13949_v21 }
 0x50b   : > { %6198 = vmatprep.subr.bf16.mxu0 %v13919_v28  ;;  %6239 = vmatprep.subr.bf16.mxu1 %v13921_v3  ;;  %v1147_v26 = vld [vmem:[%s13338_s17 + $0x868] sm:$0xff]  ;;  %18826 = vst [vmem:[#allocation126_spill] sm:$0xff] %v13953_v32  ;;  %v1198_v3 = vld [vmem:[%s13338_s17 + $0xa00] sm:$0xff]  ;;  %18828 = vst [vmem:[#allocation128_spill] sm:$0xff] %v13965_v39 }
 0x50c   : > { %v13955_v33 = vcombine.high %v1095_v25, %v1147_v26  ;;  %v1250_v28 = vld [vmem:[%s13338_s17 + $0xba0] sm:$0xff]  ;;  %v13967_v41 = vcombine.low %v1095_v25, %v1147_v26 }
 0x50d   : > { %6149 = vmatmul.mubr.bf16.vlgmr.msra.gmra.mrb[16].mxu0 %v13537_v0  ;;  %6190 = vmatmul.mubr.bf16.vlgmr.msra.gmra.mrb[16].mxu1 %v13537_v0  ;;  %v13971_v18 = vcombine.high %v1198_v3, %v1250_v28  ;;  %v13981_v15 = vcombine.low %v1198_v3, %v1250_v28 }
 0x50e   : > { %6199 = vmatpush1.bf16.msra.mxu0 %v13929_v6  ;;  %6240 = vmatpush1.bf16.msra.mxu1 %v13931_v14  ;;  %18827 = vst [vmem:[#allocation127_spill] sm:$0xff] %v13955_v33  ;;  %v1199_v6 = vld [vmem:[%s13338_s17 + $0xa08] sm:$0xff]  ;;  %18829 = vst [vmem:[#allocation129_spill] sm:$0xff] %v13967_v41 }
 0x50f   : > { %6200 = vmatprep.subr.bf16.mxu0 %v13935_v45  ;;  %6241 = vmatprep.subr.bf16.mxu1 %v13937_v46  ;;  %v1251_v14 = vld [vmem:[%s13338_s17 + $0xba8] sm:$0xff]  ;;  %18830 = vst [vmem:[#allocation130_spill] sm:$0xff] %v13971_v18  ;;  %v1302_v46 = vld [vmem:[%s13338_s17 + $0xd40] sm:$0xff]  ;;  %18832 = vst [vmem:[#allocation132_spill] sm:$0xff] %v13981_v15 }
 0x510   : > { %6230 = vmatprep.mubr.bf16.mxu0 %v18763_v29  ;;  %6271 = vmatprep.mubr.bf16.mxu1 %v18763_v29  ;;  %v13973_v62 = vcombine.high %v1199_v6, %v1251_v14  ;;  %v1303_v45 = vld [vmem:[%s13338_s17 + $0xd48] sm:$0xff]  ;;  %v13983_v16 = vcombine.low %v1199_v6, %v1251_v14 }
 0x512   : > { %6201 = vmatpush1.bf16.msra.mxu0 %v13947_v19  ;;  %6242 = vmatpush1.bf16.msra.mxu1 %v13949_v21  ;;  %18831 = vst [vmem:[#allocation131_spill] sm:$0xff] %v13973_v62  ;;  %v1354_v19 = vld [vmem:[%s13338_s17 + $0xee0] sm:$0xff]  ;;  %v1355_v21 = vld [vmem:[%s13338_s17 + $0xee8] sm:$0xff]  ;;  %18833 = vst [vmem:[#allocation133_spill] sm:$0xff] %v13983_v16 }
 0x513   : > { %6202 = vmatprep.subr.bf16.mxu0 %v13953_v32  ;;  %6243 = vmatprep.subr.bf16.mxu1 %v13955_v33  ;;  %v13987_v25 = vcombine.high %v1302_v46, %v1354_v19  ;;  %v13989_v26 = vcombine.high %v1303_v45, %v1355_v21  ;;  %v1406_v33 = vld [vmem:[%s13338_s17 + $0x1080] sm:$0xff]  ;;  %v1407_v32 = vld [vmem:[%s13338_s17 + $0x1088] sm:$0xff]  ;;  %v13997_v28 = vcombine.low %v1302_v46, %v1354_v19 }
 0x514   : > { %v13999_v3 = vcombine.low %v1303_v45, %v1355_v21 }
 0x515   : > { %18834 = vst [vmem:[#allocation134_spill] sm:$0xff] %v13987_v25  ;;  %18835 = vst [vmem:[#allocation135_spill] sm:$0xff] %v13989_v26 }
 0x516   : > { %6203 = vmatpush1.bf16.msra.mxu0 %v13965_v39  ;;  %6244 = vmatpush1.bf16.msra.mxu1 %v13967_v41  ;;  %v1458_v39 = vld [vmem:[%s13338_s17 + $0x1220] sm:$0xff]  ;;  %v1459_v41 = vld [vmem:[%s13338_s17 + $0x1228] sm:$0xff]  ;;  %18836 = vst [vmem:[#allocation136_spill] sm:$0xff] %v13997_v28  ;;  %18837 = vst [vmem:[#allocation137_spill] sm:$0xff] %v13999_v3 }
 0x517   : > { %6204 = vmatprep.subr.bf16.mxu0 %v13971_v18  ;;  %6245 = vmatprep.subr.bf16.mxu1 %v13973_v62  ;;  %v14003_v6 = vcombine.high %v1406_v33, %v1458_v39  ;;  %v14005_v14 = vcombine.high %v1407_v32, %v1459_v41  ;;  %v1510_v62 = vld [vmem:[%s13338_s17 + $0x13c0] sm:$0xff]  ;;  %v1511_v18 = vld [vmem:[%s13338_s17 + $0x13c8] sm:$0xff]  ;;  %v14013_v45 = vcombine.low %v1406_v33, %v1458_v39 }
 0x518   : > { %v14015_v46 = vcombine.low %v1407_v32, %v1459_v41 }
 0x519   : > { %18838 = vst [vmem:[#allocation138_spill] sm:$0xff] %v14003_v6  ;;  %18839 = vst [vmem:[#allocation139_spill] sm:$0xff] %v14005_v14 }
 0x51a   : > { %6205 = vmatpush1.bf16.msra.mxu0 %v13981_v15  ;;  %6246 = vmatpush1.bf16.msra.mxu1 %v13983_v16  ;;  %v1562_v15 = vld [vmem:[%s13338_s17 + $0x1560] sm:$0xff]  ;;  %v1563_v16 = vld [vmem:[%s13338_s17 + $0x1568] sm:$0xff]  ;;  %18840 = vst [vmem:[#allocation140_spill] sm:$0xff] %v14013_v45  ;;  %18841 = vst [vmem:[#allocation141_spill] sm:$0xff] %v14015_v46 }
 0x51b   : > { %6206 = vmatprep.subr.bf16.mxu0 %v13987_v25  ;;  %6247 = vmatprep.subr.bf16.mxu1 %v13989_v26  ;;  %v14019_v19 = vcombine.high %v1510_v62, %v1562_v15  ;;  %v14021_v21 = vcombine.high %v1511_v18, %v1563_v16  ;;  %v1614_v26 = vld [vmem:[%s13338_s17 + $0x1700] sm:$0xff]  ;;  %v1615_v25 = vld [vmem:[%s13338_s17 + $0x1708] sm:$0xff]  ;;  %v14029_v32 = vcombine.low %v1510_v62, %v1562_v15 }
 0x51c   : > { %v14031_v33 = vcombine.low %v1511_v18, %v1563_v16 }
 0x51d   : > { %18842 = vst [vmem:[#allocation142_spill] sm:$0xff] %v14019_v19  ;;  %18843 = vst [vmem:[#allocation143_spill] sm:$0xff] %v14021_v21 }
 0x51e   : > { %6207 = vmatpush1.bf16.msra.mxu0 %v13997_v28  ;;  %6248 = vmatpush1.bf16.msra.mxu1 %v13999_v3  ;;  %v1666_v28 = vld [vmem:[%s13338_s17 + $0x18a0] sm:$0xff]  ;;  %v1667_v3 = vld [vmem:[%s13338_s17 + $0x18a8] sm:$0xff]  ;;  %18844 = vst [vmem:[#allocation144_spill] sm:$0xff] %v14029_v32  ;;  %18845 = vst [vmem:[#allocation145_spill] sm:$0xff] %v14031_v33 }
 0x51f   : > { %6208 = vmatprep.subr.bf16.mxu0 %v14003_v6  ;;  %6249 = vmatprep.subr.bf16.mxu1 %v14005_v14  ;;  %v14035_v39 = vcombine.high %v1614_v26, %v1666_v28  ;;  %v14037_v41 = vcombine.high %v1615_v25, %v1667_v3  ;;  %v888_v14 = vld [vmem:[%s13338_s17 + $0x50] sm:$0xff]  ;;  %v889_v6 = vld [vmem:[%s13338_s17 + $0x58] sm:$0xff]  ;;  %v14045_v18 = vcombine.low %v1614_v26, %v1666_v28 }
 0x520   : > { %v14047_v62 = vcombine.low %v1615_v25, %v1667_v3 }
 0x521   : > { %18846 = vst [vmem:[#allocation146_spill] sm:$0xff] %v14035_v39  ;;  %18847 = vst [vmem:[#allocation147_spill] sm:$0xff] %v14037_v41 }
 0x522   : > { %6209 = vmatpush1.bf16.msra.mxu0 %v14013_v45  ;;  %6250 = vmatpush1.bf16.msra.mxu1 %v14015_v46  ;;  %v940_v45 = vld [vmem:[%s13338_s17 + $0x1f0] sm:$0xff]  ;;  %v941_v46 = vld [vmem:[%s13338_s17 + $0x1f8] sm:$0xff]  ;;  %18848 = vst [vmem:[#allocation148_spill] sm:$0xff] %v14045_v18  ;;  %18849 = vst [vmem:[#allocation149_spill] sm:$0xff] %v14047_v62 }
 0x523   : > { %6210 = vmatprep.subr.bf16.mxu0 %v14019_v19  ;;  %6251 = vmatprep.subr.bf16.mxu1 %v14021_v21  ;;  %v14051_v15 = vcombine.high %v888_v14, %v940_v45  ;;  %v14053_v16 = vcombine.high %v889_v6, %v941_v46  ;;  %v992_v21 = vld [vmem:[%s13338_s17 + $0x390] sm:$0xff]  ;;  %v993_v19 = vld [vmem:[%s13338_s17 + $0x398] sm:$0xff]  ;;  %v14061_v25 = vcombine.low %v888_v14, %v940_v45 }
 0x524   : > { %v14063_v26 = vcombine.low %v889_v6, %v941_v46 }
 0x525   : > { %18850 = vst [vmem:[#allocation150_spill] sm:$0xff] %v14051_v15  ;;  %18851 = vst [vmem:[#allocation151_spill] sm:$0xff] %v14053_v16 }
 0x526   : > { %6211 = vmatpush1.bf16.msra.mxu0 %v14029_v32  ;;  %6252 = vmatpush1.bf16.msra.mxu1 %v14031_v33  ;;  %v1044_v32 = vld [vmem:[%s13338_s17 + $0x530] sm:$0xff]  ;;  %v1045_v33 = vld [vmem:[%s13338_s17 + $0x538] sm:$0xff]  ;;  %18852 = vst [vmem:[#allocation152_spill] sm:$0xff] %v14061_v25  ;;  %18853 = vst [vmem:[#allocation153_spill] sm:$0xff] %v14063_v26 }
 0x527   : > { %6212 = vmatprep.subr.bf16.mxu0 %v14035_v39  ;;  %6253 = vmatprep.subr.bf16.mxu1 %v14037_v41  ;;  %v14067_v28 = vcombine.high %v992_v21, %v1044_v32  ;;  %v14069_v3 = vcombine.high %v993_v19, %v1045_v33  ;;  %v1096_v41 = vld [vmem:[%s13338_s17 + $0x6d0] sm:$0xff]  ;;  %v14079_v6 = vcombine.low %v992_v21, %v1044_v32 }
 0x528   : > { %v1148_v39 = vld [vmem:[%s13338_s17 + $0x870] sm:$0xff]  ;;  %v14081_v14 = vcombine.low %v993_v19, %v1045_v33 }
 0x529   : > { %18854 = vst [vmem:[#allocation154_spill] sm:$0xff] %v14067_v28  ;;  %18855 = vst [vmem:[#allocation155_spill] sm:$0xff] %v14069_v3  ;;  %v14085_v45 = vcombine.high %v1096_v41, %v1148_v39  ;;  %v14097_v19 = vcombine.low %v1096_v41, %v1148_v39 }
 0x52a   : > { %6213 = vmatpush1.bf16.msra.mxu0 %v14045_v18  ;;  %6254 = vmatpush1.bf16.msra.mxu1 %v14047_v62  ;;  %v1097_v18 = vld [vmem:[%s13338_s17 + $0x6d8] sm:$0xff]  ;;  %18856 = vst [vmem:[#allocation156_spill] sm:$0xff] %v14079_v6  ;;  %18857 = vst [vmem:[#allocation157_spill] sm:$0xff] %v14081_v14 }
 0x52b   : > { %6280 = vmatprep.subr.bf16.mxu0 %v14051_v15  ;;  %6321 = vmatprep.subr.bf16.mxu1 %v14053_v16  ;;  %v1149_v62 = vld [vmem:[%s13338_s17 + $0x878] sm:$0xff]  ;;  %18858 = vst [vmem:[#allocation158_spill] sm:$0xff] %v14085_v45  ;;  %v1200_v16 = vld [vmem:[%s13338_s17 + $0xa10] sm:$0xff]  ;;  %18860 = vst [vmem:[#allocation160_spill] sm:$0xff] %v14097_v19 }
 0x52c   : > { %v14087_v46 = vcombine.high %v1097_v18, %v1149_v62  ;;  %v1252_v15 = vld [vmem:[%s13338_s17 + $0xbb0] sm:$0xff]  ;;  %v14099_v21 = vcombine.low %v1097_v18, %v1149_v62 }
 0x52d   : > { %6231 = vmatmul.mubr.bf16.vlgmr.msra.gmra.mrb[20].mxu0 %v13537_v0  ;;  %6272 = vmatmul.mubr.bf16.vlgmr.msra.gmra.mrb[20].mxu1 %v13537_v0  ;;  %v14103_v32 = vcombine.high %v1200_v16, %v1252_v15  ;;  %v14113_v39 = vcombine.low %v1200_v16, %v1252_v15 }
 0x52e   : > { %6281 = vmatpush1.bf16.msra.mxu0 %v14061_v25  ;;  %6322 = vmatpush1.bf16.msra.mxu1 %v14063_v26  ;;  %18859 = vst [vmem:[#allocation159_spill] sm:$0xff] %v14087_v46  ;;  %v1201_v25 = vld [vmem:[%s13338_s17 + $0xa18] sm:$0xff]  ;;  %18861 = vst [vmem:[#allocation161_spill] sm:$0xff] %v14099_v21 }
 0x52f   : > { %6282 = vmatprep.subr.bf16.mxu0 %v14067_v28  ;;  %6323 = vmatprep.subr.bf16.mxu1 %v14069_v3  ;;  %v1253_v26 = vld [vmem:[%s13338_s17 + $0xbb8] sm:$0xff]  ;;  %18862 = vst [vmem:[#allocation162_spill] sm:$0xff] %v14103_v32  ;;  %v1304_v3 = vld [vmem:[%s13338_s17 + $0xd50] sm:$0xff]  ;;  %18864 = vst [vmem:[#allocation164_spill] sm:$0xff] %v14113_v39 }
 0x530   : > { %6312 = vmatprep.mubr.bf16.mxu0 %v18763_v29  ;;  %6353 = vmatprep.mubr.bf16.mxu1 %v18763_v29  ;;  %v14105_v33 = vcombine.high %v1201_v25, %v1253_v26  ;;  %v1305_v28 = vld [vmem:[%s13338_s17 + $0xd58] sm:$0xff]  ;;  %v14115_v41 = vcombine.low %v1201_v25, %v1253_v26 }
 0x532   : > { %6283 = vmatpush1.bf16.msra.mxu0 %v14079_v6  ;;  %6324 = vmatpush1.bf16.msra.mxu1 %v14081_v14  ;;  %18863 = vst [vmem:[#allocation163_spill] sm:$0xff] %v14105_v33  ;;  %v1356_v6 = vld [vmem:[%s13338_s17 + $0xef0] sm:$0xff]  ;;  %v1357_v14 = vld [vmem:[%s13338_s17 + $0xef8] sm:$0xff]  ;;  %18865 = vst [vmem:[#allocation165_spill] sm:$0xff] %v14115_v41 }
 0x533   : > { %6284 = vmatprep.subr.bf16.mxu0 %v14085_v45  ;;  %6325 = vmatprep.subr.bf16.mxu1 %v14087_v46  ;;  %v14119_v18 = vcombine.high %v1304_v3, %v1356_v6  ;;  %v14121_v62 = vcombine.high %v1305_v28, %v1357_v14  ;;  %v1408_v46 = vld [vmem:[%s13338_s17 + $0x1090] sm:$0xff]  ;;  %v1409_v45 = vld [vmem:[%s13338_s17 + $0x1098] sm:$0xff]  ;;  %v14129_v15 = vcombine.low %v1304_v3, %v1356_v6 }
 0x534   : > { %v14131_v16 = vcombine.low %v1305_v28, %v1357_v14 }
 0x535   : > { %18866 = vst [vmem:[#allocation166_spill] sm:$0xff] %v14119_v18  ;;  %18867 = vst [vmem:[#allocation167_spill] sm:$0xff] %v14121_v62 }
 0x536   : > { %6285 = vmatpush1.bf16.msra.mxu0 %v14097_v19  ;;  %6326 = vmatpush1.bf16.msra.mxu1 %v14099_v21  ;;  %v1460_v19 = vld [vmem:[%s13338_s17 + $0x1230] sm:$0xff]  ;;  %v1461_v21 = vld [vmem:[%s13338_s17 + $0x1238] sm:$0xff]  ;;  %18868 = vst [vmem:[#allocation168_spill] sm:$0xff] %v14129_v15  ;;  %18869 = vst [vmem:[#allocation169_spill] sm:$0xff] %v14131_v16 }
 0x537   : > { %6286 = vmatprep.subr.bf16.mxu0 %v14103_v32  ;;  %6327 = vmatprep.subr.bf16.mxu1 %v14105_v33  ;;  %v14135_v25 = vcombine.high %v1408_v46, %v1460_v19  ;;  %v14137_v26 = vcombine.high %v1409_v45, %v1461_v21  ;;  %v1512_v33 = vld [vmem:[%s13338_s17 + $0x13d0] sm:$0xff]  ;;  %v1513_v32 = vld [vmem:[%s13338_s17 + $0x13d8] sm:$0xff]  ;;  %v14145_v28 = vcombine.low %v1408_v46, %v1460_v19 }
 0x538   : > { %v14147_v3 = vcombine.low %v1409_v45, %v1461_v21 }
 0x539   : > { %18870 = vst [vmem:[#allocation170_spill] sm:$0xff] %v14135_v25  ;;  %18871 = vst [vmem:[#allocation171_spill] sm:$0xff] %v14137_v26 }
 0x53a   : > { %6287 = vmatpush1.bf16.msra.mxu0 %v14113_v39  ;;  %6328 = vmatpush1.bf16.msra.mxu1 %v14115_v41  ;;  %v1564_v39 = vld [vmem:[%s13338_s17 + $0x1570] sm:$0xff]  ;;  %v1565_v41 = vld [vmem:[%s13338_s17 + $0x1578] sm:$0xff]  ;;  %18872 = vst [vmem:[#allocation172_spill] sm:$0xff] %v14145_v28  ;;  %18873 = vst [vmem:[#allocation173_spill] sm:$0xff] %v14147_v3 }
 0x53b   : > { %6288 = vmatprep.subr.bf16.mxu0 %v14119_v18  ;;  %6329 = vmatprep.subr.bf16.mxu1 %v14121_v62  ;;  %v14151_v6 = vcombine.high %v1512_v33, %v1564_v39  ;;  %v14153_v14 = vcombine.high %v1513_v32, %v1565_v41  ;;  %v1616_v62 = vld [vmem:[%s13338_s17 + $0x1710] sm:$0xff]  ;;  %v1617_v18 = vld [vmem:[%s13338_s17 + $0x1718] sm:$0xff]  ;;  %v14161_v45 = vcombine.low %v1512_v33, %v1564_v39 }
 0x53c   : > { %v14163_v46 = vcombine.low %v1513_v32, %v1565_v41 }
 0x53d   : > { %18874 = vst [vmem:[#allocation174_spill] sm:$0xff] %v14151_v6  ;;  %18875 = vst [vmem:[#allocation175_spill] sm:$0xff] %v14153_v14 }
 0x53e   : > { %6289 = vmatpush1.bf16.msra.mxu0 %v14129_v15  ;;  %6330 = vmatpush1.bf16.msra.mxu1 %v14131_v16  ;;  %v1668_v15 = vld [vmem:[%s13338_s17 + $0x18b0] sm:$0xff]  ;;  %v1669_v16 = vld [vmem:[%s13338_s17 + $0x18b8] sm:$0xff]  ;;  %18876 = vst [vmem:[#allocation176_spill] sm:$0xff] %v14161_v45  ;;  %18877 = vst [vmem:[#allocation177_spill] sm:$0xff] %v14163_v46 }
 0x53f   : > { %6290 = vmatprep.subr.bf16.mxu0 %v14135_v25  ;;  %6331 = vmatprep.subr.bf16.mxu1 %v14137_v26  ;;  %v14167_v19 = vcombine.high %v1616_v62, %v1668_v15  ;;  %v14169_v21 = vcombine.high %v1617_v18, %v1669_v16  ;;  %v890_v26 = vld [vmem:[%s13338_s17 + $0x60] sm:$0xff]  ;;  %v891_v25 = vld [vmem:[%s13338_s17 + $0x68] sm:$0xff]  ;;  %v14177_v32 = vcombine.low %v1616_v62, %v1668_v15 }
 0x540   : > { %v14179_v33 = vcombine.low %v1617_v18, %v1669_v16 }
 0x541   : > { %18878 = vst [vmem:[#allocation178_spill] sm:$0xff] %v14167_v19  ;;  %18879 = vst [vmem:[#allocation179_spill] sm:$0xff] %v14169_v21 }
 0x542   : > { %6291 = vmatpush1.bf16.msra.mxu0 %v14145_v28  ;;  %6332 = vmatpush1.bf16.msra.mxu1 %v14147_v3  ;;  %v942_v28 = vld [vmem:[%s13338_s17 + $0x200] sm:$0xff]  ;;  %v943_v3 = vld [vmem:[%s13338_s17 + $0x208] sm:$0xff]  ;;  %18880 = vst [vmem:[#allocation180_spill] sm:$0xff] %v14177_v32  ;;  %18881 = vst [vmem:[#allocation181_spill] sm:$0xff] %v14179_v33 }
 0x543   : > { %6292 = vmatprep.subr.bf16.mxu0 %v14151_v6  ;;  %6333 = vmatprep.subr.bf16.mxu1 %v14153_v14  ;;  %v14183_v39 = vcombine.high %v890_v26, %v942_v28  ;;  %v14185_v41 = vcombine.high %v891_v25, %v943_v3  ;;  %v994_v14 = vld [vmem:[%s13338_s17 + $0x3a0] sm:$0xff]  ;;  %v995_v6 = vld [vmem:[%s13338_s17 + $0x3a8] sm:$0xff]  ;;  %v14193_v18 = vcombine.low %v890_v26, %v942_v28 }
 0x544   : > { %v14195_v62 = vcombine.low %v891_v25, %v943_v3 }
 0x545   : > { %18882 = vst [vmem:[#allocation182_spill] sm:$0xff] %v14183_v39  ;;  %18883 = vst [vmem:[#allocation183_spill] sm:$0xff] %v14185_v41 }
 0x546   : > { %6293 = vmatpush1.bf16.msra.mxu0 %v14161_v45  ;;  %6334 = vmatpush1.bf16.msra.mxu1 %v14163_v46  ;;  %v1046_v45 = vld [vmem:[%s13338_s17 + $0x540] sm:$0xff]  ;;  %v1047_v46 = vld [vmem:[%s13338_s17 + $0x548] sm:$0xff]  ;;  %18884 = vst [vmem:[#allocation184_spill] sm:$0xff] %v14193_v18  ;;  %18885 = vst [vmem:[#allocation185_spill] sm:$0xff] %v14195_v62 }
 0x547   : > { %6294 = vmatprep.subr.bf16.mxu0 %v14167_v19  ;;  %6335 = vmatprep.subr.bf16.mxu1 %v14169_v21  ;;  %v14199_v15 = vcombine.high %v994_v14, %v1046_v45  ;;  %v14201_v16 = vcombine.high %v995_v6, %v1047_v46  ;;  %v1098_v21 = vld [vmem:[%s13338_s17 + $0x6e0] sm:$0xff]  ;;  %v14211_v25 = vcombine.low %v994_v14, %v1046_v45 }
 0x548   : > { %v1150_v19 = vld [vmem:[%s13338_s17 + $0x880] sm:$0xff]  ;;  %v14213_v26 = vcombine.low %v995_v6, %v1047_v46 }
 0x549   : > { %18886 = vst [vmem:[#allocation186_spill] sm:$0xff] %v14199_v15  ;;  %18887 = vst [vmem:[#allocation187_spill] sm:$0xff] %v14201_v16  ;;  %v14217_v28 = vcombine.high %v1098_v21, %v1150_v19  ;;  %v14229_v6 = vcombine.low %v1098_v21, %v1150_v19 }
 0x54a   : > { %6295 = vmatpush1.bf16.msra.mxu0 %v14177_v32  ;;  %6336 = vmatpush1.bf16.msra.mxu1 %v14179_v33  ;;  %v1099_v32 = vld [vmem:[%s13338_s17 + $0x6e8] sm:$0xff]  ;;  %18888 = vst [vmem:[#allocation188_spill] sm:$0xff] %v14211_v25  ;;  %18889 = vst [vmem:[#allocation189_spill] sm:$0xff] %v14213_v26 }
 0x54b   : > { %6362 = vmatprep.subr.bf16.mxu0 %v14183_v39  ;;  %6403 = vmatprep.subr.bf16.mxu1 %v14185_v41  ;;  %v1151_v33 = vld [vmem:[%s13338_s17 + $0x888] sm:$0xff]  ;;  %18890 = vst [vmem:[#allocation190_spill] sm:$0xff] %v14217_v28  ;;  %v1202_v41 = vld [vmem:[%s13338_s17 + $0xa20] sm:$0xff]  ;;  %18892 = vst [vmem:[#allocation192_spill] sm:$0xff] %v14229_v6 }
 0x54c   : > { %v14219_v3 = vcombine.high %v1099_v32, %v1151_v33  ;;  %v1254_v39 = vld [vmem:[%s13338_s17 + $0xbc0] sm:$0xff]  ;;  %v14231_v14 = vcombine.low %v1099_v32, %v1151_v33 }
 0x54d   : > { %6313 = vmatmul.mubr.bf16.vlgmr.msra.gmra.mrb[24].mxu0 %v13537_v0  ;;  %6354 = vmatmul.mubr.bf16.vlgmr.msra.gmra.mrb[24].mxu1 %v13537_v0  ;;  %v14235_v45 = vcombine.high %v1202_v41, %v1254_v39  ;;  %v14245_v19 = vcombine.low %v1202_v41, %v1254_v39 }
 0x54e   : > { %6363 = vmatpush1.bf16.msra.mxu0 %v14193_v18  ;;  %6404 = vmatpush1.bf16.msra.mxu1 %v14195_v62  ;;  %18891 = vst [vmem:[#allocation191_spill] sm:$0xff] %v14219_v3  ;;  %v1203_v18 = vld [vmem:[%s13338_s17 + $0xa28] sm:$0xff]  ;;  %18893 = vst [vmem:[#allocation193_spill] sm:$0xff] %v14231_v14 }
 0x54f   : > { %6364 = vmatprep.subr.bf16.mxu0 %v14199_v15  ;;  %6405 = vmatprep.subr.bf16.mxu1 %v14201_v16  ;;  %v1255_v62 = vld [vmem:[%s13338_s17 + $0xbc8] sm:$0xff]  ;;  %18894 = vst [vmem:[#allocation194_spill] sm:$0xff] %v14235_v45  ;;  %v1306_v16 = vld [vmem:[%s13338_s17 + $0xd60] sm:$0xff]  ;;  %18896 = vst [vmem:[#allocation196_spill] sm:$0xff] %v14245_v19 }
 0x550   : > { %6394 = vmatprep.mubr.bf16.mxu0 %v18763_v29  ;;  %6435 = vmatprep.mubr.bf16.mxu1 %v18763_v29  ;;  %v14237_v46 = vcombine.high %v1203_v18, %v1255_v62  ;;  %v1307_v15 = vld [vmem:[%s13338_s17 + $0xd68] sm:$0xff]  ;;  %v14247_v21 = vcombine.low %v1203_v18, %v1255_v62 }
 0x552   : > { %6365 = vmatpush1.bf16.msra.mxu0 %v14211_v25  ;;  %6406 = vmatpush1.bf16.msra.mxu1 %v14213_v26  ;;  %18895 = vst [vmem:[#allocation195_spill] sm:$0xff] %v14237_v46  ;;  %v1358_v25 = vld [vmem:[%s13338_s17 + $0xf00] sm:$0xff]  ;;  %v1359_v26 = vld [vmem:[%s13338_s17 + $0xf08] sm:$0xff]  ;;  %18897 = vst [vmem:[#allocation197_spill] sm:$0xff] %v14247_v21 }
 0x553   : > { %6366 = vmatprep.subr.bf16.mxu0 %v14217_v28  ;;  %6407 = vmatprep.subr.bf16.mxu1 %v14219_v3  ;;  %v14251_v32 = vcombine.high %v1306_v16, %v1358_v25  ;;  %v14253_v33 = vcombine.high %v1307_v15, %v1359_v26  ;;  %v1410_v3 = vld [vmem:[%s13338_s17 + $0x10a0] sm:$0xff]  ;;  %v1411_v28 = vld [vmem:[%s13338_s17 + $0x10a8] sm:$0xff]  ;;  %v14261_v39 = vcombine.low %v1306_v16, %v1358_v25 }
 0x554   : > { %v14263_v41 = vcombine.low %v1307_v15, %v1359_v26 }
 0x555   : > { %18898 = vst [vmem:[#allocation198_spill] sm:$0xff] %v14251_v32  ;;  %18899 = vst [vmem:[#allocation199_spill] sm:$0xff] %v14253_v33 }
 0x556   : > { %6367 = vmatpush1.bf16.msra.mxu0 %v14229_v6  ;;  %6408 = vmatpush1.bf16.msra.mxu1 %v14231_v14  ;;  %v1462_v6 = vld [vmem:[%s13338_s17 + $0x1240] sm:$0xff]  ;;  %v1463_v14 = vld [vmem:[%s13338_s17 + $0x1248] sm:$0xff]  ;;  %18900 = vst [vmem:[#allocation200_spill] sm:$0xff] %v14261_v39  ;;  %18901 = vst [vmem:[#allocation201_spill] sm:$0xff] %v14263_v41 }
 0x557   : > { %6368 = vmatprep.subr.bf16.mxu0 %v14235_v45  ;;  %6409 = vmatprep.subr.bf16.mxu1 %v14237_v46  ;;  %v14267_v18 = vcombine.high %v1410_v3, %v1462_v6  ;;  %v14269_v62 = vcombine.high %v1411_v28, %v1463_v14  ;;  %v1514_v46 = vld [vmem:[%s13338_s17 + $0x13e0] sm:$0xff]  ;;  %v1515_v45 = vld [vmem:[%s13338_s17 + $0x13e8] sm:$0xff]  ;;  %v14277_v15 = vcombine.low %v1410_v3, %v1462_v6 }
 0x558   : > { %v14279_v16 = vcombine.low %v1411_v28, %v1463_v14 }
 0x559   : > { %18902 = vst [vmem:[#allocation202_spill] sm:$0xff] %v14267_v18  ;;  %18903 = vst [vmem:[#allocation203_spill] sm:$0xff] %v14269_v62 }
 0x55a   : > { %6369 = vmatpush1.bf16.msra.mxu0 %v14245_v19  ;;  %6410 = vmatpush1.bf16.msra.mxu1 %v14247_v21  ;;  %v1566_v19 = vld [vmem:[%s13338_s17 + $0x1580] sm:$0xff]  ;;  %v1567_v21 = vld [vmem:[%s13338_s17 + $0x1588] sm:$0xff]  ;;  %18904 = vst [vmem:[#allocation204_spill] sm:$0xff] %v14277_v15  ;;  %18905 = vst [vmem:[#allocation205_spill] sm:$0xff] %v14279_v16 }
 0x55b   : > { %6370 = vmatprep.subr.bf16.mxu0 %v14251_v32  ;;  %6411 = vmatprep.subr.bf16.mxu1 %v14253_v33  ;;  %v14283_v25 = vcombine.high %v1514_v46, %v1566_v19  ;;  %v14285_v26 = vcombine.high %v1515_v45, %v1567_v21  ;;  %v1618_v33 = vld [vmem:[%s13338_s17 + $0x1720] sm:$0xff]  ;;  %v1619_v32 = vld [vmem:[%s13338_s17 + $0x1728] sm:$0xff]  ;;  %v14293_v28 = vcombine.low %v1514_v46, %v1566_v19 }
 0x55c   : > { %v14295_v3 = vcombine.low %v1515_v45, %v1567_v21 }
 0x55d   : > { %18906 = vst [vmem:[#allocation206_spill] sm:$0xff] %v14283_v25  ;;  %18907 = vst [vmem:[#allocation207_spill] sm:$0xff] %v14285_v26 }
 0x55e   : > { %6371 = vmatpush1.bf16.msra.mxu0 %v14261_v39  ;;  %6412 = vmatpush1.bf16.msra.mxu1 %v14263_v41  ;;  %v1670_v39 = vld [vmem:[%s13338_s17 + $0x18c0] sm:$0xff]  ;;  %v1671_v41 = vld [vmem:[%s13338_s17 + $0x18c8] sm:$0xff]  ;;  %18908 = vst [vmem:[#allocation208_spill] sm:$0xff] %v14293_v28  ;;  %18909 = vst [vmem:[#allocation209_spill] sm:$0xff] %v14295_v3 }
 0x55f   : > { %6372 = vmatprep.subr.bf16.mxu0 %v14267_v18  ;;  %6413 = vmatprep.subr.bf16.mxu1 %v14269_v62  ;;  %v14299_v6 = vcombine.high %v1618_v33, %v1670_v39  ;;  %v14301_v14 = vcombine.high %v1619_v32, %v1671_v41  ;;  %v892_v62 = vld [vmem:[%s13338_s17 + $0x70] sm:$0xff]  ;;  %v893_v18 = vld [vmem:[%s13338_s17 + $0x78] sm:$0xff]  ;;  %v14309_v45 = vcombine.low %v1618_v33, %v1670_v39 }
 0x560   : > { %v14311_v46 = vcombine.low %v1619_v32, %v1671_v41 }
 0x561   : > { %18910 = vst [vmem:[#allocation210_spill] sm:$0xff] %v14299_v6  ;;  %18911 = vst [vmem:[#allocation211_spill] sm:$0xff] %v14301_v14 }
 0x562   : > { %6373 = vmatpush1.bf16.msra.mxu0 %v14277_v15  ;;  %6414 = vmatpush1.bf16.msra.mxu1 %v14279_v16  ;;  %v944_v15 = vld [vmem:[%s13338_s17 + $0x210] sm:$0xff]  ;;  %v945_v16 = vld [vmem:[%s13338_s17 + $0x218] sm:$0xff]  ;;  %18912 = vst [vmem:[#allocation212_spill] sm:$0xff] %v14309_v45  ;;  %18913 = vst [vmem:[#allocation213_spill] sm:$0xff] %v14311_v46 }
 0x563   : > { %6374 = vmatprep.subr.bf16.mxu0 %v14283_v25  ;;  %6415 = vmatprep.subr.bf16.mxu1 %v14285_v26  ;;  %v14315_v19 = vcombine.high %v892_v62, %v944_v15  ;;  %v14317_v21 = vcombine.high %v893_v18, %v945_v16  ;;  %v996_v26 = vld [vmem:[%s13338_s17 + $0x3b0] sm:$0xff]  ;;  %v997_v25 = vld [vmem:[%s13338_s17 + $0x3b8] sm:$0xff]  ;;  %v14325_v32 = vcombine.low %v892_v62, %v944_v15 }
 0x564   : > { %v14327_v33 = vcombine.low %v893_v18, %v945_v16 }
 0x565   : > { %18914 = vst [vmem:[#allocation214_spill] sm:$0xff] %v14315_v19  ;;  %18915 = vst [vmem:[#allocation215_spill] sm:$0xff] %v14317_v21 }
 0x566   : > { %6375 = vmatpush1.bf16.msra.mxu0 %v14293_v28  ;;  %6416 = vmatpush1.bf16.msra.mxu1 %v14295_v3  ;;  %v1048_v28 = vld [vmem:[%s13338_s17 + $0x550] sm:$0xff]  ;;  %v1049_v3 = vld [vmem:[%s13338_s17 + $0x558] sm:$0xff]  ;;  %18916 = vst [vmem:[#allocation216_spill] sm:$0xff] %v14325_v32  ;;  %18917 = vst [vmem:[#allocation217_spill] sm:$0xff] %v14327_v33 }
 0x567   : > { %6376 = vmatprep.subr.bf16.mxu0 %v14299_v6  ;;  %6417 = vmatprep.subr.bf16.mxu1 %v14301_v14  ;;  %v14331_v39 = vcombine.high %v996_v26, %v1048_v28  ;;  %v14333_v41 = vcombine.high %v997_v25, %v1049_v3  ;;  %v1100_v14 = vld [vmem:[%s13338_s17 + $0x6f0] sm:$0xff]  ;;  %v14343_v18 = vcombine.low %v996_v26, %v1048_v28 }
 0x568   : > { %v1152_v6 = vld [vmem:[%s13338_s17 + $0x890] sm:$0xff]  ;;  %v14345_v62 = vcombine.low %v997_v25, %v1049_v3 }
 0x569   : > { %18918 = vst [vmem:[#allocation218_spill] sm:$0xff] %v14331_v39  ;;  %18919 = vst [vmem:[#allocation219_spill] sm:$0xff] %v14333_v41  ;;  %v14349_v15 = vcombine.high %v1100_v14, %v1152_v6  ;;  %v14361_v25 = vcombine.low %v1100_v14, %v1152_v6 }
 0x56a   : > { %6377 = vmatpush1.bf16.msra.mxu0 %v14309_v45  ;;  %6418 = vmatpush1.bf16.msra.mxu1 %v14311_v46  ;;  %v1101_v45 = vld [vmem:[%s13338_s17 + $0x6f8] sm:$0xff]  ;;  %18920 = vst [vmem:[#allocation220_spill] sm:$0xff] %v14343_v18  ;;  %18921 = vst [vmem:[#allocation221_spill] sm:$0xff] %v14345_v62 }
 0x56b   : > { %6444 = vmatprep.subr.bf16.mxu0 %v14315_v19  ;;  %6485 = vmatprep.subr.bf16.mxu1 %v14317_v21  ;;  %v1153_v46 = vld [vmem:[%s13338_s17 + $0x898] sm:$0xff]  ;;  %18922 = vst [vmem:[#allocation222_spill] sm:$0xff] %v14349_v15  ;;  %v1204_v21 = vld [vmem:[%s13338_s17 + $0xa30] sm:$0xff]  ;;  %18924 = vst [vmem:[#allocation224_spill] sm:$0xff] %v14361_v25 }
 0x56c   : > { %v14351_v16 = vcombine.high %v1101_v45, %v1153_v46  ;;  %v1256_v19 = vld [vmem:[%s13338_s17 + $0xbd0] sm:$0xff]  ;;  %v14363_v26 = vcombine.low %v1101_v45, %v1153_v46 }
 0x56d   : > { %6395 = vmatmul.mubr.bf16.vlgmr.msra.gmra.mrb[28].mxu0 %v13537_v0  ;;  %6436 = vmatmul.mubr.bf16.vlgmr.msra.gmra.mrb[28].mxu1 %v13537_v0  ;;  %v14367_v28 = vcombine.high %v1204_v21, %v1256_v19  ;;  %v14377_v6 = vcombine.low %v1204_v21, %v1256_v19 }
 0x56e   : > { %6445 = vmatpush1.bf16.msra.mxu0 %v14325_v32  ;;  %6486 = vmatpush1.bf16.msra.mxu1 %v14327_v33  ;;  %18923 = vst [vmem:[#allocation223_spill] sm:$0xff] %v14351_v16  ;;  %v1205_v32 = vld [vmem:[%s13338_s17 + $0xa38] sm:$0xff]  ;;  %18925 = vst [vmem:[#allocation225_spill] sm:$0xff] %v14363_v26 }
 0x56f   : > { %6446 = vmatprep.subr.bf16.mxu0 %v14331_v39  ;;  %6487 = vmatprep.subr.bf16.mxu1 %v14333_v41  ;;  %v1257_v33 = vld [vmem:[%s13338_s17 + $0xbd8] sm:$0xff]  ;;  %18926 = vst [vmem:[#allocation226_spill] sm:$0xff] %v14367_v28  ;;  %v1308_v41 = vld [vmem:[%s13338_s17 + $0xd70] sm:$0xff]  ;;  %18928 = vst [vmem:[#allocation228_spill] sm:$0xff] %v14377_v6 }
 0x570   : > { %6476 = vmatprep.mubr.bf16.mxu0 %v18763_v29  ;;  %6517 = vmatprep.mubr.bf16.mxu1 %v18763_v29  ;;  %v14369_v3 = vcombine.high %v1205_v32, %v1257_v33  ;;  %v1309_v39 = vld [vmem:[%s13338_s17 + $0xd78] sm:$0xff]  ;;  %v14379_v14 = vcombine.low %v1205_v32, %v1257_v33 }
 0x572   : > { %6447 = vmatpush1.bf16.msra.mxu0 %v14343_v18  ;;  %6488 = vmatpush1.bf16.msra.mxu1 %v14345_v62  ;;  %18927 = vst [vmem:[#allocation227_spill] sm:$0xff] %v14369_v3  ;;  %v1360_v18 = vld [vmem:[%s13338_s17 + $0xf10] sm:$0xff]  ;;  %v1361_v62 = vld [vmem:[%s13338_s17 + $0xf18] sm:$0xff]  ;;  %18929 = vst [vmem:[#allocation229_spill] sm:$0xff] %v14379_v14 }
 0x573   : > { %6448 = vmatprep.subr.bf16.mxu0 %v14349_v15  ;;  %6489 = vmatprep.subr.bf16.mxu1 %v14351_v16  ;;  %v14383_v45 = vcombine.high %v1308_v41, %v1360_v18  ;;  %v14385_v46 = vcombine.high %v1309_v39, %v1361_v62  ;;  %v1412_v16 = vld [vmem:[%s13338_s17 + $0x10b0] sm:$0xff]  ;;  %v1413_v15 = vld [vmem:[%s13338_s17 + $0x10b8] sm:$0xff]  ;;  %v14393_v19 = vcombine.low %v1308_v41, %v1360_v18 }
 0x574   : > { %v14395_v21 = vcombine.low %v1309_v39, %v1361_v62 }
 0x575   : > { %18930 = vst [vmem:[#allocation230_spill] sm:$0xff] %v14383_v45  ;;  %18931 = vst [vmem:[#allocation231_spill] sm:$0xff] %v14385_v46 }
 0x576   : > { %6449 = vmatpush1.bf16.msra.mxu0 %v14361_v25  ;;  %6490 = vmatpush1.bf16.msra.mxu1 %v14363_v26  ;;  %v1464_v25 = vld [vmem:[%s13338_s17 + $0x1250] sm:$0xff]  ;;  %v1465_v26 = vld [vmem:[%s13338_s17 + $0x1258] sm:$0xff]  ;;  %18932 = vst [vmem:[#allocation232_spill] sm:$0xff] %v14393_v19  ;;  %18933 = vst [vmem:[#allocation233_spill] sm:$0xff] %v14395_v21 }
 0x577   : > { %6450 = vmatprep.subr.bf16.mxu0 %v14367_v28  ;;  %6491 = vmatprep.subr.bf16.mxu1 %v14369_v3  ;;  %v14399_v32 = vcombine.high %v1412_v16, %v1464_v25  ;;  %v14401_v33 = vcombine.high %v1413_v15, %v1465_v26  ;;  %v1516_v3 = vld [vmem:[%s13338_s17 + $0x13f0] sm:$0xff]  ;;  %v1517_v28 = vld [vmem:[%s13338_s17 + $0x13f8] sm:$0xff]  ;;  %v14409_v39 = vcombine.low %v1412_v16, %v1464_v25 }
 0x578   : > { %v14411_v41 = vcombine.low %v1413_v15, %v1465_v26 }
 0x579   : > { %18934 = vst [vmem:[#allocation234_spill] sm:$0xff] %v14399_v32  ;;  %18935 = vst [vmem:[#allocation235_spill] sm:$0xff] %v14401_v33 }
 0x57a   : > { %6451 = vmatpush1.bf16.msra.mxu0 %v14377_v6  ;;  %6492 = vmatpush1.bf16.msra.mxu1 %v14379_v14  ;;  %v1568_v6 = vld [vmem:[%s13338_s17 + $0x1590] sm:$0xff]  ;;  %v1569_v14 = vld [vmem:[%s13338_s17 + $0x1598] sm:$0xff]  ;;  %18936 = vst [vmem:[#allocation236_spill] sm:$0xff] %v14409_v39  ;;  %18937 = vst [vmem:[#allocation237_spill] sm:$0xff] %v14411_v41 }
 0x57b   : > { %6452 = vmatprep.subr.bf16.mxu0 %v14383_v45  ;;  %6493 = vmatprep.subr.bf16.mxu1 %v14385_v46  ;;  %v14415_v18 = vcombine.high %v1516_v3, %v1568_v6  ;;  %v14417_v62 = vcombine.high %v1517_v28, %v1569_v14  ;;  %v1620_v46 = vld [vmem:[%s13338_s17 + $0x1730] sm:$0xff]  ;;  %v1621_v45 = vld [vmem:[%s13338_s17 + $0x1738] sm:$0xff]  ;;  %v14425_v15 = vcombine.low %v1516_v3, %v1568_v6 }
 0x57c   : > { %v14427_v16 = vcombine.low %v1517_v28, %v1569_v14 }
 0x57d   : > { %18938 = vst [vmem:[#allocation238_spill] sm:$0xff] %v14415_v18  ;;  %18939 = vst [vmem:[#allocation239_spill] sm:$0xff] %v14417_v62 }
 0x57e   : > { %6453 = vmatpush1.bf16.msra.mxu0 %v14393_v19  ;;  %6494 = vmatpush1.bf16.msra.mxu1 %v14395_v21  ;;  %v1672_v19 = vld [vmem:[%s13338_s17 + $0x18d0] sm:$0xff]  ;;  %v1673_v21 = vld [vmem:[%s13338_s17 + $0x18d8] sm:$0xff]  ;;  %18940 = vst [vmem:[#allocation240_spill] sm:$0xff] %v14425_v15  ;;  %18941 = vst [vmem:[#allocation241_spill] sm:$0xff] %v14427_v16 }
 0x57f   : > { %6454 = vmatprep.subr.bf16.mxu0 %v14399_v32  ;;  %6495 = vmatprep.subr.bf16.mxu1 %v14401_v33  ;;  %v14431_v25 = vcombine.high %v1620_v46, %v1672_v19  ;;  %v14433_v26 = vcombine.high %v1621_v45, %v1673_v21  ;;  %v894_v33 = vld [vmem:[%s13338_s17 + $0x80] sm:$0xff]  ;;  %v895_v32 = vld [vmem:[%s13338_s17 + $0x88] sm:$0xff]  ;;  %v14441_v28 = vcombine.low %v1620_v46, %v1672_v19 }
 0x580   : > { %v14443_v3 = vcombine.low %v1621_v45, %v1673_v21 }
 0x581   : > { %18942 = vst [vmem:[#allocation242_spill] sm:$0xff] %v14431_v25  ;;  %18943 = vst [vmem:[#allocation243_spill] sm:$0xff] %v14433_v26 }
 0x582   : > { %6455 = vmatpush1.bf16.msra.mxu0 %v14409_v39  ;;  %6496 = vmatpush1.bf16.msra.mxu1 %v14411_v41  ;;  %v946_v39 = vld [vmem:[%s13338_s17 + $0x220] sm:$0xff]  ;;  %v947_v41 = vld [vmem:[%s13338_s17 + $0x228] sm:$0xff]  ;;  %18944 = vst [vmem:[#allocation244_spill] sm:$0xff] %v14441_v28  ;;  %18945 = vst [vmem:[#allocation245_spill] sm:$0xff] %v14443_v3 }
 0x583   : > { %6456 = vmatprep.subr.bf16.mxu0 %v14415_v18  ;;  %6497 = vmatprep.subr.bf16.mxu1 %v14417_v62  ;;  %v14447_v6 = vcombine.high %v894_v33, %v946_v39  ;;  %v14449_v14 = vcombine.high %v895_v32, %v947_v41  ;;  %v998_v62 = vld [vmem:[%s13338_s17 + $0x3c0] sm:$0xff]  ;;  %v999_v18 = vld [vmem:[%s13338_s17 + $0x3c8] sm:$0xff]  ;;  %v14457_v45 = vcombine.low %v894_v33, %v946_v39 }
 0x584   : > { %v14459_v46 = vcombine.low %v895_v32, %v947_v41 }
 0x585   : > { %18946 = vst [vmem:[#allocation246_spill] sm:$0xff] %v14447_v6  ;;  %18947 = vst [vmem:[#allocation247_spill] sm:$0xff] %v14449_v14 }
 0x586   : > { %6457 = vmatpush1.bf16.msra.mxu0 %v14425_v15  ;;  %6498 = vmatpush1.bf16.msra.mxu1 %v14427_v16  ;;  %v1050_v15 = vld [vmem:[%s13338_s17 + $0x560] sm:$0xff]  ;;  %v1051_v16 = vld [vmem:[%s13338_s17 + $0x568] sm:$0xff]  ;;  %18948 = vst [vmem:[#allocation248_spill] sm:$0xff] %v14457_v45  ;;  %18949 = vst [vmem:[#allocation249_spill] sm:$0xff] %v14459_v46 }
 0x587   : > { %6458 = vmatprep.subr.bf16.mxu0 %v14431_v25  ;;  %6499 = vmatprep.subr.bf16.mxu1 %v14433_v26  ;;  %v14463_v19 = vcombine.high %v998_v62, %v1050_v15  ;;  %v14465_v21 = vcombine.high %v999_v18, %v1051_v16  ;;  %v1102_v26 = vld [vmem:[%s13338_s17 + $0x700] sm:$0xff]  ;;  %v14475_v32 = vcombine.low %v998_v62, %v1050_v15 }
 0x588   : > { %v1154_v25 = vld [vmem:[%s13338_s17 + $0x8a0] sm:$0xff]  ;;  %v14477_v33 = vcombine.low %v999_v18, %v1051_v16 }
 0x589   : > { %18950 = vst [vmem:[#allocation250_spill] sm:$0xff] %v14463_v19  ;;  %18951 = vst [vmem:[#allocation251_spill] sm:$0xff] %v14465_v21  ;;  %v14481_v39 = vcombine.high %v1102_v26, %v1154_v25  ;;  %v14493_v18 = vcombine.low %v1102_v26, %v1154_v25 }
 0x58a   : > { %6459 = vmatpush1.bf16.msra.mxu0 %v14441_v28  ;;  %6500 = vmatpush1.bf16.msra.mxu1 %v14443_v3  ;;  %v1103_v28 = vld [vmem:[%s13338_s17 + $0x708] sm:$0xff]  ;;  %18952 = vst [vmem:[#allocation252_spill] sm:$0xff] %v14475_v32  ;;  %18953 = vst [vmem:[#allocation253_spill] sm:$0xff] %v14477_v33 }
 0x58b   : > { %6526 = vmatprep.subr.bf16.mxu0 %v14447_v6  ;;  %6567 = vmatprep.subr.bf16.mxu1 %v14449_v14  ;;  %v1155_v3 = vld [vmem:[%s13338_s17 + $0x8a8] sm:$0xff]  ;;  %18954 = vst [vmem:[#allocation254_spill] sm:$0xff] %v14481_v39  ;;  %v1206_v14 = vld [vmem:[%s13338_s17 + $0xa40] sm:$0xff]  ;;  %18956 = vst [vmem:[#allocation256_spill] sm:$0xff] %v14493_v18 }
 0x58c   : > { %v14483_v41 = vcombine.high %v1103_v28, %v1155_v3  ;;  %v1258_v6 = vld [vmem:[%s13338_s17 + $0xbe0] sm:$0xff]  ;;  %v14495_v62 = vcombine.low %v1103_v28, %v1155_v3 }
 0x58d   : > { %6477 = vmatmul.mubr.bf16.vlgmr.msra.gmra.mrb[32].mxu0 %v13537_v0  ;;  %6518 = vmatmul.mubr.bf16.vlgmr.msra.gmra.mrb[32].mxu1 %v13537_v0  ;;  %v14499_v15 = vcombine.high %v1206_v14, %v1258_v6  ;;  %v14509_v25 = vcombine.low %v1206_v14, %v1258_v6 }
 0x58e   : > { %6527 = vmatpush1.bf16.msra.mxu0 %v14457_v45  ;;  %6568 = vmatpush1.bf16.msra.mxu1 %v14459_v46  ;;  %18955 = vst [vmem:[#allocation255_spill] sm:$0xff] %v14483_v41  ;;  %v1207_v45 = vld [vmem:[%s13338_s17 + $0xa48] sm:$0xff]  ;;  %18957 = vst [vmem:[#allocation257_spill] sm:$0xff] %v14495_v62 }
 0x58f   : > { %6528 = vmatprep.subr.bf16.mxu0 %v14463_v19  ;;  %6569 = vmatprep.subr.bf16.mxu1 %v14465_v21  ;;  %v1259_v46 = vld [vmem:[%s13338_s17 + $0xbe8] sm:$0xff]  ;;  %18958 = vst [vmem:[#allocation258_spill] sm:$0xff] %v14499_v15  ;;  %v1310_v21 = vld [vmem:[%s13338_s17 + $0xd80] sm:$0xff]  ;;  %18960 = vst [vmem:[#allocation260_spill] sm:$0xff] %v14509_v25 }
 0x590   : > { %6558 = vmatprep.mubr.bf16.mxu0 %v18763_v29  ;;  %6599 = vmatprep.mubr.bf16.mxu1 %v18763_v29  ;;  %v14501_v16 = vcombine.high %v1207_v45, %v1259_v46  ;;  %v1311_v19 = vld [vmem:[%s13338_s17 + $0xd88] sm:$0xff]  ;;  %v14511_v26 = vcombine.low %v1207_v45, %v1259_v46 }
 0x592   : > { %6529 = vmatpush1.bf16.msra.mxu0 %v14475_v32  ;;  %6570 = vmatpush1.bf16.msra.mxu1 %v14477_v33  ;;  %18959 = vst [vmem:[#allocation259_spill] sm:$0xff] %v14501_v16  ;;  %v1362_v32 = vld [vmem:[%s13338_s17 + $0xf20] sm:$0xff]  ;;  %v1363_v33 = vld [vmem:[%s13338_s17 + $0xf28] sm:$0xff]  ;;  %18961 = vst [vmem:[#allocation261_spill] sm:$0xff] %v14511_v26 }
 0x593   : > { %6530 = vmatprep.subr.bf16.mxu0 %v14481_v39  ;;  %6571 = vmatprep.subr.bf16.mxu1 %v14483_v41  ;;  %v14515_v28 = vcombine.high %v1310_v21, %v1362_v32  ;;  %v14517_v3 = vcombine.high %v1311_v19, %v1363_v33  ;;  %v1414_v41 = vld [vmem:[%s13338_s17 + $0x10c0] sm:$0xff]  ;;  %v1415_v39 = vld [vmem:[%s13338_s17 + $0x10c8] sm:$0xff]  ;;  %v14525_v6 = vcombine.low %v1310_v21, %v1362_v32 }
 0x594   : > { %v14527_v14 = vcombine.low %v1311_v19, %v1363_v33 }
 0x595   : > { %18962 = vst [vmem:[#allocation262_spill] sm:$0xff] %v14515_v28  ;;  %18963 = vst [vmem:[#allocation263_spill] sm:$0xff] %v14517_v3 }
 0x596   : > { %6531 = vmatpush1.bf16.msra.mxu0 %v14493_v18  ;;  %6572 = vmatpush1.bf16.msra.mxu1 %v14495_v62  ;;  %v1466_v18 = vld [vmem:[%s13338_s17 + $0x1260] sm:$0xff]  ;;  %v1467_v62 = vld [vmem:[%s13338_s17 + $0x1268] sm:$0xff]  ;;  %18964 = vst [vmem:[#allocation264_spill] sm:$0xff] %v14525_v6  ;;  %18965 = vst [vmem:[#allocation265_spill] sm:$0xff] %v14527_v14 }
 0x597   : > { %6532 = vmatprep.subr.bf16.mxu0 %v14499_v15  ;;  %6573 = vmatprep.subr.bf16.mxu1 %v14501_v16  ;;  %v14531_v45 = vcombine.high %v1414_v41, %v1466_v18  ;;  %v14533_v46 = vcombine.high %v1415_v39, %v1467_v62  ;;  %v1518_v16 = vld [vmem:[%s13338_s17 + $0x1400] sm:$0xff]  ;;  %v1519_v15 = vld [vmem:[%s13338_s17 + $0x1408] sm:$0xff]  ;;  %v14541_v19 = vcombine.low %v1414_v41, %v1466_v18 }
 0x598   : > { %v14543_v21 = vcombine.low %v1415_v39, %v1467_v62 }
 0x599   : > { %18966 = vst [vmem:[#allocation266_spill] sm:$0xff] %v14531_v45  ;;  %18967 = vst [vmem:[#allocation267_spill] sm:$0xff] %v14533_v46 }
 0x59a   : > { %6533 = vmatpush1.bf16.msra.mxu0 %v14509_v25  ;;  %6574 = vmatpush1.bf16.msra.mxu1 %v14511_v26  ;;  %v1570_v25 = vld [vmem:[%s13338_s17 + $0x15a0] sm:$0xff]  ;;  %v1571_v26 = vld [vmem:[%s13338_s17 + $0x15a8] sm:$0xff]  ;;  %18968 = vst [vmem:[#allocation268_spill] sm:$0xff] %v14541_v19  ;;  %18969 = vst [vmem:[#allocation269_spill] sm:$0xff] %v14543_v21 }
 0x59b   : > { %6534 = vmatprep.subr.bf16.mxu0 %v14515_v28  ;;  %6575 = vmatprep.subr.bf16.mxu1 %v14517_v3  ;;  %v14547_v32 = vcombine.high %v1518_v16, %v1570_v25  ;;  %v14549_v33 = vcombine.high %v1519_v15, %v1571_v26  ;;  %v1622_v3 = vld [vmem:[%s13338_s17 + $0x1740] sm:$0xff]  ;;  %v1623_v28 = vld [vmem:[%s13338_s17 + $0x1748] sm:$0xff]  ;;  %v14557_v39 = vcombine.low %v1518_v16, %v1570_v25 }
 0x59c   : > { %v14559_v41 = vcombine.low %v1519_v15, %v1571_v26 }
 0x59d   : > { %18970 = vst [vmem:[#allocation270_spill] sm:$0xff] %v14547_v32  ;;  %18971 = vst [vmem:[#allocation271_spill] sm:$0xff] %v14549_v33 }
 0x59e   : > { %6535 = vmatpush1.bf16.msra.mxu0 %v14525_v6  ;;  %6576 = vmatpush1.bf16.msra.mxu1 %v14527_v14  ;;  %v1674_v6 = vld [vmem:[%s13338_s17 + $0x18e0] sm:$0xff]  ;;  %v1675_v14 = vld [vmem:[%s13338_s17 + $0x18e8] sm:$0xff]  ;;  %18972 = vst [vmem:[#allocation272_spill] sm:$0xff] %v14557_v39  ;;  %18973 = vst [vmem:[#allocation273_spill] sm:$0xff] %v14559_v41 }
 0x59f   : > { %6536 = vmatprep.subr.bf16.mxu0 %v14531_v45  ;;  %6577 = vmatprep.subr.bf16.mxu1 %v14533_v46  ;;  %v14563_v18 = vcombine.high %v1622_v3, %v1674_v6  ;;  %v14565_v62 = vcombine.high %v1623_v28, %v1675_v14  ;;  %v896_v46 = vld [vmem:[%s13338_s17 + $0x90] sm:$0xff]  ;;  %v897_v45 = vld [vmem:[%s13338_s17 + $0x98] sm:$0xff]  ;;  %v14573_v15 = vcombine.low %v1622_v3, %v1674_v6 }
 0x5a0   : > { %v14575_v16 = vcombine.low %v1623_v28, %v1675_v14 }
 0x5a1   : > { %18974 = vst [vmem:[#allocation274_spill] sm:$0xff] %v14563_v18  ;;  %18975 = vst [vmem:[#allocation275_spill] sm:$0xff] %v14565_v62 }
 0x5a2   : > { %6537 = vmatpush1.bf16.msra.mxu0 %v14541_v19  ;;  %6578 = vmatpush1.bf16.msra.mxu1 %v14543_v21  ;;  %v948_v19 = vld [vmem:[%s13338_s17 + $0x230] sm:$0xff]  ;;  %v949_v21 = vld [vmem:[%s13338_s17 + $0x238] sm:$0xff]  ;;  %18976 = vst [vmem:[#allocation276_spill] sm:$0xff] %v14573_v15  ;;  %18977 = vst [vmem:[#allocation277_spill] sm:$0xff] %v14575_v16 }
 0x5a3   : > { %6538 = vmatprep.subr.bf16.mxu0 %v14547_v32  ;;  %6579 = vmatprep.subr.bf16.mxu1 %v14549_v33  ;;  %v14579_v25 = vcombine.high %v896_v46, %v948_v19  ;;  %v14581_v26 = vcombine.high %v897_v45, %v949_v21  ;;  %v1000_v33 = vld [vmem:[%s13338_s17 + $0x3d0] sm:$0xff]  ;;  %v1001_v32 = vld [vmem:[%s13338_s17 + $0x3d8] sm:$0xff]  ;;  %v14589_v28 = vcombine.low %v896_v46, %v948_v19 }
 0x5a4   : > { %v14591_v3 = vcombine.low %v897_v45, %v949_v21 }
 0x5a5   : > { %18978 = vst [vmem:[#allocation278_spill] sm:$0xff] %v14579_v25  ;;  %18979 = vst [vmem:[#allocation279_spill] sm:$0xff] %v14581_v26 }
 0x5a6   : > { %6539 = vmatpush1.bf16.msra.mxu0 %v14557_v39  ;;  %6580 = vmatpush1.bf16.msra.mxu1 %v14559_v41  ;;  %v1052_v39 = vld [vmem:[%s13338_s17 + $0x570] sm:$0xff]  ;;  %v1053_v41 = vld [vmem:[%s13338_s17 + $0x578] sm:$0xff]  ;;  %18980 = vst [vmem:[#allocation280_spill] sm:$0xff] %v14589_v28  ;;  %18981 = vst [vmem:[#allocation281_spill] sm:$0xff] %v14591_v3 }
 0x5a7   : > { %6540 = vmatprep.subr.bf16.mxu0 %v14563_v18  ;;  %6581 = vmatprep.subr.bf16.mxu1 %v14565_v62  ;;  %v14595_v6 = vcombine.high %v1000_v33, %v1052_v39  ;;  %v14597_v14 = vcombine.high %v1001_v32, %v1053_v41  ;;  %v1104_v62 = vld [vmem:[%s13338_s17 + $0x710] sm:$0xff]  ;;  %v14607_v45 = vcombine.low %v1000_v33, %v1052_v39 }
 0x5a8   : > { %v1156_v18 = vld [vmem:[%s13338_s17 + $0x8b0] sm:$0xff]  ;;  %v14609_v46 = vcombine.low %v1001_v32, %v1053_v41 }
 0x5a9   : > { %18982 = vst [vmem:[#allocation282_spill] sm:$0xff] %v14595_v6  ;;  %18983 = vst [vmem:[#allocation283_spill] sm:$0xff] %v14597_v14  ;;  %v14613_v19 = vcombine.high %v1104_v62, %v1156_v18  ;;  %v14625_v32 = vcombine.low %v1104_v62, %v1156_v18 }
 0x5aa   : > { %6541 = vmatpush1.bf16.msra.mxu0 %v14573_v15  ;;  %6582 = vmatpush1.bf16.msra.mxu1 %v14575_v16  ;;  %v1105_v15 = vld [vmem:[%s13338_s17 + $0x718] sm:$0xff]  ;;  %18984 = vst [vmem:[#allocation284_spill] sm:$0xff] %v14607_v45  ;;  %18985 = vst [vmem:[#allocation285_spill] sm:$0xff] %v14609_v46 }
 0x5ab   : > { %6608 = vmatprep.subr.bf16.mxu0 %v14579_v25  ;;  %6649 = vmatprep.subr.bf16.mxu1 %v14581_v26  ;;  %v1157_v16 = vld [vmem:[%s13338_s17 + $0x8b8] sm:$0xff]  ;;  %18986 = vst [vmem:[#allocation286_spill] sm:$0xff] %v14613_v19  ;;  %v1208_v26 = vld [vmem:[%s13338_s17 + $0xa50] sm:$0xff]  ;;  %18988 = vst [vmem:[#allocation288_spill] sm:$0xff] %v14625_v32 }
 0x5ac   : > { %v14615_v21 = vcombine.high %v1105_v15, %v1157_v16  ;;  %v1260_v25 = vld [vmem:[%s13338_s17 + $0xbf0] sm:$0xff]  ;;  %v14627_v33 = vcombine.low %v1105_v15, %v1157_v16 }
 0x5ad   : > { %6559 = vmatmul.mubr.bf16.vlgmr.msra.gmra.mrb[36].mxu0 %v13537_v0  ;;  %6600 = vmatmul.mubr.bf16.vlgmr.msra.gmra.mrb[36].mxu1 %v13537_v0  ;;  %v14631_v39 = vcombine.high %v1208_v26, %v1260_v25  ;;  %v14641_v18 = vcombine.low %v1208_v26, %v1260_v25 }
 0x5ae   : > { %6609 = vmatpush1.bf16.msra.mxu0 %v14589_v28  ;;  %6650 = vmatpush1.bf16.msra.mxu1 %v14591_v3  ;;  %18987 = vst [vmem:[#allocation287_spill] sm:$0xff] %v14615_v21  ;;  %v1209_v28 = vld [vmem:[%s13338_s17 + $0xa58] sm:$0xff]  ;;  %18989 = vst [vmem:[#allocation289_spill] sm:$0xff] %v14627_v33 }
 0x5af   : > { %6610 = vmatprep.subr.bf16.mxu0 %v14595_v6  ;;  %6651 = vmatprep.subr.bf16.mxu1 %v14597_v14  ;;  %v1261_v3 = vld [vmem:[%s13338_s17 + $0xbf8] sm:$0xff]  ;;  %18990 = vst [vmem:[#allocation290_spill] sm:$0xff] %v14631_v39  ;;  %v1312_v14 = vld [vmem:[%s13338_s17 + $0xd90] sm:$0xff]  ;;  %18992 = vst [vmem:[#allocation292_spill] sm:$0xff] %v14641_v18 }
 0x5b0   : > { %6640 = vmatprep.mubr.bf16.mxu0 %v18763_v29  ;;  %6681 = vmatprep.mubr.bf16.mxu1 %v18763_v29  ;;  %v14633_v41 = vcombine.high %v1209_v28, %v1261_v3  ;;  %v1313_v6 = vld [vmem:[%s13338_s17 + $0xd98] sm:$0xff]  ;;  %v14643_v62 = vcombine.low %v1209_v28, %v1261_v3 }
 0x5b2   : > { %6611 = vmatpush1.bf16.msra.mxu0 %v14607_v45  ;;  %6652 = vmatpush1.bf16.msra.mxu1 %v14609_v46  ;;  %18991 = vst [vmem:[#allocation291_spill] sm:$0xff] %v14633_v41  ;;  %v1364_v45 = vld [vmem:[%s13338_s17 + $0xf30] sm:$0xff]  ;;  %v1365_v46 = vld [vmem:[%s13338_s17 + $0xf38] sm:$0xff]  ;;  %18993 = vst [vmem:[#allocation293_spill] sm:$0xff] %v14643_v62 }
 0x5b3   : > { %6612 = vmatprep.subr.bf16.mxu0 %v14613_v19  ;;  %6653 = vmatprep.subr.bf16.mxu1 %v14615_v21  ;;  %v14647_v15 = vcombine.high %v1312_v14, %v1364_v45  ;;  %v14649_v16 = vcombine.high %v1313_v6, %v1365_v46  ;;  %v1416_v21 = vld [vmem:[%s13338_s17 + $0x10d0] sm:$0xff]  ;;  %v1417_v19 = vld [vmem:[%s13338_s17 + $0x10d8] sm:$0xff]  ;;  %v14657_v25 = vcombine.low %v1312_v14, %v1364_v45 }
 0x5b4   : > { %v14659_v26 = vcombine.low %v1313_v6, %v1365_v46 }
 0x5b5   : > { %18994 = vst [vmem:[#allocation294_spill] sm:$0xff] %v14647_v15  ;;  %18995 = vst [vmem:[#allocation295_spill] sm:$0xff] %v14649_v16 }
 0x5b6   : > { %6613 = vmatpush1.bf16.msra.mxu0 %v14625_v32  ;;  %6654 = vmatpush1.bf16.msra.mxu1 %v14627_v33  ;;  %v1468_v32 = vld [vmem:[%s13338_s17 + $0x1270] sm:$0xff]  ;;  %v1469_v33 = vld [vmem:[%s13338_s17 + $0x1278] sm:$0xff]  ;;  %18996 = vst [vmem:[#allocation296_spill] sm:$0xff] %v14657_v25  ;;  %18997 = vst [vmem:[#allocation297_spill] sm:$0xff] %v14659_v26 }
 0x5b7   : > { %6614 = vmatprep.subr.bf16.mxu0 %v14631_v39  ;;  %6655 = vmatprep.subr.bf16.mxu1 %v14633_v41  ;;  %v14663_v28 = vcombine.high %v1416_v21, %v1468_v32  ;;  %v14665_v3 = vcombine.high %v1417_v19, %v1469_v33  ;;  %v1520_v41 = vld [vmem:[%s13338_s17 + $0x1410] sm:$0xff]  ;;  %v1521_v39 = vld [vmem:[%s13338_s17 + $0x1418] sm:$0xff]  ;;  %v14673_v6 = vcombine.low %v1416_v21, %v1468_v32 }
 0x5b8   : > { %v14675_v14 = vcombine.low %v1417_v19, %v1469_v33 }
 0x5b9   : > { %18998 = vst [vmem:[#allocation298_spill] sm:$0xff] %v14663_v28  ;;  %18999 = vst [vmem:[#allocation299_spill] sm:$0xff] %v14665_v3 }
 0x5ba   : > { %6615 = vmatpush1.bf16.msra.mxu0 %v14641_v18  ;;  %6656 = vmatpush1.bf16.msra.mxu1 %v14643_v62  ;;  %v1572_v18 = vld [vmem:[%s13338_s17 + $0x15b0] sm:$0xff]  ;;  %v1573_v62 = vld [vmem:[%s13338_s17 + $0x15b8] sm:$0xff]  ;;  %19000 = vst [vmem:[#allocation300_spill] sm:$0xff] %v14673_v6  ;;  %19001 = vst [vmem:[#allocation301_spill] sm:$0xff] %v14675_v14 }
 0x5bb   : > { %6616 = vmatprep.subr.bf16.mxu0 %v14647_v15  ;;  %6657 = vmatprep.subr.bf16.mxu1 %v14649_v16  ;;  %v14679_v45 = vcombine.high %v1520_v41, %v1572_v18  ;;  %v14681_v46 = vcombine.high %v1521_v39, %v1573_v62  ;;  %v1624_v16 = vld [vmem:[%s13338_s17 + $0x1750] sm:$0xff]  ;;  %v1625_v15 = vld [vmem:[%s13338_s17 + $0x1758] sm:$0xff]  ;;  %v14689_v19 = vcombine.low %v1520_v41, %v1572_v18 }
 0x5bc   : > { %v14691_v21 = vcombine.low %v1521_v39, %v1573_v62 }
 0x5bd   : > { %19002 = vst [vmem:[#allocation302_spill] sm:$0xff] %v14679_v45  ;;  %19003 = vst [vmem:[#allocation303_spill] sm:$0xff] %v14681_v46 }
 0x5be   : > { %6617 = vmatpush1.bf16.msra.mxu0 %v14657_v25  ;;  %6658 = vmatpush1.bf16.msra.mxu1 %v14659_v26  ;;  %v1676_v25 = vld [vmem:[%s13338_s17 + $0x18f0] sm:$0xff]  ;;  %v1677_v26 = vld [vmem:[%s13338_s17 + $0x18f8] sm:$0xff]  ;;  %19004 = vst [vmem:[#allocation304_spill] sm:$0xff] %v14689_v19  ;;  %19005 = vst [vmem:[#allocation305_spill] sm:$0xff] %v14691_v21 }
 0x5bf   : > { %6618 = vmatprep.subr.bf16.mxu0 %v14663_v28  ;;  %6659 = vmatprep.subr.bf16.mxu1 %v14665_v3  ;;  %v14695_v32 = vcombine.high %v1624_v16, %v1676_v25  ;;  %v14697_v33 = vcombine.high %v1625_v15, %v1677_v26  ;;  %v898_v3 = vld [vmem:[%s13338_s17 + $0xa0] sm:$0xff]  ;;  %v899_v28 = vld [vmem:[%s13338_s17 + $0xa8] sm:$0xff]  ;;  %v14705_v39 = vcombine.low %v1624_v16, %v1676_v25 }
 0x5c0   : > { %v14707_v41 = vcombine.low %v1625_v15, %v1677_v26 }
 0x5c1   : > { %19006 = vst [vmem:[#allocation306_spill] sm:$0xff] %v14695_v32  ;;  %19007 = vst [vmem:[#allocation307_spill] sm:$0xff] %v14697_v33 }
 0x5c2   : > { %6619 = vmatpush1.bf16.msra.mxu0 %v14673_v6  ;;  %6660 = vmatpush1.bf16.msra.mxu1 %v14675_v14  ;;  %v950_v6 = vld [vmem:[%s13338_s17 + $0x240] sm:$0xff]  ;;  %v951_v14 = vld [vmem:[%s13338_s17 + $0x248] sm:$0xff]  ;;  %19008 = vst [vmem:[#allocation308_spill] sm:$0xff] %v14705_v39  ;;  %19009 = vst [vmem:[#allocation309_spill] sm:$0xff] %v14707_v41 }
 0x5c3   : > { %6620 = vmatprep.subr.bf16.mxu0 %v14679_v45  ;;  %6661 = vmatprep.subr.bf16.mxu1 %v14681_v46  ;;  %v14711_v18 = vcombine.high %v898_v3, %v950_v6  ;;  %v14713_v62 = vcombine.high %v899_v28, %v951_v14  ;;  %v1002_v46 = vld [vmem:[%s13338_s17 + $0x3e0] sm:$0xff]  ;;  %v1003_v45 = vld [vmem:[%s13338_s17 + $0x3e8] sm:$0xff]  ;;  %v14721_v15 = vcombine.low %v898_v3, %v950_v6 }
 0x5c4   : > { %v14723_v16 = vcombine.low %v899_v28, %v951_v14 }
 0x5c5   : > { %19010 = vst [vmem:[#allocation310_spill] sm:$0xff] %v14711_v18  ;;  %19011 = vst [vmem:[#allocation311_spill] sm:$0xff] %v14713_v62 }
 0x5c6   : > { %6621 = vmatpush1.bf16.msra.mxu0 %v14689_v19  ;;  %6662 = vmatpush1.bf16.msra.mxu1 %v14691_v21  ;;  %v1054_v19 = vld [vmem:[%s13338_s17 + $0x580] sm:$0xff]  ;;  %v1055_v21 = vld [vmem:[%s13338_s17 + $0x588] sm:$0xff]  ;;  %19012 = vst [vmem:[#allocation312_spill] sm:$0xff] %v14721_v15  ;;  %19013 = vst [vmem:[#allocation313_spill] sm:$0xff] %v14723_v16 }
 0x5c7   : > { %6622 = vmatprep.subr.bf16.mxu0 %v14695_v32  ;;  %6663 = vmatprep.subr.bf16.mxu1 %v14697_v33  ;;  %v14727_v25 = vcombine.high %v1002_v46, %v1054_v19  ;;  %v14729_v26 = vcombine.high %v1003_v45, %v1055_v21  ;;  %v1106_v33 = vld [vmem:[%s13338_s17 + $0x720] sm:$0xff]  ;;  %v14739_v28 = vcombine.low %v1002_v46, %v1054_v19 }
 0x5c8   : > { %v1158_v32 = vld [vmem:[%s13338_s17 + $0x8c0] sm:$0xff]  ;;  %v14741_v3 = vcombine.low %v1003_v45, %v1055_v21 }
 0x5c9   : > { %19014 = vst [vmem:[#allocation314_spill] sm:$0xff] %v14727_v25  ;;  %19015 = vst [vmem:[#allocation315_spill] sm:$0xff] %v14729_v26  ;;  %v14745_v6 = vcombine.high %v1106_v33, %v1158_v32  ;;  %v14757_v45 = vcombine.low %v1106_v33, %v1158_v32 }
 0x5ca   : > { %6623 = vmatpush1.bf16.msra.mxu0 %v14705_v39  ;;  %6664 = vmatpush1.bf16.msra.mxu1 %v14707_v41  ;;  %v1107_v39 = vld [vmem:[%s13338_s17 + $0x728] sm:$0xff]  ;;  %19016 = vst [vmem:[#allocation316_spill] sm:$0xff] %v14739_v28  ;;  %19017 = vst [vmem:[#allocation317_spill] sm:$0xff] %v14741_v3 }
 0x5cb   : > { %6690 = vmatprep.subr.bf16.mxu0 %v14711_v18  ;;  %6731 = vmatprep.subr.bf16.mxu1 %v14713_v62  ;;  %v1159_v41 = vld [vmem:[%s13338_s17 + $0x8c8] sm:$0xff]  ;;  %19018 = vst [vmem:[#allocation318_spill] sm:$0xff] %v14745_v6  ;;  %v1210_v62 = vld [vmem:[%s13338_s17 + $0xa60] sm:$0xff]  ;;  %19020 = vst [vmem:[#allocation320_spill] sm:$0xff] %v14757_v45 }
 0x5cc   : > { %v14747_v14 = vcombine.high %v1107_v39, %v1159_v41  ;;  %v1262_v18 = vld [vmem:[%s13338_s17 + $0xc00] sm:$0xff]  ;;  %v14759_v46 = vcombine.low %v1107_v39, %v1159_v41 }
 0x5cd   : > { %6641 = vmatmul.mubr.bf16.vlgmr.msra.gmra.mrb[40].mxu0 %v13537_v0  ;;  %6682 = vmatmul.mubr.bf16.vlgmr.msra.gmra.mrb[40].mxu1 %v13537_v0  ;;  %v14763_v19 = vcombine.high %v1210_v62, %v1262_v18  ;;  %v14773_v32 = vcombine.low %v1210_v62, %v1262_v18 }
 0x5ce   : > { %6691 = vmatpush1.bf16.msra.mxu0 %v14721_v15  ;;  %6732 = vmatpush1.bf16.msra.mxu1 %v14723_v16  ;;  %19019 = vst [vmem:[#allocation319_spill] sm:$0xff] %v14747_v14  ;;  %v1211_v15 = vld [vmem:[%s13338_s17 + $0xa68] sm:$0xff]  ;;  %19021 = vst [vmem:[#allocation321_spill] sm:$0xff] %v14759_v46 }
 0x5cf   : > { %6692 = vmatprep.subr.bf16.mxu0 %v14727_v25  ;;  %6733 = vmatprep.subr.bf16.mxu1 %v14729_v26  ;;  %v1263_v16 = vld [vmem:[%s13338_s17 + $0xc08] sm:$0xff]  ;;  %19022 = vst [vmem:[#allocation322_spill] sm:$0xff] %v14763_v19  ;;  %v1314_v26 = vld [vmem:[%s13338_s17 + $0xda0] sm:$0xff]  ;;  %19024 = vst [vmem:[#allocation324_spill] sm:$0xff] %v14773_v32 }
 0x5d0   : > { %6722 = vmatprep.mubr.bf16.mxu0 %v18763_v29  ;;  %6763 = vmatprep.mubr.bf16.mxu1 %v18763_v29  ;;  %v14765_v21 = vcombine.high %v1211_v15, %v1263_v16  ;;  %v1315_v25 = vld [vmem:[%s13338_s17 + $0xda8] sm:$0xff]  ;;  %v14775_v33 = vcombine.low %v1211_v15, %v1263_v16 }
 0x5d2   : > { %6693 = vmatpush1.bf16.msra.mxu0 %v14739_v28  ;;  %6734 = vmatpush1.bf16.msra.mxu1 %v14741_v3  ;;  %19023 = vst [vmem:[#allocation323_spill] sm:$0xff] %v14765_v21  ;;  %v1366_v28 = vld [vmem:[%s13338_s17 + $0xf40] sm:$0xff]  ;;  %v1367_v3 = vld [vmem:[%s13338_s17 + $0xf48] sm:$0xff]  ;;  %19025 = vst [vmem:[#allocation325_spill] sm:$0xff] %v14775_v33 }
 0x5d3   : > { %6694 = vmatprep.subr.bf16.mxu0 %v14745_v6  ;;  %6735 = vmatprep.subr.bf16.mxu1 %v14747_v14  ;;  %v14779_v39 = vcombine.high %v1314_v26, %v1366_v28  ;;  %v14781_v41 = vcombine.high %v1315_v25, %v1367_v3  ;;  %v1418_v14 = vld [vmem:[%s13338_s17 + $0x10e0] sm:$0xff]  ;;  %v1419_v6 = vld [vmem:[%s13338_s17 + $0x10e8] sm:$0xff]  ;;  %v14789_v18 = vcombine.low %v1314_v26, %v1366_v28 }
 0x5d4   : > { %v14791_v62 = vcombine.low %v1315_v25, %v1367_v3 }
 0x5d5   : > { %19026 = vst [vmem:[#allocation326_spill] sm:$0xff] %v14779_v39  ;;  %19027 = vst [vmem:[#allocation327_spill] sm:$0xff] %v14781_v41 }
 0x5d6   : > { %6695 = vmatpush1.bf16.msra.mxu0 %v14757_v45  ;;  %6736 = vmatpush1.bf16.msra.mxu1 %v14759_v46  ;;  %v1470_v45 = vld [vmem:[%s13338_s17 + $0x1280] sm:$0xff]  ;;  %v1471_v46 = vld [vmem:[%s13338_s17 + $0x1288] sm:$0xff]  ;;  %19028 = vst [vmem:[#allocation328_spill] sm:$0xff] %v14789_v18  ;;  %19029 = vst [vmem:[#allocation329_spill] sm:$0xff] %v14791_v62 }
 0x5d7   : > { %6696 = vmatprep.subr.bf16.mxu0 %v14763_v19  ;;  %6737 = vmatprep.subr.bf16.mxu1 %v14765_v21  ;;  %v14795_v15 = vcombine.high %v1418_v14, %v1470_v45  ;;  %v14797_v16 = vcombine.high %v1419_v6, %v1471_v46  ;;  %v1522_v21 = vld [vmem:[%s13338_s17 + $0x1420] sm:$0xff]  ;;  %v1523_v19 = vld [vmem:[%s13338_s17 + $0x1428] sm:$0xff]  ;;  %v14805_v25 = vcombine.low %v1418_v14, %v1470_v45 }
 0x5d8   : > { %v14807_v26 = vcombine.low %v1419_v6, %v1471_v46 }
 0x5d9   : > { %19030 = vst [vmem:[#allocation330_spill] sm:$0xff] %v14795_v15  ;;  %19031 = vst [vmem:[#allocation331_spill] sm:$0xff] %v14797_v16 }
 0x5da   : > { %6697 = vmatpush1.bf16.msra.mxu0 %v14773_v32  ;;  %6738 = vmatpush1.bf16.msra.mxu1 %v14775_v33  ;;  %v1574_v32 = vld [vmem:[%s13338_s17 + $0x15c0] sm:$0xff]  ;;  %v1575_v33 = vld [vmem:[%s13338_s17 + $0x15c8] sm:$0xff]  ;;  %19032 = vst [vmem:[#allocation332_spill] sm:$0xff] %v14805_v25  ;;  %19033 = vst [vmem:[#allocation333_spill] sm:$0xff] %v14807_v26 }
 0x5db   : > { %6698 = vmatprep.subr.bf16.mxu0 %v14779_v39  ;;  %6739 = vmatprep.subr.bf16.mxu1 %v14781_v41  ;;  %v14811_v28 = vcombine.high %v1522_v21, %v1574_v32  ;;  %v14813_v3 = vcombine.high %v1523_v19, %v1575_v33  ;;  %v1626_v41 = vld [vmem:[%s13338_s17 + $0x1760] sm:$0xff]  ;;  %v1627_v39 = vld [vmem:[%s13338_s17 + $0x1768] sm:$0xff]  ;;  %v14821_v6 = vcombine.low %v1522_v21, %v1574_v32 }
 0x5dc   : > { %v14823_v14 = vcombine.low %v1523_v19, %v1575_v33 }
 0x5dd   : > { %19034 = vst [vmem:[#allocation334_spill] sm:$0xff] %v14811_v28  ;;  %19035 = vst [vmem:[#allocation335_spill] sm:$0xff] %v14813_v3 }
 0x5de   : > { %6699 = vmatpush1.bf16.msra.mxu0 %v14789_v18  ;;  %6740 = vmatpush1.bf16.msra.mxu1 %v14791_v62  ;;  %v1678_v18 = vld [vmem:[%s13338_s17 + $0x1900] sm:$0xff]  ;;  %v1679_v62 = vld [vmem:[%s13338_s17 + $0x1908] sm:$0xff]  ;;  %19036 = vst [vmem:[#allocation336_spill] sm:$0xff] %v14821_v6  ;;  %19037 = vst [vmem:[#allocation337_spill] sm:$0xff] %v14823_v14 }
 0x5df   : > { %6700 = vmatprep.subr.bf16.mxu0 %v14795_v15  ;;  %6741 = vmatprep.subr.bf16.mxu1 %v14797_v16  ;;  %v14827_v45 = vcombine.high %v1626_v41, %v1678_v18  ;;  %v14829_v46 = vcombine.high %v1627_v39, %v1679_v62  ;;  %v900_v16 = vld [vmem:[%s13338_s17 + $0xb0] sm:$0xff]  ;;  %v901_v15 = vld [vmem:[%s13338_s17 + $0xb8] sm:$0xff]  ;;  %v14837_v19 = vcombine.low %v1626_v41, %v1678_v18 }
 0x5e0   : > { %v14839_v21 = vcombine.low %v1627_v39, %v1679_v62 }
 0x5e1   : > { %19038 = vst [vmem:[#allocation338_spill] sm:$0xff] %v14827_v45  ;;  %19039 = vst [vmem:[#allocation339_spill] sm:$0xff] %v14829_v46 }
 0x5e2   : > { %6701 = vmatpush1.bf16.msra.mxu0 %v14805_v25  ;;  %6742 = vmatpush1.bf16.msra.mxu1 %v14807_v26  ;;  %v952_v25 = vld [vmem:[%s13338_s17 + $0x250] sm:$0xff]  ;;  %v953_v26 = vld [vmem:[%s13338_s17 + $0x258] sm:$0xff]  ;;  %19040 = vst [vmem:[#allocation340_spill] sm:$0xff] %v14837_v19  ;;  %19041 = vst [vmem:[#allocation341_spill] sm:$0xff] %v14839_v21 }
 0x5e3   : > { %6702 = vmatprep.subr.bf16.mxu0 %v14811_v28  ;;  %6743 = vmatprep.subr.bf16.mxu1 %v14813_v3  ;;  %v14843_v32 = vcombine.high %v900_v16, %v952_v25  ;;  %v14845_v33 = vcombine.high %v901_v15, %v953_v26  ;;  %v1004_v3 = vld [vmem:[%s13338_s17 + $0x3f0] sm:$0xff]  ;;  %v1005_v28 = vld [vmem:[%s13338_s17 + $0x3f8] sm:$0xff]  ;;  %v14853_v39 = vcombine.low %v900_v16, %v952_v25 }
 0x5e4   : > { %v14855_v41 = vcombine.low %v901_v15, %v953_v26 }
 0x5e5   : > { %19042 = vst [vmem:[#allocation342_spill] sm:$0xff] %v14843_v32  ;;  %19043 = vst [vmem:[#allocation343_spill] sm:$0xff] %v14845_v33 }
 0x5e6   : > { %6703 = vmatpush1.bf16.msra.mxu0 %v14821_v6  ;;  %6744 = vmatpush1.bf16.msra.mxu1 %v14823_v14  ;;  %v1056_v6 = vld [vmem:[%s13338_s17 + $0x590] sm:$0xff]  ;;  %v1057_v14 = vld [vmem:[%s13338_s17 + $0x598] sm:$0xff]  ;;  %19044 = vst [vmem:[#allocation344_spill] sm:$0xff] %v14853_v39  ;;  %19045 = vst [vmem:[#allocation345_spill] sm:$0xff] %v14855_v41 }
 0x5e7   : > { %6704 = vmatprep.subr.bf16.mxu0 %v14827_v45  ;;  %6745 = vmatprep.subr.bf16.mxu1 %v14829_v46  ;;  %v14859_v18 = vcombine.high %v1004_v3, %v1056_v6  ;;  %v14861_v62 = vcombine.high %v1005_v28, %v1057_v14  ;;  %v1108_v46 = vld [vmem:[%s13338_s17 + $0x730] sm:$0xff]  ;;  %v14871_v15 = vcombine.low %v1004_v3, %v1056_v6 }
 0x5e8   : > { %v1160_v45 = vld [vmem:[%s13338_s17 + $0x8d0] sm:$0xff]  ;;  %v14873_v16 = vcombine.low %v1005_v28, %v1057_v14 }
 0x5e9   : > { %19046 = vst [vmem:[#allocation346_spill] sm:$0xff] %v14859_v18  ;;  %19047 = vst [vmem:[#allocation347_spill] sm:$0xff] %v14861_v62  ;;  %v14877_v25 = vcombine.high %v1108_v46, %v1160_v45  ;;  %v14889_v28 = vcombine.low %v1108_v46, %v1160_v45 }
 0x5ea   : > { %6705 = vmatpush1.bf16.msra.mxu0 %v14837_v19  ;;  %6746 = vmatpush1.bf16.msra.mxu1 %v14839_v21  ;;  %v1109_v19 = vld [vmem:[%s13338_s17 + $0x738] sm:$0xff]  ;;  %19048 = vst [vmem:[#allocation348_spill] sm:$0xff] %v14871_v15  ;;  %19049 = vst [vmem:[#allocation349_spill] sm:$0xff] %v14873_v16 }
 0x5eb   : > { %6772 = vmatprep.subr.bf16.mxu0 %v14843_v32  ;;  %6813 = vmatprep.subr.bf16.mxu1 %v14845_v33  ;;  %v1161_v21 = vld [vmem:[%s13338_s17 + $0x8d8] sm:$0xff]  ;;  %19050 = vst [vmem:[#allocation350_spill] sm:$0xff] %v14877_v25  ;;  %v1212_v33 = vld [vmem:[%s13338_s17 + $0xa70] sm:$0xff]  ;;  %19052 = vst [vmem:[#allocation352_spill] sm:$0xff] %v14889_v28 }
 0x5ec   : > { %v14879_v26 = vcombine.high %v1109_v19, %v1161_v21  ;;  %v1264_v32 = vld [vmem:[%s13338_s17 + $0xc10] sm:$0xff]  ;;  %v14891_v3 = vcombine.low %v1109_v19, %v1161_v21 }
 0x5ed   : > { %6723 = vmatmul.mubr.bf16.vlgmr.msra.gmra.mrb[44].mxu0 %v13537_v0  ;;  %6764 = vmatmul.mubr.bf16.vlgmr.msra.gmra.mrb[44].mxu1 %v13537_v0  ;;  %v14895_v6 = vcombine.high %v1212_v33, %v1264_v32  ;;  %v14905_v45 = vcombine.low %v1212_v33, %v1264_v32 }
 0x5ee   : > { %6773 = vmatpush1.bf16.msra.mxu0 %v14853_v39  ;;  %6814 = vmatpush1.bf16.msra.mxu1 %v14855_v41  ;;  %19051 = vst [vmem:[#allocation351_spill] sm:$0xff] %v14879_v26  ;;  %v1213_v39 = vld [vmem:[%s13338_s17 + $0xa78] sm:$0xff]  ;;  %19053 = vst [vmem:[#allocation353_spill] sm:$0xff] %v14891_v3 }
 0x5ef   : > { %6774 = vmatprep.subr.bf16.mxu0 %v14859_v18  ;;  %6815 = vmatprep.subr.bf16.mxu1 %v14861_v62  ;;  %v1265_v41 = vld [vmem:[%s13338_s17 + $0xc18] sm:$0xff]  ;;  %19054 = vst [vmem:[#allocation354_spill] sm:$0xff] %v14895_v6  ;;  %v1316_v62 = vld [vmem:[%s13338_s17 + $0xdb0] sm:$0xff]  ;;  %19056 = vst [vmem:[#allocation356_spill] sm:$0xff] %v14905_v45 }
 0x5f0   : > { %6804 = vmatprep.mubr.bf16.mxu0 %v18763_v29  ;;  %6845 = vmatprep.mubr.bf16.mxu1 %v18763_v29  ;;  %v14897_v14 = vcombine.high %v1213_v39, %v1265_v41  ;;  %v1317_v18 = vld [vmem:[%s13338_s17 + $0xdb8] sm:$0xff]  ;;  %v14907_v46 = vcombine.low %v1213_v39, %v1265_v41 }
 0x5f2   : > { %6775 = vmatpush1.bf16.msra.mxu0 %v14871_v15  ;;  %6816 = vmatpush1.bf16.msra.mxu1 %v14873_v16  ;;  %19055 = vst [vmem:[#allocation355_spill] sm:$0xff] %v14897_v14  ;;  %v1368_v15 = vld [vmem:[%s13338_s17 + $0xf50] sm:$0xff]  ;;  %v1369_v16 = vld [vmem:[%s13338_s17 + $0xf58] sm:$0xff]  ;;  %19057 = vst [vmem:[#allocation357_spill] sm:$0xff] %v14907_v46 }
 0x5f3   : > { %6776 = vmatprep.subr.bf16.mxu0 %v14877_v25  ;;  %6817 = vmatprep.subr.bf16.mxu1 %v14879_v26  ;;  %v14911_v19 = vcombine.high %v1316_v62, %v1368_v15  ;;  %v14913_v21 = vcombine.high %v1317_v18, %v1369_v16  ;;  %v1420_v26 = vld [vmem:[%s13338_s17 + $0x10f0] sm:$0xff]  ;;  %v1421_v25 = vld [vmem:[%s13338_s17 + $0x10f8] sm:$0xff]  ;;  %v14921_v32 = vcombine.low %v1316_v62, %v1368_v15 }
 0x5f4   : > { %v14923_v33 = vcombine.low %v1317_v18, %v1369_v16 }
 0x5f5   : > { %19058 = vst [vmem:[#allocation358_spill] sm:$0xff] %v14911_v19  ;;  %19059 = vst [vmem:[#allocation359_spill] sm:$0xff] %v14913_v21 }
 0x5f6   : > { %6777 = vmatpush1.bf16.msra.mxu0 %v14889_v28  ;;  %6818 = vmatpush1.bf16.msra.mxu1 %v14891_v3  ;;  %v1472_v28 = vld [vmem:[%s13338_s17 + $0x1290] sm:$0xff]  ;;  %v1473_v3 = vld [vmem:[%s13338_s17 + $0x1298] sm:$0xff]  ;;  %19060 = vst [vmem:[#allocation360_spill] sm:$0xff] %v14921_v32  ;;  %19061 = vst [vmem:[#allocation361_spill] sm:$0xff] %v14923_v33 }
 0x5f7   : > { %6778 = vmatprep.subr.bf16.mxu0 %v14895_v6  ;;  %6819 = vmatprep.subr.bf16.mxu1 %v14897_v14  ;;  %v14927_v39 = vcombine.high %v1420_v26, %v1472_v28  ;;  %v14929_v41 = vcombine.high %v1421_v25, %v1473_v3  ;;  %v1524_v14 = vld [vmem:[%s13338_s17 + $0x1430] sm:$0xff]  ;;  %v1525_v6 = vld [vmem:[%s13338_s17 + $0x1438] sm:$0xff]  ;;  %v14937_v18 = vcombine.low %v1420_v26, %v1472_v28 }
 0x5f8   : > { %v14939_v62 = vcombine.low %v1421_v25, %v1473_v3 }
 0x5f9   : > { %19062 = vst [vmem:[#allocation362_spill] sm:$0xff] %v14927_v39  ;;  %19063 = vst [vmem:[#allocation363_spill] sm:$0xff] %v14929_v41 }
 0x5fa   : > { %6779 = vmatpush1.bf16.msra.mxu0 %v14905_v45  ;;  %6820 = vmatpush1.bf16.msra.mxu1 %v14907_v46  ;;  %v1576_v45 = vld [vmem:[%s13338_s17 + $0x15d0] sm:$0xff]  ;;  %v1577_v46 = vld [vmem:[%s13338_s17 + $0x15d8] sm:$0xff]  ;;  %19064 = vst [vmem:[#allocation364_spill] sm:$0xff] %v14937_v18  ;;  %19065 = vst [vmem:[#allocation365_spill] sm:$0xff] %v14939_v62 }
 0x5fb   : > { %6780 = vmatprep.subr.bf16.mxu0 %v14911_v19  ;;  %6821 = vmatprep.subr.bf16.mxu1 %v14913_v21  ;;  %v14943_v15 = vcombine.high %v1524_v14, %v1576_v45  ;;  %v14945_v16 = vcombine.high %v1525_v6, %v1577_v46  ;;  %v1628_v21 = vld [vmem:[%s13338_s17 + $0x1770] sm:$0xff]  ;;  %v1629_v19 = vld [vmem:[%s13338_s17 + $0x1778] sm:$0xff]  ;;  %v14953_v25 = vcombine.low %v1524_v14, %v1576_v45 }
 0x5fc   : > { %v14955_v26 = vcombine.low %v1525_v6, %v1577_v46 }
 0x5fd   : > { %19066 = vst [vmem:[#allocation366_spill] sm:$0xff] %v14943_v15  ;;  %19067 = vst [vmem:[#allocation367_spill] sm:$0xff] %v14945_v16 }
 0x5fe   : > { %6781 = vmatpush1.bf16.msra.mxu0 %v14921_v32  ;;  %6822 = vmatpush1.bf16.msra.mxu1 %v14923_v33  ;;  %v1680_v32 = vld [vmem:[%s13338_s17 + $0x1910] sm:$0xff]  ;;  %v1681_v33 = vld [vmem:[%s13338_s17 + $0x1918] sm:$0xff]  ;;  %19068 = vst [vmem:[#allocation368_spill] sm:$0xff] %v14953_v25  ;;  %19069 = vst [vmem:[#allocation369_spill] sm:$0xff] %v14955_v26 }
 0x5ff   : > { %6782 = vmatprep.subr.bf16.mxu0 %v14927_v39  ;;  %6823 = vmatprep.subr.bf16.mxu1 %v14929_v41  ;;  %v14959_v28 = vcombine.high %v1628_v21, %v1680_v32  ;;  %v14961_v3 = vcombine.high %v1629_v19, %v1681_v33  ;;  %v902_v41 = vld [vmem:[%s13338_s17 + $0xc0] sm:$0xff]  ;;  %v903_v39 = vld [vmem:[%s13338_s17 + $0xc8] sm:$0xff]  ;;  %v14969_v6 = vcombine.low %v1628_v21, %v1680_v32 }
 0x600   : > { %v14971_v14 = vcombine.low %v1629_v19, %v1681_v33 }
 0x601   : > { %19070 = vst [vmem:[#allocation370_spill] sm:$0xff] %v14959_v28  ;;  %19071 = vst [vmem:[#allocation371_spill] sm:$0xff] %v14961_v3 }
 0x602   : > { %6783 = vmatpush1.bf16.msra.mxu0 %v14937_v18  ;;  %6824 = vmatpush1.bf16.msra.mxu1 %v14939_v62  ;;  %v954_v18 = vld [vmem:[%s13338_s17 + $0x260] sm:$0xff]  ;;  %v955_v62 = vld [vmem:[%s13338_s17 + $0x268] sm:$0xff]  ;;  %19072 = vst [vmem:[#allocation372_spill] sm:$0xff] %v14969_v6  ;;  %19073 = vst [vmem:[#allocation373_spill] sm:$0xff] %v14971_v14 }
 0x603   : > { %6784 = vmatprep.subr.bf16.mxu0 %v14943_v15  ;;  %6825 = vmatprep.subr.bf16.mxu1 %v14945_v16  ;;  %v14975_v45 = vcombine.high %v902_v41, %v954_v18  ;;  %v14977_v46 = vcombine.high %v903_v39, %v955_v62  ;;  %v1006_v16 = vld [vmem:[%s13338_s17 + $0x400] sm:$0xff]  ;;  %v1007_v15 = vld [vmem:[%s13338_s17 + $0x408] sm:$0xff]  ;;  %v14985_v19 = vcombine.low %v902_v41, %v954_v18 }
 0x604   : > { %v14987_v21 = vcombine.low %v903_v39, %v955_v62 }
 0x605   : > { %19074 = vst [vmem:[#allocation374_spill] sm:$0xff] %v14975_v45  ;;  %19075 = vst [vmem:[#allocation375_spill] sm:$0xff] %v14977_v46 }
 0x606   : > { %6785 = vmatpush1.bf16.msra.mxu0 %v14953_v25  ;;  %6826 = vmatpush1.bf16.msra.mxu1 %v14955_v26  ;;  %v1058_v25 = vld [vmem:[%s13338_s17 + $0x5a0] sm:$0xff]  ;;  %v1059_v26 = vld [vmem:[%s13338_s17 + $0x5a8] sm:$0xff]  ;;  %19076 = vst [vmem:[#allocation376_spill] sm:$0xff] %v14985_v19  ;;  %19077 = vst [vmem:[#allocation377_spill] sm:$0xff] %v14987_v21 }
 0x607   : > { %6786 = vmatprep.subr.bf16.mxu0 %v14959_v28  ;;  %6827 = vmatprep.subr.bf16.mxu1 %v14961_v3  ;;  %v14991_v32 = vcombine.high %v1006_v16, %v1058_v25  ;;  %v14993_v33 = vcombine.high %v1007_v15, %v1059_v26  ;;  %v1110_v3 = vld [vmem:[%s13338_s17 + $0x740] sm:$0xff]  ;;  %v15003_v39 = vcombine.low %v1006_v16, %v1058_v25 }
 0x608   : > { %v1162_v28 = vld [vmem:[%s13338_s17 + $0x8e0] sm:$0xff]  ;;  %v15005_v41 = vcombine.low %v1007_v15, %v1059_v26 }
 0x609   : > { %19078 = vst [vmem:[#allocation378_spill] sm:$0xff] %v14991_v32  ;;  %19079 = vst [vmem:[#allocation379_spill] sm:$0xff] %v14993_v33  ;;  %v15009_v18 = vcombine.high %v1110_v3, %v1162_v28  ;;  %v15021_v15 = vcombine.low %v1110_v3, %v1162_v28 }
 0x60a   : > { %6787 = vmatpush1.bf16.msra.mxu0 %v14969_v6  ;;  %6828 = vmatpush1.bf16.msra.mxu1 %v14971_v14  ;;  %v1111_v6 = vld [vmem:[%s13338_s17 + $0x748] sm:$0xff]  ;;  %19080 = vst [vmem:[#allocation380_spill] sm:$0xff] %v15003_v39  ;;  %19081 = vst [vmem:[#allocation381_spill] sm:$0xff] %v15005_v41 }
 0x60b   : > { %6854 = vmatprep.subr.bf16.mxu0 %v14975_v45  ;;  %6895 = vmatprep.subr.bf16.mxu1 %v14977_v46  ;;  %v1163_v14 = vld [vmem:[%s13338_s17 + $0x8e8] sm:$0xff]  ;;  %19082 = vst [vmem:[#allocation382_spill] sm:$0xff] %v15009_v18  ;;  %v1214_v46 = vld [vmem:[%s13338_s17 + $0xa80] sm:$0xff]  ;;  %19084 = vst [vmem:[#allocation384_spill] sm:$0xff] %v15021_v15 }
 0x60c   : > { %v15011_v62 = vcombine.high %v1111_v6, %v1163_v14  ;;  %v1266_v45 = vld [vmem:[%s13338_s17 + $0xc20] sm:$0xff]  ;;  %v15023_v16 = vcombine.low %v1111_v6, %v1163_v14 }
 0x60d   : > { %6805 = vmatmul.mubr.bf16.vlgmr.msra.gmra.mrb[48].mxu0 %v13537_v0  ;;  %6846 = vmatmul.mubr.bf16.vlgmr.msra.gmra.mrb[48].mxu1 %v13537_v0  ;;  %v15027_v25 = vcombine.high %v1214_v46, %v1266_v45  ;;  %v15037_v28 = vcombine.low %v1214_v46, %v1266_v45 }
 0x60e   : > { %6855 = vmatpush1.bf16.msra.mxu0 %v14985_v19  ;;  %6896 = vmatpush1.bf16.msra.mxu1 %v14987_v21  ;;  %19083 = vst [vmem:[#allocation383_spill] sm:$0xff] %v15011_v62  ;;  %v1215_v19 = vld [vmem:[%s13338_s17 + $0xa88] sm:$0xff]  ;;  %19085 = vst [vmem:[#allocation385_spill] sm:$0xff] %v15023_v16 }
 0x60f   : > { %6856 = vmatprep.subr.bf16.mxu0 %v14991_v32  ;;  %6897 = vmatprep.subr.bf16.mxu1 %v14993_v33  ;;  %v1267_v21 = vld [vmem:[%s13338_s17 + $0xc28] sm:$0xff]  ;;  %19086 = vst [vmem:[#allocation386_spill] sm:$0xff] %v15027_v25  ;;  %v1318_v33 = vld [vmem:[%s13338_s17 + $0xdc0] sm:$0xff]  ;;  %19088 = vst [vmem:[#allocation388_spill] sm:$0xff] %v15037_v28 }
 0x610   : > { %6886 = vmatprep.mubr.bf16.mxu0 %v18763_v29  ;;  %6927 = vmatprep.mubr.bf16.mxu1 %v18763_v29  ;;  %v15029_v26 = vcombine.high %v1215_v19, %v1267_v21  ;;  %v1319_v32 = vld [vmem:[%s13338_s17 + $0xdc8] sm:$0xff]  ;;  %v15039_v3 = vcombine.low %v1215_v19, %v1267_v21 }
 0x612   : > { %6857 = vmatpush1.bf16.msra.mxu0 %v15003_v39  ;;  %6898 = vmatpush1.bf16.msra.mxu1 %v15005_v41  ;;  %19087 = vst [vmem:[#allocation387_spill] sm:$0xff] %v15029_v26  ;;  %v1370_v39 = vld [vmem:[%s13338_s17 + $0xf60] sm:$0xff]  ;;  %v1371_v41 = vld [vmem:[%s13338_s17 + $0xf68] sm:$0xff]  ;;  %19089 = vst [vmem:[#allocation389_spill] sm:$0xff] %v15039_v3 }
 0x613   : > { %6858 = vmatprep.subr.bf16.mxu0 %v15009_v18  ;;  %6899 = vmatprep.subr.bf16.mxu1 %v15011_v62  ;;  %v15043_v6 = vcombine.high %v1318_v33, %v1370_v39  ;;  %v15045_v14 = vcombine.high %v1319_v32, %v1371_v41  ;;  %v1422_v62 = vld [vmem:[%s13338_s17 + $0x1100] sm:$0xff]  ;;  %v1423_v18 = vld [vmem:[%s13338_s17 + $0x1108] sm:$0xff]  ;;  %v15053_v45 = vcombine.low %v1318_v33, %v1370_v39 }
 0x614   : > { %v15055_v46 = vcombine.low %v1319_v32, %v1371_v41 }
 0x615   : > { %19090 = vst [vmem:[#allocation390_spill] sm:$0xff] %v15043_v6  ;;  %19091 = vst [vmem:[#allocation391_spill] sm:$0xff] %v15045_v14 }
 0x616   : > { %6859 = vmatpush1.bf16.msra.mxu0 %v15021_v15  ;;  %6900 = vmatpush1.bf16.msra.mxu1 %v15023_v16  ;;  %v1474_v15 = vld [vmem:[%s13338_s17 + $0x12a0] sm:$0xff]  ;;  %v1475_v16 = vld [vmem:[%s13338_s17 + $0x12a8] sm:$0xff]  ;;  %19092 = vst [vmem:[#allocation392_spill] sm:$0xff] %v15053_v45  ;;  %19093 = vst [vmem:[#allocation393_spill] sm:$0xff] %v15055_v46 }
 0x617   : > { %6860 = vmatprep.subr.bf16.mxu0 %v15027_v25  ;;  %6901 = vmatprep.subr.bf16.mxu1 %v15029_v26  ;;  %v15059_v19 = vcombine.high %v1422_v62, %v1474_v15  ;;  %v15061_v21 = vcombine.high %v1423_v18, %v1475_v16  ;;  %v1526_v26 = vld [vmem:[%s13338_s17 + $0x1440] sm:$0xff]  ;;  %v1527_v25 = vld [vmem:[%s13338_s17 + $0x1448] sm:$0xff]  ;;  %v15069_v32 = vcombine.low %v1422_v62, %v1474_v15 }
 0x618   : > { %v15071_v33 = vcombine.low %v1423_v18, %v1475_v16 }
 0x619   : > { %19094 = vst [vmem:[#allocation394_spill] sm:$0xff] %v15059_v19  ;;  %19095 = vst [vmem:[#allocation395_spill] sm:$0xff] %v15061_v21 }
 0x61a   : > { %6861 = vmatpush1.bf16.msra.mxu0 %v15037_v28  ;;  %6902 = vmatpush1.bf16.msra.mxu1 %v15039_v3  ;;  %v1578_v28 = vld [vmem:[%s13338_s17 + $0x15e0] sm:$0xff]  ;;  %v1579_v3 = vld [vmem:[%s13338_s17 + $0x15e8] sm:$0xff]  ;;  %19096 = vst [vmem:[#allocation396_spill] sm:$0xff] %v15069_v32  ;;  %19097 = vst [vmem:[#allocation397_spill] sm:$0xff] %v15071_v33 }
 0x61b   : > { %6862 = vmatprep.subr.bf16.mxu0 %v15043_v6  ;;  %6903 = vmatprep.subr.bf16.mxu1 %v15045_v14  ;;  %v15075_v39 = vcombine.high %v1526_v26, %v1578_v28  ;;  %v15077_v41 = vcombine.high %v1527_v25, %v1579_v3  ;;  %v1630_v14 = vld [vmem:[%s13338_s17 + $0x1780] sm:$0xff]  ;;  %v1631_v6 = vld [vmem:[%s13338_s17 + $0x1788] sm:$0xff]  ;;  %v15085_v18 = vcombine.low %v1526_v26, %v1578_v28 }
 0x61c   : > { %v15087_v62 = vcombine.low %v1527_v25, %v1579_v3 }
 0x61d   : > { %19098 = vst [vmem:[#allocation398_spill] sm:$0xff] %v15075_v39  ;;  %19099 = vst [vmem:[#allocation399_spill] sm:$0xff] %v15077_v41 }
 0x61e   : > { %6863 = vmatpush1.bf16.msra.mxu0 %v15053_v45  ;;  %6904 = vmatpush1.bf16.msra.mxu1 %v15055_v46  ;;  %v1682_v45 = vld [vmem:[%s13338_s17 + $0x1920] sm:$0xff]  ;;  %v1683_v46 = vld [vmem:[%s13338_s17 + $0x1928] sm:$0xff]  ;;  %19100 = vst [vmem:[#allocation400_spill] sm:$0xff] %v15085_v18  ;;  %19101 = vst [vmem:[#allocation401_spill] sm:$0xff] %v15087_v62 }
 0x61f   : > { %6864 = vmatprep.subr.bf16.mxu0 %v15059_v19  ;;  %6905 = vmatprep.subr.bf16.mxu1 %v15061_v21  ;;  %v15091_v15 = vcombine.high %v1630_v14, %v1682_v45  ;;  %v15093_v16 = vcombine.high %v1631_v6, %v1683_v46  ;;  %v904_v21 = vld [vmem:[%s13338_s17 + $0xd0] sm:$0xff]  ;;  %v905_v19 = vld [vmem:[%s13338_s17 + $0xd8] sm:$0xff]  ;;  %v15101_v25 = vcombine.low %v1630_v14, %v1682_v45 }
 0x620   : > { %v15103_v26 = vcombine.low %v1631_v6, %v1683_v46 }
 0x621   : > { %19102 = vst [vmem:[#allocation402_spill] sm:$0xff] %v15091_v15  ;;  %19103 = vst [vmem:[#allocation403_spill] sm:$0xff] %v15093_v16 }
 0x622   : > { %6865 = vmatpush1.bf16.msra.mxu0 %v15069_v32  ;;  %6906 = vmatpush1.bf16.msra.mxu1 %v15071_v33  ;;  %v956_v32 = vld [vmem:[%s13338_s17 + $0x270] sm:$0xff]  ;;  %v957_v33 = vld [vmem:[%s13338_s17 + $0x278] sm:$0xff]  ;;  %19104 = vst [vmem:[#allocation404_spill] sm:$0xff] %v15101_v25  ;;  %19105 = vst [vmem:[#allocation405_spill] sm:$0xff] %v15103_v26 }
 0x623   : > { %6866 = vmatprep.subr.bf16.mxu0 %v15075_v39  ;;  %6907 = vmatprep.subr.bf16.mxu1 %v15077_v41  ;;  %v15107_v28 = vcombine.high %v904_v21, %v956_v32  ;;  %v15109_v3 = vcombine.high %v905_v19, %v957_v33  ;;  %v1008_v41 = vld [vmem:[%s13338_s17 + $0x410] sm:$0xff]  ;;  %v1009_v39 = vld [vmem:[%s13338_s17 + $0x418] sm:$0xff]  ;;  %v15117_v6 = vcombine.low %v904_v21, %v956_v32 }
 0x624   : > { %v15119_v14 = vcombine.low %v905_v19, %v957_v33 }
 0x625   : > { %19106 = vst [vmem:[#allocation406_spill] sm:$0xff] %v15107_v28  ;;  %19107 = vst [vmem:[#allocation407_spill] sm:$0xff] %v15109_v3 }
 0x626   : > { %6867 = vmatpush1.bf16.msra.mxu0 %v15085_v18  ;;  %6908 = vmatpush1.bf16.msra.mxu1 %v15087_v62  ;;  %v1060_v18 = vld [vmem:[%s13338_s17 + $0x5b0] sm:$0xff]  ;;  %v1061_v62 = vld [vmem:[%s13338_s17 + $0x5b8] sm:$0xff]  ;;  %19108 = vst [vmem:[#allocation408_spill] sm:$0xff] %v15117_v6  ;;  %19109 = vst [vmem:[#allocation409_spill] sm:$0xff] %v15119_v14 }
 0x627   : > { %6868 = vmatprep.subr.bf16.mxu0 %v15091_v15  ;;  %6909 = vmatprep.subr.bf16.mxu1 %v15093_v16  ;;  %v15123_v45 = vcombine.high %v1008_v41, %v1060_v18  ;;  %v15125_v46 = vcombine.high %v1009_v39, %v1061_v62  ;;  %v1112_v16 = vld [vmem:[%s13338_s17 + $0x750] sm:$0xff]  ;;  %v15135_v19 = vcombine.low %v1008_v41, %v1060_v18 }
 0x628   : > { %v1164_v15 = vld [vmem:[%s13338_s17 + $0x8f0] sm:$0xff]  ;;  %v15137_v21 = vcombine.low %v1009_v39, %v1061_v62 }
 0x629   : > { %19110 = vst [vmem:[#allocation410_spill] sm:$0xff] %v15123_v45  ;;  %19111 = vst [vmem:[#allocation411_spill] sm:$0xff] %v15125_v46  ;;  %v15141_v32 = vcombine.high %v1112_v16, %v1164_v15  ;;  %v15153_v39 = vcombine.low %v1112_v16, %v1164_v15 }
 0x62a   : > { %6869 = vmatpush1.bf16.msra.mxu0 %v15101_v25  ;;  %6910 = vmatpush1.bf16.msra.mxu1 %v15103_v26  ;;  %v1113_v25 = vld [vmem:[%s13338_s17 + $0x758] sm:$0xff]  ;;  %19112 = vst [vmem:[#allocation412_spill] sm:$0xff] %v15135_v19  ;;  %19113 = vst [vmem:[#allocation413_spill] sm:$0xff] %v15137_v21 }
 0x62b   : > { %6936 = vmatprep.subr.bf16.mxu0 %v15107_v28  ;;  %6977 = vmatprep.subr.bf16.mxu1 %v15109_v3  ;;  %v1165_v26 = vld [vmem:[%s13338_s17 + $0x8f8] sm:$0xff]  ;;  %19114 = vst [vmem:[#allocation414_spill] sm:$0xff] %v15141_v32  ;;  %v1216_v3 = vld [vmem:[%s13338_s17 + $0xa90] sm:$0xff]  ;;  %19116 = vst [vmem:[#allocation416_spill] sm:$0xff] %v15153_v39 }
 0x62c   : > { %v15143_v33 = vcombine.high %v1113_v25, %v1165_v26  ;;  %v1268_v28 = vld [vmem:[%s13338_s17 + $0xc30] sm:$0xff]  ;;  %v15155_v41 = vcombine.low %v1113_v25, %v1165_v26 }
 0x62d   : > { %6887 = vmatmul.mubr.bf16.vlgmr.msra.gmra.mrb[52].mxu0 %v13537_v0  ;;  %6928 = vmatmul.mubr.bf16.vlgmr.msra.gmra.mrb[52].mxu1 %v13537_v0  ;;  %v15159_v18 = vcombine.high %v1216_v3, %v1268_v28  ;;  %v15169_v15 = vcombine.low %v1216_v3, %v1268_v28 }
 0x62e   : > { %6937 = vmatpush1.bf16.msra.mxu0 %v15117_v6  ;;  %6978 = vmatpush1.bf16.msra.mxu1 %v15119_v14  ;;  %19115 = vst [vmem:[#allocation415_spill] sm:$0xff] %v15143_v33  ;;  %v1217_v6 = vld [vmem:[%s13338_s17 + $0xa98] sm:$0xff]  ;;  %19117 = vst [vmem:[#allocation417_spill] sm:$0xff] %v15155_v41 }
 0x62f   : > { %6938 = vmatprep.subr.bf16.mxu0 %v15123_v45  ;;  %6979 = vmatprep.subr.bf16.mxu1 %v15125_v46  ;;  %v1269_v14 = vld [vmem:[%s13338_s17 + $0xc38] sm:$0xff]  ;;  %19118 = vst [vmem:[#allocation418_spill] sm:$0xff] %v15159_v18  ;;  %v1320_v46 = vld [vmem:[%s13338_s17 + $0xdd0] sm:$0xff]  ;;  %19120 = vst [vmem:[#allocation420_spill] sm:$0xff] %v15169_v15 }
 0x630   : > { %6968 = vmatprep.mubr.bf16.mxu0 %v18763_v29  ;;  %7009 = vmatprep.mubr.bf16.mxu1 %v18763_v29  ;;  %v15161_v62 = vcombine.high %v1217_v6, %v1269_v14  ;;  %v1321_v45 = vld [vmem:[%s13338_s17 + $0xdd8] sm:$0xff]  ;;  %v15171_v16 = vcombine.low %v1217_v6, %v1269_v14 }
 0x632   : > { %6939 = vmatpush1.bf16.msra.mxu0 %v15135_v19  ;;  %6980 = vmatpush1.bf16.msra.mxu1 %v15137_v21  ;;  %19119 = vst [vmem:[#allocation419_spill] sm:$0xff] %v15161_v62  ;;  %v1372_v19 = vld [vmem:[%s13338_s17 + $0xf70] sm:$0xff]  ;;  %v1373_v21 = vld [vmem:[%s13338_s17 + $0xf78] sm:$0xff]  ;;  %19121 = vst [vmem:[#allocation421_spill] sm:$0xff] %v15171_v16 }
 0x633   : > { %6940 = vmatprep.subr.bf16.mxu0 %v15141_v32  ;;  %6981 = vmatprep.subr.bf16.mxu1 %v15143_v33  ;;  %v15175_v25 = vcombine.high %v1320_v46, %v1372_v19  ;;  %v15177_v26 = vcombine.high %v1321_v45, %v1373_v21  ;;  %v1424_v33 = vld [vmem:[%s13338_s17 + $0x1110] sm:$0xff]  ;;  %v1425_v32 = vld [vmem:[%s13338_s17 + $0x1118] sm:$0xff]  ;;  %v15185_v28 = vcombine.low %v1320_v46, %v1372_v19 }
 0x634   : > { %v15187_v3 = vcombine.low %v1321_v45, %v1373_v21 }
 0x635   : > { %19122 = vst [vmem:[#allocation422_spill] sm:$0xff] %v15175_v25  ;;  %19123 = vst [vmem:[#allocation423_spill] sm:$0xff] %v15177_v26 }
 0x636   : > { %6941 = vmatpush1.bf16.msra.mxu0 %v15153_v39  ;;  %6982 = vmatpush1.bf16.msra.mxu1 %v15155_v41  ;;  %v1476_v39 = vld [vmem:[%s13338_s17 + $0x12b0] sm:$0xff]  ;;  %v1477_v41 = vld [vmem:[%s13338_s17 + $0x12b8] sm:$0xff]  ;;  %19124 = vst [vmem:[#allocation424_spill] sm:$0xff] %v15185_v28  ;;  %19125 = vst [vmem:[#allocation425_spill] sm:$0xff] %v15187_v3 }
 0x637   : > { %6942 = vmatprep.subr.bf16.mxu0 %v15159_v18  ;;  %6983 = vmatprep.subr.bf16.mxu1 %v15161_v62  ;;  %v15191_v6 = vcombine.high %v1424_v33, %v1476_v39  ;;  %v15193_v14 = vcombine.high %v1425_v32, %v1477_v41  ;;  %v1528_v62 = vld [vmem:[%s13338_s17 + $0x1450] sm:$0xff]  ;;  %v1529_v18 = vld [vmem:[%s13338_s17 + $0x1458] sm:$0xff]  ;;  %v15201_v45 = vcombine.low %v1424_v33, %v1476_v39 }
 0x638   : > { %v15203_v46 = vcombine.low %v1425_v32, %v1477_v41 }
 0x639   : > { %19126 = vst [vmem:[#allocation426_spill] sm:$0xff] %v15191_v6  ;;  %19127 = vst [vmem:[#allocation427_spill] sm:$0xff] %v15193_v14 }
 0x63a   : > { %6943 = vmatpush1.bf16.msra.mxu0 %v15169_v15  ;;  %6984 = vmatpush1.bf16.msra.mxu1 %v15171_v16  ;;  %v1580_v15 = vld [vmem:[%s13338_s17 + $0x15f0] sm:$0xff]  ;;  %v1581_v16 = vld [vmem:[%s13338_s17 + $0x15f8] sm:$0xff]  ;;  %19128 = vst [vmem:[#allocation428_spill] sm:$0xff] %v15201_v45  ;;  %19129 = vst [vmem:[#allocation429_spill] sm:$0xff] %v15203_v46 }
 0x63b   : > { %6944 = vmatprep.subr.bf16.mxu0 %v15175_v25  ;;  %6985 = vmatprep.subr.bf16.mxu1 %v15177_v26  ;;  %v15207_v19 = vcombine.high %v1528_v62, %v1580_v15  ;;  %v15209_v21 = vcombine.high %v1529_v18, %v1581_v16  ;;  %v1632_v26 = vld [vmem:[%s13338_s17 + $0x1790] sm:$0xff]  ;;  %v1633_v25 = vld [vmem:[%s13338_s17 + $0x1798] sm:$0xff]  ;;  %v15217_v32 = vcombine.low %v1528_v62, %v1580_v15 }
 0x63c   : > { %v15219_v33 = vcombine.low %v1529_v18, %v1581_v16 }
 0x63d   : > { %19130 = vst [vmem:[#allocation430_spill] sm:$0xff] %v15207_v19  ;;  %19131 = vst [vmem:[#allocation431_spill] sm:$0xff] %v15209_v21 }
 0x63e   : > { %6945 = vmatpush1.bf16.msra.mxu0 %v15185_v28  ;;  %6986 = vmatpush1.bf16.msra.mxu1 %v15187_v3  ;;  %v1684_v28 = vld [vmem:[%s13338_s17 + $0x1930] sm:$0xff]  ;;  %v1685_v3 = vld [vmem:[%s13338_s17 + $0x1938] sm:$0xff]  ;;  %19132 = vst [vmem:[#allocation432_spill] sm:$0xff] %v15217_v32  ;;  %19133 = vst [vmem:[#allocation433_spill] sm:$0xff] %v15219_v33 }
 0x63f   : > { %6946 = vmatprep.subr.bf16.mxu0 %v15191_v6  ;;  %6987 = vmatprep.subr.bf16.mxu1 %v15193_v14  ;;  %v15223_v39 = vcombine.high %v1632_v26, %v1684_v28  ;;  %v15225_v41 = vcombine.high %v1633_v25, %v1685_v3  ;;  %v906_v14 = vld [vmem:[%s13338_s17 + $0xe0] sm:$0xff]  ;;  %v907_v6 = vld [vmem:[%s13338_s17 + $0xe8] sm:$0xff]  ;;  %v15233_v18 = vcombine.low %v1632_v26, %v1684_v28 }
 0x640   : > { %v15235_v62 = vcombine.low %v1633_v25, %v1685_v3 }
 0x641   : > { %19134 = vst [vmem:[#allocation434_spill] sm:$0xff] %v15223_v39  ;;  %19135 = vst [vmem:[#allocation435_spill] sm:$0xff] %v15225_v41 }
 0x642   : > { %6947 = vmatpush1.bf16.msra.mxu0 %v15201_v45  ;;  %6988 = vmatpush1.bf16.msra.mxu1 %v15203_v46  ;;  %v958_v45 = vld [vmem:[%s13338_s17 + $0x280] sm:$0xff]  ;;  %v959_v46 = vld [vmem:[%s13338_s17 + $0x288] sm:$0xff]  ;;  %19136 = vst [vmem:[#allocation436_spill] sm:$0xff] %v15233_v18  ;;  %19137 = vst [vmem:[#allocation437_spill] sm:$0xff] %v15235_v62 }
 0x643   : > { %6948 = vmatprep.subr.bf16.mxu0 %v15207_v19  ;;  %6989 = vmatprep.subr.bf16.mxu1 %v15209_v21  ;;  %v15239_v15 = vcombine.high %v906_v14, %v958_v45  ;;  %v15241_v16 = vcombine.high %v907_v6, %v959_v46  ;;  %v1010_v21 = vld [vmem:[%s13338_s17 + $0x420] sm:$0xff]  ;;  %v1011_v19 = vld [vmem:[%s13338_s17 + $0x428] sm:$0xff]  ;;  %v15249_v25 = vcombine.low %v906_v14, %v958_v45 }
 0x644   : > { %v15251_v26 = vcombine.low %v907_v6, %v959_v46 }
 0x645   : > { %19138 = vst [vmem:[#allocation438_spill] sm:$0xff] %v15239_v15  ;;  %19139 = vst [vmem:[#allocation439_spill] sm:$0xff] %v15241_v16 }
 0x646   : > { %6949 = vmatpush1.bf16.msra.mxu0 %v15217_v32  ;;  %6990 = vmatpush1.bf16.msra.mxu1 %v15219_v33  ;;  %v1062_v32 = vld [vmem:[%s13338_s17 + $0x5c0] sm:$0xff]  ;;  %v1063_v33 = vld [vmem:[%s13338_s17 + $0x5c8] sm:$0xff]  ;;  %19140 = vst [vmem:[#allocation440_spill] sm:$0xff] %v15249_v25  ;;  %19141 = vst [vmem:[#allocation441_spill] sm:$0xff] %v15251_v26 }
 0x647   : > { %6950 = vmatprep.subr.bf16.mxu0 %v15223_v39  ;;  %6991 = vmatprep.subr.bf16.mxu1 %v15225_v41  ;;  %v15255_v28 = vcombine.high %v1010_v21, %v1062_v32  ;;  %v15257_v3 = vcombine.high %v1011_v19, %v1063_v33  ;;  %v1114_v41 = vld [vmem:[%s13338_s17 + $0x760] sm:$0xff]  ;;  %v15267_v6 = vcombine.low %v1010_v21, %v1062_v32 }
 0x648   : > { %v1166_v39 = vld [vmem:[%s13338_s17 + $0x900] sm:$0xff]  ;;  %v15269_v14 = vcombine.low %v1011_v19, %v1063_v33 }
 0x649   : > { %19142 = vst [vmem:[#allocation442_spill] sm:$0xff] %v15255_v28  ;;  %19143 = vst [vmem:[#allocation443_spill] sm:$0xff] %v15257_v3  ;;  %v15273_v45 = vcombine.high %v1114_v41, %v1166_v39  ;;  %v15285_v19 = vcombine.low %v1114_v41, %v1166_v39 }
 0x64a   : > { %6951 = vmatpush1.bf16.msra.mxu0 %v15233_v18  ;;  %6992 = vmatpush1.bf16.msra.mxu1 %v15235_v62  ;;  %v1115_v18 = vld [vmem:[%s13338_s17 + $0x768] sm:$0xff]  ;;  %19144 = vst [vmem:[#allocation444_spill] sm:$0xff] %v15267_v6  ;;  %19145 = vst [vmem:[#allocation445_spill] sm:$0xff] %v15269_v14 }
 0x64b   : > { %7018 = vmatprep.subr.bf16.mxu0 %v15239_v15  ;;  %7059 = vmatprep.subr.bf16.mxu1 %v15241_v16  ;;  %v1167_v62 = vld [vmem:[%s13338_s17 + $0x908] sm:$0xff]  ;;  %19146 = vst [vmem:[#allocation446_spill] sm:$0xff] %v15273_v45  ;;  %v1218_v16 = vld [vmem:[%s13338_s17 + $0xaa0] sm:$0xff]  ;;  %19148 = vst [vmem:[#allocation448_spill] sm:$0xff] %v15285_v19 }
 0x64c   : > { %v15275_v46 = vcombine.high %v1115_v18, %v1167_v62  ;;  %v1270_v15 = vld [vmem:[%s13338_s17 + $0xc40] sm:$0xff]  ;;  %v15287_v21 = vcombine.low %v1115_v18, %v1167_v62 }
 0x64d   : > { %6969 = vmatmul.mubr.bf16.vlgmr.msra.gmra.mrb[56].mxu0 %v13537_v0  ;;  %7010 = vmatmul.mubr.bf16.vlgmr.msra.gmra.mrb[56].mxu1 %v13537_v0  ;;  %v15291_v32 = vcombine.high %v1218_v16, %v1270_v15  ;;  %v15301_v39 = vcombine.low %v1218_v16, %v1270_v15 }
 0x64e   : > { %7019 = vmatpush1.bf16.msra.mxu0 %v15249_v25  ;;  %7060 = vmatpush1.bf16.msra.mxu1 %v15251_v26  ;;  %19147 = vst [vmem:[#allocation447_spill] sm:$0xff] %v15275_v46  ;;  %v1219_v25 = vld [vmem:[%s13338_s17 + $0xaa8] sm:$0xff]  ;;  %19149 = vst [vmem:[#allocation449_spill] sm:$0xff] %v15287_v21 }
 0x64f   : > { %7020 = vmatprep.subr.bf16.mxu0 %v15255_v28  ;;  %7061 = vmatprep.subr.bf16.mxu1 %v15257_v3  ;;  %v1271_v26 = vld [vmem:[%s13338_s17 + $0xc48] sm:$0xff]  ;;  %19150 = vst [vmem:[#allocation450_spill] sm:$0xff] %v15291_v32  ;;  %v1322_v3 = vld [vmem:[%s13338_s17 + $0xde0] sm:$0xff]  ;;  %19152 = vst [vmem:[#allocation452_spill] sm:$0xff] %v15301_v39 }
 0x650   : > { %7050 = vmatprep.mubr.bf16.mxu0 %v18763_v29  ;;  %7091 = vmatprep.mubr.bf16.mxu1 %v18763_v29  ;;  %v15293_v33 = vcombine.high %v1219_v25, %v1271_v26  ;;  %v1323_v28 = vld [vmem:[%s13338_s17 + $0xde8] sm:$0xff]  ;;  %v15303_v41 = vcombine.low %v1219_v25, %v1271_v26 }
 0x652   : > { %7021 = vmatpush1.bf16.msra.mxu0 %v15267_v6  ;;  %7062 = vmatpush1.bf16.msra.mxu1 %v15269_v14  ;;  %19151 = vst [vmem:[#allocation451_spill] sm:$0xff] %v15293_v33  ;;  %v1374_v6 = vld [vmem:[%s13338_s17 + $0xf80] sm:$0xff]  ;;  %v1375_v14 = vld [vmem:[%s13338_s17 + $0xf88] sm:$0xff]  ;;  %19153 = vst [vmem:[#allocation453_spill] sm:$0xff] %v15303_v41 }
 0x653   : > { %7022 = vmatprep.subr.bf16.mxu0 %v15273_v45  ;;  %7063 = vmatprep.subr.bf16.mxu1 %v15275_v46  ;;  %v15307_v18 = vcombine.high %v1322_v3, %v1374_v6  ;;  %v15309_v62 = vcombine.high %v1323_v28, %v1375_v14  ;;  %v1426_v46 = vld [vmem:[%s13338_s17 + $0x1120] sm:$0xff]  ;;  %v1427_v45 = vld [vmem:[%s13338_s17 + $0x1128] sm:$0xff]  ;;  %v15317_v15 = vcombine.low %v1322_v3, %v1374_v6 }
 0x654   : > { %v15319_v16 = vcombine.low %v1323_v28, %v1375_v14 }
 0x655   : > { %19154 = vst [vmem:[#allocation454_spill] sm:$0xff] %v15307_v18  ;;  %19155 = vst [vmem:[#allocation455_spill] sm:$0xff] %v15309_v62 }
 0x656   : > { %7023 = vmatpush1.bf16.msra.mxu0 %v15285_v19  ;;  %7064 = vmatpush1.bf16.msra.mxu1 %v15287_v21  ;;  %v1478_v19 = vld [vmem:[%s13338_s17 + $0x12c0] sm:$0xff]  ;;  %v1479_v21 = vld [vmem:[%s13338_s17 + $0x12c8] sm:$0xff]  ;;  %19156 = vst [vmem:[#allocation456_spill] sm:$0xff] %v15317_v15  ;;  %19157 = vst [vmem:[#allocation457_spill] sm:$0xff] %v15319_v16 }
 0x657   : > { %7024 = vmatprep.subr.bf16.mxu0 %v15291_v32  ;;  %7065 = vmatprep.subr.bf16.mxu1 %v15293_v33  ;;  %v15323_v25 = vcombine.high %v1426_v46, %v1478_v19  ;;  %v15325_v26 = vcombine.high %v1427_v45, %v1479_v21  ;;  %v1530_v33 = vld [vmem:[%s13338_s17 + $0x1460] sm:$0xff]  ;;  %v1531_v32 = vld [vmem:[%s13338_s17 + $0x1468] sm:$0xff]  ;;  %v15333_v28 = vcombine.low %v1426_v46, %v1478_v19 }
 0x658   : > { %v15335_v3 = vcombine.low %v1427_v45, %v1479_v21 }
 0x659   : > { %19158 = vst [vmem:[#allocation458_spill] sm:$0xff] %v15323_v25  ;;  %19159 = vst [vmem:[#allocation459_spill] sm:$0xff] %v15325_v26 }
 0x65a   : > { %7025 = vmatpush1.bf16.msra.mxu0 %v15301_v39  ;;  %7066 = vmatpush1.bf16.msra.mxu1 %v15303_v41  ;;  %v1582_v39 = vld [vmem:[%s13338_s17 + $0x1600] sm:$0xff]  ;;  %v1583_v41 = vld [vmem:[%s13338_s17 + $0x1608] sm:$0xff]  ;;  %19160 = vst [vmem:[#allocation460_spill] sm:$0xff] %v15333_v28  ;;  %19161 = vst [vmem:[#allocation461_spill] sm:$0xff] %v15335_v3 }
 0x65b   : > { %7026 = vmatprep.subr.bf16.mxu0 %v15307_v18  ;;  %7067 = vmatprep.subr.bf16.mxu1 %v15309_v62  ;;  %v15339_v6 = vcombine.high %v1530_v33, %v1582_v39  ;;  %v15341_v14 = vcombine.high %v1531_v32, %v1583_v41  ;;  %v1634_v62 = vld [vmem:[%s13338_s17 + $0x17a0] sm:$0xff]  ;;  %v1635_v18 = vld [vmem:[%s13338_s17 + $0x17a8] sm:$0xff]  ;;  %v15349_v45 = vcombine.low %v1530_v33, %v1582_v39 }
 0x65c   : > { %v15351_v46 = vcombine.low %v1531_v32, %v1583_v41 }
 0x65d   : > { %19162 = vst [vmem:[#allocation462_spill] sm:$0xff] %v15339_v6  ;;  %19163 = vst [vmem:[#allocation463_spill] sm:$0xff] %v15341_v14 }
 0x65e   : > { %7027 = vmatpush1.bf16.msra.mxu0 %v15317_v15  ;;  %7068 = vmatpush1.bf16.msra.mxu1 %v15319_v16  ;;  %v1686_v15 = vld [vmem:[%s13338_s17 + $0x1940] sm:$0xff]  ;;  %v1687_v16 = vld [vmem:[%s13338_s17 + $0x1948] sm:$0xff]  ;;  %19164 = vst [vmem:[#allocation464_spill] sm:$0xff] %v15349_v45  ;;  %19165 = vst [vmem:[#allocation465_spill] sm:$0xff] %v15351_v46 }
 0x65f   : > { %7028 = vmatprep.subr.bf16.mxu0 %v15323_v25  ;;  %7069 = vmatprep.subr.bf16.mxu1 %v15325_v26  ;;  %v15355_v19 = vcombine.high %v1634_v62, %v1686_v15  ;;  %v15357_v21 = vcombine.high %v1635_v18, %v1687_v16  ;;  %v908_v26 = vld [vmem:[%s13338_s17 + $0xf0] sm:$0xff]  ;;  %v909_v25 = vld [vmem:[%s13338_s17 + $0xf8] sm:$0xff]  ;;  %v15365_v32 = vcombine.low %v1634_v62, %v1686_v15 }
 0x660   : > { %v15367_v33 = vcombine.low %v1635_v18, %v1687_v16 }
 0x661   : > { %19166 = vst [vmem:[#allocation466_spill] sm:$0xff] %v15355_v19  ;;  %19167 = vst [vmem:[#allocation467_spill] sm:$0xff] %v15357_v21 }
 0x662   : > { %7029 = vmatpush1.bf16.msra.mxu0 %v15333_v28  ;;  %7070 = vmatpush1.bf16.msra.mxu1 %v15335_v3  ;;  %v960_v28 = vld [vmem:[%s13338_s17 + $0x290] sm:$0xff]  ;;  %v961_v3 = vld [vmem:[%s13338_s17 + $0x298] sm:$0xff]  ;;  %19168 = vst [vmem:[#allocation468_spill] sm:$0xff] %v15365_v32  ;;  %19169 = vst [vmem:[#allocation469_spill] sm:$0xff] %v15367_v33 }
 0x663   : > { %7030 = vmatprep.subr.bf16.mxu0 %v15339_v6  ;;  %7071 = vmatprep.subr.bf16.mxu1 %v15341_v14  ;;  %v15371_v39 = vcombine.high %v908_v26, %v960_v28  ;;  %v15373_v41 = vcombine.high %v909_v25, %v961_v3  ;;  %v1012_v14 = vld [vmem:[%s13338_s17 + $0x430] sm:$0xff]  ;;  %v1013_v6 = vld [vmem:[%s13338_s17 + $0x438] sm:$0xff]  ;;  %v15381_v18 = vcombine.low %v908_v26, %v960_v28 }
 0x664   : > { %v15383_v62 = vcombine.low %v909_v25, %v961_v3 }
 0x665   : > { %19170 = vst [vmem:[#allocation470_spill] sm:$0xff] %v15371_v39  ;;  %19171 = vst [vmem:[#allocation471_spill] sm:$0xff] %v15373_v41 }
 0x666   : > { %7031 = vmatpush1.bf16.msra.mxu0 %v15349_v45  ;;  %7072 = vmatpush1.bf16.msra.mxu1 %v15351_v46  ;;  %v1064_v45 = vld [vmem:[%s13338_s17 + $0x5d0] sm:$0xff]  ;;  %v1065_v46 = vld [vmem:[%s13338_s17 + $0x5d8] sm:$0xff]  ;;  %19172 = vst [vmem:[#allocation472_spill] sm:$0xff] %v15381_v18  ;;  %19173 = vst [vmem:[#allocation473_spill] sm:$0xff] %v15383_v62 }
 0x667   : > { %7032 = vmatprep.subr.bf16.mxu0 %v15355_v19  ;;  %7073 = vmatprep.subr.bf16.mxu1 %v15357_v21  ;;  %v15387_v15 = vcombine.high %v1012_v14, %v1064_v45  ;;  %v15389_v16 = vcombine.high %v1013_v6, %v1065_v46  ;;  %v1116_v21 = vld [vmem:[%s13338_s17 + $0x770] sm:$0xff]  ;;  %v15399_v25 = vcombine.low %v1012_v14, %v1064_v45 }
 0x668   : > { %v1168_v19 = vld [vmem:[%s13338_s17 + $0x910] sm:$0xff]  ;;  %v15401_v26 = vcombine.low %v1013_v6, %v1065_v46 }
 0x669   : > { %19174 = vst [vmem:[#allocation474_spill] sm:$0xff] %v15387_v15  ;;  %19175 = vst [vmem:[#allocation475_spill] sm:$0xff] %v15389_v16  ;;  %v15405_v28 = vcombine.high %v1116_v21, %v1168_v19  ;;  %v15417_v6 = vcombine.low %v1116_v21, %v1168_v19 }
 0x66a   : > { %7033 = vmatpush1.bf16.msra.mxu0 %v15365_v32  ;;  %7074 = vmatpush1.bf16.msra.mxu1 %v15367_v33  ;;  %v1117_v32 = vld [vmem:[%s13338_s17 + $0x778] sm:$0xff]  ;;  %19176 = vst [vmem:[#allocation476_spill] sm:$0xff] %v15399_v25  ;;  %19177 = vst [vmem:[#allocation477_spill] sm:$0xff] %v15401_v26 }
 0x66b   : > { %7100 = vmatprep.subr.bf16.mxu0 %v15371_v39  ;;  %7141 = vmatprep.subr.bf16.mxu1 %v15373_v41  ;;  %v1169_v33 = vld [vmem:[%s13338_s17 + $0x918] sm:$0xff]  ;;  %19178 = vst [vmem:[#allocation478_spill] sm:$0xff] %v15405_v28  ;;  %v1220_v41 = vld [vmem:[%s13338_s17 + $0xab0] sm:$0xff]  ;;  %19180 = vst [vmem:[#allocation480_spill] sm:$0xff] %v15417_v6 }
 0x66c   : > { %v15407_v3 = vcombine.high %v1117_v32, %v1169_v33  ;;  %v1272_v39 = vld [vmem:[%s13338_s17 + $0xc50] sm:$0xff]  ;;  %v15419_v14 = vcombine.low %v1117_v32, %v1169_v33 }
 0x66d   : > { %7051 = vmatmul.mubr.bf16.vlgmr.msra.gmra.mrb[60].mxu0 %v13537_v0  ;;  %7092 = vmatmul.mubr.bf16.vlgmr.msra.gmra.mrb[60].mxu1 %v13537_v0  ;;  %v15423_v45 = vcombine.high %v1220_v41, %v1272_v39  ;;  %v15433_v19 = vcombine.low %v1220_v41, %v1272_v39 }
 0x66e   : > { %7101 = vmatpush1.bf16.msra.mxu0 %v15381_v18  ;;  %7142 = vmatpush1.bf16.msra.mxu1 %v15383_v62  ;;  %19179 = vst [vmem:[#allocation479_spill] sm:$0xff] %v15407_v3  ;;  %v1221_v18 = vld [vmem:[%s13338_s17 + $0xab8] sm:$0xff]  ;;  %19181 = vst [vmem:[#allocation481_spill] sm:$0xff] %v15419_v14 }
 0x66f   : > { %7102 = vmatprep.subr.bf16.mxu0 %v15387_v15  ;;  %7143 = vmatprep.subr.bf16.mxu1 %v15389_v16  ;;  %v1273_v62 = vld [vmem:[%s13338_s17 + $0xc58] sm:$0xff]  ;;  %19182 = vst [vmem:[#allocation482_spill] sm:$0xff] %v15423_v45  ;;  %v1324_v16 = vld [vmem:[%s13338_s17 + $0xdf0] sm:$0xff]  ;;  %19184 = vst [vmem:[#allocation484_spill] sm:$0xff] %v15433_v19 }
 0x670   : > { %7132 = vmatprep.mubr.bf16.mxu0 %v18763_v29  ;;  %7173 = vmatprep.mubr.bf16.mxu1 %v18763_v29  ;;  %v15425_v46 = vcombine.high %v1221_v18, %v1273_v62  ;;  %v1325_v15 = vld [vmem:[%s13338_s17 + $0xdf8] sm:$0xff]  ;;  %v15435_v21 = vcombine.low %v1221_v18, %v1273_v62 }
 0x672   : > { %7103 = vmatpush1.bf16.msra.mxu0 %v15399_v25  ;;  %7144 = vmatpush1.bf16.msra.mxu1 %v15401_v26  ;;  %19183 = vst [vmem:[#allocation483_spill] sm:$0xff] %v15425_v46  ;;  %v1376_v25 = vld [vmem:[%s13338_s17 + $0xf90] sm:$0xff]  ;;  %v1377_v26 = vld [vmem:[%s13338_s17 + $0xf98] sm:$0xff]  ;;  %19185 = vst [vmem:[#allocation485_spill] sm:$0xff] %v15435_v21 }
 0x673   : > { %7104 = vmatprep.subr.bf16.mxu0 %v15405_v28  ;;  %7145 = vmatprep.subr.bf16.mxu1 %v15407_v3  ;;  %v15439_v32 = vcombine.high %v1324_v16, %v1376_v25  ;;  %v15441_v33 = vcombine.high %v1325_v15, %v1377_v26  ;;  %v1428_v3 = vld [vmem:[%s13338_s17 + $0x1130] sm:$0xff]  ;;  %v1429_v28 = vld [vmem:[%s13338_s17 + $0x1138] sm:$0xff]  ;;  %v15449_v39 = vcombine.low %v1324_v16, %v1376_v25 }
 0x674   : > { %v15451_v41 = vcombine.low %v1325_v15, %v1377_v26 }
 0x675   : > { %19186 = vst [vmem:[#allocation486_spill] sm:$0xff] %v15439_v32  ;;  %19187 = vst [vmem:[#allocation487_spill] sm:$0xff] %v15441_v33 }
 0x676   : > { %7105 = vmatpush1.bf16.msra.mxu0 %v15417_v6  ;;  %7146 = vmatpush1.bf16.msra.mxu1 %v15419_v14  ;;  %v1480_v6 = vld [vmem:[%s13338_s17 + $0x12d0] sm:$0xff]  ;;  %v1481_v14 = vld [vmem:[%s13338_s17 + $0x12d8] sm:$0xff]  ;;  %19188 = vst [vmem:[#allocation488_spill] sm:$0xff] %v15449_v39  ;;  %19189 = vst [vmem:[#allocation489_spill] sm:$0xff] %v15451_v41 }
 0x677   : > { %7106 = vmatprep.subr.bf16.mxu0 %v15423_v45  ;;  %7147 = vmatprep.subr.bf16.mxu1 %v15425_v46  ;;  %v15455_v18 = vcombine.high %v1428_v3, %v1480_v6  ;;  %v15457_v62 = vcombine.high %v1429_v28, %v1481_v14  ;;  %v1532_v46 = vld [vmem:[%s13338_s17 + $0x1470] sm:$0xff]  ;;  %v1533_v45 = vld [vmem:[%s13338_s17 + $0x1478] sm:$0xff]  ;;  %v15465_v15 = vcombine.low %v1428_v3, %v1480_v6 }
 0x678   : > { %v15467_v16 = vcombine.low %v1429_v28, %v1481_v14 }
 0x679   : > { %19190 = vst [vmem:[#allocation490_spill] sm:$0xff] %v15455_v18  ;;  %19191 = vst [vmem:[#allocation491_spill] sm:$0xff] %v15457_v62 }
 0x67a   : > { %7107 = vmatpush1.bf16.msra.mxu0 %v15433_v19  ;;  %7148 = vmatpush1.bf16.msra.mxu1 %v15435_v21  ;;  %v1584_v19 = vld [vmem:[%s13338_s17 + $0x1610] sm:$0xff]  ;;  %v1585_v21 = vld [vmem:[%s13338_s17 + $0x1618] sm:$0xff]  ;;  %19192 = vst [vmem:[#allocation492_spill] sm:$0xff] %v15465_v15  ;;  %19193 = vst [vmem:[#allocation493_spill] sm:$0xff] %v15467_v16 }
 0x67b   : > { %7108 = vmatprep.subr.bf16.mxu0 %v15439_v32  ;;  %7149 = vmatprep.subr.bf16.mxu1 %v15441_v33  ;;  %v15471_v25 = vcombine.high %v1532_v46, %v1584_v19  ;;  %v15473_v26 = vcombine.high %v1533_v45, %v1585_v21  ;;  %v1636_v33 = vld [vmem:[%s13338_s17 + $0x17b0] sm:$0xff]  ;;  %v1637_v32 = vld [vmem:[%s13338_s17 + $0x17b8] sm:$0xff]  ;;  %v15481_v28 = vcombine.low %v1532_v46, %v1584_v19 }
 0x67c   : > { %v15483_v3 = vcombine.low %v1533_v45, %v1585_v21 }
 0x67d   : > { %19194 = vst [vmem:[#allocation494_spill] sm:$0xff] %v15471_v25  ;;  %19195 = vst [vmem:[#allocation495_spill] sm:$0xff] %v15473_v26 }
 0x67e   : > { %7109 = vmatpush1.bf16.msra.mxu0 %v15449_v39  ;;  %7150 = vmatpush1.bf16.msra.mxu1 %v15451_v41  ;;  %v1688_v39 = vld [vmem:[%s13338_s17 + $0x1950] sm:$0xff]  ;;  %v1689_v41 = vld [vmem:[%s13338_s17 + $0x1958] sm:$0xff]  ;;  %19196 = vst [vmem:[#allocation496_spill] sm:$0xff] %v15481_v28  ;;  %19197 = vst [vmem:[#allocation497_spill] sm:$0xff] %v15483_v3 }
 0x67f   : > { %7110 = vmatprep.subr.bf16.mxu0 %v15455_v18  ;;  %7151 = vmatprep.subr.bf16.mxu1 %v15457_v62  ;;  %v15487_v6 = vcombine.high %v1636_v33, %v1688_v39  ;;  %v15489_v14 = vcombine.high %v1637_v32, %v1689_v41  ;;  %v910_v62 = vld [vmem:[%s13338_s17 + $0x100] sm:$0xff]  ;;  %v911_v18 = vld [vmem:[%s13338_s17 + $0x108] sm:$0xff]  ;;  %v15497_v45 = vcombine.low %v1636_v33, %v1688_v39 }
 0x680   : > { %v15499_v46 = vcombine.low %v1637_v32, %v1689_v41 }
 0x681   : > { %19198 = vst [vmem:[#allocation498_spill] sm:$0xff] %v15487_v6  ;;  %19199 = vst [vmem:[#allocation499_spill] sm:$0xff] %v15489_v14 }
 0x682   : > { %7111 = vmatpush1.bf16.msra.mxu0 %v15465_v15  ;;  %7152 = vmatpush1.bf16.msra.mxu1 %v15467_v16  ;;  %v962_v15 = vld [vmem:[%s13338_s17 + $0x2a0] sm:$0xff]  ;;  %v963_v16 = vld [vmem:[%s13338_s17 + $0x2a8] sm:$0xff]  ;;  %19200 = vst [vmem:[#allocation500_spill] sm:$0xff] %v15497_v45  ;;  %19201 = vst [vmem:[#allocation501_spill] sm:$0xff] %v15499_v46 }
 0x683   : > { %7112 = vmatprep.subr.bf16.mxu0 %v15471_v25  ;;  %7153 = vmatprep.subr.bf16.mxu1 %v15473_v26  ;;  %v15503_v19 = vcombine.high %v910_v62, %v962_v15  ;;  %v15505_v21 = vcombine.high %v911_v18, %v963_v16  ;;  %v1014_v26 = vld [vmem:[%s13338_s17 + $0x440] sm:$0xff]  ;;  %v1015_v25 = vld [vmem:[%s13338_s17 + $0x448] sm:$0xff]  ;;  %v15513_v32 = vcombine.low %v910_v62, %v962_v15 }
 0x684   : > { %v15515_v33 = vcombine.low %v911_v18, %v963_v16 }
 0x685   : > { %19202 = vst [vmem:[#allocation502_spill] sm:$0xff] %v15503_v19  ;;  %19203 = vst [vmem:[#allocation503_spill] sm:$0xff] %v15505_v21 }
 0x686   : > { %7113 = vmatpush1.bf16.msra.mxu0 %v15481_v28  ;;  %7154 = vmatpush1.bf16.msra.mxu1 %v15483_v3  ;;  %v1066_v28 = vld [vmem:[%s13338_s17 + $0x5e0] sm:$0xff]  ;;  %v1067_v3 = vld [vmem:[%s13338_s17 + $0x5e8] sm:$0xff]  ;;  %19204 = vst [vmem:[#allocation504_spill] sm:$0xff] %v15513_v32  ;;  %19205 = vst [vmem:[#allocation505_spill] sm:$0xff] %v15515_v33 }
 0x687   : > { %7114 = vmatprep.subr.bf16.mxu0 %v15487_v6  ;;  %7155 = vmatprep.subr.bf16.mxu1 %v15489_v14  ;;  %v15519_v39 = vcombine.high %v1014_v26, %v1066_v28  ;;  %v15521_v41 = vcombine.high %v1015_v25, %v1067_v3  ;;  %v1118_v14 = vld [vmem:[%s13338_s17 + $0x780] sm:$0xff]  ;;  %v15531_v18 = vcombine.low %v1014_v26, %v1066_v28 }
 0x688   : > { %v1170_v6 = vld [vmem:[%s13338_s17 + $0x920] sm:$0xff]  ;;  %v15533_v62 = vcombine.low %v1015_v25, %v1067_v3 }
 0x689   : > { %19206 = vst [vmem:[#allocation506_spill] sm:$0xff] %v15519_v39  ;;  %19207 = vst [vmem:[#allocation507_spill] sm:$0xff] %v15521_v41  ;;  %v15537_v15 = vcombine.high %v1118_v14, %v1170_v6  ;;  %v15549_v25 = vcombine.low %v1118_v14, %v1170_v6 }
 0x68a   : > { %7115 = vmatpush1.bf16.msra.mxu0 %v15497_v45  ;;  %7156 = vmatpush1.bf16.msra.mxu1 %v15499_v46  ;;  %v1119_v45 = vld [vmem:[%s13338_s17 + $0x788] sm:$0xff]  ;;  %19208 = vst [vmem:[#allocation508_spill] sm:$0xff] %v15531_v18  ;;  %19209 = vst [vmem:[#allocation509_spill] sm:$0xff] %v15533_v62 }
 0x68b   : > { %7182 = vmatprep.subr.bf16.mxu0 %v15503_v19  ;;  %7223 = vmatprep.subr.bf16.mxu1 %v15505_v21  ;;  %v1171_v46 = vld [vmem:[%s13338_s17 + $0x928] sm:$0xff]  ;;  %19210 = vst [vmem:[#allocation510_spill] sm:$0xff] %v15537_v15  ;;  %v1222_v21 = vld [vmem:[%s13338_s17 + $0xac0] sm:$0xff]  ;;  %19212 = vst [vmem:[#allocation512_spill] sm:$0xff] %v15549_v25 }
 0x68c   : > { %v15539_v16 = vcombine.high %v1119_v45, %v1171_v46  ;;  %v1274_v19 = vld [vmem:[%s13338_s17 + $0xc60] sm:$0xff]  ;;  %v15551_v26 = vcombine.low %v1119_v45, %v1171_v46 }
 0x68d   : > { %7133 = vmatmul.mubr.bf16.vlgmr.msra.gmra.mrb[64].mxu0 %v13537_v0  ;;  %7174 = vmatmul.mubr.bf16.vlgmr.msra.gmra.mrb[64].mxu1 %v13537_v0  ;;  %v15555_v28 = vcombine.high %v1222_v21, %v1274_v19  ;;  %v15565_v6 = vcombine.low %v1222_v21, %v1274_v19 }
 0x68e   : > { %7183 = vmatpush1.bf16.msra.mxu0 %v15513_v32  ;;  %7224 = vmatpush1.bf16.msra.mxu1 %v15515_v33  ;;  %19211 = vst [vmem:[#allocation511_spill] sm:$0xff] %v15539_v16  ;;  %v1223_v32 = vld [vmem:[%s13338_s17 + $0xac8] sm:$0xff]  ;;  %19213 = vst [vmem:[#allocation513_spill] sm:$0xff] %v15551_v26 }
 0x68f   : > { %7184 = vmatprep.subr.bf16.mxu0 %v15519_v39  ;;  %7225 = vmatprep.subr.bf16.mxu1 %v15521_v41  ;;  %v1275_v33 = vld [vmem:[%s13338_s17 + $0xc68] sm:$0xff]  ;;  %19214 = vst [vmem:[#allocation514_spill] sm:$0xff] %v15555_v28  ;;  %v1326_v41 = vld [vmem:[%s13338_s17 + $0xe00] sm:$0xff]  ;;  %19216 = vst [vmem:[#allocation516_spill] sm:$0xff] %v15565_v6 }
 0x690   : > { %7214 = vmatprep.mubr.bf16.mxu0 %v18763_v29  ;;  %7255 = vmatprep.mubr.bf16.mxu1 %v18763_v29  ;;  %v15557_v3 = vcombine.high %v1223_v32, %v1275_v33  ;;  %v1327_v39 = vld [vmem:[%s13338_s17 + $0xe08] sm:$0xff]  ;;  %v15567_v14 = vcombine.low %v1223_v32, %v1275_v33 }
 0x692   : > { %7185 = vmatpush1.bf16.msra.mxu0 %v15531_v18  ;;  %7226 = vmatpush1.bf16.msra.mxu1 %v15533_v62  ;;  %19215 = vst [vmem:[#allocation515_spill] sm:$0xff] %v15557_v3  ;;  %v1378_v18 = vld [vmem:[%s13338_s17 + $0xfa0] sm:$0xff]  ;;  %v1379_v62 = vld [vmem:[%s13338_s17 + $0xfa8] sm:$0xff]  ;;  %19217 = vst [vmem:[#allocation517_spill] sm:$0xff] %v15567_v14 }
 0x693   : > { %7186 = vmatprep.subr.bf16.mxu0 %v15537_v15  ;;  %7227 = vmatprep.subr.bf16.mxu1 %v15539_v16  ;;  %v15571_v45 = vcombine.high %v1326_v41, %v1378_v18  ;;  %v15573_v46 = vcombine.high %v1327_v39, %v1379_v62  ;;  %v1430_v16 = vld [vmem:[%s13338_s17 + $0x1140] sm:$0xff]  ;;  %v1431_v15 = vld [vmem:[%s13338_s17 + $0x1148] sm:$0xff]  ;;  %v15581_v19 = vcombine.low %v1326_v41, %v1378_v18 }
 0x694   : > { %v15583_v21 = vcombine.low %v1327_v39, %v1379_v62 }
 0x695   : > { %19218 = vst [vmem:[#allocation518_spill] sm:$0xff] %v15571_v45  ;;  %19219 = vst [vmem:[#allocation519_spill] sm:$0xff] %v15573_v46 }
 0x696   : > { %7187 = vmatpush1.bf16.msra.mxu0 %v15549_v25  ;;  %7228 = vmatpush1.bf16.msra.mxu1 %v15551_v26  ;;  %v1482_v25 = vld [vmem:[%s13338_s17 + $0x12e0] sm:$0xff]  ;;  %v1483_v26 = vld [vmem:[%s13338_s17 + $0x12e8] sm:$0xff]  ;;  %19220 = vst [vmem:[#allocation520_spill] sm:$0xff] %v15581_v19  ;;  %19221 = vst [vmem:[#allocation521_spill] sm:$0xff] %v15583_v21 }
 0x697   : > { %7188 = vmatprep.subr.bf16.mxu0 %v15555_v28  ;;  %7229 = vmatprep.subr.bf16.mxu1 %v15557_v3  ;;  %v15587_v32 = vcombine.high %v1430_v16, %v1482_v25  ;;  %v15589_v33 = vcombine.high %v1431_v15, %v1483_v26  ;;  %v1534_v3 = vld [vmem:[%s13338_s17 + $0x1480] sm:$0xff]  ;;  %v1535_v28 = vld [vmem:[%s13338_s17 + $0x1488] sm:$0xff]  ;;  %v15597_v39 = vcombine.low %v1430_v16, %v1482_v25 }
 0x698   : > { %v15599_v41 = vcombine.low %v1431_v15, %v1483_v26 }
 0x699   : > { %19222 = vst [vmem:[#allocation522_spill] sm:$0xff] %v15587_v32  ;;  %19223 = vst [vmem:[#allocation523_spill] sm:$0xff] %v15589_v33 }
 0x69a   : > { %7189 = vmatpush1.bf16.msra.mxu0 %v15565_v6  ;;  %7230 = vmatpush1.bf16.msra.mxu1 %v15567_v14  ;;  %v1586_v6 = vld [vmem:[%s13338_s17 + $0x1620] sm:$0xff]  ;;  %v1587_v14 = vld [vmem:[%s13338_s17 + $0x1628] sm:$0xff]  ;;  %19224 = vst [vmem:[#allocation524_spill] sm:$0xff] %v15597_v39  ;;  %19225 = vst [vmem:[#allocation525_spill] sm:$0xff] %v15599_v41 }
 0x69b   : > { %7190 = vmatprep.subr.bf16.mxu0 %v15571_v45  ;;  %7231 = vmatprep.subr.bf16.mxu1 %v15573_v46  ;;  %v15603_v18 = vcombine.high %v1534_v3, %v1586_v6  ;;  %v15605_v62 = vcombine.high %v1535_v28, %v1587_v14  ;;  %v1638_v46 = vld [vmem:[%s13338_s17 + $0x17c0] sm:$0xff]  ;;  %v1639_v45 = vld [vmem:[%s13338_s17 + $0x17c8] sm:$0xff]  ;;  %v15613_v15 = vcombine.low %v1534_v3, %v1586_v6 }
 0x69c   : > { %v15615_v16 = vcombine.low %v1535_v28, %v1587_v14 }
 0x69d   : > { %19226 = vst [vmem:[#allocation526_spill] sm:$0xff] %v15603_v18  ;;  %19227 = vst [vmem:[#allocation527_spill] sm:$0xff] %v15605_v62 }
 0x69e   : > { %7191 = vmatpush1.bf16.msra.mxu0 %v15581_v19  ;;  %7232 = vmatpush1.bf16.msra.mxu1 %v15583_v21  ;;  %v1690_v19 = vld [vmem:[%s13338_s17 + $0x1960] sm:$0xff]  ;;  %v1691_v21 = vld [vmem:[%s13338_s17 + $0x1968] sm:$0xff]  ;;  %19228 = vst [vmem:[#allocation528_spill] sm:$0xff] %v15613_v15  ;;  %19229 = vst [vmem:[#allocation529_spill] sm:$0xff] %v15615_v16 }
 0x69f   : > { %7192 = vmatprep.subr.bf16.mxu0 %v15587_v32  ;;  %7233 = vmatprep.subr.bf16.mxu1 %v15589_v33  ;;  %v15619_v25 = vcombine.high %v1638_v46, %v1690_v19  ;;  %v15621_v26 = vcombine.high %v1639_v45, %v1691_v21  ;;  %v912_v33 = vld [vmem:[%s13338_s17 + $0x110] sm:$0xff]  ;;  %v913_v32 = vld [vmem:[%s13338_s17 + $0x118] sm:$0xff]  ;;  %v15629_v28 = vcombine.low %v1638_v46, %v1690_v19 }
 0x6a0   : > { %v15631_v3 = vcombine.low %v1639_v45, %v1691_v21 }
 0x6a1   : > { %19230 = vst [vmem:[#allocation530_spill] sm:$0xff] %v15619_v25  ;;  %19231 = vst [vmem:[#allocation531_spill] sm:$0xff] %v15621_v26 }
 0x6a2   : > { %7193 = vmatpush1.bf16.msra.mxu0 %v15597_v39  ;;  %7234 = vmatpush1.bf16.msra.mxu1 %v15599_v41  ;;  %v964_v39 = vld [vmem:[%s13338_s17 + $0x2b0] sm:$0xff]  ;;  %v965_v41 = vld [vmem:[%s13338_s17 + $0x2b8] sm:$0xff]  ;;  %19232 = vst [vmem:[#allocation532_spill] sm:$0xff] %v15629_v28  ;;  %19233 = vst [vmem:[#allocation533_spill] sm:$0xff] %v15631_v3 }
 0x6a3   : > { %7194 = vmatprep.subr.bf16.mxu0 %v15603_v18  ;;  %7235 = vmatprep.subr.bf16.mxu1 %v15605_v62  ;;  %v15635_v6 = vcombine.high %v912_v33, %v964_v39  ;;  %v15637_v14 = vcombine.high %v913_v32, %v965_v41  ;;  %v1016_v62 = vld [vmem:[%s13338_s17 + $0x450] sm:$0xff]  ;;  %v1017_v18 = vld [vmem:[%s13338_s17 + $0x458] sm:$0xff]  ;;  %v15645_v45 = vcombine.low %v912_v33, %v964_v39 }
 0x6a4   : > { %v15647_v46 = vcombine.low %v913_v32, %v965_v41 }
 0x6a5   : > { %19234 = vst [vmem:[#allocation534_spill] sm:$0xff] %v15635_v6  ;;  %19235 = vst [vmem:[#allocation535_spill] sm:$0xff] %v15637_v14 }
 0x6a6   : > { %7195 = vmatpush1.bf16.msra.mxu0 %v15613_v15  ;;  %7236 = vmatpush1.bf16.msra.mxu1 %v15615_v16  ;;  %v1068_v15 = vld [vmem:[%s13338_s17 + $0x5f0] sm:$0xff]  ;;  %v1069_v16 = vld [vmem:[%s13338_s17 + $0x5f8] sm:$0xff]  ;;  %19236 = vst [vmem:[#allocation536_spill] sm:$0xff] %v15645_v45  ;;  %19237 = vst [vmem:[#allocation537_spill] sm:$0xff] %v15647_v46 }
 0x6a7   : > { %7196 = vmatprep.subr.bf16.mxu0 %v15619_v25  ;;  %7237 = vmatprep.subr.bf16.mxu1 %v15621_v26  ;;  %v15651_v19 = vcombine.high %v1016_v62, %v1068_v15  ;;  %v15653_v21 = vcombine.high %v1017_v18, %v1069_v16  ;;  %v1120_v26 = vld [vmem:[%s13338_s17 + $0x790] sm:$0xff]  ;;  %v15663_v32 = vcombine.low %v1016_v62, %v1068_v15 }
 0x6a8   : > { %v1172_v25 = vld [vmem:[%s13338_s17 + $0x930] sm:$0xff]  ;;  %v15665_v33 = vcombine.low %v1017_v18, %v1069_v16 }
 0x6a9   : > { %19238 = vst [vmem:[#allocation538_spill] sm:$0xff] %v15651_v19  ;;  %19239 = vst [vmem:[#allocation539_spill] sm:$0xff] %v15653_v21  ;;  %v15669_v39 = vcombine.high %v1120_v26, %v1172_v25  ;;  %v15681_v18 = vcombine.low %v1120_v26, %v1172_v25 }
 0x6aa   : > { %7197 = vmatpush1.bf16.msra.mxu0 %v15629_v28  ;;  %7238 = vmatpush1.bf16.msra.mxu1 %v15631_v3  ;;  %v1121_v28 = vld [vmem:[%s13338_s17 + $0x798] sm:$0xff]  ;;  %19240 = vst [vmem:[#allocation540_spill] sm:$0xff] %v15663_v32  ;;  %19241 = vst [vmem:[#allocation541_spill] sm:$0xff] %v15665_v33 }
 0x6ab   : > { %7264 = vmatprep.subr.bf16.mxu0 %v15635_v6  ;;  %7305 = vmatprep.subr.bf16.mxu1 %v15637_v14  ;;  %v1173_v3 = vld [vmem:[%s13338_s17 + $0x938] sm:$0xff]  ;;  %19242 = vst [vmem:[#allocation542_spill] sm:$0xff] %v15669_v39  ;;  %v1224_v14 = vld [vmem:[%s13338_s17 + $0xad0] sm:$0xff]  ;;  %19244 = vst [vmem:[#allocation544_spill] sm:$0xff] %v15681_v18 }
 0x6ac   : > { %v15671_v41 = vcombine.high %v1121_v28, %v1173_v3  ;;  %v1276_v6 = vld [vmem:[%s13338_s17 + $0xc70] sm:$0xff]  ;;  %v15683_v62 = vcombine.low %v1121_v28, %v1173_v3 }
 0x6ad   : > { %7215 = vmatmul.mubr.bf16.vlgmr.msra.gmra.mrb[68].mxu0 %v13537_v0  ;;  %7256 = vmatmul.mubr.bf16.vlgmr.msra.gmra.mrb[68].mxu1 %v13537_v0  ;;  %v15687_v15 = vcombine.high %v1224_v14, %v1276_v6  ;;  %v15697_v25 = vcombine.low %v1224_v14, %v1276_v6 }
 0x6ae   : > { %7265 = vmatpush1.bf16.msra.mxu0 %v15645_v45  ;;  %7306 = vmatpush1.bf16.msra.mxu1 %v15647_v46  ;;  %19243 = vst [vmem:[#allocation543_spill] sm:$0xff] %v15671_v41  ;;  %v1225_v45 = vld [vmem:[%s13338_s17 + $0xad8] sm:$0xff]  ;;  %19245 = vst [vmem:[#allocation545_spill] sm:$0xff] %v15683_v62 }
 0x6af   : > { %7266 = vmatprep.subr.bf16.mxu0 %v15651_v19  ;;  %7307 = vmatprep.subr.bf16.mxu1 %v15653_v21  ;;  %v1277_v46 = vld [vmem:[%s13338_s17 + $0xc78] sm:$0xff]  ;;  %19246 = vst [vmem:[#allocation546_spill] sm:$0xff] %v15687_v15  ;;  %v1328_v21 = vld [vmem:[%s13338_s17 + $0xe10] sm:$0xff]  ;;  %19248 = vst [vmem:[#allocation548_spill] sm:$0xff] %v15697_v25 }
 0x6b0   : > { %7296 = vmatprep.mubr.bf16.mxu0 %v18763_v29  ;;  %7337 = vmatprep.mubr.bf16.mxu1 %v18763_v29  ;;  %v15689_v16 = vcombine.high %v1225_v45, %v1277_v46  ;;  %v1329_v19 = vld [vmem:[%s13338_s17 + $0xe18] sm:$0xff]  ;;  %v15699_v26 = vcombine.low %v1225_v45, %v1277_v46 }
 0x6b2   : > { %7267 = vmatpush1.bf16.msra.mxu0 %v15663_v32  ;;  %7308 = vmatpush1.bf16.msra.mxu1 %v15665_v33  ;;  %19247 = vst [vmem:[#allocation547_spill] sm:$0xff] %v15689_v16  ;;  %v1380_v32 = vld [vmem:[%s13338_s17 + $0xfb0] sm:$0xff]  ;;  %v1381_v33 = vld [vmem:[%s13338_s17 + $0xfb8] sm:$0xff]  ;;  %19249 = vst [vmem:[#allocation549_spill] sm:$0xff] %v15699_v26 }
 0x6b3   : > { %7268 = vmatprep.subr.bf16.mxu0 %v15669_v39  ;;  %7309 = vmatprep.subr.bf16.mxu1 %v15671_v41  ;;  %v15703_v28 = vcombine.high %v1328_v21, %v1380_v32  ;;  %v15705_v3 = vcombine.high %v1329_v19, %v1381_v33  ;;  %v1432_v41 = vld [vmem:[%s13338_s17 + $0x1150] sm:$0xff]  ;;  %v1433_v39 = vld [vmem:[%s13338_s17 + $0x1158] sm:$0xff]  ;;  %v15713_v6 = vcombine.low %v1328_v21, %v1380_v32 }
 0x6b4   : > { %v15715_v14 = vcombine.low %v1329_v19, %v1381_v33 }
 0x6b5   : > { %19250 = vst [vmem:[#allocation550_spill] sm:$0xff] %v15703_v28  ;;  %19251 = vst [vmem:[#allocation551_spill] sm:$0xff] %v15705_v3 }
 0x6b6   : > { %7269 = vmatpush1.bf16.msra.mxu0 %v15681_v18  ;;  %7310 = vmatpush1.bf16.msra.mxu1 %v15683_v62  ;;  %v1484_v18 = vld [vmem:[%s13338_s17 + $0x12f0] sm:$0xff]  ;;  %v1485_v62 = vld [vmem:[%s13338_s17 + $0x12f8] sm:$0xff]  ;;  %19252 = vst [vmem:[#allocation552_spill] sm:$0xff] %v15713_v6  ;;  %19253 = vst [vmem:[#allocation553_spill] sm:$0xff] %v15715_v14 }
 0x6b7   : > { %7270 = vmatprep.subr.bf16.mxu0 %v15687_v15  ;;  %7311 = vmatprep.subr.bf16.mxu1 %v15689_v16  ;;  %v15719_v45 = vcombine.high %v1432_v41, %v1484_v18  ;;  %v15721_v46 = vcombine.high %v1433_v39, %v1485_v62  ;;  %v1536_v16 = vld [vmem:[%s13338_s17 + $0x1490] sm:$0xff]  ;;  %v1537_v15 = vld [vmem:[%s13338_s17 + $0x1498] sm:$0xff]  ;;  %v15729_v19 = vcombine.low %v1432_v41, %v1484_v18 }
 0x6b8   : > { %v15731_v21 = vcombine.low %v1433_v39, %v1485_v62 }
 0x6b9   : > { %19254 = vst [vmem:[#allocation554_spill] sm:$0xff] %v15719_v45  ;;  %19255 = vst [vmem:[#allocation555_spill] sm:$0xff] %v15721_v46 }
 0x6ba   : > { %7271 = vmatpush1.bf16.msra.mxu0 %v15697_v25  ;;  %7312 = vmatpush1.bf16.msra.mxu1 %v15699_v26  ;;  %v1588_v25 = vld [vmem:[%s13338_s17 + $0x1630] sm:$0xff]  ;;  %v1589_v26 = vld [vmem:[%s13338_s17 + $0x1638] sm:$0xff]  ;;  %19256 = vst [vmem:[#allocation556_spill] sm:$0xff] %v15729_v19  ;;  %19257 = vst [vmem:[#allocation557_spill] sm:$0xff] %v15731_v21 }
 0x6bb   : > { %7272 = vmatprep.subr.bf16.mxu0 %v15703_v28  ;;  %7313 = vmatprep.subr.bf16.mxu1 %v15705_v3  ;;  %v15735_v32 = vcombine.high %v1536_v16, %v1588_v25  ;;  %v15737_v33 = vcombine.high %v1537_v15, %v1589_v26  ;;  %v1640_v3 = vld [vmem:[%s13338_s17 + $0x17d0] sm:$0xff]  ;;  %v1641_v28 = vld [vmem:[%s13338_s17 + $0x17d8] sm:$0xff]  ;;  %v15745_v39 = vcombine.low %v1536_v16, %v1588_v25 }
 0x6bc   : > { %v15747_v41 = vcombine.low %v1537_v15, %v1589_v26 }
 0x6bd   : > { %19258 = vst [vmem:[#allocation558_spill] sm:$0xff] %v15735_v32  ;;  %19259 = vst [vmem:[#allocation559_spill] sm:$0xff] %v15737_v33 }
 0x6be   : > { %7273 = vmatpush1.bf16.msra.mxu0 %v15713_v6  ;;  %7314 = vmatpush1.bf16.msra.mxu1 %v15715_v14  ;;  %v1692_v6 = vld [vmem:[%s13338_s17 + $0x1970] sm:$0xff]  ;;  %v1693_v14 = vld [vmem:[%s13338_s17 + $0x1978] sm:$0xff]  ;;  %19260 = vst [vmem:[#allocation560_spill] sm:$0xff] %v15745_v39  ;;  %19261 = vst [vmem:[#allocation561_spill] sm:$0xff] %v15747_v41 }
 0x6bf   : > { %7274 = vmatprep.subr.bf16.mxu0 %v15719_v45  ;;  %7315 = vmatprep.subr.bf16.mxu1 %v15721_v46  ;;  %v15751_v18 = vcombine.high %v1640_v3, %v1692_v6  ;;  %v15753_v62 = vcombine.high %v1641_v28, %v1693_v14  ;;  %v914_v46 = vld [vmem:[%s13338_s17 + $0x120] sm:$0xff]  ;;  %v915_v45 = vld [vmem:[%s13338_s17 + $0x128] sm:$0xff]  ;;  %v15761_v15 = vcombine.low %v1640_v3, %v1692_v6 }
 0x6c0   : > { %v15763_v16 = vcombine.low %v1641_v28, %v1693_v14 }
 0x6c1   : > { %19262 = vst [vmem:[#allocation562_spill] sm:$0xff] %v15751_v18  ;;  %19263 = vst [vmem:[#allocation563_spill] sm:$0xff] %v15753_v62 }
 0x6c2   : > { %7275 = vmatpush1.bf16.msra.mxu0 %v15729_v19  ;;  %7316 = vmatpush1.bf16.msra.mxu1 %v15731_v21  ;;  %v966_v19 = vld [vmem:[%s13338_s17 + $0x2c0] sm:$0xff]  ;;  %v967_v21 = vld [vmem:[%s13338_s17 + $0x2c8] sm:$0xff]  ;;  %19264 = vst [vmem:[#allocation564_spill] sm:$0xff] %v15761_v15  ;;  %19265 = vst [vmem:[#allocation565_spill] sm:$0xff] %v15763_v16 }
 0x6c3   : > { %7276 = vmatprep.subr.bf16.mxu0 %v15735_v32  ;;  %7317 = vmatprep.subr.bf16.mxu1 %v15737_v33  ;;  %v15767_v25 = vcombine.high %v914_v46, %v966_v19  ;;  %v15769_v26 = vcombine.high %v915_v45, %v967_v21  ;;  %v1018_v33 = vld [vmem:[%s13338_s17 + $0x460] sm:$0xff]  ;;  %v1019_v32 = vld [vmem:[%s13338_s17 + $0x468] sm:$0xff]  ;;  %v15777_v28 = vcombine.low %v914_v46, %v966_v19 }
 0x6c4   : > { %v15779_v3 = vcombine.low %v915_v45, %v967_v21 }
 0x6c5   : > { %19266 = vst [vmem:[#allocation566_spill] sm:$0xff] %v15767_v25  ;;  %19267 = vst [vmem:[#allocation567_spill] sm:$0xff] %v15769_v26 }
 0x6c6   : > { %7277 = vmatpush1.bf16.msra.mxu0 %v15745_v39  ;;  %7318 = vmatpush1.bf16.msra.mxu1 %v15747_v41  ;;  %v1070_v39 = vld [vmem:[%s13338_s17 + $0x600] sm:$0xff]  ;;  %v1071_v41 = vld [vmem:[%s13338_s17 + $0x608] sm:$0xff]  ;;  %19268 = vst [vmem:[#allocation568_spill] sm:$0xff] %v15777_v28  ;;  %19269 = vst [vmem:[#allocation569_spill] sm:$0xff] %v15779_v3 }
 0x6c7   : > { %7278 = vmatprep.subr.bf16.mxu0 %v15751_v18  ;;  %7319 = vmatprep.subr.bf16.mxu1 %v15753_v62  ;;  %v15783_v6 = vcombine.high %v1018_v33, %v1070_v39  ;;  %v15785_v14 = vcombine.high %v1019_v32, %v1071_v41  ;;  %v1122_v62 = vld [vmem:[%s13338_s17 + $0x7a0] sm:$0xff]  ;;  %v15795_v45 = vcombine.low %v1018_v33, %v1070_v39 }
 0x6c8   : > { %v1174_v18 = vld [vmem:[%s13338_s17 + $0x940] sm:$0xff]  ;;  %v15797_v46 = vcombine.low %v1019_v32, %v1071_v41 }
 0x6c9   : > { %19270 = vst [vmem:[#allocation570_spill] sm:$0xff] %v15783_v6  ;;  %19271 = vst [vmem:[#allocation571_spill] sm:$0xff] %v15785_v14  ;;  %v15801_v19 = vcombine.high %v1122_v62, %v1174_v18  ;;  %v15813_v32 = vcombine.low %v1122_v62, %v1174_v18 }
 0x6ca   : > { %7279 = vmatpush1.bf16.msra.mxu0 %v15761_v15  ;;  %7320 = vmatpush1.bf16.msra.mxu1 %v15763_v16  ;;  %v1123_v15 = vld [vmem:[%s13338_s17 + $0x7a8] sm:$0xff]  ;;  %19272 = vst [vmem:[#allocation572_spill] sm:$0xff] %v15795_v45  ;;  %19273 = vst [vmem:[#allocation573_spill] sm:$0xff] %v15797_v46 }
 0x6cb   : > { %7346 = vmatprep.subr.bf16.mxu0 %v15767_v25  ;;  %7387 = vmatprep.subr.bf16.mxu1 %v15769_v26  ;;  %v1175_v16 = vld [vmem:[%s13338_s17 + $0x948] sm:$0xff]  ;;  %19274 = vst [vmem:[#allocation574_spill] sm:$0xff] %v15801_v19  ;;  %v1226_v26 = vld [vmem:[%s13338_s17 + $0xae0] sm:$0xff]  ;;  %19276 = vst [vmem:[#allocation576_spill] sm:$0xff] %v15813_v32 }
 0x6cc   : > { %v15803_v21 = vcombine.high %v1123_v15, %v1175_v16  ;;  %v1278_v25 = vld [vmem:[%s13338_s17 + $0xc80] sm:$0xff]  ;;  %v15815_v33 = vcombine.low %v1123_v15, %v1175_v16 }
 0x6cd   : > { %7297 = vmatmul.mubr.bf16.vlgmr.msra.gmra.mrb[72].mxu0 %v13537_v0  ;;  %7338 = vmatmul.mubr.bf16.vlgmr.msra.gmra.mrb[72].mxu1 %v13537_v0  ;;  %v15819_v39 = vcombine.high %v1226_v26, %v1278_v25  ;;  %v15829_v18 = vcombine.low %v1226_v26, %v1278_v25 }
 0x6ce   : > { %7347 = vmatpush1.bf16.msra.mxu0 %v15777_v28  ;;  %7388 = vmatpush1.bf16.msra.mxu1 %v15779_v3  ;;  %19275 = vst [vmem:[#allocation575_spill] sm:$0xff] %v15803_v21  ;;  %v1227_v28 = vld [vmem:[%s13338_s17 + $0xae8] sm:$0xff]  ;;  %19277 = vst [vmem:[#allocation577_spill] sm:$0xff] %v15815_v33 }
 0x6cf   : > { %7348 = vmatprep.subr.bf16.mxu0 %v15783_v6  ;;  %7389 = vmatprep.subr.bf16.mxu1 %v15785_v14  ;;  %v1279_v3 = vld [vmem:[%s13338_s17 + $0xc88] sm:$0xff]  ;;  %19278 = vst [vmem:[#allocation578_spill] sm:$0xff] %v15819_v39  ;;  %v1330_v14 = vld [vmem:[%s13338_s17 + $0xe20] sm:$0xff]  ;;  %19280 = vst [vmem:[#allocation580_spill] sm:$0xff] %v15829_v18 }
 0x6d0   : > { %7378 = vmatprep.mubr.bf16.mxu0 %v18763_v29  ;;  %7419 = vmatprep.mubr.bf16.mxu1 %v18763_v29  ;;  %v15821_v41 = vcombine.high %v1227_v28, %v1279_v3  ;;  %v1331_v6 = vld [vmem:[%s13338_s17 + $0xe28] sm:$0xff]  ;;  %v15831_v62 = vcombine.low %v1227_v28, %v1279_v3 }
 0x6d2   : > { %7349 = vmatpush1.bf16.msra.mxu0 %v15795_v45  ;;  %7390 = vmatpush1.bf16.msra.mxu1 %v15797_v46  ;;  %19279 = vst [vmem:[#allocation579_spill] sm:$0xff] %v15821_v41  ;;  %v1382_v45 = vld [vmem:[%s13338_s17 + $0xfc0] sm:$0xff]  ;;  %v1383_v46 = vld [vmem:[%s13338_s17 + $0xfc8] sm:$0xff]  ;;  %19281 = vst [vmem:[#allocation581_spill] sm:$0xff] %v15831_v62 }
 0x6d3   : > { %7350 = vmatprep.subr.bf16.mxu0 %v15801_v19  ;;  %7391 = vmatprep.subr.bf16.mxu1 %v15803_v21  ;;  %v15835_v15 = vcombine.high %v1330_v14, %v1382_v45  ;;  %v15837_v16 = vcombine.high %v1331_v6, %v1383_v46  ;;  %v1434_v21 = vld [vmem:[%s13338_s17 + $0x1160] sm:$0xff]  ;;  %v1435_v19 = vld [vmem:[%s13338_s17 + $0x1168] sm:$0xff]  ;;  %v15845_v25 = vcombine.low %v1330_v14, %v1382_v45 }
 0x6d4   : > { %v15847_v26 = vcombine.low %v1331_v6, %v1383_v46 }
 0x6d5   : > { %19282 = vst [vmem:[#allocation582_spill] sm:$0xff] %v15835_v15  ;;  %19283 = vst [vmem:[#allocation583_spill] sm:$0xff] %v15837_v16 }
 0x6d6   : > { %7351 = vmatpush1.bf16.msra.mxu0 %v15813_v32  ;;  %7392 = vmatpush1.bf16.msra.mxu1 %v15815_v33  ;;  %v1486_v32 = vld [vmem:[%s13338_s17 + $0x1300] sm:$0xff]  ;;  %v1487_v33 = vld [vmem:[%s13338_s17 + $0x1308] sm:$0xff]  ;;  %19284 = vst [vmem:[#allocation584_spill] sm:$0xff] %v15845_v25  ;;  %19285 = vst [vmem:[#allocation585_spill] sm:$0xff] %v15847_v26 }
 0x6d7   : > { %7352 = vmatprep.subr.bf16.mxu0 %v15819_v39  ;;  %7393 = vmatprep.subr.bf16.mxu1 %v15821_v41  ;;  %v15851_v28 = vcombine.high %v1434_v21, %v1486_v32  ;;  %v15853_v3 = vcombine.high %v1435_v19, %v1487_v33  ;;  %v1538_v41 = vld [vmem:[%s13338_s17 + $0x14a0] sm:$0xff]  ;;  %v1539_v39 = vld [vmem:[%s13338_s17 + $0x14a8] sm:$0xff]  ;;  %v15861_v6 = vcombine.low %v1434_v21, %v1486_v32 }
 0x6d8   : > { %v15863_v14 = vcombine.low %v1435_v19, %v1487_v33 }
 0x6d9   : > { %19286 = vst [vmem:[#allocation586_spill] sm:$0xff] %v15851_v28  ;;  %19287 = vst [vmem:[#allocation587_spill] sm:$0xff] %v15853_v3 }
 0x6da   : > { %7353 = vmatpush1.bf16.msra.mxu0 %v15829_v18  ;;  %7394 = vmatpush1.bf16.msra.mxu1 %v15831_v62  ;;  %v1590_v18 = vld [vmem:[%s13338_s17 + $0x1640] sm:$0xff]  ;;  %v1591_v62 = vld [vmem:[%s13338_s17 + $0x1648] sm:$0xff]  ;;  %19288 = vst [vmem:[#allocation588_spill] sm:$0xff] %v15861_v6  ;;  %19289 = vst [vmem:[#allocation589_spill] sm:$0xff] %v15863_v14 }
 0x6db   : > { %7354 = vmatprep.subr.bf16.mxu0 %v15835_v15  ;;  %7395 = vmatprep.subr.bf16.mxu1 %v15837_v16  ;;  %v15867_v45 = vcombine.high %v1538_v41, %v1590_v18  ;;  %v15869_v46 = vcombine.high %v1539_v39, %v1591_v62  ;;  %v1642_v16 = vld [vmem:[%s13338_s17 + $0x17e0] sm:$0xff]  ;;  %v1643_v15 = vld [vmem:[%s13338_s17 + $0x17e8] sm:$0xff]  ;;  %v15877_v19 = vcombine.low %v1538_v41, %v1590_v18 }
 0x6dc   : > { %v15879_v21 = vcombine.low %v1539_v39, %v1591_v62 }
 0x6dd   : > { %19290 = vst [vmem:[#allocation590_spill] sm:$0xff] %v15867_v45  ;;  %19291 = vst [vmem:[#allocation591_spill] sm:$0xff] %v15869_v46 }
 0x6de   : > { %7355 = vmatpush1.bf16.msra.mxu0 %v15845_v25  ;;  %7396 = vmatpush1.bf16.msra.mxu1 %v15847_v26  ;;  %v1694_v25 = vld [vmem:[%s13338_s17 + $0x1980] sm:$0xff]  ;;  %v1695_v26 = vld [vmem:[%s13338_s17 + $0x1988] sm:$0xff]  ;;  %19292 = vst [vmem:[#allocation592_spill] sm:$0xff] %v15877_v19  ;;  %19293 = vst [vmem:[#allocation593_spill] sm:$0xff] %v15879_v21 }
 0x6df   : > { %7356 = vmatprep.subr.bf16.mxu0 %v15851_v28  ;;  %7397 = vmatprep.subr.bf16.mxu1 %v15853_v3  ;;  %v15883_v32 = vcombine.high %v1642_v16, %v1694_v25  ;;  %v15885_v33 = vcombine.high %v1643_v15, %v1695_v26  ;;  %v916_v3 = vld [vmem:[%s13338_s17 + $0x130] sm:$0xff]  ;;  %v917_v28 = vld [vmem:[%s13338_s17 + $0x138] sm:$0xff]  ;;  %v15893_v39 = vcombine.low %v1642_v16, %v1694_v25 }
 0x6e0   : > { %v15895_v41 = vcombine.low %v1643_v15, %v1695_v26 }
 0x6e1   : > { %19294 = vst [vmem:[#allocation594_spill] sm:$0xff] %v15883_v32  ;;  %19295 = vst [vmem:[#allocation595_spill] sm:$0xff] %v15885_v33 }
 0x6e2   : > { %7357 = vmatpush1.bf16.msra.mxu0 %v15861_v6  ;;  %7398 = vmatpush1.bf16.msra.mxu1 %v15863_v14  ;;  %v968_v6 = vld [vmem:[%s13338_s17 + $0x2d0] sm:$0xff]  ;;  %v969_v14 = vld [vmem:[%s13338_s17 + $0x2d8] sm:$0xff]  ;;  %19296 = vst [vmem:[#allocation596_spill] sm:$0xff] %v15893_v39  ;;  %19297 = vst [vmem:[#allocation597_spill] sm:$0xff] %v15895_v41 }
 0x6e3   : > { %7358 = vmatprep.subr.bf16.mxu0 %v15867_v45  ;;  %7399 = vmatprep.subr.bf16.mxu1 %v15869_v46  ;;  %v15899_v18 = vcombine.high %v916_v3, %v968_v6  ;;  %v15901_v62 = vcombine.high %v917_v28, %v969_v14  ;;  %v1020_v46 = vld [vmem:[%s13338_s17 + $0x470] sm:$0xff]  ;;  %v1021_v45 = vld [vmem:[%s13338_s17 + $0x478] sm:$0xff]  ;;  %v15909_v15 = vcombine.low %v916_v3, %v968_v6 }
 0x6e4   : > { %v15911_v16 = vcombine.low %v917_v28, %v969_v14 }
 0x6e5   : > { %19298 = vst [vmem:[#allocation598_spill] sm:$0xff] %v15899_v18  ;;  %19299 = vst [vmem:[#allocation599_spill] sm:$0xff] %v15901_v62 }
 0x6e6   : > { %7359 = vmatpush1.bf16.msra.mxu0 %v15877_v19  ;;  %7400 = vmatpush1.bf16.msra.mxu1 %v15879_v21  ;;  %v1072_v19 = vld [vmem:[%s13338_s17 + $0x610] sm:$0xff]  ;;  %v1073_v21 = vld [vmem:[%s13338_s17 + $0x618] sm:$0xff]  ;;  %19300 = vst [vmem:[#allocation600_spill] sm:$0xff] %v15909_v15  ;;  %19301 = vst [vmem:[#allocation601_spill] sm:$0xff] %v15911_v16 }
 0x6e7   : > { %7360 = vmatprep.subr.bf16.mxu0 %v15883_v32  ;;  %7401 = vmatprep.subr.bf16.mxu1 %v15885_v33  ;;  %v15915_v25 = vcombine.high %v1020_v46, %v1072_v19  ;;  %v15917_v26 = vcombine.high %v1021_v45, %v1073_v21  ;;  %v1124_v33 = vld [vmem:[%s13338_s17 + $0x7b0] sm:$0xff]  ;;  %v15927_v28 = vcombine.low %v1020_v46, %v1072_v19 }
 0x6e8   : > { %v1176_v32 = vld [vmem:[%s13338_s17 + $0x950] sm:$0xff]  ;;  %v15929_v3 = vcombine.low %v1021_v45, %v1073_v21 }
 0x6e9   : > { %19302 = vst [vmem:[#allocation602_spill] sm:$0xff] %v15915_v25  ;;  %19303 = vst [vmem:[#allocation603_spill] sm:$0xff] %v15917_v26  ;;  %v15933_v6 = vcombine.high %v1124_v33, %v1176_v32  ;;  %v15945_v45 = vcombine.low %v1124_v33, %v1176_v32 }
 0x6ea   : > { %7361 = vmatpush1.bf16.msra.mxu0 %v15893_v39  ;;  %7402 = vmatpush1.bf16.msra.mxu1 %v15895_v41  ;;  %v1125_v39 = vld [vmem:[%s13338_s17 + $0x7b8] sm:$0xff]  ;;  %19304 = vst [vmem:[#allocation604_spill] sm:$0xff] %v15927_v28  ;;  %19305 = vst [vmem:[#allocation605_spill] sm:$0xff] %v15929_v3 }
 0x6eb   : > { %7428 = vmatprep.subr.bf16.mxu0 %v15899_v18  ;;  %7469 = vmatprep.subr.bf16.mxu1 %v15901_v62  ;;  %v1177_v41 = vld [vmem:[%s13338_s17 + $0x958] sm:$0xff]  ;;  %19306 = vst [vmem:[#allocation606_spill] sm:$0xff] %v15933_v6  ;;  %v1228_v62 = vld [vmem:[%s13338_s17 + $0xaf0] sm:$0xff]  ;;  %19308 = vst [vmem:[#allocation608_spill] sm:$0xff] %v15945_v45 }
 0x6ec   : > { %v15935_v14 = vcombine.high %v1125_v39, %v1177_v41  ;;  %v1280_v18 = vld [vmem:[%s13338_s17 + $0xc90] sm:$0xff]  ;;  %v15947_v46 = vcombine.low %v1125_v39, %v1177_v41 }
 0x6ed   : > { %7379 = vmatmul.mubr.bf16.vlgmr.msra.gmra.mrb[76].mxu0 %v13537_v0  ;;  %7420 = vmatmul.mubr.bf16.vlgmr.msra.gmra.mrb[76].mxu1 %v13537_v0  ;;  %v15951_v19 = vcombine.high %v1228_v62, %v1280_v18  ;;  %v15961_v32 = vcombine.low %v1228_v62, %v1280_v18 }
 0x6ee   : > { %7429 = vmatpush1.bf16.msra.mxu0 %v15909_v15  ;;  %7470 = vmatpush1.bf16.msra.mxu1 %v15911_v16  ;;  %19307 = vst [vmem:[#allocation607_spill] sm:$0xff] %v15935_v14  ;;  %v1229_v15 = vld [vmem:[%s13338_s17 + $0xaf8] sm:$0xff]  ;;  %19309 = vst [vmem:[#allocation609_spill] sm:$0xff] %v15947_v46 }
 0x6ef   : > { %7430 = vmatprep.subr.bf16.mxu0 %v15915_v25  ;;  %7471 = vmatprep.subr.bf16.mxu1 %v15917_v26  ;;  %v1281_v16 = vld [vmem:[%s13338_s17 + $0xc98] sm:$0xff]  ;;  %19310 = vst [vmem:[#allocation610_spill] sm:$0xff] %v15951_v19  ;;  %v1332_v26 = vld [vmem:[%s13338_s17 + $0xe30] sm:$0xff]  ;;  %19312 = vst [vmem:[#allocation612_spill] sm:$0xff] %v15961_v32 }
 0x6f0   : > { %7460 = vmatprep.mubr.bf16.mxu0 %v18763_v29  ;;  %7501 = vmatprep.mubr.bf16.mxu1 %v18763_v29  ;;  %v15953_v21 = vcombine.high %v1229_v15, %v1281_v16  ;;  %v1333_v25 = vld [vmem:[%s13338_s17 + $0xe38] sm:$0xff]  ;;  %v15963_v33 = vcombine.low %v1229_v15, %v1281_v16 }
 0x6f2   : > { %7431 = vmatpush1.bf16.msra.mxu0 %v15927_v28  ;;  %7472 = vmatpush1.bf16.msra.mxu1 %v15929_v3  ;;  %19311 = vst [vmem:[#allocation611_spill] sm:$0xff] %v15953_v21  ;;  %v1384_v28 = vld [vmem:[%s13338_s17 + $0xfd0] sm:$0xff]  ;;  %v1385_v3 = vld [vmem:[%s13338_s17 + $0xfd8] sm:$0xff]  ;;  %19313 = vst [vmem:[#allocation613_spill] sm:$0xff] %v15963_v33 }
 0x6f3   : > { %7432 = vmatprep.subr.bf16.mxu0 %v15933_v6  ;;  %7473 = vmatprep.subr.bf16.mxu1 %v15935_v14  ;;  %v15967_v39 = vcombine.high %v1332_v26, %v1384_v28  ;;  %v15969_v41 = vcombine.high %v1333_v25, %v1385_v3  ;;  %v1436_v14 = vld [vmem:[%s13338_s17 + $0x1170] sm:$0xff]  ;;  %v1437_v6 = vld [vmem:[%s13338_s17 + $0x1178] sm:$0xff]  ;;  %v15977_v18 = vcombine.low %v1332_v26, %v1384_v28 }
 0x6f4   : > { %v15979_v62 = vcombine.low %v1333_v25, %v1385_v3 }
 0x6f5   : > { %19314 = vst [vmem:[#allocation614_spill] sm:$0xff] %v15967_v39  ;;  %19315 = vst [vmem:[#allocation615_spill] sm:$0xff] %v15969_v41 }
 0x6f6   : > { %7433 = vmatpush1.bf16.msra.mxu0 %v15945_v45  ;;  %7474 = vmatpush1.bf16.msra.mxu1 %v15947_v46  ;;  %v1488_v45 = vld [vmem:[%s13338_s17 + $0x1310] sm:$0xff]  ;;  %v1489_v46 = vld [vmem:[%s13338_s17 + $0x1318] sm:$0xff]  ;;  %19316 = vst [vmem:[#allocation616_spill] sm:$0xff] %v15977_v18  ;;  %19317 = vst [vmem:[#allocation617_spill] sm:$0xff] %v15979_v62 }
 0x6f7   : > { %7434 = vmatprep.subr.bf16.mxu0 %v15951_v19  ;;  %7475 = vmatprep.subr.bf16.mxu1 %v15953_v21  ;;  %v15983_v15 = vcombine.high %v1436_v14, %v1488_v45  ;;  %v15985_v16 = vcombine.high %v1437_v6, %v1489_v46  ;;  %v1540_v21 = vld [vmem:[%s13338_s17 + $0x14b0] sm:$0xff]  ;;  %v1541_v19 = vld [vmem:[%s13338_s17 + $0x14b8] sm:$0xff]  ;;  %v15993_v25 = vcombine.low %v1436_v14, %v1488_v45 }
 0x6f8   : > { %v15995_v26 = vcombine.low %v1437_v6, %v1489_v46 }
 0x6f9   : > { %19318 = vst [vmem:[#allocation618_spill] sm:$0xff] %v15983_v15  ;;  %19319 = vst [vmem:[#allocation619_spill] sm:$0xff] %v15985_v16 }
 0x6fa   : > { %7435 = vmatpush1.bf16.msra.mxu0 %v15961_v32  ;;  %7476 = vmatpush1.bf16.msra.mxu1 %v15963_v33  ;;  %v1592_v32 = vld [vmem:[%s13338_s17 + $0x1650] sm:$0xff]  ;;  %v1593_v33 = vld [vmem:[%s13338_s17 + $0x1658] sm:$0xff]  ;;  %19320 = vst [vmem:[#allocation620_spill] sm:$0xff] %v15993_v25  ;;  %19321 = vst [vmem:[#allocation621_spill] sm:$0xff] %v15995_v26 }
 0x6fb   : > { %7436 = vmatprep.subr.bf16.mxu0 %v15967_v39  ;;  %7477 = vmatprep.subr.bf16.mxu1 %v15969_v41  ;;  %v15999_v28 = vcombine.high %v1540_v21, %v1592_v32  ;;  %v16001_v3 = vcombine.high %v1541_v19, %v1593_v33  ;;  %v1644_v41 = vld [vmem:[%s13338_s17 + $0x17f0] sm:$0xff]  ;;  %v1645_v39 = vld [vmem:[%s13338_s17 + $0x17f8] sm:$0xff]  ;;  %v16009_v6 = vcombine.low %v1540_v21, %v1592_v32 }
 0x6fc   : > { %v16011_v14 = vcombine.low %v1541_v19, %v1593_v33 }
 0x6fd   : > { %19322 = vst [vmem:[#allocation622_spill] sm:$0xff] %v15999_v28  ;;  %19323 = vst [vmem:[#allocation623_spill] sm:$0xff] %v16001_v3 }
 0x6fe   : > { %7437 = vmatpush1.bf16.msra.mxu0 %v15977_v18  ;;  %7478 = vmatpush1.bf16.msra.mxu1 %v15979_v62  ;;  %v1696_v18 = vld [vmem:[%s13338_s17 + $0x1990] sm:$0xff]  ;;  %v1697_v62 = vld [vmem:[%s13338_s17 + $0x1998] sm:$0xff]  ;;  %19324 = vst [vmem:[#allocation624_spill] sm:$0xff] %v16009_v6  ;;  %19325 = vst [vmem:[#allocation625_spill] sm:$0xff] %v16011_v14 }
 0x6ff   : > { %7438 = vmatprep.subr.bf16.mxu0 %v15983_v15  ;;  %7479 = vmatprep.subr.bf16.mxu1 %v15985_v16  ;;  %v16015_v45 = vcombine.high %v1644_v41, %v1696_v18  ;;  %v16017_v46 = vcombine.high %v1645_v39, %v1697_v62  ;;  %v918_v16 = vld [vmem:[%s13338_s17 + $0x140] sm:$0xff]  ;;  %v919_v15 = vld [vmem:[%s13338_s17 + $0x148] sm:$0xff]  ;;  %v16025_v19 = vcombine.low %v1644_v41, %v1696_v18 }
 0x700   : > { %v16027_v21 = vcombine.low %v1645_v39, %v1697_v62 }
 0x701   : > { %19326 = vst [vmem:[#allocation626_spill] sm:$0xff] %v16015_v45  ;;  %19327 = vst [vmem:[#allocation627_spill] sm:$0xff] %v16017_v46 }
 0x702   : > { %7439 = vmatpush1.bf16.msra.mxu0 %v15993_v25  ;;  %7480 = vmatpush1.bf16.msra.mxu1 %v15995_v26  ;;  %v970_v25 = vld [vmem:[%s13338_s17 + $0x2e0] sm:$0xff]  ;;  %v971_v26 = vld [vmem:[%s13338_s17 + $0x2e8] sm:$0xff]  ;;  %19328 = vst [vmem:[#allocation628_spill] sm:$0xff] %v16025_v19  ;;  %19329 = vst [vmem:[#allocation629_spill] sm:$0xff] %v16027_v21 }
 0x703   : > { %7440 = vmatprep.subr.bf16.mxu0 %v15999_v28  ;;  %7481 = vmatprep.subr.bf16.mxu1 %v16001_v3  ;;  %v16031_v32 = vcombine.high %v918_v16, %v970_v25  ;;  %v16033_v33 = vcombine.high %v919_v15, %v971_v26  ;;  %v1022_v3 = vld [vmem:[%s13338_s17 + $0x480] sm:$0xff]  ;;  %v1023_v28 = vld [vmem:[%s13338_s17 + $0x488] sm:$0xff]  ;;  %v16041_v39 = vcombine.low %v918_v16, %v970_v25 }
 0x704   : > { %v16043_v41 = vcombine.low %v919_v15, %v971_v26 }
 0x705   : > { %19330 = vst [vmem:[#allocation630_spill] sm:$0xff] %v16031_v32  ;;  %19331 = vst [vmem:[#allocation631_spill] sm:$0xff] %v16033_v33 }
 0x706   : > { %7441 = vmatpush1.bf16.msra.mxu0 %v16009_v6  ;;  %7482 = vmatpush1.bf16.msra.mxu1 %v16011_v14  ;;  %v1074_v6 = vld [vmem:[%s13338_s17 + $0x620] sm:$0xff]  ;;  %v1075_v14 = vld [vmem:[%s13338_s17 + $0x628] sm:$0xff]  ;;  %19332 = vst [vmem:[#allocation632_spill] sm:$0xff] %v16041_v39  ;;  %19333 = vst [vmem:[#allocation633_spill] sm:$0xff] %v16043_v41 }
 0x707   : > { %7442 = vmatprep.subr.bf16.mxu0 %v16015_v45  ;;  %7483 = vmatprep.subr.bf16.mxu1 %v16017_v46  ;;  %v16047_v18 = vcombine.high %v1022_v3, %v1074_v6  ;;  %v16049_v62 = vcombine.high %v1023_v28, %v1075_v14  ;;  %v1126_v46 = vld [vmem:[%s13338_s17 + $0x7c0] sm:$0xff]  ;;  %v16059_v15 = vcombine.low %v1022_v3, %v1074_v6 }
 0x708   : > { %v1178_v45 = vld [vmem:[%s13338_s17 + $0x960] sm:$0xff]  ;;  %v16061_v16 = vcombine.low %v1023_v28, %v1075_v14 }
 0x709   : > { %19334 = vst [vmem:[#allocation634_spill] sm:$0xff] %v16047_v18  ;;  %19335 = vst [vmem:[#allocation635_spill] sm:$0xff] %v16049_v62  ;;  %v16065_v25 = vcombine.high %v1126_v46, %v1178_v45  ;;  %v16077_v28 = vcombine.low %v1126_v46, %v1178_v45 }
 0x70a   : > { %7443 = vmatpush1.bf16.msra.mxu0 %v16025_v19  ;;  %7484 = vmatpush1.bf16.msra.mxu1 %v16027_v21  ;;  %v1127_v19 = vld [vmem:[%s13338_s17 + $0x7c8] sm:$0xff]  ;;  %19336 = vst [vmem:[#allocation636_spill] sm:$0xff] %v16059_v15  ;;  %19337 = vst [vmem:[#allocation637_spill] sm:$0xff] %v16061_v16 }
 0x70b   : > { %7510 = vmatprep.subr.bf16.mxu0 %v16031_v32  ;;  %7551 = vmatprep.subr.bf16.mxu1 %v16033_v33  ;;  %v1179_v21 = vld [vmem:[%s13338_s17 + $0x968] sm:$0xff]  ;;  %19338 = vst [vmem:[#allocation638_spill] sm:$0xff] %v16065_v25  ;;  %v1230_v33 = vld [vmem:[%s13338_s17 + $0xb00] sm:$0xff]  ;;  %19340 = vst [vmem:[#allocation640_spill] sm:$0xff] %v16077_v28 }
 0x70c   : > { %v16067_v26 = vcombine.high %v1127_v19, %v1179_v21  ;;  %v1282_v32 = vld [vmem:[%s13338_s17 + $0xca0] sm:$0xff]  ;;  %v16079_v3 = vcombine.low %v1127_v19, %v1179_v21 }
 0x70d   : > { %7461 = vmatmul.mubr.bf16.vlgmr.msra.gmra.mrb[80].mxu0 %v13537_v0  ;;  %7502 = vmatmul.mubr.bf16.vlgmr.msra.gmra.mrb[80].mxu1 %v13537_v0  ;;  %v16083_v6 = vcombine.high %v1230_v33, %v1282_v32  ;;  %v16093_v45 = vcombine.low %v1230_v33, %v1282_v32 }
 0x70e   : > { %7511 = vmatpush1.bf16.msra.mxu0 %v16041_v39  ;;  %7552 = vmatpush1.bf16.msra.mxu1 %v16043_v41  ;;  %19339 = vst [vmem:[#allocation639_spill] sm:$0xff] %v16067_v26  ;;  %v1231_v39 = vld [vmem:[%s13338_s17 + $0xb08] sm:$0xff]  ;;  %19341 = vst [vmem:[#allocation641_spill] sm:$0xff] %v16079_v3 }
 0x70f   : > { %7512 = vmatprep.subr.bf16.mxu0 %v16047_v18  ;;  %7553 = vmatprep.subr.bf16.mxu1 %v16049_v62  ;;  %v1283_v41 = vld [vmem:[%s13338_s17 + $0xca8] sm:$0xff]  ;;  %19342 = vst [vmem:[#allocation642_spill] sm:$0xff] %v16083_v6  ;;  %v1334_v62 = vld [vmem:[%s13338_s17 + $0xe40] sm:$0xff]  ;;  %19344 = vst [vmem:[#allocation644_spill] sm:$0xff] %v16093_v45 }
 0x710   : > { %7542 = vmatprep.mubr.bf16.mxu0 %v18763_v29  ;;  %7583 = vmatprep.mubr.bf16.mxu1 %v18763_v29  ;;  %v16085_v14 = vcombine.high %v1231_v39, %v1283_v41  ;;  %v1335_v18 = vld [vmem:[%s13338_s17 + $0xe48] sm:$0xff]  ;;  %v16095_v46 = vcombine.low %v1231_v39, %v1283_v41 }
 0x712   : > { %7513 = vmatpush1.bf16.msra.mxu0 %v16059_v15  ;;  %7554 = vmatpush1.bf16.msra.mxu1 %v16061_v16  ;;  %19343 = vst [vmem:[#allocation643_spill] sm:$0xff] %v16085_v14  ;;  %v1386_v15 = vld [vmem:[%s13338_s17 + $0xfe0] sm:$0xff]  ;;  %v1387_v16 = vld [vmem:[%s13338_s17 + $0xfe8] sm:$0xff]  ;;  %19345 = vst [vmem:[#allocation645_spill] sm:$0xff] %v16095_v46 }
 0x713   : > { %7514 = vmatprep.subr.bf16.mxu0 %v16065_v25  ;;  %7555 = vmatprep.subr.bf16.mxu1 %v16067_v26  ;;  %v16099_v19 = vcombine.high %v1334_v62, %v1386_v15  ;;  %v16101_v21 = vcombine.high %v1335_v18, %v1387_v16  ;;  %v1438_v26 = vld [vmem:[%s13338_s17 + $0x1180] sm:$0xff]  ;;  %v1439_v25 = vld [vmem:[%s13338_s17 + $0x1188] sm:$0xff]  ;;  %v16109_v32 = vcombine.low %v1334_v62, %v1386_v15 }
 0x714   : > { %v16111_v33 = vcombine.low %v1335_v18, %v1387_v16 }
 0x715   : > { %19346 = vst [vmem:[#allocation646_spill] sm:$0xff] %v16099_v19  ;;  %19347 = vst [vmem:[#allocation647_spill] sm:$0xff] %v16101_v21 }
 0x716   : > { %7515 = vmatpush1.bf16.msra.mxu0 %v16077_v28  ;;  %7556 = vmatpush1.bf16.msra.mxu1 %v16079_v3  ;;  %v1490_v28 = vld [vmem:[%s13338_s17 + $0x1320] sm:$0xff]  ;;  %v1491_v3 = vld [vmem:[%s13338_s17 + $0x1328] sm:$0xff]  ;;  %19348 = vst [vmem:[#allocation648_spill] sm:$0xff] %v16109_v32  ;;  %19349 = vst [vmem:[#allocation649_spill] sm:$0xff] %v16111_v33 }
 0x717   : > { %7516 = vmatprep.subr.bf16.mxu0 %v16083_v6  ;;  %7557 = vmatprep.subr.bf16.mxu1 %v16085_v14  ;;  %v16115_v39 = vcombine.high %v1438_v26, %v1490_v28  ;;  %v16117_v41 = vcombine.high %v1439_v25, %v1491_v3  ;;  %v1542_v14 = vld [vmem:[%s13338_s17 + $0x14c0] sm:$0xff]  ;;  %v1543_v6 = vld [vmem:[%s13338_s17 + $0x14c8] sm:$0xff]  ;;  %v16125_v18 = vcombine.low %v1438_v26, %v1490_v28 }
 0x718   : > { %v16127_v62 = vcombine.low %v1439_v25, %v1491_v3 }
 0x719   : > { %19350 = vst [vmem:[#allocation650_spill] sm:$0xff] %v16115_v39  ;;  %19351 = vst [vmem:[#allocation651_spill] sm:$0xff] %v16117_v41 }
 0x71a   : > { %7517 = vmatpush1.bf16.msra.mxu0 %v16093_v45  ;;  %7558 = vmatpush1.bf16.msra.mxu1 %v16095_v46  ;;  %v1594_v45 = vld [vmem:[%s13338_s17 + $0x1660] sm:$0xff]  ;;  %v1595_v46 = vld [vmem:[%s13338_s17 + $0x1668] sm:$0xff]  ;;  %19352 = vst [vmem:[#allocation652_spill] sm:$0xff] %v16125_v18  ;;  %19353 = vst [vmem:[#allocation653_spill] sm:$0xff] %v16127_v62 }
 0x71b   : > { %7518 = vmatprep.subr.bf16.mxu0 %v16099_v19  ;;  %7559 = vmatprep.subr.bf16.mxu1 %v16101_v21  ;;  %v16131_v15 = vcombine.high %v1542_v14, %v1594_v45  ;;  %v16133_v16 = vcombine.high %v1543_v6, %v1595_v46  ;;  %v1646_v21 = vld [vmem:[%s13338_s17 + $0x1800] sm:$0xff]  ;;  %v1647_v19 = vld [vmem:[%s13338_s17 + $0x1808] sm:$0xff]  ;;  %v16141_v25 = vcombine.low %v1542_v14, %v1594_v45 }
 0x71c   : > { %v16143_v26 = vcombine.low %v1543_v6, %v1595_v46 }
 0x71d   : > { %19354 = vst [vmem:[#allocation654_spill] sm:$0xff] %v16131_v15  ;;  %19355 = vst [vmem:[#allocation655_spill] sm:$0xff] %v16133_v16 }
 0x71e   : > { %7519 = vmatpush1.bf16.msra.mxu0 %v16109_v32  ;;  %7560 = vmatpush1.bf16.msra.mxu1 %v16111_v33  ;;  %v1698_v32 = vld [vmem:[%s13338_s17 + $0x19a0] sm:$0xff]  ;;  %v1699_v33 = vld [vmem:[%s13338_s17 + $0x19a8] sm:$0xff]  ;;  %19356 = vst [vmem:[#allocation656_spill] sm:$0xff] %v16141_v25  ;;  %19357 = vst [vmem:[#allocation657_spill] sm:$0xff] %v16143_v26 }
 0x71f   : > { %7520 = vmatprep.subr.bf16.mxu0 %v16115_v39  ;;  %7561 = vmatprep.subr.bf16.mxu1 %v16117_v41  ;;  %v16147_v28 = vcombine.high %v1646_v21, %v1698_v32  ;;  %v16149_v3 = vcombine.high %v1647_v19, %v1699_v33  ;;  %v920_v41 = vld [vmem:[%s13338_s17 + $0x150] sm:$0xff]  ;;  %v921_v39 = vld [vmem:[%s13338_s17 + $0x158] sm:$0xff]  ;;  %v16157_v6 = vcombine.low %v1646_v21, %v1698_v32 }
 0x720   : > { %v16159_v14 = vcombine.low %v1647_v19, %v1699_v33 }
 0x721   : > { %19358 = vst [vmem:[#allocation658_spill] sm:$0xff] %v16147_v28  ;;  %19359 = vst [vmem:[#allocation659_spill] sm:$0xff] %v16149_v3 }
 0x722   : > { %7521 = vmatpush1.bf16.msra.mxu0 %v16125_v18  ;;  %7562 = vmatpush1.bf16.msra.mxu1 %v16127_v62  ;;  %v972_v18 = vld [vmem:[%s13338_s17 + $0x2f0] sm:$0xff]  ;;  %v973_v62 = vld [vmem:[%s13338_s17 + $0x2f8] sm:$0xff]  ;;  %19360 = vst [vmem:[#allocation660_spill] sm:$0xff] %v16157_v6  ;;  %19361 = vst [vmem:[#allocation661_spill] sm:$0xff] %v16159_v14 }
 0x723   : > { %7522 = vmatprep.subr.bf16.mxu0 %v16131_v15  ;;  %7563 = vmatprep.subr.bf16.mxu1 %v16133_v16  ;;  %v16163_v45 = vcombine.high %v920_v41, %v972_v18  ;;  %v16165_v46 = vcombine.high %v921_v39, %v973_v62  ;;  %v1024_v16 = vld [vmem:[%s13338_s17 + $0x490] sm:$0xff]  ;;  %v1025_v15 = vld [vmem:[%s13338_s17 + $0x498] sm:$0xff]  ;;  %v16173_v19 = vcombine.low %v920_v41, %v972_v18 }
 0x724   : > { %v16175_v21 = vcombine.low %v921_v39, %v973_v62 }
 0x725   : > { %19362 = vst [vmem:[#allocation662_spill] sm:$0xff] %v16163_v45  ;;  %19363 = vst [vmem:[#allocation663_spill] sm:$0xff] %v16165_v46 }
 0x726   : > { %7523 = vmatpush1.bf16.msra.mxu0 %v16141_v25  ;;  %7564 = vmatpush1.bf16.msra.mxu1 %v16143_v26  ;;  %v1076_v25 = vld [vmem:[%s13338_s17 + $0x630] sm:$0xff]  ;;  %v1077_v26 = vld [vmem:[%s13338_s17 + $0x638] sm:$0xff]  ;;  %19364 = vst [vmem:[#allocation664_spill] sm:$0xff] %v16173_v19  ;;  %19365 = vst [vmem:[#allocation665_spill] sm:$0xff] %v16175_v21 }
 0x727   : > { %7524 = vmatprep.subr.bf16.mxu0 %v16147_v28  ;;  %7565 = vmatprep.subr.bf16.mxu1 %v16149_v3  ;;  %v16179_v32 = vcombine.high %v1024_v16, %v1076_v25  ;;  %v16181_v33 = vcombine.high %v1025_v15, %v1077_v26  ;;  %v1128_v3 = vld [vmem:[%s13338_s17 + $0x7d0] sm:$0xff]  ;;  %v16191_v39 = vcombine.low %v1024_v16, %v1076_v25 }
 0x728   : > { %v1180_v28 = vld [vmem:[%s13338_s17 + $0x970] sm:$0xff]  ;;  %v16193_v41 = vcombine.low %v1025_v15, %v1077_v26 }
 0x729   : > { %19366 = vst [vmem:[#allocation666_spill] sm:$0xff] %v16179_v32  ;;  %19367 = vst [vmem:[#allocation667_spill] sm:$0xff] %v16181_v33  ;;  %v16197_v18 = vcombine.high %v1128_v3, %v1180_v28  ;;  %v16209_v15 = vcombine.low %v1128_v3, %v1180_v28 }
 0x72a   : > { %7525 = vmatpush1.bf16.msra.mxu0 %v16157_v6  ;;  %7566 = vmatpush1.bf16.msra.mxu1 %v16159_v14  ;;  %v1129_v6 = vld [vmem:[%s13338_s17 + $0x7d8] sm:$0xff]  ;;  %19368 = vst [vmem:[#allocation668_spill] sm:$0xff] %v16191_v39  ;;  %19369 = vst [vmem:[#allocation669_spill] sm:$0xff] %v16193_v41 }
 0x72b   : > { %7592 = vmatprep.subr.bf16.mxu0 %v16163_v45  ;;  %7633 = vmatprep.subr.bf16.mxu1 %v16165_v46  ;;  %v1181_v14 = vld [vmem:[%s13338_s17 + $0x978] sm:$0xff]  ;;  %19370 = vst [vmem:[#allocation670_spill] sm:$0xff] %v16197_v18  ;;  %v1232_v46 = vld [vmem:[%s13338_s17 + $0xb10] sm:$0xff]  ;;  %19372 = vst [vmem:[#allocation672_spill] sm:$0xff] %v16209_v15 }
 0x72c   : > { %v16199_v62 = vcombine.high %v1129_v6, %v1181_v14  ;;  %v1284_v45 = vld [vmem:[%s13338_s17 + $0xcb0] sm:$0xff]  ;;  %v16211_v16 = vcombine.low %v1129_v6, %v1181_v14 }
 0x72d   : > { %7543 = vmatmul.mubr.bf16.vlgmr.msra.gmra.mrb[84].mxu0 %v13537_v0  ;;  %7584 = vmatmul.mubr.bf16.vlgmr.msra.gmra.mrb[84].mxu1 %v13537_v0  ;;  %v16215_v25 = vcombine.high %v1232_v46, %v1284_v45  ;;  %v16225_v28 = vcombine.low %v1232_v46, %v1284_v45 }
 0x72e   : > { %7593 = vmatpush1.bf16.msra.mxu0 %v16173_v19  ;;  %7634 = vmatpush1.bf16.msra.mxu1 %v16175_v21  ;;  %19371 = vst [vmem:[#allocation671_spill] sm:$0xff] %v16199_v62  ;;  %v1233_v19 = vld [vmem:[%s13338_s17 + $0xb18] sm:$0xff]  ;;  %19373 = vst [vmem:[#allocation673_spill] sm:$0xff] %v16211_v16 }
 0x72f   : > { %7594 = vmatprep.subr.bf16.mxu0 %v16179_v32  ;;  %7635 = vmatprep.subr.bf16.mxu1 %v16181_v33  ;;  %v1285_v21 = vld [vmem:[%s13338_s17 + $0xcb8] sm:$0xff]  ;;  %19374 = vst [vmem:[#allocation674_spill] sm:$0xff] %v16215_v25  ;;  %v1336_v33 = vld [vmem:[%s13338_s17 + $0xe50] sm:$0xff]  ;;  %19376 = vst [vmem:[#allocation676_spill] sm:$0xff] %v16225_v28 }
 0x730   : > { %7624 = vmatprep.mubr.bf16.mxu0 %v18763_v29  ;;  %7665 = vmatprep.mubr.bf16.mxu1 %v18763_v29  ;;  %v16217_v26 = vcombine.high %v1233_v19, %v1285_v21  ;;  %v1337_v32 = vld [vmem:[%s13338_s17 + $0xe58] sm:$0xff]  ;;  %v16227_v3 = vcombine.low %v1233_v19, %v1285_v21 }
 0x732   : > { %7595 = vmatpush1.bf16.msra.mxu0 %v16191_v39  ;;  %7636 = vmatpush1.bf16.msra.mxu1 %v16193_v41  ;;  %19375 = vst [vmem:[#allocation675_spill] sm:$0xff] %v16217_v26  ;;  %v1388_v39 = vld [vmem:[%s13338_s17 + $0xff0] sm:$0xff]  ;;  %v1389_v41 = vld [vmem:[%s13338_s17 + $0xff8] sm:$0xff]  ;;  %19377 = vst [vmem:[#allocation677_spill] sm:$0xff] %v16227_v3 }
 0x733   : > { %7596 = vmatprep.subr.bf16.mxu0 %v16197_v18  ;;  %7637 = vmatprep.subr.bf16.mxu1 %v16199_v62  ;;  %v16231_v6 = vcombine.high %v1336_v33, %v1388_v39  ;;  %v16233_v14 = vcombine.high %v1337_v32, %v1389_v41  ;;  %v1440_v62 = vld [vmem:[%s13338_s17 + $0x1190] sm:$0xff]  ;;  %v1441_v18 = vld [vmem:[%s13338_s17 + $0x1198] sm:$0xff]  ;;  %v16241_v45 = vcombine.low %v1336_v33, %v1388_v39 }
 0x734   : > { %v16243_v46 = vcombine.low %v1337_v32, %v1389_v41 }
 0x735   : > { %19378 = vst [vmem:[#allocation678_spill] sm:$0xff] %v16231_v6  ;;  %19379 = vst [vmem:[#allocation679_spill] sm:$0xff] %v16233_v14 }
 0x736   : > { %7597 = vmatpush1.bf16.msra.mxu0 %v16209_v15  ;;  %7638 = vmatpush1.bf16.msra.mxu1 %v16211_v16  ;;  %v1492_v15 = vld [vmem:[%s13338_s17 + $0x1330] sm:$0xff]  ;;  %v1493_v16 = vld [vmem:[%s13338_s17 + $0x1338] sm:$0xff]  ;;  %19380 = vst [vmem:[#allocation680_spill] sm:$0xff] %v16241_v45  ;;  %19381 = vst [vmem:[#allocation681_spill] sm:$0xff] %v16243_v46 }
 0x737   : > { %7598 = vmatprep.subr.bf16.mxu0 %v16215_v25  ;;  %7639 = vmatprep.subr.bf16.mxu1 %v16217_v26  ;;  %v16247_v19 = vcombine.high %v1440_v62, %v1492_v15  ;;  %v16249_v21 = vcombine.high %v1441_v18, %v1493_v16  ;;  %v1544_v26 = vld [vmem:[%s13338_s17 + $0x14d0] sm:$0xff]  ;;  %v1545_v25 = vld [vmem:[%s13338_s17 + $0x14d8] sm:$0xff]  ;;  %v16257_v32 = vcombine.low %v1440_v62, %v1492_v15 }
 0x738   : > { %v16259_v33 = vcombine.low %v1441_v18, %v1493_v16 }
 0x739   : > { %19382 = vst [vmem:[#allocation682_spill] sm:$0xff] %v16247_v19  ;;  %19383 = vst [vmem:[#allocation683_spill] sm:$0xff] %v16249_v21 }
 0x73a   : > { %7599 = vmatpush1.bf16.msra.mxu0 %v16225_v28  ;;  %7640 = vmatpush1.bf16.msra.mxu1 %v16227_v3  ;;  %v1596_v28 = vld [vmem:[%s13338_s17 + $0x1670] sm:$0xff]  ;;  %v1597_v3 = vld [vmem:[%s13338_s17 + $0x1678] sm:$0xff]  ;;  %19384 = vst [vmem:[#allocation684_spill] sm:$0xff] %v16257_v32  ;;  %19385 = vst [vmem:[#allocation685_spill] sm:$0xff] %v16259_v33 }
 0x73b   : > { %7600 = vmatprep.subr.bf16.mxu0 %v16231_v6  ;;  %7641 = vmatprep.subr.bf16.mxu1 %v16233_v14  ;;  %v16263_v39 = vcombine.high %v1544_v26, %v1596_v28  ;;  %v16265_v41 = vcombine.high %v1545_v25, %v1597_v3  ;;  %v1648_v14 = vld [vmem:[%s13338_s17 + $0x1810] sm:$0xff]  ;;  %v1649_v6 = vld [vmem:[%s13338_s17 + $0x1818] sm:$0xff]  ;;  %v16273_v18 = vcombine.low %v1544_v26, %v1596_v28 }
 0x73c   : > { %v16275_v62 = vcombine.low %v1545_v25, %v1597_v3 }
 0x73d   : > { %19386 = vst [vmem:[#allocation686_spill] sm:$0xff] %v16263_v39  ;;  %19387 = vst [vmem:[#allocation687_spill] sm:$0xff] %v16265_v41 }
 0x73e   : > { %7601 = vmatpush1.bf16.msra.mxu0 %v16241_v45  ;;  %7642 = vmatpush1.bf16.msra.mxu1 %v16243_v46  ;;  %v1700_v45 = vld [vmem:[%s13338_s17 + $0x19b0] sm:$0xff]  ;;  %v1701_v46 = vld [vmem:[%s13338_s17 + $0x19b8] sm:$0xff]  ;;  %19388 = vst [vmem:[#allocation688_spill] sm:$0xff] %v16273_v18  ;;  %19389 = vst [vmem:[#allocation689_spill] sm:$0xff] %v16275_v62 }
 0x73f   : > { %7602 = vmatprep.subr.bf16.mxu0 %v16247_v19  ;;  %7643 = vmatprep.subr.bf16.mxu1 %v16249_v21  ;;  %v16279_v15 = vcombine.high %v1648_v14, %v1700_v45  ;;  %v16281_v16 = vcombine.high %v1649_v6, %v1701_v46  ;;  %v922_v21 = vld [vmem:[%s13338_s17 + $0x160] sm:$0xff]  ;;  %v923_v19 = vld [vmem:[%s13338_s17 + $0x168] sm:$0xff]  ;;  %v16289_v25 = vcombine.low %v1648_v14, %v1700_v45 }
 0x740   : > { %v16291_v26 = vcombine.low %v1649_v6, %v1701_v46 }
 0x741   : > { %19390 = vst [vmem:[#allocation690_spill] sm:$0xff] %v16279_v15  ;;  %19391 = vst [vmem:[#allocation691_spill] sm:$0xff] %v16281_v16 }
 0x742   : > { %7603 = vmatpush1.bf16.msra.mxu0 %v16257_v32  ;;  %7644 = vmatpush1.bf16.msra.mxu1 %v16259_v33  ;;  %v974_v32 = vld [vmem:[%s13338_s17 + $0x300] sm:$0xff]  ;;  %v975_v33 = vld [vmem:[%s13338_s17 + $0x308] sm:$0xff]  ;;  %19392 = vst [vmem:[#allocation692_spill] sm:$0xff] %v16289_v25  ;;  %19393 = vst [vmem:[#allocation693_spill] sm:$0xff] %v16291_v26 }
 0x743   : > { %7604 = vmatprep.subr.bf16.mxu0 %v16263_v39  ;;  %7645 = vmatprep.subr.bf16.mxu1 %v16265_v41  ;;  %v16295_v28 = vcombine.high %v922_v21, %v974_v32  ;;  %v16297_v3 = vcombine.high %v923_v19, %v975_v33  ;;  %v1026_v41 = vld [vmem:[%s13338_s17 + $0x4a0] sm:$0xff]  ;;  %v1027_v39 = vld [vmem:[%s13338_s17 + $0x4a8] sm:$0xff]  ;;  %v16305_v6 = vcombine.low %v922_v21, %v974_v32 }
 0x744   : > { %v16307_v14 = vcombine.low %v923_v19, %v975_v33 }
 0x745   : > { %19394 = vst [vmem:[#allocation694_spill] sm:$0xff] %v16295_v28  ;;  %19395 = vst [vmem:[#allocation695_spill] sm:$0xff] %v16297_v3 }
 0x746   : > { %7605 = vmatpush1.bf16.msra.mxu0 %v16273_v18  ;;  %7646 = vmatpush1.bf16.msra.mxu1 %v16275_v62  ;;  %v1078_v18 = vld [vmem:[%s13338_s17 + $0x640] sm:$0xff]  ;;  %v1079_v62 = vld [vmem:[%s13338_s17 + $0x648] sm:$0xff]  ;;  %19396 = vst [vmem:[#allocation696_spill] sm:$0xff] %v16305_v6  ;;  %19397 = vst [vmem:[#allocation697_spill] sm:$0xff] %v16307_v14 }
 0x747   : > { %7606 = vmatprep.subr.bf16.mxu0 %v16279_v15  ;;  %7647 = vmatprep.subr.bf16.mxu1 %v16281_v16  ;;  %v16311_v45 = vcombine.high %v1026_v41, %v1078_v18  ;;  %v16313_v46 = vcombine.high %v1027_v39, %v1079_v62  ;;  %v1130_v16 = vld [vmem:[%s13338_s17 + $0x7e0] sm:$0xff]  ;;  %v16323_v19 = vcombine.low %v1026_v41, %v1078_v18 }
 0x748   : > { %v1182_v15 = vld [vmem:[%s13338_s17 + $0x980] sm:$0xff]  ;;  %v16325_v21 = vcombine.low %v1027_v39, %v1079_v62 }
 0x749   : > { %19398 = vst [vmem:[#allocation698_spill] sm:$0xff] %v16311_v45  ;;  %19399 = vst [vmem:[#allocation699_spill] sm:$0xff] %v16313_v46  ;;  %v16329_v32 = vcombine.high %v1130_v16, %v1182_v15  ;;  %v16341_v39 = vcombine.low %v1130_v16, %v1182_v15 }
 0x74a   : > { %7607 = vmatpush1.bf16.msra.mxu0 %v16289_v25  ;;  %7648 = vmatpush1.bf16.msra.mxu1 %v16291_v26  ;;  %v1131_v25 = vld [vmem:[%s13338_s17 + $0x7e8] sm:$0xff]  ;;  %19400 = vst [vmem:[#allocation700_spill] sm:$0xff] %v16323_v19  ;;  %19401 = vst [vmem:[#allocation701_spill] sm:$0xff] %v16325_v21 }
 0x74b   : > { %7674 = vmatprep.subr.bf16.mxu0 %v16295_v28  ;;  %7715 = vmatprep.subr.bf16.mxu1 %v16297_v3  ;;  %v1183_v26 = vld [vmem:[%s13338_s17 + $0x988] sm:$0xff]  ;;  %19402 = vst [vmem:[#allocation702_spill] sm:$0xff] %v16329_v32  ;;  %v1234_v3 = vld [vmem:[%s13338_s17 + $0xb20] sm:$0xff]  ;;  %19404 = vst [vmem:[#allocation704_spill] sm:$0xff] %v16341_v39 }
 0x74c   : > { %v16331_v33 = vcombine.high %v1131_v25, %v1183_v26  ;;  %v1286_v28 = vld [vmem:[%s13338_s17 + $0xcc0] sm:$0xff]  ;;  %v16343_v41 = vcombine.low %v1131_v25, %v1183_v26 }
 0x74d   : > { %7625 = vmatmul.mubr.bf16.vlgmr.msra.gmra.mrb[88].mxu0 %v13537_v0  ;;  %7666 = vmatmul.mubr.bf16.vlgmr.msra.gmra.mrb[88].mxu1 %v13537_v0  ;;  %v16347_v18 = vcombine.high %v1234_v3, %v1286_v28  ;;  %v16357_v15 = vcombine.low %v1234_v3, %v1286_v28 }
 0x74e   : > { %7675 = vmatpush1.bf16.msra.mxu0 %v16305_v6  ;;  %7716 = vmatpush1.bf16.msra.mxu1 %v16307_v14  ;;  %19403 = vst [vmem:[#allocation703_spill] sm:$0xff] %v16331_v33  ;;  %v1235_v6 = vld [vmem:[%s13338_s17 + $0xb28] sm:$0xff]  ;;  %19405 = vst [vmem:[#allocation705_spill] sm:$0xff] %v16343_v41 }
 0x74f   : > { %7676 = vmatprep.subr.bf16.mxu0 %v16311_v45  ;;  %7717 = vmatprep.subr.bf16.mxu1 %v16313_v46  ;;  %v1287_v14 = vld [vmem:[%s13338_s17 + $0xcc8] sm:$0xff]  ;;  %19406 = vst [vmem:[#allocation706_spill] sm:$0xff] %v16347_v18  ;;  %v1338_v46 = vld [vmem:[%s13338_s17 + $0xe60] sm:$0xff]  ;;  %19408 = vst [vmem:[#allocation708_spill] sm:$0xff] %v16357_v15 }
 0x750   : > { %7706 = vmatprep.mubr.bf16.mxu0 %v18763_v29  ;;  %7747 = vmatprep.mubr.bf16.mxu1 %v18763_v29  ;;  %v16349_v62 = vcombine.high %v1235_v6, %v1287_v14  ;;  %v1339_v45 = vld [vmem:[%s13338_s17 + $0xe68] sm:$0xff]  ;;  %v16359_v16 = vcombine.low %v1235_v6, %v1287_v14 }
 0x752   : > { %7677 = vmatpush1.bf16.msra.mxu0 %v16323_v19  ;;  %7718 = vmatpush1.bf16.msra.mxu1 %v16325_v21  ;;  %19407 = vst [vmem:[#allocation707_spill] sm:$0xff] %v16349_v62  ;;  %v1390_v19 = vld [vmem:[%s13338_s17 + $0x1000] sm:$0xff]  ;;  %v1391_v21 = vld [vmem:[%s13338_s17 + $0x1008] sm:$0xff]  ;;  %19409 = vst [vmem:[#allocation709_spill] sm:$0xff] %v16359_v16 }
 0x753   : > { %7678 = vmatprep.subr.bf16.mxu0 %v16329_v32  ;;  %7719 = vmatprep.subr.bf16.mxu1 %v16331_v33  ;;  %v16363_v25 = vcombine.high %v1338_v46, %v1390_v19  ;;  %v16365_v26 = vcombine.high %v1339_v45, %v1391_v21  ;;  %v1442_v33 = vld [vmem:[%s13338_s17 + $0x11a0] sm:$0xff]  ;;  %v1443_v32 = vld [vmem:[%s13338_s17 + $0x11a8] sm:$0xff]  ;;  %v16373_v28 = vcombine.low %v1338_v46, %v1390_v19 }
 0x754   : > { %v16375_v3 = vcombine.low %v1339_v45, %v1391_v21 }
 0x755   : > { %19410 = vst [vmem:[#allocation710_spill] sm:$0xff] %v16363_v25  ;;  %19411 = vst [vmem:[#allocation711_spill] sm:$0xff] %v16365_v26 }
 0x756   : > { %7679 = vmatpush1.bf16.msra.mxu0 %v16341_v39  ;;  %7720 = vmatpush1.bf16.msra.mxu1 %v16343_v41  ;;  %v1494_v39 = vld [vmem:[%s13338_s17 + $0x1340] sm:$0xff]  ;;  %v1495_v41 = vld [vmem:[%s13338_s17 + $0x1348] sm:$0xff]  ;;  %19412 = vst [vmem:[#allocation712_spill] sm:$0xff] %v16373_v28  ;;  %19413 = vst [vmem:[#allocation713_spill] sm:$0xff] %v16375_v3 }
 0x757   : > { %7680 = vmatprep.subr.bf16.mxu0 %v16347_v18  ;;  %7721 = vmatprep.subr.bf16.mxu1 %v16349_v62  ;;  %v16379_v6 = vcombine.high %v1442_v33, %v1494_v39  ;;  %v16381_v14 = vcombine.high %v1443_v32, %v1495_v41  ;;  %v1546_v62 = vld [vmem:[%s13338_s17 + $0x14e0] sm:$0xff]  ;;  %v1547_v18 = vld [vmem:[%s13338_s17 + $0x14e8] sm:$0xff]  ;;  %v16389_v45 = vcombine.low %v1442_v33, %v1494_v39 }
 0x758   : > { %v16391_v46 = vcombine.low %v1443_v32, %v1495_v41 }
 0x759   : > { %19414 = vst [vmem:[#allocation714_spill] sm:$0xff] %v16379_v6  ;;  %19415 = vst [vmem:[#allocation715_spill] sm:$0xff] %v16381_v14 }
 0x75a   : > { %7681 = vmatpush1.bf16.msra.mxu0 %v16357_v15  ;;  %7722 = vmatpush1.bf16.msra.mxu1 %v16359_v16  ;;  %v1598_v15 = vld [vmem:[%s13338_s17 + $0x1680] sm:$0xff]  ;;  %v1599_v16 = vld [vmem:[%s13338_s17 + $0x1688] sm:$0xff]  ;;  %19416 = vst [vmem:[#allocation716_spill] sm:$0xff] %v16389_v45  ;;  %19417 = vst [vmem:[#allocation717_spill] sm:$0xff] %v16391_v46 }
 0x75b   : > { %7682 = vmatprep.subr.bf16.mxu0 %v16363_v25  ;;  %7723 = vmatprep.subr.bf16.mxu1 %v16365_v26  ;;  %v16395_v19 = vcombine.high %v1546_v62, %v1598_v15  ;;  %v16397_v21 = vcombine.high %v1547_v18, %v1599_v16  ;;  %v1650_v26 = vld [vmem:[%s13338_s17 + $0x1820] sm:$0xff]  ;;  %v1651_v25 = vld [vmem:[%s13338_s17 + $0x1828] sm:$0xff]  ;;  %v16405_v32 = vcombine.low %v1546_v62, %v1598_v15 }
 0x75c   : > { %v16407_v33 = vcombine.low %v1547_v18, %v1599_v16 }
 0x75d   : > { %19418 = vst [vmem:[#allocation718_spill] sm:$0xff] %v16395_v19  ;;  %19419 = vst [vmem:[#allocation719_spill] sm:$0xff] %v16397_v21 }
 0x75e   : > { %7683 = vmatpush1.bf16.msra.mxu0 %v16373_v28  ;;  %7724 = vmatpush1.bf16.msra.mxu1 %v16375_v3  ;;  %v1702_v28 = vld [vmem:[%s13338_s17 + $0x19c0] sm:$0xff]  ;;  %v1703_v3 = vld [vmem:[%s13338_s17 + $0x19c8] sm:$0xff]  ;;  %19420 = vst [vmem:[#allocation720_spill] sm:$0xff] %v16405_v32  ;;  %19421 = vst [vmem:[#allocation721_spill] sm:$0xff] %v16407_v33 }
 0x75f   : > { %7684 = vmatprep.subr.bf16.mxu0 %v16379_v6  ;;  %7725 = vmatprep.subr.bf16.mxu1 %v16381_v14  ;;  %v16411_v39 = vcombine.high %v1650_v26, %v1702_v28  ;;  %v16413_v41 = vcombine.high %v1651_v25, %v1703_v3  ;;  %v924_v14 = vld [vmem:[%s13338_s17 + $0x170] sm:$0xff]  ;;  %v925_v6 = vld [vmem:[%s13338_s17 + $0x178] sm:$0xff]  ;;  %v16421_v18 = vcombine.low %v1650_v26, %v1702_v28 }
 0x760   : > { %v16423_v62 = vcombine.low %v1651_v25, %v1703_v3 }
 0x761   : > { %19422 = vst [vmem:[#allocation722_spill] sm:$0xff] %v16411_v39  ;;  %19423 = vst [vmem:[#allocation723_spill] sm:$0xff] %v16413_v41 }
 0x762   : > { %7685 = vmatpush1.bf16.msra.mxu0 %v16389_v45  ;;  %7726 = vmatpush1.bf16.msra.mxu1 %v16391_v46  ;;  %v976_v45 = vld [vmem:[%s13338_s17 + $0x310] sm:$0xff]  ;;  %v977_v46 = vld [vmem:[%s13338_s17 + $0x318] sm:$0xff]  ;;  %19424 = vst [vmem:[#allocation724_spill] sm:$0xff] %v16421_v18  ;;  %19425 = vst [vmem:[#allocation725_spill] sm:$0xff] %v16423_v62 }
 0x763   : > { %7686 = vmatprep.subr.bf16.mxu0 %v16395_v19  ;;  %7727 = vmatprep.subr.bf16.mxu1 %v16397_v21  ;;  %v16427_v15 = vcombine.high %v924_v14, %v976_v45  ;;  %v16429_v16 = vcombine.high %v925_v6, %v977_v46  ;;  %v1028_v21 = vld [vmem:[%s13338_s17 + $0x4b0] sm:$0xff]  ;;  %v1029_v19 = vld [vmem:[%s13338_s17 + $0x4b8] sm:$0xff]  ;;  %v16437_v25 = vcombine.low %v924_v14, %v976_v45 }
 0x764   : > { %v16439_v26 = vcombine.low %v925_v6, %v977_v46 }
 0x765   : > { %19426 = vst [vmem:[#allocation726_spill] sm:$0xff] %v16427_v15  ;;  %19427 = vst [vmem:[#allocation727_spill] sm:$0xff] %v16429_v16 }
 0x766   : > { %7687 = vmatpush1.bf16.msra.mxu0 %v16405_v32  ;;  %7728 = vmatpush1.bf16.msra.mxu1 %v16407_v33  ;;  %v1080_v32 = vld [vmem:[%s13338_s17 + $0x650] sm:$0xff]  ;;  %v1081_v33 = vld [vmem:[%s13338_s17 + $0x658] sm:$0xff]  ;;  %19428 = vst [vmem:[#allocation728_spill] sm:$0xff] %v16437_v25  ;;  %19429 = vst [vmem:[#allocation729_spill] sm:$0xff] %v16439_v26 }
 0x767   : > { %7688 = vmatprep.subr.bf16.mxu0 %v16411_v39  ;;  %7729 = vmatprep.subr.bf16.mxu1 %v16413_v41  ;;  %v16443_v28 = vcombine.high %v1028_v21, %v1080_v32  ;;  %v16445_v3 = vcombine.high %v1029_v19, %v1081_v33  ;;  %v1132_v41 = vld [vmem:[%s13338_s17 + $0x7f0] sm:$0xff]  ;;  %v16455_v6 = vcombine.low %v1028_v21, %v1080_v32 }
 0x768   : > { %v1184_v39 = vld [vmem:[%s13338_s17 + $0x990] sm:$0xff]  ;;  %v16457_v14 = vcombine.low %v1029_v19, %v1081_v33 }
 0x769   : > { %19430 = vst [vmem:[#allocation730_spill] sm:$0xff] %v16443_v28  ;;  %19431 = vst [vmem:[#allocation731_spill] sm:$0xff] %v16445_v3  ;;  %v16461_v45 = vcombine.high %v1132_v41, %v1184_v39  ;;  %v16473_v19 = vcombine.low %v1132_v41, %v1184_v39 }
 0x76a   : > { %7689 = vmatpush1.bf16.msra.mxu0 %v16421_v18  ;;  %7730 = vmatpush1.bf16.msra.mxu1 %v16423_v62  ;;  %v1133_v18 = vld [vmem:[%s13338_s17 + $0x7f8] sm:$0xff]  ;;  %19432 = vst [vmem:[#allocation732_spill] sm:$0xff] %v16455_v6  ;;  %19433 = vst [vmem:[#allocation733_spill] sm:$0xff] %v16457_v14 }
 0x76b   : > { %7756 = vmatprep.subr.bf16.mxu0 %v16427_v15  ;;  %7797 = vmatprep.subr.bf16.mxu1 %v16429_v16  ;;  %v1185_v62 = vld [vmem:[%s13338_s17 + $0x998] sm:$0xff]  ;;  %19434 = vst [vmem:[#allocation734_spill] sm:$0xff] %v16461_v45  ;;  %v1236_v16 = vld [vmem:[%s13338_s17 + $0xb30] sm:$0xff]  ;;  %19436 = vst [vmem:[#allocation736_spill] sm:$0xff] %v16473_v19 }
 0x76c   : > { %v16463_v46 = vcombine.high %v1133_v18, %v1185_v62  ;;  %v1288_v15 = vld [vmem:[%s13338_s17 + $0xcd0] sm:$0xff]  ;;  %v16475_v21 = vcombine.low %v1133_v18, %v1185_v62 }
 0x76d   : > { %7707 = vmatmul.mubr.bf16.vlgmr.msra.gmra.mrb[92].mxu0 %v13537_v0  ;;  %7748 = vmatmul.mubr.bf16.vlgmr.msra.gmra.mrb[92].mxu1 %v13537_v0  ;;  %v16479_v32 = vcombine.high %v1236_v16, %v1288_v15  ;;  %v16489_v39 = vcombine.low %v1236_v16, %v1288_v15 }
 0x76e   : > { %7757 = vmatpush1.bf16.msra.mxu0 %v16437_v25  ;;  %7798 = vmatpush1.bf16.msra.mxu1 %v16439_v26  ;;  %19435 = vst [vmem:[#allocation735_spill] sm:$0xff] %v16463_v46  ;;  %v1237_v25 = vld [vmem:[%s13338_s17 + $0xb38] sm:$0xff]  ;;  %19437 = vst [vmem:[#allocation737_spill] sm:$0xff] %v16475_v21 }
 0x76f   : > { %7758 = vmatprep.subr.bf16.mxu0 %v16443_v28  ;;  %7799 = vmatprep.subr.bf16.mxu1 %v16445_v3  ;;  %v1289_v26 = vld [vmem:[%s13338_s17 + $0xcd8] sm:$0xff]  ;;  %19438 = vst [vmem:[#allocation738_spill] sm:$0xff] %v16479_v32  ;;  %v1340_v3 = vld [vmem:[%s13338_s17 + $0xe70] sm:$0xff]  ;;  %19440 = vst [vmem:[#allocation740_spill] sm:$0xff] %v16489_v39 }
 0x770   : > { %7788 = vmatprep.mubr.bf16.mxu0 %v18763_v29  ;;  %7829 = vmatprep.mubr.bf16.mxu1 %v18763_v29  ;;  %v16481_v33 = vcombine.high %v1237_v25, %v1289_v26  ;;  %v1341_v28 = vld [vmem:[%s13338_s17 + $0xe78] sm:$0xff]  ;;  %v16491_v41 = vcombine.low %v1237_v25, %v1289_v26 }
 0x772   : > { %7759 = vmatpush1.bf16.msra.mxu0 %v16455_v6  ;;  %7800 = vmatpush1.bf16.msra.mxu1 %v16457_v14  ;;  %19439 = vst [vmem:[#allocation739_spill] sm:$0xff] %v16481_v33  ;;  %v1392_v6 = vld [vmem:[%s13338_s17 + $0x1010] sm:$0xff]  ;;  %v1393_v14 = vld [vmem:[%s13338_s17 + $0x1018] sm:$0xff]  ;;  %19441 = vst [vmem:[#allocation741_spill] sm:$0xff] %v16491_v41 }
 0x773   : > { %7760 = vmatprep.subr.bf16.mxu0 %v16461_v45  ;;  %7801 = vmatprep.subr.bf16.mxu1 %v16463_v46  ;;  %v16495_v18 = vcombine.high %v1340_v3, %v1392_v6  ;;  %v16497_v62 = vcombine.high %v1341_v28, %v1393_v14  ;;  %v1444_v46 = vld [vmem:[%s13338_s17 + $0x11b0] sm:$0xff]  ;;  %v1445_v45 = vld [vmem:[%s13338_s17 + $0x11b8] sm:$0xff]  ;;  %v16505_v15 = vcombine.low %v1340_v3, %v1392_v6 }
 0x774   : > { %v16507_v16 = vcombine.low %v1341_v28, %v1393_v14 }
 0x775   : > { %19442 = vst [vmem:[#allocation742_spill] sm:$0xff] %v16495_v18  ;;  %19443 = vst [vmem:[#allocation743_spill] sm:$0xff] %v16497_v62 }
 0x776   : > { %7761 = vmatpush1.bf16.msra.mxu0 %v16473_v19  ;;  %7802 = vmatpush1.bf16.msra.mxu1 %v16475_v21  ;;  %v1496_v19 = vld [vmem:[%s13338_s17 + $0x1350] sm:$0xff]  ;;  %v1497_v21 = vld [vmem:[%s13338_s17 + $0x1358] sm:$0xff]  ;;  %19444 = vst [vmem:[#allocation744_spill] sm:$0xff] %v16505_v15  ;;  %19445 = vst [vmem:[#allocation745_spill] sm:$0xff] %v16507_v16 }
 0x777   : > { %7762 = vmatprep.subr.bf16.mxu0 %v16479_v32  ;;  %7803 = vmatprep.subr.bf16.mxu1 %v16481_v33  ;;  %v16511_v25 = vcombine.high %v1444_v46, %v1496_v19  ;;  %v16513_v26 = vcombine.high %v1445_v45, %v1497_v21  ;;  %v1548_v33 = vld [vmem:[%s13338_s17 + $0x14f0] sm:$0xff]  ;;  %v1549_v32 = vld [vmem:[%s13338_s17 + $0x14f8] sm:$0xff]  ;;  %v16521_v28 = vcombine.low %v1444_v46, %v1496_v19 }
 0x778   : > { %v16523_v3 = vcombine.low %v1445_v45, %v1497_v21 }
 0x779   : > { %19446 = vst [vmem:[#allocation746_spill] sm:$0xff] %v16511_v25  ;;  %19447 = vst [vmem:[#allocation747_spill] sm:$0xff] %v16513_v26 }
 0x77a   : > { %7763 = vmatpush1.bf16.msra.mxu0 %v16489_v39  ;;  %7804 = vmatpush1.bf16.msra.mxu1 %v16491_v41  ;;  %v1600_v39 = vld [vmem:[%s13338_s17 + $0x1690] sm:$0xff]  ;;  %v1601_v41 = vld [vmem:[%s13338_s17 + $0x1698] sm:$0xff]  ;;  %19448 = vst [vmem:[#allocation748_spill] sm:$0xff] %v16521_v28  ;;  %19449 = vst [vmem:[#allocation749_spill] sm:$0xff] %v16523_v3 }
 0x77b   : > { %7764 = vmatprep.subr.bf16.mxu0 %v16495_v18  ;;  %7805 = vmatprep.subr.bf16.mxu1 %v16497_v62  ;;  %v16527_v6 = vcombine.high %v1548_v33, %v1600_v39  ;;  %v16529_v14 = vcombine.high %v1549_v32, %v1601_v41  ;;  %v1652_v62 = vld [vmem:[%s13338_s17 + $0x1830] sm:$0xff]  ;;  %v1653_v18 = vld [vmem:[%s13338_s17 + $0x1838] sm:$0xff]  ;;  %v16537_v45 = vcombine.low %v1548_v33, %v1600_v39 }
 0x77c   : > { %v16539_v46 = vcombine.low %v1549_v32, %v1601_v41 }
 0x77d   : > { %19450 = vst [vmem:[#allocation750_spill] sm:$0xff] %v16527_v6  ;;  %19451 = vst [vmem:[#allocation751_spill] sm:$0xff] %v16529_v14 }
 0x77e   : > { %7765 = vmatpush1.bf16.msra.mxu0 %v16505_v15  ;;  %7806 = vmatpush1.bf16.msra.mxu1 %v16507_v16  ;;  %v1704_v15 = vld [vmem:[%s13338_s17 + $0x19d0] sm:$0xff]  ;;  %v1705_v16 = vld [vmem:[%s13338_s17 + $0x19d8] sm:$0xff]  ;;  %19452 = vst [vmem:[#allocation752_spill] sm:$0xff] %v16537_v45  ;;  %19453 = vst [vmem:[#allocation753_spill] sm:$0xff] %v16539_v46 }
 0x77f   : > { %7766 = vmatprep.subr.bf16.mxu0 %v16511_v25  ;;  %7807 = vmatprep.subr.bf16.mxu1 %v16513_v26  ;;  %v16543_v19 = vcombine.high %v1652_v62, %v1704_v15  ;;  %v16545_v21 = vcombine.high %v1653_v18, %v1705_v16  ;;  %v926_v26 = vld [vmem:[%s13338_s17 + $0x180] sm:$0xff]  ;;  %v927_v25 = vld [vmem:[%s13338_s17 + $0x188] sm:$0xff]  ;;  %v16553_v32 = vcombine.low %v1652_v62, %v1704_v15 }
 0x780   : > { %v16555_v33 = vcombine.low %v1653_v18, %v1705_v16 }
 0x781   : > { %19454 = vst [vmem:[#allocation754_spill] sm:$0xff] %v16543_v19  ;;  %19455 = vst [vmem:[#allocation755_spill] sm:$0xff] %v16545_v21 }
 0x782   : > { %7767 = vmatpush1.bf16.msra.mxu0 %v16521_v28  ;;  %7808 = vmatpush1.bf16.msra.mxu1 %v16523_v3  ;;  %v978_v28 = vld [vmem:[%s13338_s17 + $0x320] sm:$0xff]  ;;  %v979_v3 = vld [vmem:[%s13338_s17 + $0x328] sm:$0xff]  ;;  %19456 = vst [vmem:[#allocation756_spill] sm:$0xff] %v16553_v32  ;;  %19457 = vst [vmem:[#allocation757_spill] sm:$0xff] %v16555_v33 }
 0x783   : > { %7768 = vmatprep.subr.bf16.mxu0 %v16527_v6  ;;  %7809 = vmatprep.subr.bf16.mxu1 %v16529_v14  ;;  %v16559_v39 = vcombine.high %v926_v26, %v978_v28  ;;  %v16561_v41 = vcombine.high %v927_v25, %v979_v3  ;;  %v1030_v14 = vld [vmem:[%s13338_s17 + $0x4c0] sm:$0xff]  ;;  %v1031_v6 = vld [vmem:[%s13338_s17 + $0x4c8] sm:$0xff]  ;;  %v16569_v18 = vcombine.low %v926_v26, %v978_v28 }
 0x784   : > { %v16571_v62 = vcombine.low %v927_v25, %v979_v3 }
 0x785   : > { %19458 = vst [vmem:[#allocation758_spill] sm:$0xff] %v16559_v39  ;;  %19459 = vst [vmem:[#allocation759_spill] sm:$0xff] %v16561_v41 }
 0x786   : > { %7769 = vmatpush1.bf16.msra.mxu0 %v16537_v45  ;;  %7810 = vmatpush1.bf16.msra.mxu1 %v16539_v46  ;;  %v1082_v45 = vld [vmem:[%s13338_s17 + $0x660] sm:$0xff]  ;;  %v1083_v46 = vld [vmem:[%s13338_s17 + $0x668] sm:$0xff]  ;;  %19460 = vst [vmem:[#allocation760_spill] sm:$0xff] %v16569_v18  ;;  %19461 = vst [vmem:[#allocation761_spill] sm:$0xff] %v16571_v62 }
 0x787   : > { %7770 = vmatprep.subr.bf16.mxu0 %v16543_v19  ;;  %7811 = vmatprep.subr.bf16.mxu1 %v16545_v21  ;;  %v16575_v15 = vcombine.high %v1030_v14, %v1082_v45  ;;  %v16577_v16 = vcombine.high %v1031_v6, %v1083_v46  ;;  %v1134_v21 = vld [vmem:[%s13338_s17 + $0x800] sm:$0xff]  ;;  %v16587_v25 = vcombine.low %v1030_v14, %v1082_v45 }
 0x788   : > { %v1186_v19 = vld [vmem:[%s13338_s17 + $0x9a0] sm:$0xff]  ;;  %v16589_v26 = vcombine.low %v1031_v6, %v1083_v46 }
 0x789   : > { %19462 = vst [vmem:[#allocation762_spill] sm:$0xff] %v16575_v15  ;;  %19463 = vst [vmem:[#allocation763_spill] sm:$0xff] %v16577_v16  ;;  %v16593_v28 = vcombine.high %v1134_v21, %v1186_v19  ;;  %v16605_v6 = vcombine.low %v1134_v21, %v1186_v19 }
 0x78a   : > { %7771 = vmatpush1.bf16.msra.mxu0 %v16553_v32  ;;  %7812 = vmatpush1.bf16.msra.mxu1 %v16555_v33  ;;  %v1135_v32 = vld [vmem:[%s13338_s17 + $0x808] sm:$0xff]  ;;  %19464 = vst [vmem:[#allocation764_spill] sm:$0xff] %v16587_v25  ;;  %19465 = vst [vmem:[#allocation765_spill] sm:$0xff] %v16589_v26 }
 0x78b   : > { %7838 = vmatprep.subr.bf16.mxu0 %v16559_v39  ;;  %7879 = vmatprep.subr.bf16.mxu1 %v16561_v41  ;;  %v1187_v33 = vld [vmem:[%s13338_s17 + $0x9a8] sm:$0xff]  ;;  %19466 = vst [vmem:[#allocation766_spill] sm:$0xff] %v16593_v28  ;;  %v1238_v41 = vld [vmem:[%s13338_s17 + $0xb40] sm:$0xff]  ;;  %19468 = vst [vmem:[#allocation768_spill] sm:$0xff] %v16605_v6 }
 0x78c   : > { %v16595_v3 = vcombine.high %v1135_v32, %v1187_v33  ;;  %v1290_v39 = vld [vmem:[%s13338_s17 + $0xce0] sm:$0xff]  ;;  %v16607_v14 = vcombine.low %v1135_v32, %v1187_v33 }
 0x78d   : > { %7789 = vmatmul.mubr.bf16.vlgmr.msra.gmra.mrb[96].mxu0 %v13537_v0  ;;  %7830 = vmatmul.mubr.bf16.vlgmr.msra.gmra.mrb[96].mxu1 %v13537_v0  ;;  %v16611_v45 = vcombine.high %v1238_v41, %v1290_v39  ;;  %v16621_v19 = vcombine.low %v1238_v41, %v1290_v39 }
 0x78e   : > { %7839 = vmatpush1.bf16.msra.mxu0 %v16569_v18  ;;  %7880 = vmatpush1.bf16.msra.mxu1 %v16571_v62  ;;  %19467 = vst [vmem:[#allocation767_spill] sm:$0xff] %v16595_v3  ;;  %v1239_v18 = vld [vmem:[%s13338_s17 + $0xb48] sm:$0xff]  ;;  %19469 = vst [vmem:[#allocation769_spill] sm:$0xff] %v16607_v14 }
 0x78f   : > { %7840 = vmatprep.subr.bf16.mxu0 %v16575_v15  ;;  %7881 = vmatprep.subr.bf16.mxu1 %v16577_v16  ;;  %v1291_v62 = vld [vmem:[%s13338_s17 + $0xce8] sm:$0xff]  ;;  %19470 = vst [vmem:[#allocation770_spill] sm:$0xff] %v16611_v45  ;;  %v1342_v16 = vld [vmem:[%s13338_s17 + $0xe80] sm:$0xff]  ;;  %19472 = vst [vmem:[#allocation772_spill] sm:$0xff] %v16621_v19 }
 0x790   : > { %7870 = vmatprep.mubr.bf16.mxu0 %v18763_v29  ;;  %7911 = vmatprep.mubr.bf16.mxu1 %v18763_v29  ;;  %v16613_v46 = vcombine.high %v1239_v18, %v1291_v62  ;;  %v1343_v15 = vld [vmem:[%s13338_s17 + $0xe88] sm:$0xff]  ;;  %v16623_v21 = vcombine.low %v1239_v18, %v1291_v62 }
 0x792   : > { %7841 = vmatpush1.bf16.msra.mxu0 %v16587_v25  ;;  %7882 = vmatpush1.bf16.msra.mxu1 %v16589_v26  ;;  %19471 = vst [vmem:[#allocation771_spill] sm:$0xff] %v16613_v46  ;;  %v1394_v25 = vld [vmem:[%s13338_s17 + $0x1020] sm:$0xff]  ;;  %v1395_v26 = vld [vmem:[%s13338_s17 + $0x1028] sm:$0xff]  ;;  %19473 = vst [vmem:[#allocation773_spill] sm:$0xff] %v16623_v21 }
 0x793   : > { %7842 = vmatprep.subr.bf16.mxu0 %v16593_v28  ;;  %7883 = vmatprep.subr.bf16.mxu1 %v16595_v3  ;;  %v16627_v32 = vcombine.high %v1342_v16, %v1394_v25  ;;  %v16629_v33 = vcombine.high %v1343_v15, %v1395_v26  ;;  %v1446_v3 = vld [vmem:[%s13338_s17 + $0x11c0] sm:$0xff]  ;;  %v1447_v28 = vld [vmem:[%s13338_s17 + $0x11c8] sm:$0xff]  ;;  %v16637_v39 = vcombine.low %v1342_v16, %v1394_v25 }
 0x794   : > { %v16639_v41 = vcombine.low %v1343_v15, %v1395_v26 }
 0x795   : > { %19474 = vst [vmem:[#allocation774_spill] sm:$0xff] %v16627_v32  ;;  %19475 = vst [vmem:[#allocation775_spill] sm:$0xff] %v16629_v33 }
 0x796   : > { %7843 = vmatpush1.bf16.msra.mxu0 %v16605_v6  ;;  %7884 = vmatpush1.bf16.msra.mxu1 %v16607_v14  ;;  %v1498_v6 = vld [vmem:[%s13338_s17 + $0x1360] sm:$0xff]  ;;  %v1499_v14 = vld [vmem:[%s13338_s17 + $0x1368] sm:$0xff]  ;;  %19476 = vst [vmem:[#allocation776_spill] sm:$0xff] %v16637_v39  ;;  %19477 = vst [vmem:[#allocation777_spill] sm:$0xff] %v16639_v41 }
 0x797   : > { %7844 = vmatprep.subr.bf16.mxu0 %v16611_v45  ;;  %7885 = vmatprep.subr.bf16.mxu1 %v16613_v46  ;;  %v16643_v18 = vcombine.high %v1446_v3, %v1498_v6  ;;  %v16645_v62 = vcombine.high %v1447_v28, %v1499_v14  ;;  %v1550_v46 = vld [vmem:[%s13338_s17 + $0x1500] sm:$0xff]  ;;  %v1551_v45 = vld [vmem:[%s13338_s17 + $0x1508] sm:$0xff]  ;;  %v16653_v15 = vcombine.low %v1446_v3, %v1498_v6 }
 0x798   : > { %v16655_v16 = vcombine.low %v1447_v28, %v1499_v14 }
 0x799   : > { %19478 = vst [vmem:[#allocation778_spill] sm:$0xff] %v16643_v18  ;;  %19479 = vst [vmem:[#allocation779_spill] sm:$0xff] %v16645_v62 }
 0x79a   : > { %7845 = vmatpush1.bf16.msra.mxu0 %v16621_v19  ;;  %7886 = vmatpush1.bf16.msra.mxu1 %v16623_v21  ;;  %v1602_v19 = vld [vmem:[%s13338_s17 + $0x16a0] sm:$0xff]  ;;  %v1603_v21 = vld [vmem:[%s13338_s17 + $0x16a8] sm:$0xff]  ;;  %19480 = vst [vmem:[#allocation780_spill] sm:$0xff] %v16653_v15  ;;  %19481 = vst [vmem:[#allocation781_spill] sm:$0xff] %v16655_v16 }
 0x79b   : > { %7846 = vmatprep.subr.bf16.mxu0 %v16627_v32  ;;  %7887 = vmatprep.subr.bf16.mxu1 %v16629_v33  ;;  %v16659_v25 = vcombine.high %v1550_v46, %v1602_v19  ;;  %v16661_v26 = vcombine.high %v1551_v45, %v1603_v21  ;;  %v1654_v33 = vld [vmem:[%s13338_s17 + $0x1840] sm:$0xff]  ;;  %v1655_v32 = vld [vmem:[%s13338_s17 + $0x1848] sm:$0xff]  ;;  %v16669_v28 = vcombine.low %v1550_v46, %v1602_v19 }
 0x79c   : > { %v16671_v3 = vcombine.low %v1551_v45, %v1603_v21 }
 0x79d   : > { %19482 = vst [vmem:[#allocation782_spill] sm:$0xff] %v16659_v25  ;;  %19483 = vst [vmem:[#allocation783_spill] sm:$0xff] %v16661_v26 }
 0x79e   : > { %7847 = vmatpush1.bf16.msra.mxu0 %v16637_v39  ;;  %7888 = vmatpush1.bf16.msra.mxu1 %v16639_v41  ;;  %v1706_v39 = vld [vmem:[%s13338_s17 + $0x19e0] sm:$0xff]  ;;  %v1707_v41 = vld [vmem:[%s13338_s17 + $0x19e8] sm:$0xff]  ;;  %19484 = vst [vmem:[#allocation784_spill] sm:$0xff] %v16669_v28  ;;  %19485 = vst [vmem:[#allocation785_spill] sm:$0xff] %v16671_v3 }
 0x79f   : > { %7848 = vmatprep.subr.bf16.mxu0 %v16643_v18  ;;  %7889 = vmatprep.subr.bf16.mxu1 %v16645_v62  ;;  %v16675_v6 = vcombine.high %v1654_v33, %v1706_v39  ;;  %v16677_v14 = vcombine.high %v1655_v32, %v1707_v41  ;;  %v928_v62 = vld [vmem:[%s13338_s17 + $0x190] sm:$0xff]  ;;  %v929_v18 = vld [vmem:[%s13338_s17 + $0x198] sm:$0xff]  ;;  %v16685_v45 = vcombine.low %v1654_v33, %v1706_v39 }
 0x7a0   : > { %v16687_v46 = vcombine.low %v1655_v32, %v1707_v41 }
 0x7a1   : > { %19486 = vst [vmem:[#allocation786_spill] sm:$0xff] %v16675_v6  ;;  %19487 = vst [vmem:[#allocation787_spill] sm:$0xff] %v16677_v14 }
 0x7a2   : > { %7849 = vmatpush1.bf16.msra.mxu0 %v16653_v15  ;;  %7890 = vmatpush1.bf16.msra.mxu1 %v16655_v16  ;;  %v980_v15 = vld [vmem:[%s13338_s17 + $0x330] sm:$0xff]  ;;  %v981_v16 = vld [vmem:[%s13338_s17 + $0x338] sm:$0xff]  ;;  %19488 = vst [vmem:[#allocation788_spill] sm:$0xff] %v16685_v45  ;;  %19489 = vst [vmem:[#allocation789_spill] sm:$0xff] %v16687_v46 }
 0x7a3   : > { %7850 = vmatprep.subr.bf16.mxu0 %v16659_v25  ;;  %7891 = vmatprep.subr.bf16.mxu1 %v16661_v26  ;;  %v16691_v19 = vcombine.high %v928_v62, %v980_v15  ;;  %v16693_v21 = vcombine.high %v929_v18, %v981_v16  ;;  %v1032_v26 = vld [vmem:[%s13338_s17 + $0x4d0] sm:$0xff]  ;;  %v1033_v25 = vld [vmem:[%s13338_s17 + $0x4d8] sm:$0xff]  ;;  %v16701_v32 = vcombine.low %v928_v62, %v980_v15 }
 0x7a4   : > { %v16703_v33 = vcombine.low %v929_v18, %v981_v16 }
 0x7a5   : > { %19490 = vst [vmem:[#allocation790_spill] sm:$0xff] %v16691_v19  ;;  %19491 = vst [vmem:[#allocation791_spill] sm:$0xff] %v16693_v21 }
 0x7a6   : > { %7851 = vmatpush1.bf16.msra.mxu0 %v16669_v28  ;;  %7892 = vmatpush1.bf16.msra.mxu1 %v16671_v3  ;;  %v1084_v28 = vld [vmem:[%s13338_s17 + $0x670] sm:$0xff]  ;;  %v1085_v3 = vld [vmem:[%s13338_s17 + $0x678] sm:$0xff]  ;;  %19492 = vst [vmem:[#allocation792_spill] sm:$0xff] %v16701_v32  ;;  %19493 = vst [vmem:[#allocation793_spill] sm:$0xff] %v16703_v33 }
 0x7a7   : > { %7852 = vmatprep.subr.bf16.mxu0 %v16675_v6  ;;  %7893 = vmatprep.subr.bf16.mxu1 %v16677_v14  ;;  %v16707_v39 = vcombine.high %v1032_v26, %v1084_v28  ;;  %v16709_v41 = vcombine.high %v1033_v25, %v1085_v3  ;;  %v1136_v14 = vld [vmem:[%s13338_s17 + $0x810] sm:$0xff]  ;;  %v16719_v18 = vcombine.low %v1032_v26, %v1084_v28 }
 0x7a8   : > { %v1188_v6 = vld [vmem:[%s13338_s17 + $0x9b0] sm:$0xff]  ;;  %v16721_v62 = vcombine.low %v1033_v25, %v1085_v3 }
 0x7a9   : > { %19494 = vst [vmem:[#allocation794_spill] sm:$0xff] %v16707_v39  ;;  %19495 = vst [vmem:[#allocation795_spill] sm:$0xff] %v16709_v41  ;;  %v16725_v15 = vcombine.high %v1136_v14, %v1188_v6  ;;  %v16737_v25 = vcombine.low %v1136_v14, %v1188_v6 }
 0x7aa   : > { %7853 = vmatpush1.bf16.msra.mxu0 %v16685_v45  ;;  %7894 = vmatpush1.bf16.msra.mxu1 %v16687_v46  ;;  %v1137_v45 = vld [vmem:[%s13338_s17 + $0x818] sm:$0xff]  ;;  %19496 = vst [vmem:[#allocation796_spill] sm:$0xff] %v16719_v18  ;;  %19497 = vst [vmem:[#allocation797_spill] sm:$0xff] %v16721_v62 }
 0x7ab   : > { %7920 = vmatprep.subr.bf16.mxu0 %v16691_v19  ;;  %7961 = vmatprep.subr.bf16.mxu1 %v16693_v21  ;;  %v1189_v46 = vld [vmem:[%s13338_s17 + $0x9b8] sm:$0xff]  ;;  %19498 = vst [vmem:[#allocation798_spill] sm:$0xff] %v16725_v15  ;;  %v1240_v21 = vld [vmem:[%s13338_s17 + $0xb50] sm:$0xff]  ;;  %19500 = vst [vmem:[#allocation800_spill] sm:$0xff] %v16737_v25 }
 0x7ac   : > { %v16727_v16 = vcombine.high %v1137_v45, %v1189_v46  ;;  %v1292_v19 = vld [vmem:[%s13338_s17 + $0xcf0] sm:$0xff]  ;;  %v16739_v26 = vcombine.low %v1137_v45, %v1189_v46 }
 0x7ad   : > { %7871 = vmatmul.mubr.bf16.vlgmr.msra.gmra.mrb[100].mxu0 %v13537_v0  ;;  %7912 = vmatmul.mubr.bf16.vlgmr.msra.gmra.mrb[100].mxu1 %v13537_v0  ;;  %v16743_v28 = vcombine.high %v1240_v21, %v1292_v19  ;;  %v16753_v6 = vcombine.low %v1240_v21, %v1292_v19 }
 0x7ae   : > { %7921 = vmatpush1.bf16.msra.mxu0 %v16701_v32  ;;  %7962 = vmatpush1.bf16.msra.mxu1 %v16703_v33  ;;  %19499 = vst [vmem:[#allocation799_spill] sm:$0xff] %v16727_v16  ;;  %v1241_v32 = vld [vmem:[%s13338_s17 + $0xb58] sm:$0xff]  ;;  %19501 = vst [vmem:[#allocation801_spill] sm:$0xff] %v16739_v26 }
 0x7af   : > { %7922 = vmatprep.subr.bf16.mxu0 %v16707_v39  ;;  %7963 = vmatprep.subr.bf16.mxu1 %v16709_v41  ;;  %v1293_v33 = vld [vmem:[%s13338_s17 + $0xcf8] sm:$0xff]  ;;  %19502 = vst [vmem:[#allocation802_spill] sm:$0xff] %v16743_v28  ;;  %v1344_v41 = vld [vmem:[%s13338_s17 + $0xe90] sm:$0xff]  ;;  %19504 = vst [vmem:[#allocation804_spill] sm:$0xff] %v16753_v6 }
 0x7b0   : > { %7952 = vmatprep.mubr.bf16.mxu0 %v18763_v29  ;;  %7993 = vmatprep.mubr.bf16.mxu1 %v18763_v29  ;;  %v16745_v3 = vcombine.high %v1241_v32, %v1293_v33  ;;  %v1345_v39 = vld [vmem:[%s13338_s17 + $0xe98] sm:$0xff]  ;;  %v16755_v14 = vcombine.low %v1241_v32, %v1293_v33 }
 0x7b2   : > { %7923 = vmatpush1.bf16.msra.mxu0 %v16719_v18  ;;  %7964 = vmatpush1.bf16.msra.mxu1 %v16721_v62  ;;  %19503 = vst [vmem:[#allocation803_spill] sm:$0xff] %v16745_v3  ;;  %v1396_v18 = vld [vmem:[%s13338_s17 + $0x1030] sm:$0xff]  ;;  %v1397_v62 = vld [vmem:[%s13338_s17 + $0x1038] sm:$0xff]  ;;  %19505 = vst [vmem:[#allocation805_spill] sm:$0xff] %v16755_v14 }
 0x7b3   : > { %7924 = vmatprep.subr.bf16.mxu0 %v16725_v15  ;;  %7965 = vmatprep.subr.bf16.mxu1 %v16727_v16  ;;  %v16759_v45 = vcombine.high %v1344_v41, %v1396_v18  ;;  %v16761_v46 = vcombine.high %v1345_v39, %v1397_v62  ;;  %v1448_v16 = vld [vmem:[%s13338_s17 + $0x11d0] sm:$0xff]  ;;  %v1449_v15 = vld [vmem:[%s13338_s17 + $0x11d8] sm:$0xff]  ;;  %v16769_v19 = vcombine.low %v1344_v41, %v1396_v18 }
 0x7b4   : > { %v16771_v21 = vcombine.low %v1345_v39, %v1397_v62 }
 0x7b5   : > { %19506 = vst [vmem:[#allocation806_spill] sm:$0xff] %v16759_v45  ;;  %19507 = vst [vmem:[#allocation807_spill] sm:$0xff] %v16761_v46 }
 0x7b6   : > { %7925 = vmatpush1.bf16.msra.mxu0 %v16737_v25  ;;  %7966 = vmatpush1.bf16.msra.mxu1 %v16739_v26  ;;  %v1500_v25 = vld [vmem:[%s13338_s17 + $0x1370] sm:$0xff]  ;;  %v1501_v26 = vld [vmem:[%s13338_s17 + $0x1378] sm:$0xff] }
 0x7b7   : > { %7926 = vmatprep.subr.bf16.mxu0 %v16743_v28  ;;  %7967 = vmatprep.subr.bf16.mxu1 %v16745_v3  ;;  %v16775_v32 = vcombine.high %v1448_v16, %v1500_v25  ;;  %v16777_v33 = vcombine.high %v1449_v15, %v1501_v26  ;;  %v1552_v3 = vld [vmem:[%s13338_s17 + $0x1510] sm:$0xff]  ;;  %v1553_v28 = vld [vmem:[%s13338_s17 + $0x1518] sm:$0xff]  ;;  %v16785_v39 = vcombine.low %v1448_v16, %v1500_v25 }
 0x7b8   : > { %v16787_v41 = vcombine.low %v1449_v15, %v1501_v26  ;;  %v16809_v26 = vcombine.high %v1657_v17, %v1709_v61 }
 0x7b9   : > { %19508 = vst [vmem:[#allocation808_spill] sm:$0xff] %v16777_v33  ;;  %19509 = vst [vmem:[#allocation809_spill] sm:$0xff] %v16785_v39 }
 0x7ba   : > { %7927 = vmatpush1.bf16.msra.mxu0 %v16753_v6  ;;  %7968 = vmatpush1.bf16.msra.mxu1 %v16755_v14  ;;  %v1604_v6 = vld [vmem:[%s13338_s17 + $0x16b0] sm:$0xff]  ;;  %v1605_v14 = vld [vmem:[%s13338_s17 + $0x16b8] sm:$0xff] }
 0x7bb   : > { %7928 = vmatprep.subr.bf16.mxu0 %v16759_v45  ;;  %7969 = vmatprep.subr.bf16.mxu1 %v16761_v46  ;;  %v16791_v18 = vcombine.high %v1552_v3, %v1604_v6  ;;  %v16793_v62 = vcombine.high %v1553_v28, %v1605_v14  ;;  %v1656_v46 = vld [vmem:[%s13338_s17 + $0x1850] sm:$0xff]  ;;  %v16801_v16 = vcombine.low %v1552_v3, %v1604_v6  ;;  %v19555_v3 = vld [vmem:[#allocation76_spill] sm:$0xff]  ;;  %v19556_v6 = vld [vmem:[#allocation77_spill] sm:$0xff] }
 0x7bc   : > { %v1708_v45 = vld [vmem:[%s13338_s17 + $0x19f0] sm:$0xff]  ;;  %v16803_v15 = vcombine.low %v1553_v28, %v1605_v14  ;;  %v19554_v28 = vld [vmem:[#allocation75_spill] sm:$0xff]  ;;  %s12831_s17 = scalar_lea.vmem %s12830_s14, 3328 }
 0x7bd   : > { %v16807_v25 = vcombine.high %v1656_v46, %v1708_v45  ;;  %v19557_v14 = vld [vmem:[#allocation78_spill] sm:$0xff]  ;;  %p12833_p4 = scmp.lt.s32.totalorder %s12831_s17, %s12825_s15 }
 0x7be   : > { %7929 = vmatpush1.bf16.msra.mxu0 %v16769_v19  ;;  %7970 = vmatpush1.bf16.msra.mxu1 %v16771_v21 }
 0x7bf   : > { %7930 = vmatprep.subr.bf16.mxu0 %v16775_v32  ;;  %7971 = vmatprep.subr.bf16.mxu1 %v16777_v33  ;;  %v16813_v33 = vcombine.low %v1656_v46, %v1708_v45  ;;  %v19558_v45 = vld [vmem:[#allocation79_spill] sm:$0xff]  ;;  %v19559_v46 = vld [vmem:[#allocation80_spill] sm:$0xff]  ;;  %p12834_p5 = por %p12833_p4, %p12832_p3 }
 0x7c1   : > { %p12835_p10 = pnand %p12834_p5, %p12828_p7 }
 0x7c2   : > { %7931 = vmatpush1.bf16.msra.mxu0 %v16785_v39  ;;  %7972 = vmatpush1.bf16.msra.mxu1 %v16787_v41  ;;  %v16815_v39 = vcombine.low %v1657_v17, %v1709_v61  ;;  %v19552_v61 = vld [vmem:[#allocation73_spill] sm:$0xff]  ;;  %v19553_v17 = vld [vmem:[#allocation74_spill] sm:$0xff] }
 0x7c3   : > { %7932 = vmatprep.subr.bf16.mxu0 %v16791_v18  ;;  %7973 = vmatprep.subr.bf16.mxu1 %v16793_v62 }
 0x7c6   : > { %7933 = vmatpush1.bf16.msra.mxu0 %v16801_v16  ;;  %7974 = vmatpush1.bf16.msra.mxu1 %v16803_v15 }
 0x7c7   : > { %7934 = vmatprep.subr.bf16.mxu0 %v16807_v25  ;;  %7975 = vmatprep.subr.bf16.mxu1 %v16809_v26 }
 0x7ca   : > { %7935 = vmatpush1.bf16.msra.mxu0 %v16813_v33  ;;  %7976 = vmatpush1.bf16.msra.mxu1 %v16815_v39 }
 0x7cb   : > { %8002 = vmatprep.subr.bf16.mxu0 %v13390_v1  ;;  %8043 = vmatprep.subr.bf16.mxu1 %v13397_v54  ;;  %v19511_v1 = vld [vmem:[#allocation32_spill] sm:$0xff]  ;;  %v19513_v54 = vld [vmem:[#allocation34_spill] sm:$0xff] }
 0x7cd   : > { %7953 = vmatmul.mubr.bf16.vlgmr.msra.gmra.mrb[104].mxu0 %v13537_v0  ;;  %7994 = vmatmul.mubr.bf16.vlgmr.msra.gmra.mrb[104].mxu1 %v13537_v0  ;;  %v19546_v0 = vld [vmem:[#allocation67_spill] sm:$0xff] }
 0x7ce   : > { %8003 = vmatpush1.bf16.msra.mxu0 %v13388_v49  ;;  %8044 = vmatpush1.bf16.msra.mxu1 %v13395_v53  ;;  %v19510_v49 = vld [vmem:[#allocation31_spill] sm:$0xff]  ;;  %v19512_v53 = vld [vmem:[#allocation33_spill] sm:$0xff] }
 0x7cf   : > { %8004 = vmatprep.subr.bf16.mxu0 %v13399_v55  ;;  %8045 = vmatprep.subr.bf16.mxu1 %v13442_v20  ;;  %v19514_v55 = vld [vmem:[#allocation35_spill] sm:$0xff]  ;;  %v19524_v20 = vld [vmem:[#allocation45_spill] sm:$0xff] }
 0x7d0   : > { %8034 = vmatprep.mubr.bf16.mxu0 %v18763_v29  ;;  %8075 = vmatprep.mubr.bf16.mxu1 %v18763_v29 }
 0x7d2   : > { %8005 = vmatpush1.bf16.msra.mxu0 %v13404_v56  ;;  %8046 = vmatpush1.bf16.msra.mxu1 %v13447_v23  ;;  %v19515_v56 = vld [vmem:[#allocation36_spill] sm:$0xff]  ;;  %v19525_v23 = vld [vmem:[#allocation46_spill] sm:$0xff] }
 0x7d3   : > { %8006 = vmatprep.subr.bf16.mxu0 %v13409_v59  ;;  %8047 = vmatprep.subr.bf16.mxu1 %v13450_v24  ;;  %v19516_v59 = vld [vmem:[#allocation37_spill] sm:$0xff]  ;;  %v19526_v24 = vld [vmem:[#allocation47_spill] sm:$0xff] }
 0x7d6   : > { %8007 = vmatpush1.bf16.msra.mxu0 %v13412_v60  ;;  %8048 = vmatpush1.bf16.msra.mxu1 %v13455_v2  ;;  %v19517_v60 = vld [vmem:[#allocation38_spill] sm:$0xff]  ;;  %v19527_v2 = vld [vmem:[#allocation48_spill] sm:$0xff] }
 0x7d7   : > { %8008 = vmatprep.subr.bf16.mxu0 %v13417_v63  ;;  %8049 = vmatprep.subr.bf16.mxu1 %v13458_v27  ;;  %v19518_v63 = vld [vmem:[#allocation39_spill] sm:$0xff]  ;;  %v19528_v27 = vld [vmem:[#allocation49_spill] sm:$0xff] }
 0x7da   : > { %8009 = vmatpush1.bf16.msra.mxu0 %v13420_v4  ;;  %8050 = vmatpush1.bf16.msra.mxu1 %v13463_v30  ;;  %v19519_v4 = vld [vmem:[#allocation40_spill] sm:$0xff]  ;;  %v19529_v30 = vld [vmem:[#allocation50_spill] sm:$0xff] }
 0x7db   : > { %8010 = vmatprep.subr.bf16.mxu0 %v13425_v7  ;;  %8051 = vmatprep.subr.bf16.mxu1 %v13466_v31  ;;  %v19520_v7 = vld [vmem:[#allocation41_spill] sm:$0xff]  ;;  %v19530_v31 = vld [vmem:[#allocation51_spill] sm:$0xff] }
 0x7de   : > { %8011 = vmatpush1.bf16.msra.mxu0 %v13428_v8  ;;  %8052 = vmatpush1.bf16.msra.mxu1 %v13471_v34  ;;  %v19521_v8 = vld [vmem:[#allocation42_spill] sm:$0xff]  ;;  %v19531_v34 = vld [vmem:[#allocation52_spill] sm:$0xff] }
 0x7df   : > { %8012 = vmatprep.subr.bf16.mxu0 %v13433_v11  ;;  %8053 = vmatprep.subr.bf16.mxu1 %v13474_v35  ;;  %v19522_v11 = vld [vmem:[#allocation43_spill] sm:$0xff]  ;;  %v19532_v35 = vld [vmem:[#allocation53_spill] sm:$0xff] }
 0x7e2   : > { %8013 = vmatpush1.bf16.msra.mxu0 %v13436_v12  ;;  %8054 = vmatpush1.bf16.msra.mxu1 %v13477_v36  ;;  %v19523_v12 = vld [vmem:[#allocation44_spill] sm:$0xff]  ;;  %v19533_v36 = vld [vmem:[#allocation54_spill] sm:$0xff] }
 0x7e3   : > { %8014 = vmatprep.subr.bf16.mxu0 %v13484_v40  ;;  %8055 = vmatprep.subr.bf16.mxu1 %v13491_v44  ;;  %v19534_v40 = vld [vmem:[#allocation55_spill] sm:$0xff]  ;;  %v19537_v44 = vld [vmem:[#allocation58_spill] sm:$0xff] }
 0x7e6   : > { %8015 = vmatpush1.bf16.msra.mxu0 %v13487_v42  ;;  %8056 = vmatpush1.bf16.msra.mxu1 %v13489_v43  ;;  %v19535_v42 = vld [vmem:[#allocation56_spill] sm:$0xff]  ;;  %v19536_v43 = vld [vmem:[#allocation57_spill] sm:$0xff] }
 0x7e7   : > { %8016 = vmatprep.subr.bf16.mxu0 %v13500_v48  ;;  %8057 = vmatprep.subr.bf16.mxu1 %v13507_v57  ;;  %v19538_v48 = vld [vmem:[#allocation59_spill] sm:$0xff]  ;;  %v19541_v57 = vld [vmem:[#allocation62_spill] sm:$0xff] }
 0x7ea   : > { %8017 = vmatpush1.bf16.msra.mxu0 %v13503_v51  ;;  %8058 = vmatpush1.bf16.msra.mxu1 %v13505_v52  ;;  %v19539_v51 = vld [vmem:[#allocation60_spill] sm:$0xff]  ;;  %v19540_v52 = vld [vmem:[#allocation61_spill] sm:$0xff] }
 0x7eb   : > { %8084 = vmatprep.subr.bf16.mxu0 %v13516_v5  ;;  %8125 = vmatprep.subr.bf16.mxu1 %v13523_v13  ;;  %v19542_v5 = vld [vmem:[#allocation63_spill] sm:$0xff]  ;;  %v19545_v13 = vld [vmem:[#allocation66_spill] sm:$0xff] }
 0x7ed   : > { %8035 = vmatmul.mubr.bf16.vlgmr.msra.gmra.mrb[4].mxu0 %v13530_v22  ;;  %8076 = vmatmul.mubr.bf16.vlgmr.msra.gmra.mrb[4].mxu1 %v13530_v22 }
 0x7ee   : > { %8085 = vmatpush1.bf16.msra.mxu0 %v13519_v9  ;;  %8126 = vmatpush1.bf16.msra.mxu1 %v13521_v10  ;;  %v19543_v9 = vld [vmem:[#allocation64_spill] sm:$0xff]  ;;  %v19544_v10 = vld [vmem:[#allocation65_spill] sm:$0xff] }
 0x7ef   : > { %8086 = vmatprep.subr.bf16.mxu0 %v13539_v37  ;;  %8127 = vmatprep.subr.bf16.mxu1 %v13541_v38  ;;  %v19547_v37 = vld [vmem:[#allocation68_spill] sm:$0xff]  ;;  %v19548_v38 = vld [vmem:[#allocation69_spill] sm:$0xff] }
 0x7f0   : > { %8116 = vmatprep.mubr.bf16.mxu0 %v18763_v29  ;;  %8157 = vmatprep.mubr.bf16.mxu1 %v18763_v29 }
 0x7f2   : > { %8087 = vmatpush1.bf16.msra.mxu0 %v13551_v47  ;;  %8128 = vmatpush1.bf16.msra.mxu1 %v13553_v50  ;;  %v19549_v47 = vld [vmem:[#allocation70_spill] sm:$0xff]  ;;  %v19550_v50 = vld [vmem:[#allocation71_spill] sm:$0xff] }
 0x7f3   : > { %8088 = vmatprep.subr.bf16.mxu0 %v13557_v58  ;;  %8129 = vmatprep.subr.bf16.mxu1 %v19510_v49  ;;  %v19551_v58 = vld [vmem:[#allocation72_spill] sm:$0xff]  ;;  %v19560_v49 = vld [vmem:[#allocation81_spill] sm:$0xff] }
 0x7f6   : > { %8089 = vmatpush1.bf16.msra.mxu0 %v19511_v1  ;;  %8130 = vmatpush1.bf16.msra.mxu1 %v19512_v53  ;;  %v19561_v1 = vld [vmem:[#allocation82_spill] sm:$0xff]  ;;  %v19562_v53 = vld [vmem:[#allocation83_spill] sm:$0xff] }
 0x7f7   : > { %8090 = vmatprep.subr.bf16.mxu0 %v19513_v54  ;;  %8131 = vmatprep.subr.bf16.mxu1 %v19514_v55  ;;  %v19563_v54 = vld [vmem:[#allocation84_spill] sm:$0xff]  ;;  %v19564_v55 = vld [vmem:[#allocation85_spill] sm:$0xff] }
 0x7fa   : > { %8091 = vmatpush1.bf16.msra.mxu0 %v19515_v56  ;;  %8132 = vmatpush1.bf16.msra.mxu1 %v19516_v59  ;;  %v19565_v56 = vld [vmem:[#allocation86_spill] sm:$0xff]  ;;  %v19566_v59 = vld [vmem:[#allocation87_spill] sm:$0xff] }
 0x7fb   : > { %8092 = vmatprep.subr.bf16.mxu0 %v19517_v60  ;;  %8133 = vmatprep.subr.bf16.mxu1 %v19518_v63  ;;  %v19567_v60 = vld [vmem:[#allocation88_spill] sm:$0xff]  ;;  %v19568_v63 = vld [vmem:[#allocation89_spill] sm:$0xff] }
 0x7fe   : > { %8093 = vmatpush1.bf16.msra.mxu0 %v19519_v4  ;;  %8134 = vmatpush1.bf16.msra.mxu1 %v19520_v7  ;;  %v19569_v4 = vld [vmem:[#allocation90_spill] sm:$0xff]  ;;  %v19570_v7 = vld [vmem:[#allocation91_spill] sm:$0xff] }
 0x7ff   : > { %8094 = vmatprep.subr.bf16.mxu0 %v19521_v8  ;;  %8135 = vmatprep.subr.bf16.mxu1 %v19522_v11  ;;  %v19571_v8 = vld [vmem:[#allocation92_spill] sm:$0xff]  ;;  %v19572_v11 = vld [vmem:[#allocation93_spill] sm:$0xff] }
 0x802   : > { %8095 = vmatpush1.bf16.msra.mxu0 %v19523_v12  ;;  %8136 = vmatpush1.bf16.msra.mxu1 %v19524_v20  ;;  %v19573_v12 = vld [vmem:[#allocation94_spill] sm:$0xff]  ;;  %v19574_v20 = vld [vmem:[#allocation95_spill] sm:$0xff] }
 0x803   : > { %8096 = vmatprep.subr.bf16.mxu0 %v19525_v23  ;;  %8137 = vmatprep.subr.bf16.mxu1 %v19526_v24  ;;  %v19575_v23 = vld [vmem:[#allocation96_spill] sm:$0xff]  ;;  %v19576_v24 = vld [vmem:[#allocation97_spill] sm:$0xff] }
 0x806   : > { %8097 = vmatpush1.bf16.msra.mxu0 %v19527_v2  ;;  %8138 = vmatpush1.bf16.msra.mxu1 %v19528_v27  ;;  %v19577_v2 = vld [vmem:[#allocation98_spill] sm:$0xff]  ;;  %v19578_v27 = vld [vmem:[#allocation99_spill] sm:$0xff] }
 0x807   : > { %8098 = vmatprep.subr.bf16.mxu0 %v19529_v30  ;;  %8139 = vmatprep.subr.bf16.mxu1 %v19530_v31  ;;  %v19579_v30 = vld [vmem:[#allocation100_spill] sm:$0xff]  ;;  %v19580_v31 = vld [vmem:[#allocation101_spill] sm:$0xff] }
 0x80a   : > { %8099 = vmatpush1.bf16.msra.mxu0 %v19531_v34  ;;  %8140 = vmatpush1.bf16.msra.mxu1 %v19532_v35  ;;  %v19581_v34 = vld [vmem:[#allocation102_spill] sm:$0xff]  ;;  %v19582_v35 = vld [vmem:[#allocation103_spill] sm:$0xff] }
 0x80b   : > { %8166 = vmatprep.subr.bf16.mxu0 %v19533_v36  ;;  %8207 = vmatprep.subr.bf16.mxu1 %v19534_v40  ;;  %v19583_v36 = vld [vmem:[#allocation104_spill] sm:$0xff]  ;;  %v19584_v40 = vld [vmem:[#allocation105_spill] sm:$0xff] }
 0x80d   : > { %8117 = vmatmul.mubr.bf16.vlgmr.msra.gmra.mrb[8].mxu0 %v13530_v22  ;;  %8158 = vmatmul.mubr.bf16.vlgmr.msra.gmra.mrb[8].mxu1 %v13530_v22 }
 0x80e   : > { %8167 = vmatpush1.bf16.msra.mxu0 %v19535_v42  ;;  %8208 = vmatpush1.bf16.msra.mxu1 %v19536_v43  ;;  %v19585_v42 = vld [vmem:[#allocation106_spill] sm:$0xff]  ;;  %v19586_v43 = vld [vmem:[#allocation107_spill] sm:$0xff] }
 0x80f   : > { %8168 = vmatprep.subr.bf16.mxu0 %v19537_v44  ;;  %8209 = vmatprep.subr.bf16.mxu1 %v19538_v48  ;;  %v19587_v44 = vld [vmem:[#allocation108_spill] sm:$0xff]  ;;  %v19588_v48 = vld [vmem:[#allocation109_spill] sm:$0xff] }
 0x810   : > { %8198 = vmatprep.mubr.bf16.mxu0 %v18763_v29  ;;  %8239 = vmatprep.mubr.bf16.mxu1 %v18763_v29 }
 0x812   : > { %8169 = vmatpush1.bf16.msra.mxu0 %v19539_v51  ;;  %8210 = vmatpush1.bf16.msra.mxu1 %v19540_v52  ;;  %v19589_v51 = vld [vmem:[#allocation110_spill] sm:$0xff]  ;;  %v19590_v52 = vld [vmem:[#allocation111_spill] sm:$0xff] }
 0x813   : > { %8170 = vmatprep.subr.bf16.mxu0 %v19541_v57  ;;  %8211 = vmatprep.subr.bf16.mxu1 %v19542_v5  ;;  %v19591_v57 = vld [vmem:[#allocation112_spill] sm:$0xff]  ;;  %v19592_v5 = vld [vmem:[#allocation113_spill] sm:$0xff] }
 0x816   : > { %8171 = vmatpush1.bf16.msra.mxu0 %v19543_v9  ;;  %8212 = vmatpush1.bf16.msra.mxu1 %v19544_v10  ;;  %v19593_v9 = vld [vmem:[#allocation114_spill] sm:$0xff]  ;;  %v19594_v10 = vld [vmem:[#allocation115_spill] sm:$0xff] }
 0x817   : > { %8172 = vmatprep.subr.bf16.mxu0 %v19545_v13  ;;  %8213 = vmatprep.subr.bf16.mxu1 %v19546_v0  ;;  %v19595_v13 = vld [vmem:[#allocation116_spill] sm:$0xff]  ;;  %v19596_v0 = vld [vmem:[#allocation117_spill] sm:$0xff] }
 0x81a   : > { %8173 = vmatpush1.bf16.msra.mxu0 %v19547_v37  ;;  %8214 = vmatpush1.bf16.msra.mxu1 %v19548_v38  ;;  %v19597_v37 = vld [vmem:[#allocation118_spill] sm:$0xff]  ;;  %v19598_v38 = vld [vmem:[#allocation119_spill] sm:$0xff] }
 0x81b   : > { %8174 = vmatprep.subr.bf16.mxu0 %v19549_v47  ;;  %8215 = vmatprep.subr.bf16.mxu1 %v19550_v50  ;;  %v19599_v47 = vld [vmem:[#allocation120_spill] sm:$0xff]  ;;  %v19600_v50 = vld [vmem:[#allocation121_spill] sm:$0xff] }
 0x81e   : > { %8175 = vmatpush1.bf16.msra.mxu0 %v19551_v58  ;;  %8216 = vmatpush1.bf16.msra.mxu1 %v19552_v61  ;;  %v19601_v58 = vld [vmem:[#allocation122_spill] sm:$0xff]  ;;  %v19602_v61 = vld [vmem:[#allocation123_spill] sm:$0xff] }
 0x81f   : > { %8176 = vmatprep.subr.bf16.mxu0 %v19553_v17  ;;  %8217 = vmatprep.subr.bf16.mxu1 %v19554_v28  ;;  %v19603_v17 = vld [vmem:[#allocation124_spill] sm:$0xff]  ;;  %v19604_v28 = vld [vmem:[#allocation125_spill] sm:$0xff] }
 0x822   : > { %8177 = vmatpush1.bf16.msra.mxu0 %v19555_v3  ;;  %8218 = vmatpush1.bf16.msra.mxu1 %v19556_v6  ;;  %v19605_v3 = vld [vmem:[#allocation126_spill] sm:$0xff]  ;;  %v19606_v6 = vld [vmem:[#allocation127_spill] sm:$0xff] }
 0x823   : > { %8178 = vmatprep.subr.bf16.mxu0 %v19557_v14  ;;  %8219 = vmatprep.subr.bf16.mxu1 %v19558_v45  ;;  %v19607_v14 = vld [vmem:[#allocation128_spill] sm:$0xff]  ;;  %v19608_v45 = vld [vmem:[#allocation129_spill] sm:$0xff] }
 0x826   : > { %8179 = vmatpush1.bf16.msra.mxu0 %v19559_v46  ;;  %8220 = vmatpush1.bf16.msra.mxu1 %v19560_v49  ;;  %v19609_v46 = vld [vmem:[#allocation130_spill] sm:$0xff]  ;;  %v19610_v49 = vld [vmem:[#allocation131_spill] sm:$0xff] }
 0x827   : > { %8180 = vmatprep.subr.bf16.mxu0 %v19561_v1  ;;  %8221 = vmatprep.subr.bf16.mxu1 %v19562_v53  ;;  %v19611_v1 = vld [vmem:[#allocation132_spill] sm:$0xff]  ;;  %v19612_v53 = vld [vmem:[#allocation133_spill] sm:$0xff] }
 0x82a   : > { %8181 = vmatpush1.bf16.msra.mxu0 %v19563_v54  ;;  %8222 = vmatpush1.bf16.msra.mxu1 %v19564_v55  ;;  %v19613_v54 = vld [vmem:[#allocation134_spill] sm:$0xff]  ;;  %v19614_v55 = vld [vmem:[#allocation135_spill] sm:$0xff] }
 0x82b   : > { %8248 = vmatprep.subr.bf16.mxu0 %v19565_v56  ;;  %8289 = vmatprep.subr.bf16.mxu1 %v19566_v59  ;;  %v19615_v56 = vld [vmem:[#allocation136_spill] sm:$0xff]  ;;  %v19616_v59 = vld [vmem:[#allocation137_spill] sm:$0xff] }
 0x82d   : > { %8199 = vmatmul.mubr.bf16.vlgmr.msra.gmra.mrb[12].mxu0 %v13530_v22  ;;  %8240 = vmatmul.mubr.bf16.vlgmr.msra.gmra.mrb[12].mxu1 %v13530_v22 }
 0x82e   : > { %8249 = vmatpush1.bf16.msra.mxu0 %v19567_v60  ;;  %8290 = vmatpush1.bf16.msra.mxu1 %v19568_v63  ;;  %v19617_v60 = vld [vmem:[#allocation138_spill] sm:$0xff]  ;;  %v19618_v63 = vld [vmem:[#allocation139_spill] sm:$0xff] }
 0x82f   : > { %8250 = vmatprep.subr.bf16.mxu0 %v19569_v4  ;;  %8291 = vmatprep.subr.bf16.mxu1 %v19570_v7  ;;  %v19619_v4 = vld [vmem:[#allocation140_spill] sm:$0xff]  ;;  %v19620_v7 = vld [vmem:[#allocation141_spill] sm:$0xff] }
 0x830   : > { %8280 = vmatprep.mubr.bf16.mxu0 %v18763_v29  ;;  %8321 = vmatprep.mubr.bf16.mxu1 %v18763_v29 }
 0x832   : > { %8251 = vmatpush1.bf16.msra.mxu0 %v19571_v8  ;;  %8292 = vmatpush1.bf16.msra.mxu1 %v19572_v11  ;;  %v19621_v8 = vld [vmem:[#allocation142_spill] sm:$0xff]  ;;  %v19622_v11 = vld [vmem:[#allocation143_spill] sm:$0xff] }
 0x833   : > { %8252 = vmatprep.subr.bf16.mxu0 %v19573_v12  ;;  %8293 = vmatprep.subr.bf16.mxu1 %v19574_v20  ;;  %v19623_v12 = vld [vmem:[#allocation144_spill] sm:$0xff]  ;;  %v19624_v20 = vld [vmem:[#allocation145_spill] sm:$0xff] }
 0x836   : > { %8253 = vmatpush1.bf16.msra.mxu0 %v19575_v23  ;;  %8294 = vmatpush1.bf16.msra.mxu1 %v19576_v24  ;;  %v19625_v23 = vld [vmem:[#allocation146_spill] sm:$0xff]  ;;  %v19626_v24 = vld [vmem:[#allocation147_spill] sm:$0xff] }
 0x837   : > { %8254 = vmatprep.subr.bf16.mxu0 %v19577_v2  ;;  %8295 = vmatprep.subr.bf16.mxu1 %v19578_v27  ;;  %v19627_v2 = vld [vmem:[#allocation148_spill] sm:$0xff]  ;;  %v19628_v27 = vld [vmem:[#allocation149_spill] sm:$0xff] }
 0x83a   : > { %8255 = vmatpush1.bf16.msra.mxu0 %v19579_v30  ;;  %8296 = vmatpush1.bf16.msra.mxu1 %v19580_v31  ;;  %v19629_v30 = vld [vmem:[#allocation150_spill] sm:$0xff]  ;;  %v19630_v31 = vld [vmem:[#allocation151_spill] sm:$0xff] }
 0x83b   : > { %8256 = vmatprep.subr.bf16.mxu0 %v19581_v34  ;;  %8297 = vmatprep.subr.bf16.mxu1 %v19582_v35  ;;  %v19631_v34 = vld [vmem:[#allocation152_spill] sm:$0xff]  ;;  %v19632_v35 = vld [vmem:[#allocation153_spill] sm:$0xff] }
 0x83e   : > { %8257 = vmatpush1.bf16.msra.mxu0 %v19583_v36  ;;  %8298 = vmatpush1.bf16.msra.mxu1 %v19584_v40  ;;  %v19633_v36 = vld [vmem:[#allocation154_spill] sm:$0xff]  ;;  %v19634_v40 = vld [vmem:[#allocation155_spill] sm:$0xff] }
 0x83f   : > { %8258 = vmatprep.subr.bf16.mxu0 %v19585_v42  ;;  %8299 = vmatprep.subr.bf16.mxu1 %v19586_v43  ;;  %v19635_v42 = vld [vmem:[#allocation156_spill] sm:$0xff]  ;;  %v19636_v43 = vld [vmem:[#allocation157_spill] sm:$0xff] }
 0x842   : > { %8259 = vmatpush1.bf16.msra.mxu0 %v19587_v44  ;;  %8300 = vmatpush1.bf16.msra.mxu1 %v19588_v48  ;;  %v19637_v44 = vld [vmem:[#allocation158_spill] sm:$0xff]  ;;  %v19638_v48 = vld [vmem:[#allocation159_spill] sm:$0xff] }
 0x843   : > { %8260 = vmatprep.subr.bf16.mxu0 %v19589_v51  ;;  %8301 = vmatprep.subr.bf16.mxu1 %v19590_v52  ;;  %v19639_v51 = vld [vmem:[#allocation160_spill] sm:$0xff]  ;;  %v19640_v52 = vld [vmem:[#allocation161_spill] sm:$0xff] }
 0x846   : > { %8261 = vmatpush1.bf16.msra.mxu0 %v19591_v57  ;;  %8302 = vmatpush1.bf16.msra.mxu1 %v19592_v5  ;;  %v19641_v57 = vld [vmem:[#allocation162_spill] sm:$0xff]  ;;  %v19642_v5 = vld [vmem:[#allocation163_spill] sm:$0xff] }
 0x847   : > { %8262 = vmatprep.subr.bf16.mxu0 %v19593_v9  ;;  %8303 = vmatprep.subr.bf16.mxu1 %v19594_v10  ;;  %v19643_v9 = vld [vmem:[#allocation164_spill] sm:$0xff]  ;;  %v19644_v10 = vld [vmem:[#allocation165_spill] sm:$0xff] }
 0x84a   : > { %8263 = vmatpush1.bf16.msra.mxu0 %v19595_v13  ;;  %8304 = vmatpush1.bf16.msra.mxu1 %v19596_v0  ;;  %v19645_v13 = vld [vmem:[#allocation166_spill] sm:$0xff]  ;;  %v19646_v0 = vld [vmem:[#allocation167_spill] sm:$0xff] }
 0x84b   : > { %8330 = vmatprep.subr.bf16.mxu0 %v19597_v37  ;;  %8371 = vmatprep.subr.bf16.mxu1 %v19598_v38  ;;  %v19647_v37 = vld [vmem:[#allocation168_spill] sm:$0xff]  ;;  %v19648_v38 = vld [vmem:[#allocation169_spill] sm:$0xff] }
 0x84d   : > { %8281 = vmatmul.mubr.bf16.vlgmr.msra.gmra.mrb[16].mxu0 %v13530_v22  ;;  %8322 = vmatmul.mubr.bf16.vlgmr.msra.gmra.mrb[16].mxu1 %v13530_v22 }
 0x84e   : > { %8331 = vmatpush1.bf16.msra.mxu0 %v19599_v47  ;;  %8372 = vmatpush1.bf16.msra.mxu1 %v19600_v50  ;;  %v19649_v47 = vld [vmem:[#allocation170_spill] sm:$0xff]  ;;  %v19650_v50 = vld [vmem:[#allocation171_spill] sm:$0xff] }
 0x84f   : > { %8332 = vmatprep.subr.bf16.mxu0 %v19601_v58  ;;  %8373 = vmatprep.subr.bf16.mxu1 %v19602_v61  ;;  %v19651_v58 = vld [vmem:[#allocation172_spill] sm:$0xff]  ;;  %v19652_v61 = vld [vmem:[#allocation173_spill] sm:$0xff] }
 0x850   : > { %8362 = vmatprep.mubr.bf16.mxu0 %v18763_v29  ;;  %8403 = vmatprep.mubr.bf16.mxu1 %v18763_v29 }
 0x852   : > { %8333 = vmatpush1.bf16.msra.mxu0 %v19603_v17  ;;  %8374 = vmatpush1.bf16.msra.mxu1 %v19604_v28  ;;  %v19653_v17 = vld [vmem:[#allocation174_spill] sm:$0xff]  ;;  %v19654_v28 = vld [vmem:[#allocation175_spill] sm:$0xff] }
 0x853   : > { %8334 = vmatprep.subr.bf16.mxu0 %v19605_v3  ;;  %8375 = vmatprep.subr.bf16.mxu1 %v19606_v6  ;;  %v19655_v3 = vld [vmem:[#allocation176_spill] sm:$0xff]  ;;  %v19656_v6 = vld [vmem:[#allocation177_spill] sm:$0xff] }
 0x856   : > { %8335 = vmatpush1.bf16.msra.mxu0 %v19607_v14  ;;  %8376 = vmatpush1.bf16.msra.mxu1 %v19608_v45  ;;  %v19657_v14 = vld [vmem:[#allocation178_spill] sm:$0xff]  ;;  %v19658_v45 = vld [vmem:[#allocation179_spill] sm:$0xff] }
 0x857   : > { %8336 = vmatprep.subr.bf16.mxu0 %v19609_v46  ;;  %8377 = vmatprep.subr.bf16.mxu1 %v19610_v49  ;;  %v19659_v46 = vld [vmem:[#allocation180_spill] sm:$0xff]  ;;  %v19660_v49 = vld [vmem:[#allocation181_spill] sm:$0xff] }
 0x85a   : > { %8337 = vmatpush1.bf16.msra.mxu0 %v19611_v1  ;;  %8378 = vmatpush1.bf16.msra.mxu1 %v19612_v53  ;;  %v19661_v1 = vld [vmem:[#allocation182_spill] sm:$0xff]  ;;  %v19662_v53 = vld [vmem:[#allocation183_spill] sm:$0xff] }
 0x85b   : > { %8338 = vmatprep.subr.bf16.mxu0 %v19613_v54  ;;  %8379 = vmatprep.subr.bf16.mxu1 %v19614_v55  ;;  %v19663_v54 = vld [vmem:[#allocation184_spill] sm:$0xff]  ;;  %v19664_v55 = vld [vmem:[#allocation185_spill] sm:$0xff] }
 0x85e   : > { %8339 = vmatpush1.bf16.msra.mxu0 %v19615_v56  ;;  %8380 = vmatpush1.bf16.msra.mxu1 %v19616_v59  ;;  %v19665_v56 = vld [vmem:[#allocation186_spill] sm:$0xff]  ;;  %v19666_v59 = vld [vmem:[#allocation187_spill] sm:$0xff] }
 0x85f   : > { %8340 = vmatprep.subr.bf16.mxu0 %v19617_v60  ;;  %8381 = vmatprep.subr.bf16.mxu1 %v19618_v63  ;;  %v19667_v60 = vld [vmem:[#allocation188_spill] sm:$0xff]  ;;  %v19668_v63 = vld [vmem:[#allocation189_spill] sm:$0xff] }
 0x862   : > { %8341 = vmatpush1.bf16.msra.mxu0 %v19619_v4  ;;  %8382 = vmatpush1.bf16.msra.mxu1 %v19620_v7  ;;  %v19669_v4 = vld [vmem:[#allocation190_spill] sm:$0xff]  ;;  %v19670_v7 = vld [vmem:[#allocation191_spill] sm:$0xff] }
 0x863   : > { %8342 = vmatprep.subr.bf16.mxu0 %v19621_v8  ;;  %8383 = vmatprep.subr.bf16.mxu1 %v19622_v11  ;;  %v19671_v8 = vld [vmem:[#allocation192_spill] sm:$0xff]  ;;  %v19672_v11 = vld [vmem:[#allocation193_spill] sm:$0xff] }
 0x866   : > { %8343 = vmatpush1.bf16.msra.mxu0 %v19623_v12  ;;  %8384 = vmatpush1.bf16.msra.mxu1 %v19624_v20  ;;  %v19673_v12 = vld [vmem:[#allocation194_spill] sm:$0xff]  ;;  %v19674_v20 = vld [vmem:[#allocation195_spill] sm:$0xff] }
 0x867   : > { %8344 = vmatprep.subr.bf16.mxu0 %v19625_v23  ;;  %8385 = vmatprep.subr.bf16.mxu1 %v19626_v24  ;;  %v19675_v23 = vld [vmem:[#allocation196_spill] sm:$0xff]  ;;  %v19676_v24 = vld [vmem:[#allocation197_spill] sm:$0xff] }
 0x86a   : > { %8345 = vmatpush1.bf16.msra.mxu0 %v19627_v2  ;;  %8386 = vmatpush1.bf16.msra.mxu1 %v19628_v27  ;;  %v19677_v2 = vld [vmem:[#allocation198_spill] sm:$0xff]  ;;  %v19678_v27 = vld [vmem:[#allocation199_spill] sm:$0xff] }
 0x86b   : > { %8412 = vmatprep.subr.bf16.mxu0 %v19629_v30  ;;  %8453 = vmatprep.subr.bf16.mxu1 %v19630_v31  ;;  %v19679_v30 = vld [vmem:[#allocation200_spill] sm:$0xff]  ;;  %v19680_v31 = vld [vmem:[#allocation201_spill] sm:$0xff] }
 0x86d   : > { %8363 = vmatmul.mubr.bf16.vlgmr.msra.gmra.mrb[20].mxu0 %v13530_v22  ;;  %8404 = vmatmul.mubr.bf16.vlgmr.msra.gmra.mrb[20].mxu1 %v13530_v22 }
 0x86e   : > { %8413 = vmatpush1.bf16.msra.mxu0 %v19631_v34  ;;  %8454 = vmatpush1.bf16.msra.mxu1 %v19632_v35  ;;  %v19681_v34 = vld [vmem:[#allocation202_spill] sm:$0xff]  ;;  %v19682_v35 = vld [vmem:[#allocation203_spill] sm:$0xff] }
 0x86f   : > { %8414 = vmatprep.subr.bf16.mxu0 %v19633_v36  ;;  %8455 = vmatprep.subr.bf16.mxu1 %v19634_v40  ;;  %v19683_v36 = vld [vmem:[#allocation204_spill] sm:$0xff]  ;;  %v19684_v40 = vld [vmem:[#allocation205_spill] sm:$0xff] }
 0x870   : > { %8444 = vmatprep.mubr.bf16.mxu0 %v18763_v29  ;;  %8485 = vmatprep.mubr.bf16.mxu1 %v18763_v29 }
 0x872   : > { %8415 = vmatpush1.bf16.msra.mxu0 %v19635_v42  ;;  %8456 = vmatpush1.bf16.msra.mxu1 %v19636_v43  ;;  %v19685_v42 = vld [vmem:[#allocation206_spill] sm:$0xff]  ;;  %v19686_v43 = vld [vmem:[#allocation207_spill] sm:$0xff] }
 0x873   : > { %8416 = vmatprep.subr.bf16.mxu0 %v19637_v44  ;;  %8457 = vmatprep.subr.bf16.mxu1 %v19638_v48  ;;  %v19687_v44 = vld [vmem:[#allocation208_spill] sm:$0xff]  ;;  %v19688_v48 = vld [vmem:[#allocation209_spill] sm:$0xff] }
 0x876   : > { %8417 = vmatpush1.bf16.msra.mxu0 %v19639_v51  ;;  %8458 = vmatpush1.bf16.msra.mxu1 %v19640_v52  ;;  %v19689_v51 = vld [vmem:[#allocation210_spill] sm:$0xff]  ;;  %v19690_v52 = vld [vmem:[#allocation211_spill] sm:$0xff] }
 0x877   : > { %8418 = vmatprep.subr.bf16.mxu0 %v19641_v57  ;;  %8459 = vmatprep.subr.bf16.mxu1 %v19642_v5  ;;  %v19691_v57 = vld [vmem:[#allocation212_spill] sm:$0xff]  ;;  %v19692_v5 = vld [vmem:[#allocation213_spill] sm:$0xff] }
 0x87a   : > { %8419 = vmatpush1.bf16.msra.mxu0 %v19643_v9  ;;  %8460 = vmatpush1.bf16.msra.mxu1 %v19644_v10  ;;  %v19693_v9 = vld [vmem:[#allocation214_spill] sm:$0xff]  ;;  %v19694_v10 = vld [vmem:[#allocation215_spill] sm:$0xff] }
 0x87b   : > { %8420 = vmatprep.subr.bf16.mxu0 %v19645_v13  ;;  %8461 = vmatprep.subr.bf16.mxu1 %v19646_v0  ;;  %v19695_v13 = vld [vmem:[#allocation216_spill] sm:$0xff]  ;;  %v19696_v0 = vld [vmem:[#allocation217_spill] sm:$0xff] }
 0x87e   : > { %8421 = vmatpush1.bf16.msra.mxu0 %v19647_v37  ;;  %8462 = vmatpush1.bf16.msra.mxu1 %v19648_v38  ;;  %v19697_v37 = vld [vmem:[#allocation218_spill] sm:$0xff]  ;;  %v19698_v38 = vld [vmem:[#allocation219_spill] sm:$0xff] }
 0x87f   : > { %8422 = vmatprep.subr.bf16.mxu0 %v19649_v47  ;;  %8463 = vmatprep.subr.bf16.mxu1 %v19650_v50  ;;  %v19699_v47 = vld [vmem:[#allocation220_spill] sm:$0xff]  ;;  %v19700_v50 = vld [vmem:[#allocation221_spill] sm:$0xff] }
 0x882   : > { %8423 = vmatpush1.bf16.msra.mxu0 %v19651_v58  ;;  %8464 = vmatpush1.bf16.msra.mxu1 %v19652_v61  ;;  %v19701_v58 = vld [vmem:[#allocation222_spill] sm:$0xff]  ;;  %v19702_v61 = vld [vmem:[#allocation223_spill] sm:$0xff] }
 0x883   : > { %8424 = vmatprep.subr.bf16.mxu0 %v19653_v17  ;;  %8465 = vmatprep.subr.bf16.mxu1 %v19654_v28  ;;  %v19703_v17 = vld [vmem:[#allocation224_spill] sm:$0xff]  ;;  %v19704_v28 = vld [vmem:[#allocation225_spill] sm:$0xff] }
 0x886   : > { %8425 = vmatpush1.bf16.msra.mxu0 %v19655_v3  ;;  %8466 = vmatpush1.bf16.msra.mxu1 %v19656_v6  ;;  %v19705_v3 = vld [vmem:[#allocation226_spill] sm:$0xff]  ;;  %v19706_v6 = vld [vmem:[#allocation227_spill] sm:$0xff] }
 0x887   : > { %8426 = vmatprep.subr.bf16.mxu0 %v19657_v14  ;;  %8467 = vmatprep.subr.bf16.mxu1 %v19658_v45  ;;  %v12932_v14 = vmov 1966171168  }
 0x888   : > { %v10243_v45 = vunpack.c.l.s4 %v12932_v14  ;;  %v19740_v14 = vld [vmem:[#allocation260_spill] sm:$0xff] }
 0x88a   : > { %8427 = vmatpush1.bf16.msra.mxu0 %v19659_v46  ;;  %8468 = vmatpush1.bf16.msra.mxu1 %v19660_v49  ;;  %v19707_v46 = vld [vmem:[#allocation228_spill] sm:$0xff]  ;;  %v19708_v49 = vld [vmem:[#allocation229_spill] sm:$0xff] }
 0x88b   : > { %8494 = vmatprep.subr.bf16.mxu0 %v19661_v1  ;;  %8535 = vmatprep.subr.bf16.mxu1 %v19662_v53  ;;  %v19709_v1 = vld [vmem:[#allocation230_spill] sm:$0xff]  ;;  %v19710_v53 = vld [vmem:[#allocation231_spill] sm:$0xff] }
 0x88d   : > { %8445 = vmatmul.mubr.bf16.vlgmr.msra.gmra.mrb[24].mxu0 %v13530_v22  ;;  %8486 = vmatmul.mubr.bf16.vlgmr.msra.gmra.mrb[24].mxu1 %v13530_v22 }
 0x88e   : > { %8495 = vmatpush1.bf16.msra.mxu0 %v19663_v54  ;;  %8536 = vmatpush1.bf16.msra.mxu1 %v19664_v55  ;;  %v10244_v54 = vunpack.c.0.s8 %v10243_v45  ;;  %v19711_v55 = vld [vmem:[#allocation232_spill] sm:$0xff]  ;;  %v19741_v45 = vld [vmem:[#allocation261_spill] sm:$0xff] }
 0x88f   : > { %8496 = vmatprep.subr.bf16.mxu0 %v19665_v56  ;;  %8537 = vmatprep.subr.bf16.mxu1 %v19666_v59  ;;  %v19712_v56 = vld [vmem:[#allocation233_spill] sm:$0xff]  ;;  %v19713_v59 = vld [vmem:[#allocation234_spill] sm:$0xff] }
 0x890   : > { %8526 = vmatprep.mubr.bf16.mxu0 %v18763_v29  ;;  %8567 = vmatprep.mubr.bf16.mxu1 %v18763_v29 }
 0x892   : > { %8497 = vmatpush1.bf16.msra.mxu0 %v19667_v60  ;;  %8538 = vmatpush1.bf16.msra.mxu1 %v19668_v63  ;;  %v19714_v60 = vld [vmem:[#allocation235_spill] sm:$0xff]  ;;  %v19715_v63 = vld [vmem:[#allocation30_spill] sm:$0xff] }
 0x893   : > { %8498 = vmatprep.subr.bf16.mxu0 %v19669_v4  ;;  %8539 = vmatprep.subr.bf16.mxu1 %v19670_v7  ;;  %v17100_v4 = vsub.s32 %v10244_v54, %v19715_v63  ;;  %v19746_v54 = vld [vmem:[#allocation266_spill] sm:$0xff] }
 0x896   : > { %8499 = vmatpush1.bf16.msra.mxu0 %v19671_v8  ;;  %8540 = vmatpush1.bf16.msra.mxu1 %v19672_v11 }
 0x897   : > { %8500 = vmatprep.subr.bf16.mxu0 %v19673_v12  ;;  %8541 = vmatprep.subr.bf16.mxu1 %v19674_v20 }
 0x89a   : > { %8501 = vmatpush1.bf16.msra.mxu0 %v19675_v23  ;;  %8542 = vmatpush1.bf16.msra.mxu1 %v19676_v24 }
 0x89b   : > { %8502 = vmatprep.subr.bf16.mxu0 %v19677_v2  ;;  %8543 = vmatprep.subr.bf16.mxu1 %v19678_v27  ;;  %v19716_v27 = vld [vmem:[#allocation236_spill] sm:$0xff] }
 0x89e   : > { %8503 = vmatpush1.bf16.msra.mxu0 %v19679_v30  ;;  %8544 = vmatpush1.bf16.msra.mxu1 %v19680_v31  ;;  %v19717_v30 = vld [vmem:[#allocation237_spill] sm:$0xff] }
 0x89f   : > { %8504 = vmatprep.subr.bf16.mxu0 %v19681_v34  ;;  %8545 = vmatprep.subr.bf16.mxu1 %v19682_v35  ;;  %v19718_v35 = vld [vmem:[#allocation238_spill] sm:$0xff] }
 0x8a2   : > { %8505 = vmatpush1.bf16.msra.mxu0 %v19683_v36  ;;  %8546 = vmatpush1.bf16.msra.mxu1 %v19684_v40  ;;  %v19719_v36 = vld [vmem:[#allocation239_spill] sm:$0xff] }
 0x8a3   : > { %8506 = vmatprep.subr.bf16.mxu0 %v19685_v42  ;;  %8547 = vmatprep.subr.bf16.mxu1 %v19686_v43 }
 0x8a6   : > { %8507 = vmatpush1.bf16.msra.mxu0 %v19687_v44  ;;  %8548 = vmatpush1.bf16.msra.mxu1 %v19688_v48  ;;  %v19720_v44 = vld [vmem:[#allocation240_spill] sm:$0xff]  ;;  %v19721_v48 = vld [vmem:[#allocation241_spill] sm:$0xff] }
 0x8a7   : > { %8508 = vmatprep.subr.bf16.mxu0 %v19689_v51  ;;  %8549 = vmatprep.subr.bf16.mxu1 %v19690_v52  ;;  %v19722_v51 = vld [vmem:[#allocation242_spill] sm:$0xff]  ;;  %v19723_v52 = vld [vmem:[#allocation243_spill] sm:$0xff] }
 0x8aa   : > { %8509 = vmatpush1.bf16.msra.mxu0 %v19691_v57  ;;  %8550 = vmatpush1.bf16.msra.mxu1 %v19692_v5  ;;  %v19724_v57 = vld [vmem:[#allocation244_spill] sm:$0xff]  ;;  %v19725_v5 = vld [vmem:[#allocation245_spill] sm:$0xff] }
 0x8ab   : > { %8576 = vmatprep.subr.bf16.mxu0 %v19693_v9  ;;  %8617 = vmatprep.subr.bf16.mxu1 %v19694_v10  ;;  %v19726_v9 = vld [vmem:[#allocation246_spill] sm:$0xff]  ;;  %v19727_v10 = vld [vmem:[#allocation247_spill] sm:$0xff] }
 0x8ad   : > { %8527 = vmatmul.mubr.bf16.vlgmr.msra.gmra.mrb[28].mxu0 %v13530_v22  ;;  %8568 = vmatmul.mubr.bf16.vlgmr.msra.gmra.mrb[28].mxu1 %v13530_v22 }
 0x8ae   : > { %8577 = vmatpush1.bf16.msra.mxu0 %v19695_v13  ;;  %8618 = vmatpush1.bf16.msra.mxu1 %v19696_v0  ;;  %v19728_v13 = vld [vmem:[#allocation248_spill] sm:$0xff]  ;;  %v19729_v0 = vld [vmem:[#allocation249_spill] sm:$0xff] }
 0x8af   : > { %8578 = vmatprep.subr.bf16.mxu0 %v19697_v37  ;;  %8619 = vmatprep.subr.bf16.mxu1 %v19698_v38  ;;  %v19730_v37 = vld [vmem:[#allocation250_spill] sm:$0xff]  ;;  %v19731_v38 = vld [vmem:[#allocation251_spill] sm:$0xff] }
 0x8b0   : > { %8608 = vmatprep.mubr.bf16.mxu0 %v18763_v29  ;;  %8649 = vmatprep.mubr.bf16.mxu1 %v18763_v29 }
 0x8b2   : > { %8579 = vmatpush1.bf16.msra.mxu0 %v19699_v47  ;;  %8620 = vmatpush1.bf16.msra.mxu1 %v19700_v50  ;;  %v19732_v47 = vld [vmem:[#allocation252_spill] sm:$0xff]  ;;  %v19733_v50 = vld [vmem:[#allocation253_spill] sm:$0xff] }
 0x8b3   : > { %8580 = vmatprep.subr.bf16.mxu0 %v19701_v58  ;;  %8621 = vmatprep.subr.bf16.mxu1 %v19702_v61  ;;  %v19734_v58 = vld [vmem:[#allocation254_spill] sm:$0xff]  ;;  %v19735_v61 = vld [vmem:[#allocation255_spill] sm:$0xff] }
 0x8b6   : > { %8581 = vmatpush1.bf16.msra.mxu0 %v19703_v17  ;;  %8622 = vmatpush1.bf16.msra.mxu1 %v19704_v28  ;;  %v19736_v17 = vld [vmem:[#allocation256_spill] sm:$0xff]  ;;  %v19737_v28 = vld [vmem:[#allocation257_spill] sm:$0xff] }
 0x8b7   : > { %8582 = vmatprep.subr.bf16.mxu0 %v19705_v3  ;;  %8623 = vmatprep.subr.bf16.mxu1 %v19706_v6  ;;  %v19738_v3 = vld [vmem:[#allocation258_spill] sm:$0xff]  ;;  %v19739_v6 = vld [vmem:[#allocation259_spill] sm:$0xff] }
 0x8ba   : > { %8583 = vmatpush1.bf16.msra.mxu0 %v19707_v46  ;;  %8624 = vmatpush1.bf16.msra.mxu1 %v19708_v49  ;;  %v19742_v46 = vld [vmem:[#allocation262_spill] sm:$0xff]  ;;  %v19743_v49 = vld [vmem:[#allocation263_spill] sm:$0xff] }
 0x8bb   : > { %8584 = vmatprep.subr.bf16.mxu0 %v19709_v1  ;;  %8625 = vmatprep.subr.bf16.mxu1 %v19710_v53  ;;  %v19744_v1 = vld [vmem:[#allocation264_spill] sm:$0xff]  ;;  %v19745_v53 = vld [vmem:[#allocation265_spill] sm:$0xff] }
 0x8be   : > { %8585 = vmatpush1.bf16.msra.mxu0 %v19711_v55  ;;  %8626 = vmatpush1.bf16.msra.mxu1 %v19712_v56  ;;  %v19747_v55 = vld [vmem:[#allocation267_spill] sm:$0xff] }
 0x8bf   : > { %8586 = vmatprep.subr.bf16.mxu0 %v19713_v59  ;;  %8627 = vmatprep.subr.bf16.mxu1 %v19714_v60 }
 0x8c0   : > { %v8036_v7 = vpop.f32.mrb[4].mxu0  ;;  %v8077_v8 = vpop.f32.mrb[4].mxu1 }
 0x8c1   : > { %v8038_v11 = vpop.f32.mrb[5].mxu0  ;;  %v8079_v12 = vpop.f32.mrb[5].mxu1 }
 0x8c2   : > { %v10238_v20 = vcombine.low %v8036_v7, %v8038_v11  ;;  %v10239_v23 = vcombine.low %v8077_v8, %v8079_v12  ;;  %v8040_v24 = vpop.f32.mrb[6].mxu0  ;;  %v8081_v2 = vpop.f32.mrb[6].mxu1  ;;  %8587 = vmatpush1.bf16.msra.mxu0 %v19716_v27  ;;  %8628 = vmatpush1.bf16.msra.mxu1 %v19717_v30  ;;  %v19750_v27 = vld [vmem:[#allocation270_spill] sm:$0xff]  ;;  %v19751_v30 = vld [vmem:[#allocation271_spill] sm:$0xff] }
 0x8c3   : > { %v8041_v31 = vpop.f32.mrb[7].mxu0  ;;  %v8082_v34 = vpop.f32.mrb[7].mxu1  ;;  %8588 = vmatprep.subr.bf16.mxu0 %v19718_v35  ;;  %8629 = vmatprep.subr.bf16.mxu1 %v19719_v36  ;;  %v19752_v36 = vld [vmem:[#allocation272_spill] sm:$0xff] }
 0x8c4   : > { %v10248_v40 = vrot.slane %v10238_v20, %v17100_v4  ;;  %v10255_v42 = vrot.slane %v10239_v23, %v17100_v4  ;;  %v19748_v20 = vld [vmem:[#allocation268_spill] sm:$0xff]  ;;  %v19749_v23 = vld [vmem:[#allocation269_spill] sm:$0xff] }
 0x8c6   : > { %v10270_v43 = vcombine.low %v10248_v40, %v10255_v42  ;;  %8589 = vmatpush1.bf16.msra.mxu0 %v19720_v44  ;;  %8630 = vmatpush1.bf16.msra.mxu1 %v19721_v48  ;;  %v19753_v40 = vld [vmem:[#allocation273_spill] sm:$0xff]  ;;  %v19754_v42 = vld [vmem:[#allocation274_spill] sm:$0xff]  ;;  %v19755_v44 = vld [vmem:[#allocation275_spill] sm:$0xff] }
 0x8c7   : > { %8590 = vmatprep.subr.bf16.mxu0 %v19722_v51  ;;  %8631 = vmatprep.subr.bf16.mxu1 %v19723_v52 }
 0x8c8   : > { %v10278_v48 = vrot.slane %v10270_v43, %v17100_v4  ;;  %v19760_v43 = vld [vmem:[#allocation280_spill] sm:$0xff] }
 0x8ca   : > { %8591 = vmatpush1.bf16.msra.mxu0 %v19724_v57  ;;  %8632 = vmatpush1.bf16.msra.mxu1 %v19725_v5  ;;  %v19756_v57 = vld [vmem:[#allocation276_spill] sm:$0xff]  ;;  %v19757_v5 = vld [vmem:[#allocation277_spill] sm:$0xff] }
 0x8cb   : > { %8658 = vmatprep.subr.bf16.mxu0 %v19726_v9  ;;  %8699 = vmatprep.subr.bf16.mxu1 %v19727_v10  ;;  %v19758_v9 = vld [vmem:[#allocation278_spill] sm:$0xff]  ;;  %v19759_v10 = vld [vmem:[#allocation279_spill] sm:$0xff] }
 0x8cd   : > { %8609 = vmatmul.mubr.bf16.vlgmr.msra.gmra.mrb[32].mxu0 %v13530_v22  ;;  %8650 = vmatmul.mubr.bf16.vlgmr.msra.gmra.mrb[32].mxu1 %v13530_v22 }
 0x8ce   : > { %8659 = vmatpush1.bf16.msra.mxu0 %v19728_v13  ;;  %8700 = vmatpush1.bf16.msra.mxu1 %v19729_v0  ;;  %v19761_v13 = vld [vmem:[#allocation281_spill] sm:$0xff]  ;;  %v19762_v0 = vld [vmem:[#allocation282_spill] sm:$0xff] }
 0x8cf   : > { %8660 = vmatprep.subr.bf16.mxu0 %v19730_v37  ;;  %8701 = vmatprep.subr.bf16.mxu1 %v19731_v38  ;;  %v19763_v37 = vld [vmem:[#allocation283_spill] sm:$0xff]  ;;  %v19764_v38 = vld [vmem:[#allocation284_spill] sm:$0xff] }
 0x8d0   : > { %8690 = vmatprep.mubr.bf16.mxu0 %v18763_v29  ;;  %8731 = vmatprep.mubr.bf16.mxu1 %v18763_v29 }
 0x8d2   : > { %8661 = vmatpush1.bf16.msra.mxu0 %v19732_v47  ;;  %8702 = vmatpush1.bf16.msra.mxu1 %v19733_v50  ;;  %v19765_v47 = vld [vmem:[#allocation285_spill] sm:$0xff]  ;;  %v19766_v50 = vld [vmem:[#allocation286_spill] sm:$0xff] }
 0x8d3   : > { %8662 = vmatprep.subr.bf16.mxu0 %v19734_v58  ;;  %8703 = vmatprep.subr.bf16.mxu1 %v19735_v61  ;;  %v19767_v58 = vld [vmem:[#allocation287_spill] sm:$0xff]  ;;  %v19768_v61 = vld [vmem:[#allocation288_spill] sm:$0xff] }
 0x8d6   : > { %8663 = vmatpush1.bf16.msra.mxu0 %v19736_v17  ;;  %8704 = vmatpush1.bf16.msra.mxu1 %v19737_v28  ;;  %v19769_v17 = vld [vmem:[#allocation289_spill] sm:$0xff]  ;;  %v19770_v28 = vld [vmem:[#allocation290_spill] sm:$0xff] }
 0x8d7   : > { %8664 = vmatprep.subr.bf16.mxu0 %v19738_v3  ;;  %8705 = vmatprep.subr.bf16.mxu1 %v19739_v6  ;;  %v19771_v3 = vld [vmem:[#allocation291_spill] sm:$0xff]  ;;  %v19772_v6 = vld [vmem:[#allocation292_spill] sm:$0xff] }
 0x8da   : > { %8665 = vmatpush1.bf16.msra.mxu0 %v19740_v14  ;;  %8706 = vmatpush1.bf16.msra.mxu1 %v19741_v45  ;;  %v19773_v14 = vld [vmem:[#allocation293_spill] sm:$0xff]  ;;  %v19774_v45 = vld [vmem:[#allocation294_spill] sm:$0xff] }
 0x8db   : > { %8666 = vmatprep.subr.bf16.mxu0 %v19742_v46  ;;  %8707 = vmatprep.subr.bf16.mxu1 %v19743_v49  ;;  %v19775_v46 = vld [vmem:[#allocation295_spill] sm:$0xff]  ;;  %v19776_v49 = vld [vmem:[#allocation296_spill] sm:$0xff] }
 0x8de   : > { %8667 = vmatpush1.bf16.msra.mxu0 %v19744_v1  ;;  %8708 = vmatpush1.bf16.msra.mxu1 %v19745_v53  ;;  %v19777_v1 = vld [vmem:[#allocation297_spill] sm:$0xff]  ;;  %v19778_v53 = vld [vmem:[#allocation298_spill] sm:$0xff] }
 0x8df   : > { %8668 = vmatprep.subr.bf16.mxu0 %v19746_v54  ;;  %8709 = vmatprep.subr.bf16.mxu1 %v19747_v55  ;;  %v19779_v54 = vld [vmem:[#allocation299_spill] sm:$0xff] }
 0x8e0   : > { %v8118_v56 = vpop.f32.mrb[8].mxu0  ;;  %v8159_v59 = vpop.f32.mrb[8].mxu1 }
 0x8e1   : > { %v8120_v60 = vpop.f32.mrb[9].mxu0  ;;  %v8161_v63 = vpop.f32.mrb[9].mxu1 }
 0x8e2   : > { %v10240_v7 = vcombine.low %v8118_v56, %v8120_v60  ;;  %v10241_v8 = vcombine.low %v8159_v59, %v8161_v63  ;;  %v8122_v11 = vpop.f32.mrb[10].mxu0  ;;  %v8163_v12 = vpop.f32.mrb[10].mxu1  ;;  %8669 = vmatpush1.bf16.msra.mxu0 %v19748_v20  ;;  %8710 = vmatpush1.bf16.msra.mxu1 %v19749_v23  ;;  %v19781_v20 = vld [vmem:[#allocation301_spill] sm:$0xff] }
 0x8e3   : > { %v8123_v24 = vpop.f32.mrb[11].mxu0  ;;  %v8164_v2 = vpop.f32.mrb[11].mxu1  ;;  %8670 = vmatprep.subr.bf16.mxu0 %v19750_v27  ;;  %8711 = vmatprep.subr.bf16.mxu1 %v19751_v30  ;;  %v19780_v12 = vld [vmem:[#allocation300_spill] sm:$0xff]  ;;  %v19783_v27 = vld [vmem:[#allocation303_spill] sm:$0xff] }
 0x8e4   : > { %v10262_v31 = vrot.slane %v10240_v7, %v17100_v4  ;;  %v10269_v34 = vrot.slane %v10241_v8, %v17100_v4  ;;  %v19782_v2 = vld [vmem:[#allocation302_spill] sm:$0xff] }
 0x8e6   : > { %v10271_v35 = vcombine.low %v10262_v31, %v10269_v34  ;;  %8671 = vmatpush1.bf16.msra.mxu0 %v19752_v36  ;;  %8712 = vmatpush1.bf16.msra.mxu1 %v19753_v40  ;;  %v19785_v36 = vld [vmem:[#allocation305_spill] sm:$0xff]  ;;  %v19786_v40 = vld [vmem:[#allocation306_spill] sm:$0xff] }
 0x8e7   : > { %8672 = vmatprep.subr.bf16.mxu0 %v19754_v42  ;;  %8713 = vmatprep.subr.bf16.mxu1 %v19755_v44  ;;  %v19787_v42 = vld [vmem:[#allocation307_spill] sm:$0xff]  ;;  %v19788_v44 = vld [vmem:[#allocation308_spill] sm:$0xff] }
 0x8e8   : > { %v10285_v51 = vrot.slane %v10271_v35, %v17100_v4  ;;  %v19784_v35 = vld [vmem:[#allocation304_spill] sm:$0xff] }
 0x8ea   : > { %v10286_v52 = vcombine.low %v10278_v48, %v10285_v51  ;;  %8673 = vmatpush1.bf16.msra.mxu0 %v19756_v57  ;;  %8714 = vmatpush1.bf16.msra.mxu1 %v19757_v5  ;;  %v19789_v48 = vld [vmem:[#allocation309_spill] sm:$0xff]  ;;  %v19790_v51 = vld [vmem:[#allocation310_spill] sm:$0xff]  ;;  %v19792_v57 = vld [vmem:[#allocation312_spill] sm:$0xff] }
 0x8eb   : > { %8740 = vmatprep.subr.bf16.mxu0 %v19758_v9  ;;  %8781 = vmatprep.subr.bf16.mxu1 %v19759_v10  ;;  %v19793_v5 = vld [vmem:[#allocation313_spill] sm:$0xff]  ;;  %v19794_v9 = vld [vmem:[#allocation314_spill] sm:$0xff]  ;;  %v19795_v10 = vld [vmem:[#allocation315_spill] sm:$0xff] }
 0x8ec   : > { %10888 = vst [vmem:[%s17157_s30] sm:$0xff] %v10286_v52  ;;  %v19791_v52 = vld [vmem:[#allocation311_spill] sm:$0xff] }
 0x8ed   : > { %8691 = vmatmul.mubr.bf16.vlgmr.msra.gmra.mrb[36].mxu0 %v13530_v22  ;;  %8732 = vmatmul.mubr.bf16.vlgmr.msra.gmra.mrb[36].mxu1 %v13530_v22 }
 0x8ee   : > { %8741 = vmatpush1.bf16.msra.mxu0 %v19760_v43  ;;  %8782 = vmatpush1.bf16.msra.mxu1 %v19761_v13  ;;  %v19796_v43 = vld [vmem:[#allocation316_spill] sm:$0xff]  ;;  %v19797_v13 = vld [vmem:[#allocation317_spill] sm:$0xff] }
 0x8ef   : > { %8742 = vmatprep.subr.bf16.mxu0 %v19762_v0  ;;  %8783 = vmatprep.subr.bf16.mxu1 %v19763_v37  ;;  %v19798_v0 = vld [vmem:[#allocation318_spill] sm:$0xff]  ;;  %v19799_v37 = vld [vmem:[#allocation319_spill] sm:$0xff] }
 0x8f0   : > { %8772 = vmatprep.mubr.bf16.mxu0 %v18763_v29  ;;  %8813 = vmatprep.mubr.bf16.mxu1 %v18763_v29 }
 0x8f2   : > { %8743 = vmatpush1.bf16.msra.mxu0 %v19764_v38  ;;  %8784 = vmatpush1.bf16.msra.mxu1 %v19765_v47  ;;  %v19800_v38 = vld [vmem:[#allocation320_spill] sm:$0xff]  ;;  %v19801_v47 = vld [vmem:[#allocation321_spill] sm:$0xff] }
 0x8f3   : > { %8744 = vmatprep.subr.bf16.mxu0 %v19766_v50  ;;  %8785 = vmatprep.subr.bf16.mxu1 %v19767_v58  ;;  %v19802_v50 = vld [vmem:[#allocation322_spill] sm:$0xff]  ;;  %v19803_v58 = vld [vmem:[#allocation323_spill] sm:$0xff] }
 0x8f6   : > { %8745 = vmatpush1.bf16.msra.mxu0 %v19768_v61  ;;  %8786 = vmatpush1.bf16.msra.mxu1 %v19769_v17  ;;  %v19804_v61 = vld [vmem:[#allocation324_spill] sm:$0xff]  ;;  %v19805_v17 = vld [vmem:[#allocation325_spill] sm:$0xff] }
 0x8f7   : > { %8746 = vmatprep.subr.bf16.mxu0 %v19770_v28  ;;  %8787 = vmatprep.subr.bf16.mxu1 %v19771_v3  ;;  %v19806_v28 = vld [vmem:[#allocation326_spill] sm:$0xff]  ;;  %v19807_v3 = vld [vmem:[#allocation327_spill] sm:$0xff] }
 0x8fa   : > { %8747 = vmatpush1.bf16.msra.mxu0 %v19772_v6  ;;  %8788 = vmatpush1.bf16.msra.mxu1 %v19773_v14  ;;  %v19808_v6 = vld [vmem:[#allocation328_spill] sm:$0xff]  ;;  %v19809_v14 = vld [vmem:[#allocation329_spill] sm:$0xff] }
 0x8fb   : > { %8748 = vmatprep.subr.bf16.mxu0 %v19774_v45  ;;  %8789 = vmatprep.subr.bf16.mxu1 %v19775_v46  ;;  %v19810_v45 = vld [vmem:[#allocation330_spill] sm:$0xff]  ;;  %v19811_v46 = vld [vmem:[#allocation331_spill] sm:$0xff] }
 0x8fe   : > { %8749 = vmatpush1.bf16.msra.mxu0 %v19776_v49  ;;  %8790 = vmatpush1.bf16.msra.mxu1 %v19777_v1 }
 0x8ff   : > { %8750 = vmatprep.subr.bf16.mxu0 %v19778_v53  ;;  %8791 = vmatprep.subr.bf16.mxu1 %v19779_v54 }
 0x900   : > { %v8200_v55 = vpop.f32.mrb[12].mxu0  ;;  %v8241_v56 = vpop.f32.mrb[12].mxu1 }
 0x901   : > { %v8202_v59 = vpop.f32.mrb[13].mxu0  ;;  %v8243_v60 = vpop.f32.mrb[13].mxu1 }
 0x902   : > { %v10287_v63 = vcombine.low %v8200_v55, %v8202_v59  ;;  %v10288_v7 = vcombine.low %v8241_v56, %v8243_v60  ;;  %v8204_v8 = vpop.f32.mrb[14].mxu0  ;;  %v8245_v11 = vpop.f32.mrb[14].mxu1  ;;  %8751 = vmatpush1.bf16.msra.mxu0 %v19780_v12  ;;  %8792 = vmatpush1.bf16.msra.mxu1 %v19781_v20  ;;  %v19814_v12 = vld [vmem:[#allocation334_spill] sm:$0xff]  ;;  %v19815_v20 = vld [vmem:[#allocation335_spill] sm:$0xff] }
 0x903   : > { %v8205_v23 = vpop.f32.mrb[15].mxu0  ;;  %v8246_v24 = vpop.f32.mrb[15].mxu1  ;;  %8752 = vmatprep.subr.bf16.mxu0 %v19782_v2  ;;  %8793 = vmatprep.subr.bf16.mxu1 %v19783_v27  ;;  %v19816_v27 = vld [vmem:[#allocation336_spill] sm:$0xff] }
 0x904   : > { %v10297_v30 = vrot.slane %v10287_v63, %v17100_v4  ;;  %v10304_v31 = vrot.slane %v10288_v7, %v17100_v4  ;;  %v19812_v63 = vld [vmem:[#allocation332_spill] sm:$0xff]  ;;  %v19813_v7 = vld [vmem:[#allocation333_spill] sm:$0xff] }
 0x906   : > { %v10319_v34 = vcombine.low %v10297_v30, %v10304_v31  ;;  %8753 = vmatpush1.bf16.msra.mxu0 %v19784_v35  ;;  %8794 = vmatpush1.bf16.msra.mxu1 %v19785_v36  ;;  %v19817_v30 = vld [vmem:[#allocation337_spill] sm:$0xff]  ;;  %v19818_v31 = vld [vmem:[#allocation338_spill] sm:$0xff]  ;;  %v19819_v35 = vld [vmem:[#allocation339_spill] sm:$0xff] }
 0x907   : > { %8754 = vmatprep.subr.bf16.mxu0 %v19786_v40  ;;  %8795 = vmatprep.subr.bf16.mxu1 %v19787_v42 }
 0x908   : > { %v10327_v36 = vrot.slane %v10319_v34, %v17100_v4  ;;  %v19826_v34 = vld [vmem:[#allocation346_spill] sm:$0xff] }
 0x90a   : > { %8755 = vmatpush1.bf16.msra.mxu0 %v19788_v44  ;;  %8796 = vmatpush1.bf16.msra.mxu1 %v19789_v48  ;;  %v19820_v44 = vld [vmem:[#allocation340_spill] sm:$0xff]  ;;  %v19821_v48 = vld [vmem:[#allocation341_spill] sm:$0xff] }
 0x90b   : > { %8822 = vmatprep.subr.bf16.mxu0 %v19790_v51  ;;  %8863 = vmatprep.subr.bf16.mxu1 %v19791_v52  ;;  %v19822_v51 = vld [vmem:[#allocation342_spill] sm:$0xff]  ;;  %v19823_v52 = vld [vmem:[#allocation343_spill] sm:$0xff] }
 0x90d   : > { %8773 = vmatmul.mubr.bf16.vlgmr.msra.gmra.mrb[40].mxu0 %v13530_v22  ;;  %8814 = vmatmul.mubr.bf16.vlgmr.msra.gmra.mrb[40].mxu1 %v13530_v22 }
 0x90e   : > { %8823 = vmatpush1.bf16.msra.mxu0 %v19792_v57  ;;  %8864 = vmatpush1.bf16.msra.mxu1 %v19793_v5  ;;  %v19824_v57 = vld [vmem:[#allocation344_spill] sm:$0xff]  ;;  %v19825_v5 = vld [vmem:[#allocation345_spill] sm:$0xff] }
 0x90f   : > { %8824 = vmatprep.subr.bf16.mxu0 %v19794_v9  ;;  %8865 = vmatprep.subr.bf16.mxu1 %v19795_v10  ;;  %v19827_v9 = vld [vmem:[#allocation347_spill] sm:$0xff]  ;;  %v19828_v10 = vld [vmem:[#allocation348_spill] sm:$0xff] }
 0x910   : > { %8854 = vmatprep.mubr.bf16.mxu0 %v18763_v29  ;;  %8895 = vmatprep.mubr.bf16.mxu1 %v18763_v29 }
 0x912   : > { %8825 = vmatpush1.bf16.msra.mxu0 %v19796_v43  ;;  %8866 = vmatpush1.bf16.msra.mxu1 %v19797_v13  ;;  %v19829_v43 = vld [vmem:[#allocation349_spill] sm:$0xff]  ;;  %v19830_v13 = vld [vmem:[#allocation350_spill] sm:$0xff] }
 0x913   : > { %8826 = vmatprep.subr.bf16.mxu0 %v19798_v0  ;;  %8867 = vmatprep.subr.bf16.mxu1 %v19799_v37  ;;  %v19831_v0 = vld [vmem:[#allocation351_spill] sm:$0xff]  ;;  %v19832_v37 = vld [vmem:[#allocation352_spill] sm:$0xff] }
 0x916   : > { %8827 = vmatpush1.bf16.msra.mxu0 %v19800_v38  ;;  %8868 = vmatpush1.bf16.msra.mxu1 %v19801_v47  ;;  %v19833_v38 = vld [vmem:[#allocation353_spill] sm:$0xff]  ;;  %v19834_v47 = vld [vmem:[#allocation354_spill] sm:$0xff] }
 0x917   : > { %8828 = vmatprep.subr.bf16.mxu0 %v19802_v50  ;;  %8869 = vmatprep.subr.bf16.mxu1 %v19803_v58  ;;  %v19835_v50 = vld [vmem:[#allocation355_spill] sm:$0xff]  ;;  %v19836_v58 = vld [vmem:[#allocation356_spill] sm:$0xff] }
 0x91a   : > { %8829 = vmatpush1.bf16.msra.mxu0 %v19804_v61  ;;  %8870 = vmatpush1.bf16.msra.mxu1 %v19805_v17  ;;  %v19837_v61 = vld [vmem:[#allocation357_spill] sm:$0xff]  ;;  %v19838_v17 = vld [vmem:[#allocation358_spill] sm:$0xff] }
 0x91b   : > { %8830 = vmatprep.subr.bf16.mxu0 %v19806_v28  ;;  %8871 = vmatprep.subr.bf16.mxu1 %v19807_v3  ;;  %v19839_v28 = vld [vmem:[#allocation359_spill] sm:$0xff]  ;;  %v19840_v3 = vld [vmem:[#allocation360_spill] sm:$0xff] }
 0x91e   : > { %8831 = vmatpush1.bf16.msra.mxu0 %v19808_v6  ;;  %8872 = vmatpush1.bf16.msra.mxu1 %v19809_v14  ;;  %v19841_v6 = vld [vmem:[#allocation361_spill] sm:$0xff]  ;;  %v19842_v14 = vld [vmem:[#allocation362_spill] sm:$0xff] }
 0x91f   : > { %8832 = vmatprep.subr.bf16.mxu0 %v19810_v45  ;;  %8873 = vmatprep.subr.bf16.mxu1 %v19811_v46  ;;  %v19843_v45 = vld [vmem:[#allocation363_spill] sm:$0xff] }
 0x920   : > { %v8282_v49 = vpop.f32.mrb[16].mxu0  ;;  %v8323_v1 = vpop.f32.mrb[16].mxu1 }
 0x921   : > { %v8284_v53 = vpop.f32.mrb[17].mxu0  ;;  %v8325_v54 = vpop.f32.mrb[17].mxu1 }
 0x922   : > { %v10289_v55 = vcombine.low %v8282_v49, %v8284_v53  ;;  %v10290_v56 = vcombine.low %v8323_v1, %v8325_v54  ;;  %v8286_v59 = vpop.f32.mrb[18].mxu0  ;;  %v8327_v60 = vpop.f32.mrb[18].mxu1  ;;  %8833 = vmatpush1.bf16.msra.mxu0 %v19812_v63  ;;  %8874 = vmatpush1.bf16.msra.mxu1 %v19813_v7  ;;  %v19845_v63 = vld [vmem:[#allocation365_spill] sm:$0xff] }
 0x923   : > { %v8287_v8 = vpop.f32.mrb[19].mxu0  ;;  %v8328_v11 = vpop.f32.mrb[19].mxu1  ;;  %8834 = vmatprep.subr.bf16.mxu0 %v19814_v12  ;;  %8875 = vmatprep.subr.bf16.mxu1 %v19815_v20  ;;  %v19844_v60 = vld [vmem:[#allocation364_spill] sm:$0xff]  ;;  %v19847_v12 = vld [vmem:[#allocation367_spill] sm:$0xff] }
 0x924   : > { %v10311_v23 = vrot.slane %v10289_v55, %v17100_v4  ;;  %v10318_v24 = vrot.slane %v10290_v56, %v17100_v4  ;;  %v19846_v11 = vld [vmem:[#allocation366_spill] sm:$0xff] }
 0x926   : > { %v10320_v2 = vcombine.low %v10311_v23, %v10318_v24  ;;  %8835 = vmatpush1.bf16.msra.mxu0 %v19816_v27  ;;  %8876 = vmatpush1.bf16.msra.mxu1 %v19817_v30  ;;  %v19849_v27 = vld [vmem:[#allocation369_spill] sm:$0xff]  ;;  %v19850_v30 = vld [vmem:[#allocation370_spill] sm:$0xff] }
 0x927   : > { %8836 = vmatprep.subr.bf16.mxu0 %v19818_v31  ;;  %8877 = vmatprep.subr.bf16.mxu1 %v19819_v35  ;;  %v19851_v31 = vld [vmem:[#allocation371_spill] sm:$0xff]  ;;  %v19852_v35 = vld [vmem:[#allocation372_spill] sm:$0xff] }
 0x928   : > { %v10334_v40 = vrot.slane %v10320_v2, %v17100_v4  ;;  %v19848_v2 = vld [vmem:[#allocation368_spill] sm:$0xff] }
 0x92a   : > { %v10335_v42 = vcombine.low %v10327_v36, %v10334_v40  ;;  %8837 = vmatpush1.bf16.msra.mxu0 %v19820_v44  ;;  %8878 = vmatpush1.bf16.msra.mxu1 %v19821_v48  ;;  %v19853_v36 = vld [vmem:[#allocation373_spill] sm:$0xff]  ;;  %v19854_v40 = vld [vmem:[#allocation374_spill] sm:$0xff]  ;;  %v19856_v44 = vld [vmem:[#allocation376_spill] sm:$0xff] }
 0x92b   : > { %8904 = vmatprep.subr.bf16.mxu0 %v19822_v51  ;;  %8945 = vmatprep.subr.bf16.mxu1 %v19823_v52  ;;  %v19857_v48 = vld [vmem:[#allocation377_spill] sm:$0xff]  ;;  %v19858_v51 = vld [vmem:[#allocation378_spill] sm:$0xff]  ;;  %v19859_v52 = vld [vmem:[#allocation379_spill] sm:$0xff] }
 0x92c   : > { %10889 = vst [vmem:[%s17157_s30 + $0x8] sm:$0xff] %v10335_v42  ;;  %v19855_v42 = vld [vmem:[#allocation375_spill] sm:$0xff] }
 0x92d   : > { %8855 = vmatmul.mubr.bf16.vlgmr.msra.gmra.mrb[44].mxu0 %v13530_v22  ;;  %8896 = vmatmul.mubr.bf16.vlgmr.msra.gmra.mrb[44].mxu1 %v13530_v22 }
 0x92e   : > { %8905 = vmatpush1.bf16.msra.mxu0 %v19824_v57  ;;  %8946 = vmatpush1.bf16.msra.mxu1 %v19825_v5  ;;  %v19860_v57 = vld [vmem:[#allocation380_spill] sm:$0xff]  ;;  %v19861_v5 = vld [vmem:[#allocation381_spill] sm:$0xff] }
 0x92f   : > { %8906 = vmatprep.subr.bf16.mxu0 %v19826_v34  ;;  %8947 = vmatprep.subr.bf16.mxu1 %v19827_v9  ;;  %v19862_v34 = vld [vmem:[#allocation382_spill] sm:$0xff]  ;;  %v19863_v9 = vld [vmem:[#allocation383_spill] sm:$0xff] }
 0x930   : > { %8936 = vmatprep.mubr.bf16.mxu0 %v18763_v29  ;;  %8977 = vmatprep.mubr.bf16.mxu1 %v18763_v29 }
 0x932   : > { %8907 = vmatpush1.bf16.msra.mxu0 %v19828_v10  ;;  %8948 = vmatpush1.bf16.msra.mxu1 %v19829_v43  ;;  %v19864_v10 = vld [vmem:[#allocation384_spill] sm:$0xff]  ;;  %v19865_v43 = vld [vmem:[#allocation385_spill] sm:$0xff] }
 0x933   : > { %8908 = vmatprep.subr.bf16.mxu0 %v19830_v13  ;;  %8949 = vmatprep.subr.bf16.mxu1 %v19831_v0  ;;  %v19866_v13 = vld [vmem:[#allocation386_spill] sm:$0xff]  ;;  %v19867_v0 = vld [vmem:[#allocation387_spill] sm:$0xff] }
 0x936   : > { %8909 = vmatpush1.bf16.msra.mxu0 %v19832_v37  ;;  %8950 = vmatpush1.bf16.msra.mxu1 %v19833_v38  ;;  %v19868_v37 = vld [vmem:[#allocation388_spill] sm:$0xff]  ;;  %v19869_v38 = vld [vmem:[#allocation389_spill] sm:$0xff] }
 0x937   : > { %8910 = vmatprep.subr.bf16.mxu0 %v19834_v47  ;;  %8951 = vmatprep.subr.bf16.mxu1 %v19835_v50  ;;  %v19870_v47 = vld [vmem:[#allocation390_spill] sm:$0xff]  ;;  %v19871_v50 = vld [vmem:[#allocation391_spill] sm:$0xff] }
 0x93a   : > { %8911 = vmatpush1.bf16.msra.mxu0 %v19836_v58  ;;  %8952 = vmatpush1.bf16.msra.mxu1 %v19837_v61  ;;  %v19872_v58 = vld [vmem:[#allocation392_spill] sm:$0xff]  ;;  %v19873_v61 = vld [vmem:[#allocation393_spill] sm:$0xff] }
 0x93b   : > { %8912 = vmatprep.subr.bf16.mxu0 %v19838_v17  ;;  %8953 = vmatprep.subr.bf16.mxu1 %v19839_v28  ;;  %v19874_v17 = vld [vmem:[#allocation394_spill] sm:$0xff]  ;;  %v19875_v28 = vld [vmem:[#allocation395_spill] sm:$0xff] }
 0x93e   : > { %8913 = vmatpush1.bf16.msra.mxu0 %v19840_v3  ;;  %8954 = vmatpush1.bf16.msra.mxu1 %v19841_v6 }
 0x93f   : > { %8914 = vmatprep.subr.bf16.mxu0 %v19842_v14  ;;  %8955 = vmatprep.subr.bf16.mxu1 %v19843_v45 }
 0x940   : > { %v8364_v46 = vpop.f32.mrb[20].mxu0  ;;  %v8405_v49 = vpop.f32.mrb[20].mxu1 }
 0x941   : > { %v8366_v1 = vpop.f32.mrb[21].mxu0  ;;  %v8407_v53 = vpop.f32.mrb[21].mxu1 }
 0x942   : > { %v10336_v54 = vcombine.low %v8364_v46, %v8366_v1  ;;  %v10337_v55 = vcombine.low %v8405_v49, %v8407_v53  ;;  %v8368_v56 = vpop.f32.mrb[22].mxu0  ;;  %v8409_v59 = vpop.f32.mrb[22].mxu1  ;;  %8915 = vmatpush1.bf16.msra.mxu0 %v19844_v60  ;;  %8956 = vmatpush1.bf16.msra.mxu1 %v19845_v63  ;;  %v19878_v60 = vld [vmem:[#allocation398_spill] sm:$0xff]  ;;  %v19879_v63 = vld [vmem:[#allocation399_spill] sm:$0xff] }
 0x943   : > { %v8369_v7 = vpop.f32.mrb[23].mxu0  ;;  %v8410_v8 = vpop.f32.mrb[23].mxu1  ;;  %8916 = vmatprep.subr.bf16.mxu0 %v19846_v11  ;;  %8957 = vmatprep.subr.bf16.mxu1 %v19847_v12  ;;  %v19880_v12 = vld [vmem:[#allocation400_spill] sm:$0xff] }
 0x944   : > { %v10346_v20 = vrot.slane %v10336_v54, %v17100_v4  ;;  %v10353_v23 = vrot.slane %v10337_v55, %v17100_v4  ;;  %v19876_v54 = vld [vmem:[#allocation396_spill] sm:$0xff]  ;;  %v19877_v55 = vld [vmem:[#allocation397_spill] sm:$0xff] }
 0x946   : > { %v10368_v24 = vcombine.low %v10346_v20, %v10353_v23  ;;  %8917 = vmatpush1.bf16.msra.mxu0 %v19848_v2  ;;  %8958 = vmatpush1.bf16.msra.mxu1 %v19849_v27  ;;  %v19881_v20 = vld [vmem:[#allocation401_spill] sm:$0xff]  ;;  %v19882_v23 = vld [vmem:[#allocation402_spill] sm:$0xff]  ;;  %v19883_v2 = vld [vmem:[#allocation403_spill] sm:$0xff] }
 0x947   : > { %8918 = vmatprep.subr.bf16.mxu0 %v19850_v30  ;;  %8959 = vmatprep.subr.bf16.mxu1 %v19851_v31 }
 0x948   : > { %v10376_v27 = vrot.slane %v10368_v24, %v17100_v4  ;;  %v19890_v24 = vld [vmem:[#allocation410_spill] sm:$0xff] }
 0x94a   : > { %8919 = vmatpush1.bf16.msra.mxu0 %v19852_v35  ;;  %8960 = vmatpush1.bf16.msra.mxu1 %v19853_v36  ;;  %v19884_v35 = vld [vmem:[#allocation404_spill] sm:$0xff]  ;;  %v19885_v36 = vld [vmem:[#allocation405_spill] sm:$0xff] }
 0x94b   : > { %8986 = vmatprep.subr.bf16.mxu0 %v19854_v40  ;;  %9027 = vmatprep.subr.bf16.mxu1 %v19855_v42  ;;  %v19886_v40 = vld [vmem:[#allocation406_spill] sm:$0xff]  ;;  %v19887_v42 = vld [vmem:[#allocation407_spill] sm:$0xff] }
 0x94d   : > { %8937 = vmatmul.mubr.bf16.vlgmr.msra.gmra.mrb[48].mxu0 %v13530_v22  ;;  %8978 = vmatmul.mubr.bf16.vlgmr.msra.gmra.mrb[48].mxu1 %v13530_v22 }
 0x94e   : > { %8987 = vmatpush1.bf16.msra.mxu0 %v19856_v44  ;;  %9028 = vmatpush1.bf16.msra.mxu1 %v19857_v48  ;;  %v19888_v44 = vld [vmem:[#allocation408_spill] sm:$0xff]  ;;  %v19889_v48 = vld [vmem:[#allocation409_spill] sm:$0xff] }
 0x94f   : > { %8988 = vmatprep.subr.bf16.mxu0 %v19858_v51  ;;  %9029 = vmatprep.subr.bf16.mxu1 %v19859_v52  ;;  %v19891_v51 = vld [vmem:[#allocation411_spill] sm:$0xff]  ;;  %v19892_v52 = vld [vmem:[#allocation412_spill] sm:$0xff] }
 0x950   : > { %9018 = vmatprep.mubr.bf16.mxu0 %v18763_v29  ;;  %9059 = vmatprep.mubr.bf16.mxu1 %v18763_v29 }
 0x952   : > { %8989 = vmatpush1.bf16.msra.mxu0 %v19860_v57  ;;  %9030 = vmatpush1.bf16.msra.mxu1 %v19861_v5  ;;  %v19893_v57 = vld [vmem:[#allocation413_spill] sm:$0xff]  ;;  %v19894_v5 = vld [vmem:[#allocation414_spill] sm:$0xff] }
 0x953   : > { %8990 = vmatprep.subr.bf16.mxu0 %v19862_v34  ;;  %9031 = vmatprep.subr.bf16.mxu1 %v19863_v9  ;;  %v19895_v34 = vld [vmem:[#allocation415_spill] sm:$0xff]  ;;  %v19896_v9 = vld [vmem:[#allocation416_spill] sm:$0xff] }
 0x956   : > { %8991 = vmatpush1.bf16.msra.mxu0 %v19864_v10  ;;  %9032 = vmatpush1.bf16.msra.mxu1 %v19865_v43  ;;  %v19897_v10 = vld [vmem:[#allocation417_spill] sm:$0xff]  ;;  %v19898_v43 = vld [vmem:[#allocation418_spill] sm:$0xff] }
 0x957   : > { %8992 = vmatprep.subr.bf16.mxu0 %v19866_v13  ;;  %9033 = vmatprep.subr.bf16.mxu1 %v19867_v0  ;;  %v19899_v13 = vld [vmem:[#allocation419_spill] sm:$0xff]  ;;  %v19900_v0 = vld [vmem:[#allocation420_spill] sm:$0xff] }
 0x95a   : > { %8993 = vmatpush1.bf16.msra.mxu0 %v19868_v37  ;;  %9034 = vmatpush1.bf16.msra.mxu1 %v19869_v38  ;;  %v19901_v37 = vld [vmem:[#allocation421_spill] sm:$0xff]  ;;  %v19902_v38 = vld [vmem:[#allocation422_spill] sm:$0xff] }
 0x95b   : > { %8994 = vmatprep.subr.bf16.mxu0 %v19870_v47  ;;  %9035 = vmatprep.subr.bf16.mxu1 %v19871_v50  ;;  %v19903_v47 = vld [vmem:[#allocation423_spill] sm:$0xff]  ;;  %v19904_v50 = vld [vmem:[#allocation424_spill] sm:$0xff] }
 0x95e   : > { %8995 = vmatpush1.bf16.msra.mxu0 %v19872_v58  ;;  %9036 = vmatpush1.bf16.msra.mxu1 %v19873_v61  ;;  %v19905_v58 = vld [vmem:[#allocation425_spill] sm:$0xff]  ;;  %v19906_v61 = vld [vmem:[#allocation426_spill] sm:$0xff] }
 0x95f   : > { %8996 = vmatprep.subr.bf16.mxu0 %v19874_v17  ;;  %9037 = vmatprep.subr.bf16.mxu1 %v19875_v28  ;;  %v19907_v17 = vld [vmem:[#allocation427_spill] sm:$0xff] }
 0x960   : > { %v8446_v3 = vpop.f32.mrb[24].mxu0  ;;  %v8487_v6 = vpop.f32.mrb[24].mxu1 }
 0x961   : > { %v8448_v14 = vpop.f32.mrb[25].mxu0  ;;  %v8489_v45 = vpop.f32.mrb[25].mxu1 }
 0x962   : > { %v10338_v46 = vcombine.low %v8446_v3, %v8448_v14  ;;  %v10339_v49 = vcombine.low %v8487_v6, %v8489_v45  ;;  %v8450_v1 = vpop.f32.mrb[26].mxu0  ;;  %v8491_v53 = vpop.f32.mrb[26].mxu1  ;;  %8997 = vmatpush1.bf16.msra.mxu0 %v19876_v54  ;;  %9038 = vmatpush1.bf16.msra.mxu1 %v19877_v55  ;;  %v19909_v54 = vld [vmem:[#allocation429_spill] sm:$0xff] }
 0x963   : > { %v8451_v56 = vpop.f32.mrb[27].mxu0  ;;  %v8492_v59 = vpop.f32.mrb[27].mxu1  ;;  %8998 = vmatprep.subr.bf16.mxu0 %v19878_v60  ;;  %9039 = vmatprep.subr.bf16.mxu1 %v19879_v63  ;;  %v19908_v53 = vld [vmem:[#allocation428_spill] sm:$0xff]  ;;  %v19911_v60 = vld [vmem:[#allocation431_spill] sm:$0xff] }
 0x964   : > { %v10360_v7 = vrot.slane %v10338_v46, %v17100_v4  ;;  %v10367_v8 = vrot.slane %v10339_v49, %v17100_v4  ;;  %v19910_v59 = vld [vmem:[#allocation430_spill] sm:$0xff] }
 0x966   : > { %v10369_v11 = vcombine.low %v10360_v7, %v10367_v8  ;;  %8999 = vmatpush1.bf16.msra.mxu0 %v19880_v12  ;;  %9040 = vmatpush1.bf16.msra.mxu1 %v19881_v20  ;;  %v19913_v12 = vld [vmem:[#allocation433_spill] sm:$0xff]  ;;  %v19914_v20 = vld [vmem:[#allocation434_spill] sm:$0xff] }
 0x967   : > { %9000 = vmatprep.subr.bf16.mxu0 %v19882_v23  ;;  %9041 = vmatprep.subr.bf16.mxu1 %v19883_v2  ;;  %v19915_v23 = vld [vmem:[#allocation435_spill] sm:$0xff]  ;;  %v19916_v2 = vld [vmem:[#allocation436_spill] sm:$0xff] }
 0x968   : > { %v10383_v30 = vrot.slane %v10369_v11, %v17100_v4  ;;  %v19912_v11 = vld [vmem:[#allocation432_spill] sm:$0xff] }
 0x96a   : > { %v10384_v31 = vcombine.low %v10376_v27, %v10383_v30  ;;  %9001 = vmatpush1.bf16.msra.mxu0 %v19884_v35  ;;  %9042 = vmatpush1.bf16.msra.mxu1 %v19885_v36  ;;  %v19917_v27 = vld [vmem:[#allocation437_spill] sm:$0xff]  ;;  %v19918_v30 = vld [vmem:[#allocation438_spill] sm:$0xff]  ;;  %v19920_v35 = vld [vmem:[#allocation440_spill] sm:$0xff] }
 0x96b   : > { %9068 = vmatprep.subr.bf16.mxu0 %v19886_v40  ;;  %9109 = vmatprep.subr.bf16.mxu1 %v19887_v42  ;;  %v19921_v36 = vld [vmem:[#allocation441_spill] sm:$0xff]  ;;  %v19922_v40 = vld [vmem:[#allocation442_spill] sm:$0xff]  ;;  %v19923_v42 = vld [vmem:[#allocation443_spill] sm:$0xff] }
 0x96c   : > { %10890 = vst [vmem:[%s17157_s30 + $0x10] sm:$0xff] %v10384_v31  ;;  %v19919_v31 = vld [vmem:[#allocation439_spill] sm:$0xff] }
 0x96d   : > { %9019 = vmatmul.mubr.bf16.vlgmr.msra.gmra.mrb[52].mxu0 %v13530_v22  ;;  %9060 = vmatmul.mubr.bf16.vlgmr.msra.gmra.mrb[52].mxu1 %v13530_v22 }
 0x96e   : > { %9069 = vmatpush1.bf16.msra.mxu0 %v19888_v44  ;;  %9110 = vmatpush1.bf16.msra.mxu1 %v19889_v48  ;;  %v19924_v44 = vld [vmem:[#allocation444_spill] sm:$0xff]  ;;  %v19925_v48 = vld [vmem:[#allocation445_spill] sm:$0xff] }
 0x96f   : > { %9070 = vmatprep.subr.bf16.mxu0 %v19890_v24  ;;  %9111 = vmatprep.subr.bf16.mxu1 %v19891_v51  ;;  %v19926_v24 = vld [vmem:[#allocation446_spill] sm:$0xff]  ;;  %v19927_v51 = vld [vmem:[#allocation447_spill] sm:$0xff] }
 0x970   : > { %9100 = vmatprep.mubr.bf16.mxu0 %v18763_v29  ;;  %9141 = vmatprep.mubr.bf16.mxu1 %v18763_v29 }
 0x972   : > { %9071 = vmatpush1.bf16.msra.mxu0 %v19892_v52  ;;  %9112 = vmatpush1.bf16.msra.mxu1 %v19893_v57  ;;  %v19928_v52 = vld [vmem:[#allocation448_spill] sm:$0xff]  ;;  %v19929_v57 = vld [vmem:[#allocation449_spill] sm:$0xff] }
 0x973   : > { %9072 = vmatprep.subr.bf16.mxu0 %v19894_v5  ;;  %9113 = vmatprep.subr.bf16.mxu1 %v19895_v34  ;;  %v19930_v5 = vld [vmem:[#allocation450_spill] sm:$0xff]  ;;  %v19931_v34 = vld [vmem:[#allocation451_spill] sm:$0xff] }
 0x976   : > { %9073 = vmatpush1.bf16.msra.mxu0 %v19896_v9  ;;  %9114 = vmatpush1.bf16.msra.mxu1 %v19897_v10  ;;  %v19932_v9 = vld [vmem:[#allocation452_spill] sm:$0xff]  ;;  %v19933_v10 = vld [vmem:[#allocation453_spill] sm:$0xff] }
 0x977   : > { %9074 = vmatprep.subr.bf16.mxu0 %v19898_v43  ;;  %9115 = vmatprep.subr.bf16.mxu1 %v19899_v13  ;;  %v19934_v43 = vld [vmem:[#allocation454_spill] sm:$0xff]  ;;  %v19935_v13 = vld [vmem:[#allocation455_spill] sm:$0xff] }
 0x97a   : > { %9075 = vmatpush1.bf16.msra.mxu0 %v19900_v0  ;;  %9116 = vmatpush1.bf16.msra.mxu1 %v19901_v37  ;;  %v19936_v0 = vld [vmem:[#allocation456_spill] sm:$0xff]  ;;  %v19937_v37 = vld [vmem:[#allocation457_spill] sm:$0xff] }
 0x97b   : > { %9076 = vmatprep.subr.bf16.mxu0 %v19902_v38  ;;  %9117 = vmatprep.subr.bf16.mxu1 %v19903_v47  ;;  %v19938_v38 = vld [vmem:[#allocation458_spill] sm:$0xff]  ;;  %v19939_v47 = vld [vmem:[#allocation459_spill] sm:$0xff] }
 0x97e   : > { %9077 = vmatpush1.bf16.msra.mxu0 %v19904_v50  ;;  %9118 = vmatpush1.bf16.msra.mxu1 %v19905_v58 }
 0x97f   : > { %9078 = vmatprep.subr.bf16.mxu0 %v19906_v61  ;;  %9119 = vmatprep.subr.bf16.mxu1 %v19907_v17 }
 0x980   : > { %v8528_v28 = vpop.f32.mrb[28].mxu0  ;;  %v8569_v3 = vpop.f32.mrb[28].mxu1 }
 0x981   : > { %v8530_v6 = vpop.f32.mrb[29].mxu0  ;;  %v8571_v14 = vpop.f32.mrb[29].mxu1 }
 0x982   : > { %v10385_v45 = vcombine.low %v8528_v28, %v8530_v6  ;;  %v10386_v46 = vcombine.low %v8569_v3, %v8571_v14  ;;  %v8532_v49 = vpop.f32.mrb[30].mxu0  ;;  %v8573_v1 = vpop.f32.mrb[30].mxu1  ;;  %9079 = vmatpush1.bf16.msra.mxu0 %v19908_v53  ;;  %9120 = vmatpush1.bf16.msra.mxu1 %v19909_v54  ;;  %v19942_v53 = vld [vmem:[#allocation462_spill] sm:$0xff]  ;;  %v19943_v54 = vld [vmem:[#allocation463_spill] sm:$0xff] }
 0x983   : > { %v8533_v55 = vpop.f32.mrb[31].mxu0  ;;  %v8574_v56 = vpop.f32.mrb[31].mxu1  ;;  %9080 = vmatprep.subr.bf16.mxu0 %v19910_v59  ;;  %9121 = vmatprep.subr.bf16.mxu1 %v19911_v60  ;;  %v19944_v60 = vld [vmem:[#allocation464_spill] sm:$0xff] }
 0x984   : > { %v10395_v63 = vrot.slane %v10385_v45, %v17100_v4  ;;  %v10402_v7 = vrot.slane %v10386_v46, %v17100_v4  ;;  %v19940_v45 = vld [vmem:[#allocation460_spill] sm:$0xff]  ;;  %v19941_v46 = vld [vmem:[#allocation461_spill] sm:$0xff] }
 0x986   : > { %v10417_v8 = vcombine.low %v10395_v63, %v10402_v7  ;;  %9081 = vmatpush1.bf16.msra.mxu0 %v19912_v11  ;;  %9122 = vmatpush1.bf16.msra.mxu1 %v19913_v12  ;;  %v19945_v63 = vld [vmem:[#allocation465_spill] sm:$0xff]  ;;  %v19946_v7 = vld [vmem:[#allocation466_spill] sm:$0xff]  ;;  %v19947_v11 = vld [vmem:[#allocation467_spill] sm:$0xff] }
 0x987   : > { %9082 = vmatprep.subr.bf16.mxu0 %v19914_v20  ;;  %9123 = vmatprep.subr.bf16.mxu1 %v19915_v23 }
 0x988   : > { %v10425_v12 = vrot.slane %v10417_v8, %v17100_v4  ;;  %v19954_v8 = vld [vmem:[#allocation474_spill] sm:$0xff] }
 0x98a   : > { %9083 = vmatpush1.bf16.msra.mxu0 %v19916_v2  ;;  %9124 = vmatpush1.bf16.msra.mxu1 %v19917_v27  ;;  %v19948_v2 = vld [vmem:[#allocation468_spill] sm:$0xff]  ;;  %v19949_v27 = vld [vmem:[#allocation469_spill] sm:$0xff] }
 0x98b   : > { %9150 = vmatprep.subr.bf16.mxu0 %v19918_v30  ;;  %9191 = vmatprep.subr.bf16.mxu1 %v19919_v31  ;;  %v19950_v30 = vld [vmem:[#allocation470_spill] sm:$0xff]  ;;  %v19951_v31 = vld [vmem:[#allocation471_spill] sm:$0xff] }
 0x98d   : > { %9101 = vmatmul.mubr.bf16.vlgmr.msra.gmra.mrb[56].mxu0 %v13530_v22  ;;  %9142 = vmatmul.mubr.bf16.vlgmr.msra.gmra.mrb[56].mxu1 %v13530_v22 }
 0x98e   : > { %9151 = vmatpush1.bf16.msra.mxu0 %v19920_v35  ;;  %9192 = vmatpush1.bf16.msra.mxu1 %v19921_v36  ;;  %v19952_v35 = vld [vmem:[#allocation472_spill] sm:$0xff]  ;;  %v19953_v36 = vld [vmem:[#allocation473_spill] sm:$0xff] }
 0x98f   : > { %9152 = vmatprep.subr.bf16.mxu0 %v19922_v40  ;;  %9193 = vmatprep.subr.bf16.mxu1 %v19923_v42  ;;  %v19955_v40 = vld [vmem:[#allocation475_spill] sm:$0xff]  ;;  %v19956_v42 = vld [vmem:[#allocation476_spill] sm:$0xff] }
 0x990   : > { %9182 = vmatprep.mubr.bf16.mxu0 %v18763_v29  ;;  %9223 = vmatprep.mubr.bf16.mxu1 %v18763_v29 }
 0x992   : > { %9153 = vmatpush1.bf16.msra.mxu0 %v19924_v44  ;;  %9194 = vmatpush1.bf16.msra.mxu1 %v19925_v48  ;;  %v19957_v44 = vld [vmem:[#allocation477_spill] sm:$0xff]  ;;  %v19958_v48 = vld [vmem:[#allocation478_spill] sm:$0xff] }
 0x993   : > { %9154 = vmatprep.subr.bf16.mxu0 %v19926_v24  ;;  %9195 = vmatprep.subr.bf16.mxu1 %v19927_v51  ;;  %v19959_v24 = vld [vmem:[#allocation479_spill] sm:$0xff]  ;;  %v19960_v51 = vld [vmem:[#allocation480_spill] sm:$0xff] }
 0x996   : > { %9155 = vmatpush1.bf16.msra.mxu0 %v19928_v52  ;;  %9196 = vmatpush1.bf16.msra.mxu1 %v19929_v57  ;;  %v19961_v52 = vld [vmem:[#allocation481_spill] sm:$0xff]  ;;  %v19962_v57 = vld [vmem:[#allocation482_spill] sm:$0xff] }
 0x997   : > { %9156 = vmatprep.subr.bf16.mxu0 %v19930_v5  ;;  %9197 = vmatprep.subr.bf16.mxu1 %v19931_v34  ;;  %v19963_v5 = vld [vmem:[#allocation483_spill] sm:$0xff]  ;;  %v19964_v34 = vld [vmem:[#allocation484_spill] sm:$0xff] }
 0x99a   : > { %9157 = vmatpush1.bf16.msra.mxu0 %v19932_v9  ;;  %9198 = vmatpush1.bf16.msra.mxu1 %v19933_v10  ;;  %v19965_v9 = vld [vmem:[#allocation485_spill] sm:$0xff]  ;;  %v19966_v10 = vld [vmem:[#allocation486_spill] sm:$0xff] }
 0x99b   : > { %9158 = vmatprep.subr.bf16.mxu0 %v19934_v43  ;;  %9199 = vmatprep.subr.bf16.mxu1 %v19935_v13  ;;  %v19967_v43 = vld [vmem:[#allocation487_spill] sm:$0xff]  ;;  %v19968_v13 = vld [vmem:[#allocation488_spill] sm:$0xff] }
 0x99e   : > { %9159 = vmatpush1.bf16.msra.mxu0 %v19936_v0  ;;  %9200 = vmatpush1.bf16.msra.mxu1 %v19937_v37  ;;  %v19969_v0 = vld [vmem:[#allocation489_spill] sm:$0xff]  ;;  %v19970_v37 = vld [vmem:[#allocation490_spill] sm:$0xff] }
 0x99f   : > { %9160 = vmatprep.subr.bf16.mxu0 %v19938_v38  ;;  %9201 = vmatprep.subr.bf16.mxu1 %v19939_v47  ;;  %v19971_v38 = vld [vmem:[#allocation491_spill] sm:$0xff] }
 0x9a0   : > { %v8610_v50 = vpop.f32.mrb[32].mxu0  ;;  %v8651_v58 = vpop.f32.mrb[32].mxu1 }
 0x9a1   : > { %v8612_v61 = vpop.f32.mrb[33].mxu0  ;;  %v8653_v17 = vpop.f32.mrb[33].mxu1 }
 0x9a2   : > { %v10387_v28 = vcombine.low %v8610_v50, %v8612_v61  ;;  %v10388_v3 = vcombine.low %v8651_v58, %v8653_v17  ;;  %v8614_v6 = vpop.f32.mrb[34].mxu0  ;;  %v8655_v14 = vpop.f32.mrb[34].mxu1  ;;  %9161 = vmatpush1.bf16.msra.mxu0 %v19940_v45  ;;  %9202 = vmatpush1.bf16.msra.mxu1 %v19941_v46  ;;  %v19973_v45 = vld [vmem:[#allocation493_spill] sm:$0xff] }
 0x9a3   : > { %v8615_v49 = vpop.f32.mrb[35].mxu0  ;;  %v8656_v1 = vpop.f32.mrb[35].mxu1  ;;  %9162 = vmatprep.subr.bf16.mxu0 %v19942_v53  ;;  %9203 = vmatprep.subr.bf16.mxu1 %v19943_v54  ;;  %v19972_v14 = vld [vmem:[#allocation492_spill] sm:$0xff]  ;;  %v19975_v53 = vld [vmem:[#allocation495_spill] sm:$0xff] }
 0x9a4   : > { %v10409_v55 = vrot.slane %v10387_v28, %v17100_v4  ;;  %v10416_v56 = vrot.slane %v10388_v3, %v17100_v4  ;;  %v19974_v1 = vld [vmem:[#allocation494_spill] sm:$0xff] }
 0x9a6   : > { %v10418_v59 = vcombine.low %v10409_v55, %v10416_v56  ;;  %9163 = vmatpush1.bf16.msra.mxu0 %v19944_v60  ;;  %9204 = vmatpush1.bf16.msra.mxu1 %v19945_v63  ;;  %v19977_v60 = vld [vmem:[#allocation497_spill] sm:$0xff]  ;;  %v19978_v63 = vld [vmem:[#allocation498_spill] sm:$0xff] }
 0x9a7   : > { %9164 = vmatprep.subr.bf16.mxu0 %v19946_v7  ;;  %9205 = vmatprep.subr.bf16.mxu1 %v19947_v11  ;;  %v19979_v7 = vld [vmem:[#allocation499_spill] sm:$0xff]  ;;  %v19980_v11 = vld [vmem:[#allocation500_spill] sm:$0xff] }
 0x9a8   : > { %v10432_v20 = vrot.slane %v10418_v59, %v17100_v4  ;;  %v19976_v59 = vld [vmem:[#allocation496_spill] sm:$0xff] }
 0x9aa   : > { %v10433_v23 = vcombine.low %v10425_v12, %v10432_v20  ;;  %9165 = vmatpush1.bf16.msra.mxu0 %v19948_v2  ;;  %9206 = vmatpush1.bf16.msra.mxu1 %v19949_v27  ;;  %v19981_v12 = vld [vmem:[#allocation501_spill] sm:$0xff]  ;;  %v19982_v20 = vld [vmem:[#allocation502_spill] sm:$0xff]  ;;  %v19984_v2 = vld [vmem:[#allocation504_spill] sm:$0xff] }
 0x9ab   : > { %9232 = vmatprep.subr.bf16.mxu0 %v19950_v30  ;;  %9273 = vmatprep.subr.bf16.mxu1 %v19951_v31  ;;  %v19985_v27 = vld [vmem:[#allocation505_spill] sm:$0xff]  ;;  %v19986_v30 = vld [vmem:[#allocation506_spill] sm:$0xff]  ;;  %v19987_v31 = vld [vmem:[#allocation507_spill] sm:$0xff] }
 0x9ac   : > { %10891 = vst [vmem:[%s17157_s30 + $0x18] sm:$0xff] %v10433_v23  ;;  %v19983_v23 = vld [vmem:[#allocation503_spill] sm:$0xff] }
 0x9ad   : > { %9183 = vmatmul.mubr.bf16.vlgmr.msra.gmra.mrb[60].mxu0 %v13530_v22  ;;  %9224 = vmatmul.mubr.bf16.vlgmr.msra.gmra.mrb[60].mxu1 %v13530_v22 }
 0x9ae   : > { %9233 = vmatpush1.bf16.msra.mxu0 %v19952_v35  ;;  %9274 = vmatpush1.bf16.msra.mxu1 %v19953_v36  ;;  %v19988_v35 = vld [vmem:[#allocation508_spill] sm:$0xff]  ;;  %v19989_v36 = vld [vmem:[#allocation509_spill] sm:$0xff] }
 0x9af   : > { %9234 = vmatprep.subr.bf16.mxu0 %v19954_v8  ;;  %9275 = vmatprep.subr.bf16.mxu1 %v19955_v40  ;;  %v19990_v8 = vld [vmem:[#allocation510_spill] sm:$0xff]  ;;  %v19991_v40 = vld [vmem:[#allocation511_spill] sm:$0xff] }
 0x9b0   : > { %9264 = vmatprep.mubr.bf16.mxu0 %v18763_v29  ;;  %9305 = vmatprep.mubr.bf16.mxu1 %v18763_v29 }
 0x9b2   : > { %9235 = vmatpush1.bf16.msra.mxu0 %v19956_v42  ;;  %9276 = vmatpush1.bf16.msra.mxu1 %v19957_v44  ;;  %v19992_v42 = vld [vmem:[#allocation512_spill] sm:$0xff]  ;;  %v19993_v44 = vld [vmem:[#allocation513_spill] sm:$0xff] }
 0x9b3   : > { %9236 = vmatprep.subr.bf16.mxu0 %v19958_v48  ;;  %9277 = vmatprep.subr.bf16.mxu1 %v19959_v24  ;;  %v19994_v48 = vld [vmem:[#allocation514_spill] sm:$0xff]  ;;  %v19995_v24 = vld [vmem:[#allocation515_spill] sm:$0xff] }
 0x9b6   : > { %9237 = vmatpush1.bf16.msra.mxu0 %v19960_v51  ;;  %9278 = vmatpush1.bf16.msra.mxu1 %v19961_v52  ;;  %v19996_v51 = vld [vmem:[#allocation516_spill] sm:$0xff]  ;;  %v19997_v52 = vld [vmem:[#allocation517_spill] sm:$0xff] }
 0x9b7   : > { %9238 = vmatprep.subr.bf16.mxu0 %v19962_v57  ;;  %9279 = vmatprep.subr.bf16.mxu1 %v19963_v5  ;;  %v19998_v57 = vld [vmem:[#allocation518_spill] sm:$0xff]  ;;  %v19999_v5 = vld [vmem:[#allocation519_spill] sm:$0xff] }
 0x9ba   : > { %9239 = vmatpush1.bf16.msra.mxu0 %v19964_v34  ;;  %9280 = vmatpush1.bf16.msra.mxu1 %v19965_v9  ;;  %v20000_v34 = vld [vmem:[#allocation520_spill] sm:$0xff]  ;;  %v20001_v9 = vld [vmem:[#allocation521_spill] sm:$0xff] }
 0x9bb   : > { %9240 = vmatprep.subr.bf16.mxu0 %v19966_v10  ;;  %9281 = vmatprep.subr.bf16.mxu1 %v19967_v43  ;;  %v20002_v10 = vld [vmem:[#allocation522_spill] sm:$0xff]  ;;  %v20003_v43 = vld [vmem:[#allocation523_spill] sm:$0xff] }
 0x9be   : > { %9241 = vmatpush1.bf16.msra.mxu0 %v19968_v13  ;;  %9282 = vmatpush1.bf16.msra.mxu1 %v19969_v0 }
 0x9bf   : > { %9242 = vmatprep.subr.bf16.mxu0 %v19970_v37  ;;  %9283 = vmatprep.subr.bf16.mxu1 %v19971_v38 }
 0x9c0   : > { %v8692_v47 = vpop.f32.mrb[36].mxu0  ;;  %v8733_v50 = vpop.f32.mrb[36].mxu1 }
 0x9c1   : > { %v8694_v58 = vpop.f32.mrb[37].mxu0  ;;  %v8735_v61 = vpop.f32.mrb[37].mxu1 }
 0x9c2   : > { %v10434_v17 = vcombine.low %v8692_v47, %v8694_v58  ;;  %v10435_v28 = vcombine.low %v8733_v50, %v8735_v61  ;;  %v8696_v3 = vpop.f32.mrb[38].mxu0  ;;  %v8737_v6 = vpop.f32.mrb[38].mxu1  ;;  %9243 = vmatpush1.bf16.msra.mxu0 %v19972_v14  ;;  %9284 = vmatpush1.bf16.msra.mxu1 %v19973_v45  ;;  %v20006_v14 = vld [vmem:[#allocation526_spill] sm:$0xff]  ;;  %v20007_v45 = vld [vmem:[#allocation527_spill] sm:$0xff] }
 0x9c3   : > { %v8697_v46 = vpop.f32.mrb[39].mxu0  ;;  %v8738_v49 = vpop.f32.mrb[39].mxu1  ;;  %9244 = vmatprep.subr.bf16.mxu0 %v19974_v1  ;;  %9285 = vmatprep.subr.bf16.mxu1 %v19975_v53  ;;  %v20008_v53 = vld [vmem:[#allocation528_spill] sm:$0xff] }
 0x9c4   : > { %v10444_v54 = vrot.slane %v10434_v17, %v17100_v4  ;;  %v10451_v55 = vrot.slane %v10435_v28, %v17100_v4  ;;  %v20004_v17 = vld [vmem:[#allocation524_spill] sm:$0xff]  ;;  %v20005_v28 = vld [vmem:[#allocation525_spill] sm:$0xff] }
 0x9c6   : > { %v10466_v56 = vcombine.low %v10444_v54, %v10451_v55  ;;  %9245 = vmatpush1.bf16.msra.mxu0 %v19976_v59  ;;  %9286 = vmatpush1.bf16.msra.mxu1 %v19977_v60  ;;  %v20009_v54 = vld [vmem:[#allocation529_spill] sm:$0xff]  ;;  %v20010_v55 = vld [vmem:[#allocation530_spill] sm:$0xff]  ;;  %v20011_v59 = vld [vmem:[#allocation531_spill] sm:$0xff] }
 0x9c7   : > { %9246 = vmatprep.subr.bf16.mxu0 %v19978_v63  ;;  %9287 = vmatprep.subr.bf16.mxu1 %v19979_v7 }
 0x9c8   : > { %v10474_v60 = vrot.slane %v10466_v56, %v17100_v4  ;;  %v20018_v56 = vld [vmem:[#allocation538_spill] sm:$0xff] }
 0x9ca   : > { %9247 = vmatpush1.bf16.msra.mxu0 %v19980_v11  ;;  %9288 = vmatpush1.bf16.msra.mxu1 %v19981_v12  ;;  %v20012_v11 = vld [vmem:[#allocation532_spill] sm:$0xff]  ;;  %v20013_v12 = vld [vmem:[#allocation533_spill] sm:$0xff] }
 0x9cb   : > { %9314 = vmatprep.subr.bf16.mxu0 %v19982_v20  ;;  %9355 = vmatprep.subr.bf16.mxu1 %v19983_v23  ;;  %v20014_v20 = vld [vmem:[#allocation534_spill] sm:$0xff]  ;;  %v20015_v23 = vld [vmem:[#allocation535_spill] sm:$0xff] }
 0x9cd   : > { %9265 = vmatmul.mubr.bf16.vlgmr.msra.gmra.mrb[64].mxu0 %v13530_v22  ;;  %9306 = vmatmul.mubr.bf16.vlgmr.msra.gmra.mrb[64].mxu1 %v13530_v22 }
 0x9ce   : > { %9315 = vmatpush1.bf16.msra.mxu0 %v19984_v2  ;;  %9356 = vmatpush1.bf16.msra.mxu1 %v19985_v27  ;;  %v20016_v2 = vld [vmem:[#allocation536_spill] sm:$0xff]  ;;  %v20017_v27 = vld [vmem:[#allocation537_spill] sm:$0xff] }
 0x9cf   : > { %9316 = vmatprep.subr.bf16.mxu0 %v19986_v30  ;;  %9357 = vmatprep.subr.bf16.mxu1 %v19987_v31  ;;  %v20019_v30 = vld [vmem:[#allocation539_spill] sm:$0xff]  ;;  %v20020_v31 = vld [vmem:[#allocation540_spill] sm:$0xff] }
 0x9d0   : > { %9346 = vmatprep.mubr.bf16.mxu0 %v18763_v29  ;;  %9387 = vmatprep.mubr.bf16.mxu1 %v18763_v29 }
 0x9d2   : > { %9317 = vmatpush1.bf16.msra.mxu0 %v19988_v35  ;;  %9358 = vmatpush1.bf16.msra.mxu1 %v19989_v36  ;;  %v20021_v35 = vld [vmem:[#allocation541_spill] sm:$0xff]  ;;  %v20022_v36 = vld [vmem:[#allocation542_spill] sm:$0xff] }
 0x9d3   : > { %9318 = vmatprep.subr.bf16.mxu0 %v19990_v8  ;;  %9359 = vmatprep.subr.bf16.mxu1 %v19991_v40  ;;  %v20023_v8 = vld [vmem:[#allocation543_spill] sm:$0xff]  ;;  %v20024_v40 = vld [vmem:[#allocation544_spill] sm:$0xff] }
 0x9d6   : > { %9319 = vmatpush1.bf16.msra.mxu0 %v19992_v42  ;;  %9360 = vmatpush1.bf16.msra.mxu1 %v19993_v44  ;;  %v20025_v42 = vld [vmem:[#allocation545_spill] sm:$0xff]  ;;  %v20026_v44 = vld [vmem:[#allocation546_spill] sm:$0xff] }
 0x9d7   : > { %9320 = vmatprep.subr.bf16.mxu0 %v19994_v48  ;;  %9361 = vmatprep.subr.bf16.mxu1 %v19995_v24  ;;  %v20027_v48 = vld [vmem:[#allocation547_spill] sm:$0xff]  ;;  %v20028_v24 = vld [vmem:[#allocation548_spill] sm:$0xff] }
 0x9da   : > { %9321 = vmatpush1.bf16.msra.mxu0 %v19996_v51  ;;  %9362 = vmatpush1.bf16.msra.mxu1 %v19997_v52  ;;  %v20029_v51 = vld [vmem:[#allocation549_spill] sm:$0xff]  ;;  %v20030_v52 = vld [vmem:[#allocation550_spill] sm:$0xff] }
 0x9db   : > { %9322 = vmatprep.subr.bf16.mxu0 %v19998_v57  ;;  %9363 = vmatprep.subr.bf16.mxu1 %v19999_v5  ;;  %v20031_v57 = vld [vmem:[#allocation551_spill] sm:$0xff]  ;;  %v20032_v5 = vld [vmem:[#allocation552_spill] sm:$0xff] }
 0x9de   : > { %9323 = vmatpush1.bf16.msra.mxu0 %v20000_v34  ;;  %9364 = vmatpush1.bf16.msra.mxu1 %v20001_v9  ;;  %v20033_v34 = vld [vmem:[#allocation553_spill] sm:$0xff]  ;;  %v20034_v9 = vld [vmem:[#allocation554_spill] sm:$0xff] }
 0x9df   : > { %9324 = vmatprep.subr.bf16.mxu0 %v20002_v10  ;;  %9365 = vmatprep.subr.bf16.mxu1 %v20003_v43  ;;  %v20035_v10 = vld [vmem:[#allocation555_spill] sm:$0xff] }
 0x9e0   : > { %v8774_v13 = vpop.f32.mrb[40].mxu0  ;;  %v8815_v0 = vpop.f32.mrb[40].mxu1 }
 0x9e1   : > { %v8776_v37 = vpop.f32.mrb[41].mxu0  ;;  %v8817_v38 = vpop.f32.mrb[41].mxu1 }
 0x9e2   : > { %v10436_v47 = vcombine.low %v8774_v13, %v8776_v37  ;;  %v10437_v50 = vcombine.low %v8815_v0, %v8817_v38  ;;  %v8778_v58 = vpop.f32.mrb[42].mxu0  ;;  %v8819_v61 = vpop.f32.mrb[42].mxu1  ;;  %9325 = vmatpush1.bf16.msra.mxu0 %v20004_v17  ;;  %9366 = vmatpush1.bf16.msra.mxu1 %v20005_v28  ;;  %v20037_v17 = vld [vmem:[#allocation557_spill] sm:$0xff] }
 0x9e3   : > { %v8779_v3 = vpop.f32.mrb[43].mxu0  ;;  %v8820_v6 = vpop.f32.mrb[43].mxu1  ;;  %9326 = vmatprep.subr.bf16.mxu0 %v20006_v14  ;;  %9367 = vmatprep.subr.bf16.mxu1 %v20007_v45  ;;  %v20036_v61 = vld [vmem:[#allocation556_spill] sm:$0xff]  ;;  %v20039_v14 = vld [vmem:[#allocation559_spill] sm:$0xff] }
 0x9e4   : > { %v10458_v46 = vrot.slane %v10436_v47, %v17100_v4  ;;  %v10465_v49 = vrot.slane %v10437_v50, %v17100_v4  ;;  %v20038_v6 = vld [vmem:[#allocation558_spill] sm:$0xff] }
 0x9e6   : > { %v10467_v1 = vcombine.low %v10458_v46, %v10465_v49  ;;  %9327 = vmatpush1.bf16.msra.mxu0 %v20008_v53  ;;  %9368 = vmatpush1.bf16.msra.mxu1 %v20009_v54  ;;  %v20041_v53 = vld [vmem:[#allocation561_spill] sm:$0xff]  ;;  %v20042_v54 = vld [vmem:[#allocation562_spill] sm:$0xff] }
 0x9e7   : > { %9328 = vmatprep.subr.bf16.mxu0 %v20010_v55  ;;  %9369 = vmatprep.subr.bf16.mxu1 %v20011_v59  ;;  %v20043_v55 = vld [vmem:[#allocation563_spill] sm:$0xff]  ;;  %v20044_v59 = vld [vmem:[#allocation564_spill] sm:$0xff] }
 0x9e8   : > { %v10481_v63 = vrot.slane %v10467_v1, %v17100_v4  ;;  %v20040_v1 = vld [vmem:[#allocation560_spill] sm:$0xff] }
 0x9ea   : > { %v10482_v7 = vcombine.low %v10474_v60, %v10481_v63  ;;  %9329 = vmatpush1.bf16.msra.mxu0 %v20012_v11  ;;  %9370 = vmatpush1.bf16.msra.mxu1 %v20013_v12  ;;  %v20045_v60 = vld [vmem:[#allocation565_spill] sm:$0xff]  ;;  %v20046_v63 = vld [vmem:[#allocation566_spill] sm:$0xff]  ;;  %v20048_v11 = vld [vmem:[#allocation568_spill] sm:$0xff] }
 0x9eb   : > { %9396 = vmatprep.subr.bf16.mxu0 %v20014_v20  ;;  %9437 = vmatprep.subr.bf16.mxu1 %v20015_v23  ;;  %v20049_v12 = vld [vmem:[#allocation569_spill] sm:$0xff]  ;;  %v20050_v20 = vld [vmem:[#allocation570_spill] sm:$0xff]  ;;  %v20051_v23 = vld [vmem:[#allocation571_spill] sm:$0xff] }
 0x9ec   : > { %10892 = vst [vmem:[%s17157_s30 + $0x20] sm:$0xff] %v10482_v7  ;;  %v20047_v7 = vld [vmem:[#allocation567_spill] sm:$0xff] }
 0x9ed   : > { %9347 = vmatmul.mubr.bf16.vlgmr.msra.gmra.mrb[68].mxu0 %v13530_v22  ;;  %9388 = vmatmul.mubr.bf16.vlgmr.msra.gmra.mrb[68].mxu1 %v13530_v22 }
 0x9ee   : > { %9397 = vmatpush1.bf16.msra.mxu0 %v20016_v2  ;;  %9438 = vmatpush1.bf16.msra.mxu1 %v20017_v27  ;;  %v20052_v2 = vld [vmem:[#allocation572_spill] sm:$0xff]  ;;  %v20053_v27 = vld [vmem:[#allocation573_spill] sm:$0xff] }
 0x9ef   : > { %9398 = vmatprep.subr.bf16.mxu0 %v20018_v56  ;;  %9439 = vmatprep.subr.bf16.mxu1 %v20019_v30  ;;  %v20054_v56 = vld [vmem:[#allocation574_spill] sm:$0xff]  ;;  %v20055_v30 = vld [vmem:[#allocation575_spill] sm:$0xff] }
 0x9f0   : > { %9428 = vmatprep.mubr.bf16.mxu0 %v18763_v29  ;;  %9469 = vmatprep.mubr.bf16.mxu1 %v18763_v29 }
 0x9f2   : > { %9399 = vmatpush1.bf16.msra.mxu0 %v20020_v31  ;;  %9440 = vmatpush1.bf16.msra.mxu1 %v20021_v35  ;;  %v20056_v31 = vld [vmem:[#allocation576_spill] sm:$0xff]  ;;  %v20057_v35 = vld [vmem:[#allocation577_spill] sm:$0xff] }
 0x9f3   : > { %9400 = vmatprep.subr.bf16.mxu0 %v20022_v36  ;;  %9441 = vmatprep.subr.bf16.mxu1 %v20023_v8  ;;  %v20058_v36 = vld [vmem:[#allocation578_spill] sm:$0xff]  ;;  %v20059_v8 = vld [vmem:[#allocation579_spill] sm:$0xff] }
 0x9f6   : > { %9401 = vmatpush1.bf16.msra.mxu0 %v20024_v40  ;;  %9442 = vmatpush1.bf16.msra.mxu1 %v20025_v42  ;;  %v20060_v40 = vld [vmem:[#allocation580_spill] sm:$0xff]  ;;  %v20061_v42 = vld [vmem:[#allocation581_spill] sm:$0xff] }
 0x9f7   : > { %9402 = vmatprep.subr.bf16.mxu0 %v20026_v44  ;;  %9443 = vmatprep.subr.bf16.mxu1 %v20027_v48  ;;  %v20062_v44 = vld [vmem:[#allocation582_spill] sm:$0xff]  ;;  %v20063_v48 = vld [vmem:[#allocation583_spill] sm:$0xff] }
 0x9fa   : > { %9403 = vmatpush1.bf16.msra.mxu0 %v20028_v24  ;;  %9444 = vmatpush1.bf16.msra.mxu1 %v20029_v51  ;;  %v20064_v24 = vld [vmem:[#allocation584_spill] sm:$0xff]  ;;  %v20065_v51 = vld [vmem:[#allocation585_spill] sm:$0xff] }
 0x9fb   : > { %9404 = vmatprep.subr.bf16.mxu0 %v20030_v52  ;;  %9445 = vmatprep.subr.bf16.mxu1 %v20031_v57  ;;  %v20066_v52 = vld [vmem:[#allocation586_spill] sm:$0xff]  ;;  %v20067_v57 = vld [vmem:[#allocation587_spill] sm:$0xff] }
 0x9fe   : > { %9405 = vmatpush1.bf16.msra.mxu0 %v20032_v5  ;;  %9446 = vmatpush1.bf16.msra.mxu1 %v20033_v34 }
 0x9ff   : > { %9406 = vmatprep.subr.bf16.mxu0 %v20034_v9  ;;  %9447 = vmatprep.subr.bf16.mxu1 %v20035_v10 }
 0xa00   : > { %v8856_v43 = vpop.f32.mrb[44].mxu0  ;;  %v8897_v13 = vpop.f32.mrb[44].mxu1 }
 0xa01   : > { %v8858_v0 = vpop.f32.mrb[45].mxu0  ;;  %v8899_v37 = vpop.f32.mrb[45].mxu1 }
 0xa02   : > { %v10483_v38 = vcombine.low %v8856_v43, %v8858_v0  ;;  %v10484_v47 = vcombine.low %v8897_v13, %v8899_v37  ;;  %v8860_v50 = vpop.f32.mrb[46].mxu0  ;;  %v8901_v58 = vpop.f32.mrb[46].mxu1  ;;  %9407 = vmatpush1.bf16.msra.mxu0 %v20036_v61  ;;  %9448 = vmatpush1.bf16.msra.mxu1 %v20037_v17  ;;  %v20070_v61 = vld [vmem:[#allocation590_spill] sm:$0xff]  ;;  %v20071_v17 = vld [vmem:[#allocation591_spill] sm:$0xff] }
 0xa03   : > { %v8861_v28 = vpop.f32.mrb[47].mxu0  ;;  %v8902_v3 = vpop.f32.mrb[47].mxu1  ;;  %9408 = vmatprep.subr.bf16.mxu0 %v20038_v6  ;;  %9449 = vmatprep.subr.bf16.mxu1 %v20039_v14  ;;  %v20072_v14 = vld [vmem:[#allocation592_spill] sm:$0xff] }
 0xa04   : > { %v10493_v45 = vrot.slane %v10483_v38, %v17100_v4  ;;  %v10500_v46 = vrot.slane %v10484_v47, %v17100_v4  ;;  %v20068_v38 = vld [vmem:[#allocation588_spill] sm:$0xff]  ;;  %v20069_v47 = vld [vmem:[#allocation589_spill] sm:$0xff] }
 0xa06   : > { %v10515_v49 = vcombine.low %v10493_v45, %v10500_v46  ;;  %9409 = vmatpush1.bf16.msra.mxu0 %v20040_v1  ;;  %9450 = vmatpush1.bf16.msra.mxu1 %v20041_v53  ;;  %v20073_v45 = vld [vmem:[#allocation593_spill] sm:$0xff]  ;;  %v20074_v46 = vld [vmem:[#allocation594_spill] sm:$0xff]  ;;  %v20075_v1 = vld [vmem:[#allocation595_spill] sm:$0xff] }
 0xa07   : > { %9410 = vmatprep.subr.bf16.mxu0 %v20042_v54  ;;  %9451 = vmatprep.subr.bf16.mxu1 %v20043_v55 }
 0xa08   : > { %v10523_v53 = vrot.slane %v10515_v49, %v17100_v4  ;;  %v20082_v49 = vld [vmem:[#allocation602_spill] sm:$0xff] }
 0xa0a   : > { %9411 = vmatpush1.bf16.msra.mxu0 %v20044_v59  ;;  %9452 = vmatpush1.bf16.msra.mxu1 %v20045_v60  ;;  %v20076_v59 = vld [vmem:[#allocation596_spill] sm:$0xff]  ;;  %v20077_v60 = vld [vmem:[#allocation597_spill] sm:$0xff] }
 0xa0b   : > { %9478 = vmatprep.subr.bf16.mxu0 %v20046_v63  ;;  %9519 = vmatprep.subr.bf16.mxu1 %v20047_v7  ;;  %v20078_v63 = vld [vmem:[#allocation598_spill] sm:$0xff]  ;;  %v20079_v7 = vld [vmem:[#allocation599_spill] sm:$0xff] }
 0xa0d   : > { %9429 = vmatmul.mubr.bf16.vlgmr.msra.gmra.mrb[72].mxu0 %v13530_v22  ;;  %9470 = vmatmul.mubr.bf16.vlgmr.msra.gmra.mrb[72].mxu1 %v13530_v22 }
 0xa0e   : > { %9479 = vmatpush1.bf16.msra.mxu0 %v20048_v11  ;;  %9520 = vmatpush1.bf16.msra.mxu1 %v20049_v12  ;;  %v20080_v11 = vld [vmem:[#allocation600_spill] sm:$0xff]  ;;  %v20081_v12 = vld [vmem:[#allocation601_spill] sm:$0xff] }
 0xa0f   : > { %9480 = vmatprep.subr.bf16.mxu0 %v20050_v20  ;;  %9521 = vmatprep.subr.bf16.mxu1 %v20051_v23  ;;  %v20083_v20 = vld [vmem:[#allocation603_spill] sm:$0xff]  ;;  %v20084_v23 = vld [vmem:[#allocation604_spill] sm:$0xff] }
 0xa10   : > { %9510 = vmatprep.mubr.bf16.mxu0 %v18763_v29  ;;  %9551 = vmatprep.mubr.bf16.mxu1 %v18763_v29 }
 0xa12   : > { %9481 = vmatpush1.bf16.msra.mxu0 %v20052_v2  ;;  %9522 = vmatpush1.bf16.msra.mxu1 %v20053_v27  ;;  %v20085_v2 = vld [vmem:[#allocation605_spill] sm:$0xff]  ;;  %v20086_v27 = vld [vmem:[#allocation606_spill] sm:$0xff] }
 0xa13   : > { %9482 = vmatprep.subr.bf16.mxu0 %v20054_v56  ;;  %9523 = vmatprep.subr.bf16.mxu1 %v20055_v30  ;;  %v20087_v56 = vld [vmem:[#allocation607_spill] sm:$0xff]  ;;  %v20088_v30 = vld [vmem:[#allocation608_spill] sm:$0xff] }
 0xa16   : > { %9483 = vmatpush1.bf16.msra.mxu0 %v20056_v31  ;;  %9524 = vmatpush1.bf16.msra.mxu1 %v20057_v35  ;;  %v20089_v31 = vld [vmem:[#allocation609_spill] sm:$0xff]  ;;  %v20090_v35 = vld [vmem:[#allocation610_spill] sm:$0xff] }
 0xa17   : > { %9484 = vmatprep.subr.bf16.mxu0 %v20058_v36  ;;  %9525 = vmatprep.subr.bf16.mxu1 %v20059_v8  ;;  %v20091_v36 = vld [vmem:[#allocation611_spill] sm:$0xff]  ;;  %v20092_v8 = vld [vmem:[#allocation612_spill] sm:$0xff] }
 0xa1a   : > { %9485 = vmatpush1.bf16.msra.mxu0 %v20060_v40  ;;  %9526 = vmatpush1.bf16.msra.mxu1 %v20061_v42  ;;  %v20093_v40 = vld [vmem:[#allocation613_spill] sm:$0xff]  ;;  %v20094_v42 = vld [vmem:[#allocation614_spill] sm:$0xff] }
 0xa1b   : > { %9486 = vmatprep.subr.bf16.mxu0 %v20062_v44  ;;  %9527 = vmatprep.subr.bf16.mxu1 %v20063_v48  ;;  %v20095_v44 = vld [vmem:[#allocation615_spill] sm:$0xff]  ;;  %v20096_v48 = vld [vmem:[#allocation616_spill] sm:$0xff] }
 0xa1e   : > { %9487 = vmatpush1.bf16.msra.mxu0 %v20064_v24  ;;  %9528 = vmatpush1.bf16.msra.mxu1 %v20065_v51  ;;  %v20097_v24 = vld [vmem:[#allocation617_spill] sm:$0xff]  ;;  %v20098_v51 = vld [vmem:[#allocation618_spill] sm:$0xff] }
 0xa1f   : > { %9488 = vmatprep.subr.bf16.mxu0 %v20066_v52  ;;  %9529 = vmatprep.subr.bf16.mxu1 %v20067_v57  ;;  %v20099_v52 = vld [vmem:[#allocation619_spill] sm:$0xff] }
 0xa20   : > { %v8938_v5 = vpop.f32.mrb[48].mxu0  ;;  %v8979_v34 = vpop.f32.mrb[48].mxu1 }
 0xa21   : > { %v8940_v9 = vpop.f32.mrb[49].mxu0  ;;  %v8981_v10 = vpop.f32.mrb[49].mxu1 }
 0xa22   : > { %v10485_v43 = vcombine.low %v8938_v5, %v8940_v9  ;;  %v10486_v13 = vcombine.low %v8979_v34, %v8981_v10  ;;  %v8942_v0 = vpop.f32.mrb[50].mxu0  ;;  %v8983_v37 = vpop.f32.mrb[50].mxu1  ;;  %9489 = vmatpush1.bf16.msra.mxu0 %v20068_v38  ;;  %9530 = vmatpush1.bf16.msra.mxu1 %v20069_v47  ;;  %v20101_v38 = vld [vmem:[#allocation621_spill] sm:$0xff] }
 0xa23   : > { %v8943_v50 = vpop.f32.mrb[51].mxu0  ;;  %v8984_v58 = vpop.f32.mrb[51].mxu1  ;;  %9490 = vmatprep.subr.bf16.mxu0 %v20070_v61  ;;  %9531 = vmatprep.subr.bf16.mxu1 %v20071_v17  ;;  %v20100_v37 = vld [vmem:[#allocation620_spill] sm:$0xff]  ;;  %v20103_v61 = vld [vmem:[#allocation623_spill] sm:$0xff] }
 0xa24   : > { %v10507_v28 = vrot.slane %v10485_v43, %v17100_v4  ;;  %v10514_v3 = vrot.slane %v10486_v13, %v17100_v4  ;;  %v20102_v58 = vld [vmem:[#allocation622_spill] sm:$0xff] }
 0xa26   : > { %v10516_v6 = vcombine.low %v10507_v28, %v10514_v3  ;;  %9491 = vmatpush1.bf16.msra.mxu0 %v20072_v14  ;;  %9532 = vmatpush1.bf16.msra.mxu1 %v20073_v45  ;;  %v20105_v14 = vld [vmem:[#allocation625_spill] sm:$0xff]  ;;  %v20106_v45 = vld [vmem:[#allocation626_spill] sm:$0xff] }
 0xa27   : > { %9492 = vmatprep.subr.bf16.mxu0 %v20074_v46  ;;  %9533 = vmatprep.subr.bf16.mxu1 %v20075_v1  ;;  %v20107_v46 = vld [vmem:[#allocation627_spill] sm:$0xff]  ;;  %v20108_v1 = vld [vmem:[#allocation628_spill] sm:$0xff] }
 0xa28   : > { %v10530_v54 = vrot.slane %v10516_v6, %v17100_v4  ;;  %v20104_v6 = vld [vmem:[#allocation624_spill] sm:$0xff] }
 0xa2a   : > { %v10531_v55 = vcombine.low %v10523_v53, %v10530_v54  ;;  %9493 = vmatpush1.bf16.msra.mxu0 %v20076_v59  ;;  %9534 = vmatpush1.bf16.msra.mxu1 %v20077_v60  ;;  %v20109_v53 = vld [vmem:[#allocation629_spill] sm:$0xff]  ;;  %v20110_v54 = vld [vmem:[#allocation630_spill] sm:$0xff]  ;;  %v20112_v59 = vld [vmem:[#allocation632_spill] sm:$0xff] }
 0xa2b   : > { %9560 = vmatprep.subr.bf16.mxu0 %v20078_v63  ;;  %9601 = vmatprep.subr.bf16.mxu1 %v20079_v7  ;;  %v20113_v60 = vld [vmem:[#allocation633_spill] sm:$0xff]  ;;  %v20114_v63 = vld [vmem:[#allocation634_spill] sm:$0xff]  ;;  %v20115_v7 = vld [vmem:[#allocation635_spill] sm:$0xff] }
 0xa2c   : > { %10893 = vst [vmem:[%s17157_s30 + $0x28] sm:$0xff] %v10531_v55  ;;  %v20111_v55 = vld [vmem:[#allocation631_spill] sm:$0xff] }
 0xa2d   : > { %9511 = vmatmul.mubr.bf16.vlgmr.msra.gmra.mrb[76].mxu0 %v13530_v22  ;;  %9552 = vmatmul.mubr.bf16.vlgmr.msra.gmra.mrb[76].mxu1 %v13530_v22 }
 0xa2e   : > { %9561 = vmatpush1.bf16.msra.mxu0 %v20080_v11  ;;  %9602 = vmatpush1.bf16.msra.mxu1 %v20081_v12  ;;  %v20116_v11 = vld [vmem:[#allocation636_spill] sm:$0xff]  ;;  %v20117_v12 = vld [vmem:[#allocation637_spill] sm:$0xff] }
 0xa2f   : > { %9562 = vmatprep.subr.bf16.mxu0 %v20082_v49  ;;  %9603 = vmatprep.subr.bf16.mxu1 %v20083_v20  ;;  %v20118_v49 = vld [vmem:[#allocation638_spill] sm:$0xff]  ;;  %v20119_v20 = vld [vmem:[#allocation639_spill] sm:$0xff] }
 0xa30   : > { %9592 = vmatprep.mubr.bf16.mxu0 %v18763_v29  ;;  %9633 = vmatprep.mubr.bf16.mxu1 %v18763_v29 }
 0xa32   : > { %9563 = vmatpush1.bf16.msra.mxu0 %v20084_v23  ;;  %9604 = vmatpush1.bf16.msra.mxu1 %v20085_v2  ;;  %v20120_v23 = vld [vmem:[#allocation640_spill] sm:$0xff]  ;;  %v20121_v2 = vld [vmem:[#allocation641_spill] sm:$0xff] }
 0xa33   : > { %9564 = vmatprep.subr.bf16.mxu0 %v20086_v27  ;;  %9605 = vmatprep.subr.bf16.mxu1 %v20087_v56  ;;  %v20122_v27 = vld [vmem:[#allocation642_spill] sm:$0xff]  ;;  %v20123_v56 = vld [vmem:[#allocation643_spill] sm:$0xff] }
 0xa36   : > { %9565 = vmatpush1.bf16.msra.mxu0 %v20088_v30  ;;  %9606 = vmatpush1.bf16.msra.mxu1 %v20089_v31  ;;  %v20124_v30 = vld [vmem:[#allocation644_spill] sm:$0xff]  ;;  %v20125_v31 = vld [vmem:[#allocation645_spill] sm:$0xff] }
 0xa37   : > { %9566 = vmatprep.subr.bf16.mxu0 %v20090_v35  ;;  %9607 = vmatprep.subr.bf16.mxu1 %v20091_v36  ;;  %v20126_v35 = vld [vmem:[#allocation646_spill] sm:$0xff]  ;;  %v20127_v36 = vld [vmem:[#allocation647_spill] sm:$0xff] }
 0xa3a   : > { %9567 = vmatpush1.bf16.msra.mxu0 %v20092_v8  ;;  %9608 = vmatpush1.bf16.msra.mxu1 %v20093_v40  ;;  %v20128_v8 = vld [vmem:[#allocation648_spill] sm:$0xff]  ;;  %v20129_v40 = vld [vmem:[#allocation649_spill] sm:$0xff] }
 0xa3b   : > { %9568 = vmatprep.subr.bf16.mxu0 %v20094_v42  ;;  %9609 = vmatprep.subr.bf16.mxu1 %v20095_v44  ;;  %v20130_v42 = vld [vmem:[#allocation650_spill] sm:$0xff]  ;;  %v20131_v44 = vld [vmem:[#allocation651_spill] sm:$0xff] }
 0xa3e   : > { %9569 = vmatpush1.bf16.msra.mxu0 %v20096_v48  ;;  %9610 = vmatpush1.bf16.msra.mxu1 %v20097_v24 }
 0xa3f   : > { %9570 = vmatprep.subr.bf16.mxu0 %v20098_v51  ;;  %9611 = vmatprep.subr.bf16.mxu1 %v20099_v52 }
 0xa40   : > { %v9020_v57 = vpop.f32.mrb[52].mxu0  ;;  %v9061_v5 = vpop.f32.mrb[52].mxu1 }
 0xa41   : > { %v9022_v34 = vpop.f32.mrb[53].mxu0  ;;  %v9063_v9 = vpop.f32.mrb[53].mxu1 }
 0xa42   : > { %v10532_v10 = vcombine.low %v9020_v57, %v9022_v34  ;;  %v10533_v43 = vcombine.low %v9061_v5, %v9063_v9  ;;  %v9024_v13 = vpop.f32.mrb[54].mxu0  ;;  %v9065_v0 = vpop.f32.mrb[54].mxu1  ;;  %9571 = vmatpush1.bf16.msra.mxu0 %v20100_v37  ;;  %9612 = vmatpush1.bf16.msra.mxu1 %v20101_v38  ;;  %v20134_v37 = vld [vmem:[#allocation654_spill] sm:$0xff]  ;;  %v20135_v38 = vld [vmem:[#allocation655_spill] sm:$0xff] }
 0xa43   : > { %v9025_v47 = vpop.f32.mrb[55].mxu0  ;;  %v9066_v50 = vpop.f32.mrb[55].mxu1  ;;  %9572 = vmatprep.subr.bf16.mxu0 %v20102_v58  ;;  %9613 = vmatprep.subr.bf16.mxu1 %v20103_v61  ;;  %v20136_v61 = vld [vmem:[#allocation656_spill] sm:$0xff] }
 0xa44   : > { %v10542_v17 = vrot.slane %v10532_v10, %v17100_v4  ;;  %v10549_v28 = vrot.slane %v10533_v43, %v17100_v4  ;;  %v20132_v10 = vld [vmem:[#allocation652_spill] sm:$0xff]  ;;  %v20133_v43 = vld [vmem:[#allocation653_spill] sm:$0xff] }
 0xa46   : > { %v10564_v3 = vcombine.low %v10542_v17, %v10549_v28  ;;  %9573 = vmatpush1.bf16.msra.mxu0 %v20104_v6  ;;  %9614 = vmatpush1.bf16.msra.mxu1 %v20105_v14  ;;  %v20137_v17 = vld [vmem:[#allocation657_spill] sm:$0xff]  ;;  %v20138_v28 = vld [vmem:[#allocation658_spill] sm:$0xff]  ;;  %v20139_v6 = vld [vmem:[#allocation659_spill] sm:$0xff] }
 0xa47   : > { %9574 = vmatprep.subr.bf16.mxu0 %v20106_v45  ;;  %9615 = vmatprep.subr.bf16.mxu1 %v20107_v46 }
 0xa48   : > { %v10572_v14 = vrot.slane %v10564_v3, %v17100_v4  ;;  %v20146_v3 = vld [vmem:[#allocation666_spill] sm:$0xff] }
 0xa4a   : > { %9575 = vmatpush1.bf16.msra.mxu0 %v20108_v1  ;;  %9616 = vmatpush1.bf16.msra.mxu1 %v20109_v53  ;;  %v20140_v1 = vld [vmem:[#allocation660_spill] sm:$0xff]  ;;  %v20141_v53 = vld [vmem:[#allocation661_spill] sm:$0xff] }
 0xa4b   : > { %9642 = vmatprep.subr.bf16.mxu0 %v20110_v54  ;;  %9683 = vmatprep.subr.bf16.mxu1 %v20111_v55  ;;  %v20142_v54 = vld [vmem:[#allocation662_spill] sm:$0xff]  ;;  %v20143_v55 = vld [vmem:[#allocation663_spill] sm:$0xff] }
 0xa4d   : > { %9593 = vmatmul.mubr.bf16.vlgmr.msra.gmra.mrb[80].mxu0 %v13530_v22  ;;  %9634 = vmatmul.mubr.bf16.vlgmr.msra.gmra.mrb[80].mxu1 %v13530_v22 }
 0xa4e   : > { %9643 = vmatpush1.bf16.msra.mxu0 %v20112_v59  ;;  %9684 = vmatpush1.bf16.msra.mxu1 %v20113_v60  ;;  %v20144_v59 = vld [vmem:[#allocation664_spill] sm:$0xff]  ;;  %v20145_v60 = vld [vmem:[#allocation665_spill] sm:$0xff] }
 0xa4f   : > { %9644 = vmatprep.subr.bf16.mxu0 %v20114_v63  ;;  %9685 = vmatprep.subr.bf16.mxu1 %v20115_v7  ;;  %v20147_v63 = vld [vmem:[#allocation667_spill] sm:$0xff]  ;;  %v20148_v7 = vld [vmem:[#allocation668_spill] sm:$0xff] }
 0xa50   : > { %9674 = vmatprep.mubr.bf16.mxu0 %v18763_v29  ;;  %9715 = vmatprep.mubr.bf16.mxu1 %v18763_v29 }
 0xa52   : > { %9645 = vmatpush1.bf16.msra.mxu0 %v20116_v11  ;;  %9686 = vmatpush1.bf16.msra.mxu1 %v20117_v12  ;;  %v20149_v11 = vld [vmem:[#allocation669_spill] sm:$0xff]  ;;  %v20150_v12 = vld [vmem:[#allocation670_spill] sm:$0xff] }
 0xa53   : > { %9646 = vmatprep.subr.bf16.mxu0 %v20118_v49  ;;  %9687 = vmatprep.subr.bf16.mxu1 %v20119_v20  ;;  %v20151_v49 = vld [vmem:[#allocation671_spill] sm:$0xff]  ;;  %v20152_v20 = vld [vmem:[#allocation672_spill] sm:$0xff] }
 0xa56   : > { %9647 = vmatpush1.bf16.msra.mxu0 %v20120_v23  ;;  %9688 = vmatpush1.bf16.msra.mxu1 %v20121_v2  ;;  %v20153_v23 = vld [vmem:[#allocation673_spill] sm:$0xff]  ;;  %v20154_v2 = vld [vmem:[#allocation674_spill] sm:$0xff] }
 0xa57   : > { %9648 = vmatprep.subr.bf16.mxu0 %v20122_v27  ;;  %9689 = vmatprep.subr.bf16.mxu1 %v20123_v56  ;;  %v20155_v27 = vld [vmem:[#allocation675_spill] sm:$0xff]  ;;  %v20156_v56 = vld [vmem:[#allocation676_spill] sm:$0xff] }
 0xa5a   : > { %9649 = vmatpush1.bf16.msra.mxu0 %v20124_v30  ;;  %9690 = vmatpush1.bf16.msra.mxu1 %v20125_v31  ;;  %v20157_v30 = vld [vmem:[#allocation677_spill] sm:$0xff]  ;;  %v20158_v31 = vld [vmem:[#allocation678_spill] sm:$0xff] }
 0xa5b   : > { %9650 = vmatprep.subr.bf16.mxu0 %v20126_v35  ;;  %9691 = vmatprep.subr.bf16.mxu1 %v20127_v36  ;;  %v20159_v35 = vld [vmem:[#allocation679_spill] sm:$0xff]  ;;  %v20160_v36 = vld [vmem:[#allocation680_spill] sm:$0xff] }
 0xa5e   : > { %9651 = vmatpush1.bf16.msra.mxu0 %v20128_v8  ;;  %9692 = vmatpush1.bf16.msra.mxu1 %v20129_v40  ;;  %v20161_v8 = vld [vmem:[#allocation681_spill] sm:$0xff]  ;;  %v20162_v40 = vld [vmem:[#allocation682_spill] sm:$0xff] }
 0xa5f   : > { %9652 = vmatprep.subr.bf16.mxu0 %v20130_v42  ;;  %9693 = vmatprep.subr.bf16.mxu1 %v20131_v44  ;;  %v20163_v42 = vld [vmem:[#allocation683_spill] sm:$0xff] }
 0xa60   : > { %v9102_v48 = vpop.f32.mrb[56].mxu0  ;;  %v9143_v24 = vpop.f32.mrb[56].mxu1 }
 0xa61   : > { %v9104_v51 = vpop.f32.mrb[57].mxu0  ;;  %v9145_v52 = vpop.f32.mrb[57].mxu1 }
 0xa62   : > { %v10534_v57 = vcombine.low %v9102_v48, %v9104_v51  ;;  %v10535_v5 = vcombine.low %v9143_v24, %v9145_v52  ;;  %v9106_v34 = vpop.f32.mrb[58].mxu0  ;;  %v9147_v9 = vpop.f32.mrb[58].mxu1  ;;  %9653 = vmatpush1.bf16.msra.mxu0 %v20132_v10  ;;  %9694 = vmatpush1.bf16.msra.mxu1 %v20133_v43  ;;  %v20165_v10 = vld [vmem:[#allocation685_spill] sm:$0xff] }
 0xa63   : > { %v9107_v13 = vpop.f32.mrb[59].mxu0  ;;  %v9148_v0 = vpop.f32.mrb[59].mxu1  ;;  %9654 = vmatprep.subr.bf16.mxu0 %v20134_v37  ;;  %9695 = vmatprep.subr.bf16.mxu1 %v20135_v38  ;;  %v20164_v9 = vld [vmem:[#allocation684_spill] sm:$0xff]  ;;  %v20167_v37 = vld [vmem:[#allocation687_spill] sm:$0xff] }
 0xa64   : > { %v10556_v47 = vrot.slane %v10534_v57, %v17100_v4  ;;  %v10563_v50 = vrot.slane %v10535_v5, %v17100_v4  ;;  %v20166_v0 = vld [vmem:[#allocation686_spill] sm:$0xff] }
 0xa66   : > { %v10565_v58 = vcombine.low %v10556_v47, %v10563_v50  ;;  %9655 = vmatpush1.bf16.msra.mxu0 %v20136_v61  ;;  %9696 = vmatpush1.bf16.msra.mxu1 %v20137_v17  ;;  %v20169_v61 = vld [vmem:[#allocation689_spill] sm:$0xff]  ;;  %v20170_v17 = vld [vmem:[#allocation690_spill] sm:$0xff] }
 0xa67   : > { %9656 = vmatprep.subr.bf16.mxu0 %v20138_v28  ;;  %9697 = vmatprep.subr.bf16.mxu1 %v20139_v6  ;;  %v20171_v28 = vld [vmem:[#allocation691_spill] sm:$0xff]  ;;  %v20172_v6 = vld [vmem:[#allocation692_spill] sm:$0xff] }
 0xa68   : > { %v10579_v45 = vrot.slane %v10565_v58, %v17100_v4  ;;  %v20168_v58 = vld [vmem:[#allocation688_spill] sm:$0xff] }
 0xa6a   : > { %v10580_v46 = vcombine.low %v10572_v14, %v10579_v45  ;;  %9657 = vmatpush1.bf16.msra.mxu0 %v20140_v1  ;;  %9698 = vmatpush1.bf16.msra.mxu1 %v20141_v53  ;;  %v20173_v14 = vld [vmem:[#allocation693_spill] sm:$0xff]  ;;  %v20174_v45 = vld [vmem:[#allocation694_spill] sm:$0xff]  ;;  %v20176_v1 = vld [vmem:[#allocation696_spill] sm:$0xff] }
 0xa6b   : > { %9724 = vmatprep.subr.bf16.mxu0 %v20142_v54  ;;  %9765 = vmatprep.subr.bf16.mxu1 %v20143_v55  ;;  %v20177_v53 = vld [vmem:[#allocation697_spill] sm:$0xff]  ;;  %v20178_v54 = vld [vmem:[#allocation698_spill] sm:$0xff]  ;;  %v20179_v55 = vld [vmem:[#allocation699_spill] sm:$0xff] }
 0xa6c   : > { %10894 = vst [vmem:[%s17157_s30 + $0x30] sm:$0xff] %v10580_v46  ;;  %v20175_v46 = vld [vmem:[#allocation695_spill] sm:$0xff] }
 0xa6d   : > { %9675 = vmatmul.mubr.bf16.vlgmr.msra.gmra.mrb[84].mxu0 %v13530_v22  ;;  %9716 = vmatmul.mubr.bf16.vlgmr.msra.gmra.mrb[84].mxu1 %v13530_v22 }
 0xa6e   : > { %9725 = vmatpush1.bf16.msra.mxu0 %v20144_v59  ;;  %9766 = vmatpush1.bf16.msra.mxu1 %v20145_v60  ;;  %v20180_v59 = vld [vmem:[#allocation700_spill] sm:$0xff]  ;;  %v20181_v60 = vld [vmem:[#allocation701_spill] sm:$0xff] }
 0xa6f   : > { %9726 = vmatprep.subr.bf16.mxu0 %v20146_v3  ;;  %9767 = vmatprep.subr.bf16.mxu1 %v20147_v63  ;;  %v20182_v3 = vld [vmem:[#allocation702_spill] sm:$0xff]  ;;  %v20183_v63 = vld [vmem:[#allocation703_spill] sm:$0xff] }
 0xa70   : > { %9756 = vmatprep.mubr.bf16.mxu0 %v18763_v29  ;;  %9797 = vmatprep.mubr.bf16.mxu1 %v18763_v29 }
 0xa72   : > { %9727 = vmatpush1.bf16.msra.mxu0 %v20148_v7  ;;  %9768 = vmatpush1.bf16.msra.mxu1 %v20149_v11  ;;  %v20184_v7 = vld [vmem:[#allocation704_spill] sm:$0xff]  ;;  %v20185_v11 = vld [vmem:[#allocation705_spill] sm:$0xff] }
 0xa73   : > { %9728 = vmatprep.subr.bf16.mxu0 %v20150_v12  ;;  %9769 = vmatprep.subr.bf16.mxu1 %v20151_v49  ;;  %v20186_v12 = vld [vmem:[#allocation706_spill] sm:$0xff]  ;;  %v20187_v49 = vld [vmem:[#allocation707_spill] sm:$0xff] }
 0xa76   : > { %9729 = vmatpush1.bf16.msra.mxu0 %v20152_v20  ;;  %9770 = vmatpush1.bf16.msra.mxu1 %v20153_v23  ;;  %v20188_v20 = vld [vmem:[#allocation708_spill] sm:$0xff]  ;;  %v20189_v23 = vld [vmem:[#allocation709_spill] sm:$0xff] }
 0xa77   : > { %9730 = vmatprep.subr.bf16.mxu0 %v20154_v2  ;;  %9771 = vmatprep.subr.bf16.mxu1 %v20155_v27  ;;  %v20190_v2 = vld [vmem:[#allocation710_spill] sm:$0xff]  ;;  %v20191_v27 = vld [vmem:[#allocation711_spill] sm:$0xff] }
 0xa7a   : > { %9731 = vmatpush1.bf16.msra.mxu0 %v20156_v56  ;;  %9772 = vmatpush1.bf16.msra.mxu1 %v20157_v30  ;;  %v20192_v56 = vld [vmem:[#allocation712_spill] sm:$0xff]  ;;  %v20193_v30 = vld [vmem:[#allocation713_spill] sm:$0xff] }
 0xa7b   : > { %9732 = vmatprep.subr.bf16.mxu0 %v20158_v31  ;;  %9773 = vmatprep.subr.bf16.mxu1 %v20159_v35  ;;  %v20194_v31 = vld [vmem:[#allocation714_spill] sm:$0xff]  ;;  %v20195_v35 = vld [vmem:[#allocation715_spill] sm:$0xff] }
 0xa7e   : > { %9733 = vmatpush1.bf16.msra.mxu0 %v20160_v36  ;;  %9774 = vmatpush1.bf16.msra.mxu1 %v20161_v8 }
 0xa7f   : > { %9734 = vmatprep.subr.bf16.mxu0 %v20162_v40  ;;  %9775 = vmatprep.subr.bf16.mxu1 %v20163_v42 }
 0xa80   : > { %v9184_v44 = vpop.f32.mrb[60].mxu0  ;;  %v9225_v48 = vpop.f32.mrb[60].mxu1 }
 0xa81   : > { %v9186_v24 = vpop.f32.mrb[61].mxu0  ;;  %v9227_v51 = vpop.f32.mrb[61].mxu1 }
 0xa82   : > { %v10581_v52 = vcombine.low %v9184_v44, %v9186_v24  ;;  %v10582_v57 = vcombine.low %v9225_v48, %v9227_v51  ;;  %v9188_v5 = vpop.f32.mrb[62].mxu0  ;;  %v9229_v34 = vpop.f32.mrb[62].mxu1  ;;  %9735 = vmatpush1.bf16.msra.mxu0 %v20164_v9  ;;  %9776 = vmatpush1.bf16.msra.mxu1 %v20165_v10  ;;  %v20198_v9 = vld [vmem:[#allocation718_spill] sm:$0xff]  ;;  %v20199_v10 = vld [vmem:[#allocation719_spill] sm:$0xff] }
 0xa83   : > { %v9189_v43 = vpop.f32.mrb[63].mxu0  ;;  %v9230_v13 = vpop.f32.mrb[63].mxu1  ;;  %9736 = vmatprep.subr.bf16.mxu0 %v20166_v0  ;;  %9777 = vmatprep.subr.bf16.mxu1 %v20167_v37  ;;  %v20200_v37 = vld [vmem:[#allocation720_spill] sm:$0xff] }
 0xa84   : > { %v10591_v38 = vrot.slane %v10581_v52, %v17100_v4  ;;  %v10598_v47 = vrot.slane %v10582_v57, %v17100_v4  ;;  %v20196_v52 = vld [vmem:[#allocation716_spill] sm:$0xff]  ;;  %v20197_v57 = vld [vmem:[#allocation717_spill] sm:$0xff] }
 0xa86   : > { %v10613_v50 = vcombine.low %v10591_v38, %v10598_v47  ;;  %9737 = vmatpush1.bf16.msra.mxu0 %v20168_v58  ;;  %9778 = vmatpush1.bf16.msra.mxu1 %v20169_v61  ;;  %v20201_v38 = vld [vmem:[#allocation721_spill] sm:$0xff]  ;;  %v20202_v47 = vld [vmem:[#allocation722_spill] sm:$0xff]  ;;  %v20203_v58 = vld [vmem:[#allocation723_spill] sm:$0xff] }
 0xa87   : > { %9738 = vmatprep.subr.bf16.mxu0 %v20170_v17  ;;  %9779 = vmatprep.subr.bf16.mxu1 %v20171_v28 }
 0xa88   : > { %v10621_v61 = vrot.slane %v10613_v50, %v17100_v4  ;;  %v20210_v50 = vld [vmem:[#allocation730_spill] sm:$0xff] }
 0xa8a   : > { %9739 = vmatpush1.bf16.msra.mxu0 %v20172_v6  ;;  %9780 = vmatpush1.bf16.msra.mxu1 %v20173_v14  ;;  %v20204_v6 = vld [vmem:[#allocation724_spill] sm:$0xff]  ;;  %v20205_v14 = vld [vmem:[#allocation725_spill] sm:$0xff] }
 0xa8b   : > { %9806 = vmatprep.subr.bf16.mxu0 %v20174_v45  ;;  %9847 = vmatprep.subr.bf16.mxu1 %v20175_v46  ;;  %v20206_v45 = vld [vmem:[#allocation726_spill] sm:$0xff]  ;;  %v20207_v46 = vld [vmem:[#allocation727_spill] sm:$0xff] }
 0xa8d   : > { %9757 = vmatmul.mubr.bf16.vlgmr.msra.gmra.mrb[88].mxu0 %v13530_v22  ;;  %9798 = vmatmul.mubr.bf16.vlgmr.msra.gmra.mrb[88].mxu1 %v13530_v22 }
 0xa8e   : > { %9807 = vmatpush1.bf16.msra.mxu0 %v20176_v1  ;;  %9848 = vmatpush1.bf16.msra.mxu1 %v20177_v53  ;;  %v20208_v1 = vld [vmem:[#allocation728_spill] sm:$0xff]  ;;  %v20209_v53 = vld [vmem:[#allocation729_spill] sm:$0xff] }
 0xa8f   : > { %9808 = vmatprep.subr.bf16.mxu0 %v20178_v54  ;;  %9849 = vmatprep.subr.bf16.mxu1 %v20179_v55  ;;  %v20211_v54 = vld [vmem:[#allocation731_spill] sm:$0xff]  ;;  %v20212_v55 = vld [vmem:[#allocation732_spill] sm:$0xff] }
 0xa90   : > { %9838 = vmatprep.mubr.bf16.mxu0 %v18763_v29  ;;  %9879 = vmatprep.mubr.bf16.mxu1 %v18763_v29 }
 0xa92   : > { %9809 = vmatpush1.bf16.msra.mxu0 %v20180_v59  ;;  %9850 = vmatpush1.bf16.msra.mxu1 %v20181_v60  ;;  %v20213_v59 = vld [vmem:[#allocation733_spill] sm:$0xff]  ;;  %v20214_v60 = vld [vmem:[#allocation734_spill] sm:$0xff] }
 0xa93   : > { %9810 = vmatprep.subr.bf16.mxu0 %v20182_v3  ;;  %9851 = vmatprep.subr.bf16.mxu1 %v20183_v63  ;;  %v20215_v3 = vld [vmem:[#allocation735_spill] sm:$0xff]  ;;  %v20216_v63 = vld [vmem:[#allocation736_spill] sm:$0xff] }
 0xa96   : > { %9811 = vmatpush1.bf16.msra.mxu0 %v20184_v7  ;;  %9852 = vmatpush1.bf16.msra.mxu1 %v20185_v11  ;;  %v20217_v7 = vld [vmem:[#allocation737_spill] sm:$0xff]  ;;  %v20218_v11 = vld [vmem:[#allocation738_spill] sm:$0xff] }
 0xa97   : > { %9812 = vmatprep.subr.bf16.mxu0 %v20186_v12  ;;  %9853 = vmatprep.subr.bf16.mxu1 %v20187_v49  ;;  %v20219_v12 = vld [vmem:[#allocation739_spill] sm:$0xff]  ;;  %v20220_v49 = vld [vmem:[#allocation740_spill] sm:$0xff] }
 0xa9a   : > { %9813 = vmatpush1.bf16.msra.mxu0 %v20188_v20  ;;  %9854 = vmatpush1.bf16.msra.mxu1 %v20189_v23  ;;  %v20221_v20 = vld [vmem:[#allocation741_spill] sm:$0xff]  ;;  %v20222_v23 = vld [vmem:[#allocation742_spill] sm:$0xff] }
 0xa9b   : > { %9814 = vmatprep.subr.bf16.mxu0 %v20190_v2  ;;  %9855 = vmatprep.subr.bf16.mxu1 %v20191_v27  ;;  %v20223_v2 = vld [vmem:[#allocation743_spill] sm:$0xff]  ;;  %v20224_v27 = vld [vmem:[#allocation744_spill] sm:$0xff] }
 0xa9e   : > { %9815 = vmatpush1.bf16.msra.mxu0 %v20192_v56  ;;  %9856 = vmatpush1.bf16.msra.mxu1 %v20193_v30  ;;  %v20225_v56 = vld [vmem:[#allocation745_spill] sm:$0xff]  ;;  %v20226_v30 = vld [vmem:[#allocation746_spill] sm:$0xff] }
 0xa9f   : > { %9816 = vmatprep.subr.bf16.mxu0 %v20194_v31  ;;  %9857 = vmatprep.subr.bf16.mxu1 %v20195_v35  ;;  %v20227_v31 = vld [vmem:[#allocation747_spill] sm:$0xff] }
 0xaa0   : > { %v9266_v36 = vpop.f32.mrb[64].mxu0  ;;  %v9307_v8 = vpop.f32.mrb[64].mxu1 }
 0xaa1   : > { %v9268_v40 = vpop.f32.mrb[65].mxu0  ;;  %v9309_v42 = vpop.f32.mrb[65].mxu1 }
 0xaa2   : > { %v10583_v44 = vcombine.low %v9266_v36, %v9268_v40  ;;  %v10584_v48 = vcombine.low %v9307_v8, %v9309_v42  ;;  %v9270_v24 = vpop.f32.mrb[66].mxu0  ;;  %v9311_v51 = vpop.f32.mrb[66].mxu1  ;;  %9817 = vmatpush1.bf16.msra.mxu0 %v20196_v52  ;;  %9858 = vmatpush1.bf16.msra.mxu1 %v20197_v57  ;;  %v20229_v52 = vld [vmem:[#allocation749_spill] sm:$0xff] }
 0xaa3   : > { %v9271_v5 = vpop.f32.mrb[67].mxu0  ;;  %v9312_v34 = vpop.f32.mrb[67].mxu1  ;;  %9818 = vmatprep.subr.bf16.mxu0 %v20198_v9  ;;  %9859 = vmatprep.subr.bf16.mxu1 %v20199_v10  ;;  %v20228_v51 = vld [vmem:[#allocation748_spill] sm:$0xff]  ;;  %v20231_v9 = vld [vmem:[#allocation751_spill] sm:$0xff] }
 0xaa4   : > { %v10605_v43 = vrot.slane %v10583_v44, %v17100_v4  ;;  %v10612_v13 = vrot.slane %v10584_v48, %v17100_v4  ;;  %v20230_v34 = vld [vmem:[#allocation750_spill] sm:$0xff] }
 0xaa6   : > { %v10614_v0 = vcombine.low %v10605_v43, %v10612_v13  ;;  %9819 = vmatpush1.bf16.msra.mxu0 %v20200_v37  ;;  %9860 = vmatpush1.bf16.msra.mxu1 %v20201_v38  ;;  %v20233_v37 = vld [vmem:[#allocation753_spill] sm:$0xff]  ;;  %v20234_v38 = vld [vmem:[#allocation754_spill] sm:$0xff] }
 0xaa7   : > { %9820 = vmatprep.subr.bf16.mxu0 %v20202_v47  ;;  %9861 = vmatprep.subr.bf16.mxu1 %v20203_v58  ;;  %v20235_v47 = vld [vmem:[#allocation755_spill] sm:$0xff]  ;;  %v20236_v58 = vld [vmem:[#allocation756_spill] sm:$0xff] }
 0xaa8   : > { %v10628_v17 = vrot.slane %v10614_v0, %v17100_v4  ;;  %v20232_v0 = vld [vmem:[#allocation752_spill] sm:$0xff] }
 0xaaa   : > { %v10629_v28 = vcombine.low %v10621_v61, %v10628_v17  ;;  %9821 = vmatpush1.bf16.msra.mxu0 %v20204_v6  ;;  %9862 = vmatpush1.bf16.msra.mxu1 %v20205_v14  ;;  %v20237_v61 = vld [vmem:[#allocation757_spill] sm:$0xff]  ;;  %v20238_v17 = vld [vmem:[#allocation758_spill] sm:$0xff]  ;;  %v20240_v6 = vld [vmem:[#allocation760_spill] sm:$0xff] }
 0xaab   : > { %9888 = vmatprep.subr.bf16.mxu0 %v20206_v45  ;;  %9929 = vmatprep.subr.bf16.mxu1 %v20207_v46  ;;  %v20241_v14 = vld [vmem:[#allocation761_spill] sm:$0xff]  ;;  %v20242_v45 = vld [vmem:[#allocation762_spill] sm:$0xff]  ;;  %v20243_v46 = vld [vmem:[#allocation763_spill] sm:$0xff] }
 0xaac   : > { %10895 = vst [vmem:[%s17157_s30 + $0x38] sm:$0xff] %v10629_v28  ;;  %v20239_v28 = vld [vmem:[#allocation759_spill] sm:$0xff] }
 0xaad   : > { %9839 = vmatmul.mubr.bf16.vlgmr.msra.gmra.mrb[92].mxu0 %v13530_v22  ;;  %9880 = vmatmul.mubr.bf16.vlgmr.msra.gmra.mrb[92].mxu1 %v13530_v22 }
 0xaae   : > { %9889 = vmatpush1.bf16.msra.mxu0 %v20208_v1  ;;  %9930 = vmatpush1.bf16.msra.mxu1 %v20209_v53  ;;  %v20244_v1 = vld [vmem:[#allocation764_spill] sm:$0xff]  ;;  %v20245_v53 = vld [vmem:[#allocation765_spill] sm:$0xff] }
 0xaaf   : > { %9890 = vmatprep.subr.bf16.mxu0 %v20210_v50  ;;  %9931 = vmatprep.subr.bf16.mxu1 %v20211_v54  ;;  %v20246_v50 = vld [vmem:[#allocation766_spill] sm:$0xff]  ;;  %v20247_v54 = vld [vmem:[#allocation767_spill] sm:$0xff] }
 0xab0   : > { %9920 = vmatprep.mubr.bf16.mxu0 %v18763_v29  ;;  %9961 = vmatprep.mubr.bf16.mxu1 %v18763_v29 }
 0xab2   : > { %9891 = vmatpush1.bf16.msra.mxu0 %v20212_v55  ;;  %9932 = vmatpush1.bf16.msra.mxu1 %v20213_v59  ;;  %v20248_v55 = vld [vmem:[#allocation768_spill] sm:$0xff]  ;;  %v20249_v59 = vld [vmem:[#allocation769_spill] sm:$0xff] }
 0xab3   : > { %9892 = vmatprep.subr.bf16.mxu0 %v20214_v60  ;;  %9933 = vmatprep.subr.bf16.mxu1 %v20215_v3  ;;  %v20250_v60 = vld [vmem:[#allocation770_spill] sm:$0xff]  ;;  %v20251_v3 = vld [vmem:[#allocation771_spill] sm:$0xff] }
 0xab6   : > { %9893 = vmatpush1.bf16.msra.mxu0 %v20216_v63  ;;  %9934 = vmatpush1.bf16.msra.mxu1 %v20217_v7  ;;  %v20252_v63 = vld [vmem:[#allocation772_spill] sm:$0xff]  ;;  %v20253_v7 = vld [vmem:[#allocation773_spill] sm:$0xff] }
 0xab7   : > { %9894 = vmatprep.subr.bf16.mxu0 %v20218_v11  ;;  %9935 = vmatprep.subr.bf16.mxu1 %v20219_v12  ;;  %v20254_v11 = vld [vmem:[#allocation774_spill] sm:$0xff]  ;;  %v20255_v12 = vld [vmem:[#allocation775_spill] sm:$0xff] }
 0xaba   : > { %9895 = vmatpush1.bf16.msra.mxu0 %v20220_v49  ;;  %9936 = vmatpush1.bf16.msra.mxu1 %v20221_v20  ;;  %v20256_v49 = vld [vmem:[#allocation776_spill] sm:$0xff]  ;;  %v20257_v20 = vld [vmem:[#allocation777_spill] sm:$0xff] }
 0xabb   : > { %9896 = vmatprep.subr.bf16.mxu0 %v20222_v23  ;;  %9937 = vmatprep.subr.bf16.mxu1 %v20223_v2  ;;  %v20258_v23 = vld [vmem:[#allocation778_spill] sm:$0xff]  ;;  %v20259_v2 = vld [vmem:[#allocation779_spill] sm:$0xff] }
 0xabe   : > { %9897 = vmatpush1.bf16.msra.mxu0 %v20224_v27  ;;  %9938 = vmatpush1.bf16.msra.mxu1 %v20225_v56 }
 0xabf   : > { %9898 = vmatprep.subr.bf16.mxu0 %v20226_v30  ;;  %9939 = vmatprep.subr.bf16.mxu1 %v20227_v31 }
 0xac0   : > { %v9348_v35 = vpop.f32.mrb[68].mxu0  ;;  %v9389_v36 = vpop.f32.mrb[68].mxu1 }
 0xac1   : > { %v9350_v8 = vpop.f32.mrb[69].mxu0  ;;  %v9391_v40 = vpop.f32.mrb[69].mxu1 }
 0xac2   : > { %v10630_v42 = vcombine.low %v9348_v35, %v9350_v8  ;;  %v10631_v44 = vcombine.low %v9389_v36, %v9391_v40  ;;  %v9352_v48 = vpop.f32.mrb[70].mxu0  ;;  %v9393_v24 = vpop.f32.mrb[70].mxu1  ;;  %9899 = vmatpush1.bf16.msra.mxu0 %v20228_v51  ;;  %9940 = vmatpush1.bf16.msra.mxu1 %v20229_v52  ;;  %v20262_v51 = vld [vmem:[#allocation782_spill] sm:$0xff]  ;;  %v20263_v52 = vld [vmem:[#allocation783_spill] sm:$0xff] }
 0xac3   : > { %v9353_v57 = vpop.f32.mrb[71].mxu0  ;;  %v9394_v5 = vpop.f32.mrb[71].mxu1  ;;  %9900 = vmatprep.subr.bf16.mxu0 %v20230_v34  ;;  %9941 = vmatprep.subr.bf16.mxu1 %v20231_v9  ;;  %v20264_v9 = vld [vmem:[#allocation784_spill] sm:$0xff] }
 0xac4   : > { %v10640_v10 = vrot.slane %v10630_v42, %v17100_v4  ;;  %v10647_v43 = vrot.slane %v10631_v44, %v17100_v4  ;;  %v20260_v42 = vld [vmem:[#allocation780_spill] sm:$0xff]  ;;  %v20261_v44 = vld [vmem:[#allocation781_spill] sm:$0xff] }
 0xac6   : > { %v10662_v13 = vcombine.low %v10640_v10, %v10647_v43  ;;  %9901 = vmatpush1.bf16.msra.mxu0 %v20232_v0  ;;  %9942 = vmatpush1.bf16.msra.mxu1 %v20233_v37  ;;  %v20265_v10 = vld [vmem:[#allocation785_spill] sm:$0xff]  ;;  %v20266_v43 = vld [vmem:[#allocation786_spill] sm:$0xff]  ;;  %v20267_v0 = vld [vmem:[#allocation787_spill] sm:$0xff] }
 0xac7   : > { %9902 = vmatprep.subr.bf16.mxu0 %v20234_v38  ;;  %9943 = vmatprep.subr.bf16.mxu1 %v20235_v47 }
 0xac8   : > { %v10670_v37 = vrot.slane %v10662_v13, %v17100_v4  ;;  %v20274_v13 = vld [vmem:[#allocation794_spill] sm:$0xff] }
 0xaca   : > { %9903 = vmatpush1.bf16.msra.mxu0 %v20236_v58  ;;  %9944 = vmatpush1.bf16.msra.mxu1 %v20237_v61  ;;  %v20268_v58 = vld [vmem:[#allocation788_spill] sm:$0xff]  ;;  %v20269_v61 = vld [vmem:[#allocation789_spill] sm:$0xff] }
 0xacb   : > { %9970 = vmatprep.subr.bf16.mxu0 %v20238_v17  ;;  %10011 = vmatprep.subr.bf16.mxu1 %v20239_v28  ;;  %v20270_v17 = vld [vmem:[#allocation790_spill] sm:$0xff]  ;;  %v20271_v28 = vld [vmem:[#allocation791_spill] sm:$0xff] }
 0xacd   : > { %9921 = vmatmul.mubr.bf16.vlgmr.msra.gmra.mrb[96].mxu0 %v13530_v22  ;;  %9962 = vmatmul.mubr.bf16.vlgmr.msra.gmra.mrb[96].mxu1 %v13530_v22 }
 0xace   : > { %9971 = vmatpush1.bf16.msra.mxu0 %v20240_v6  ;;  %10012 = vmatpush1.bf16.msra.mxu1 %v20241_v14  ;;  %v20272_v6 = vld [vmem:[#allocation792_spill] sm:$0xff]  ;;  %v20273_v14 = vld [vmem:[#allocation793_spill] sm:$0xff] }
 0xacf   : > { %9972 = vmatprep.subr.bf16.mxu0 %v20242_v45  ;;  %10013 = vmatprep.subr.bf16.mxu1 %v20243_v46  ;;  %v20275_v45 = vld [vmem:[#allocation795_spill] sm:$0xff]  ;;  %v20276_v46 = vld [vmem:[#allocation796_spill] sm:$0xff] }
 0xad0   : > { %10002 = vmatprep.mubr.bf16.mxu0 %v18763_v29  ;;  %10043 = vmatprep.mubr.bf16.mxu1 %v18763_v29 }
 0xad2   : > { %9973 = vmatpush1.bf16.msra.mxu0 %v20244_v1  ;;  %10014 = vmatpush1.bf16.msra.mxu1 %v20245_v53  ;;  %v20277_v1 = vld [vmem:[#allocation797_spill] sm:$0xff]  ;;  %v20278_v53 = vld [vmem:[#allocation798_spill] sm:$0xff] }
 0xad3   : > { %9974 = vmatprep.subr.bf16.mxu0 %v20246_v50  ;;  %10015 = vmatprep.subr.bf16.mxu1 %v20247_v54  ;;  %v20279_v50 = vld [vmem:[#allocation799_spill] sm:$0xff]  ;;  %v20280_v54 = vld [vmem:[#allocation800_spill] sm:$0xff] }
 0xad6   : > { %9975 = vmatpush1.bf16.msra.mxu0 %v20248_v55  ;;  %10016 = vmatpush1.bf16.msra.mxu1 %v20249_v59  ;;  %v20281_v55 = vld [vmem:[#allocation801_spill] sm:$0xff]  ;;  %v20282_v59 = vld [vmem:[#allocation802_spill] sm:$0xff] }
 0xad7   : > { %9976 = vmatprep.subr.bf16.mxu0 %v20250_v60  ;;  %10017 = vmatprep.subr.bf16.mxu1 %v20251_v3  ;;  %v20283_v60 = vld [vmem:[#allocation803_spill] sm:$0xff]  ;;  %v20284_v3 = vld [vmem:[#allocation804_spill] sm:$0xff] }
 0xada   : > { %9977 = vmatpush1.bf16.msra.mxu0 %v20252_v63  ;;  %10018 = vmatpush1.bf16.msra.mxu1 %v20253_v7  ;;  %v20285_v63 = vld [vmem:[#allocation805_spill] sm:$0xff]  ;;  %v20287_v7 = vld [vmem:[#allocation807_spill] sm:$0xff] }
 0xadb   : > { %9978 = vmatprep.subr.bf16.mxu0 %v20254_v11  ;;  %10019 = vmatprep.subr.bf16.mxu1 %v20255_v12  ;;  %v20288_v11 = vld [vmem:[#allocation808_spill] sm:$0xff] }
 0xade   : > { %9979 = vmatpush1.bf16.msra.mxu0 %v20256_v49  ;;  %10020 = vmatpush1.bf16.msra.mxu1 %v20257_v20 }
 0xadf   : > { %9980 = vmatprep.subr.bf16.mxu0 %v20258_v23  ;;  %10021 = vmatprep.subr.bf16.mxu1 %v20259_v2 }
 0xae0   : > { %v9430_v27 = vpop.f32.mrb[72].mxu0  ;;  %v9471_v56 = vpop.f32.mrb[72].mxu1 }
 0xae1   : > { %v9432_v30 = vpop.f32.mrb[73].mxu0  ;;  %v9473_v31 = vpop.f32.mrb[73].mxu1 }
 0xae2   : > { %v10632_v35 = vcombine.low %v9430_v27, %v9432_v30  ;;  %v10633_v36 = vcombine.low %v9471_v56, %v9473_v31  ;;  %v9434_v8 = vpop.f32.mrb[74].mxu0  ;;  %v9475_v40 = vpop.f32.mrb[74].mxu1  ;;  %9981 = vmatpush1.bf16.msra.mxu0 %v20260_v42  ;;  %10022 = vmatpush1.bf16.msra.mxu1 %v20261_v44  ;;  %v20289_v31 = vld [vmem:[#allocation809_spill] sm:$0xff] }
 0xae3   : > { %v9435_v48 = vpop.f32.mrb[75].mxu0  ;;  %v9476_v24 = vpop.f32.mrb[75].mxu1  ;;  %9982 = vmatprep.subr.bf16.mxu0 %v20262_v51  ;;  %10023 = vmatprep.subr.bf16.mxu1 %v20263_v52 }
 0xae4   : > { %v10654_v57 = vrot.slane %v10632_v35, %v17100_v4  ;;  %v10661_v5 = vrot.slane %v10633_v36, %v17100_v4 }
 0xae6   : > { %v10663_v34 = vcombine.low %v10654_v57, %v10661_v5  ;;  %9983 = vmatpush1.bf16.msra.mxu0 %v20264_v9  ;;  %10024 = vmatpush1.bf16.msra.mxu1 %v20265_v10 }
 0xae7   : > { %9984 = vmatprep.subr.bf16.mxu0 %v20266_v43  ;;  %10025 = vmatprep.subr.bf16.mxu1 %v20267_v0 }
 0xae8   : > { %v10677_v38 = vrot.slane %v10663_v34, %v17100_v4 }
 0xaea   : > { %v10678_v47 = vcombine.low %v10670_v37, %v10677_v38  ;;  %9985 = vmatpush1.bf16.msra.mxu0 %v20268_v58  ;;  %10026 = vmatpush1.bf16.msra.mxu1 %v20269_v61 }
 0xaeb   : > { %10052 = vmatprep.subr.bf16.mxu0 %v20270_v17  ;;  %10093 = vmatprep.subr.bf16.mxu1 %v20271_v28 }
 0xaec   : > { %10896 = vst [vmem:[%s17157_s30 + $0x40] sm:$0xff] %v10678_v47 }
 0xaed   : > { %10003 = vmatmul.mubr.bf16.vlgmr.msra.gmra.mrb[100].mxu0 %v13530_v22  ;;  %10044 = vmatmul.mubr.bf16.vlgmr.msra.gmra.mrb[100].mxu1 %v13530_v22 }
 0xaee   : > { %10053 = vmatpush1.bf16.msra.mxu0 %v20272_v6  ;;  %10094 = vmatpush1.bf16.msra.mxu1 %v20273_v14 }
 0xaef   : > { %10054 = vmatprep.subr.bf16.mxu0 %v20274_v13  ;;  %10095 = vmatprep.subr.bf16.mxu1 %v20275_v45 }
 0xaf0   : > { %10084 = vmatprep.mubr.bf16.mxu0 %v18763_v29  ;;  %10125 = vmatprep.mubr.bf16.mxu1 %v18763_v29  ;;  %v20286_v29 = vld [vmem:[#allocation806_spill] sm:$0xff] }
 0xaf2   : > { %10055 = vmatpush1.bf16.msra.mxu0 %v20276_v46  ;;  %10096 = vmatpush1.bf16.msra.mxu1 %v20277_v1 }
 0xaf3   : > { %10056 = vmatprep.subr.bf16.mxu0 %v20278_v53  ;;  %10097 = vmatprep.subr.bf16.mxu1 %v20279_v50 }
 0xaf6   : > { %10057 = vmatpush1.bf16.msra.mxu0 %v20280_v54  ;;  %10098 = vmatpush1.bf16.msra.mxu1 %v20281_v55 }
 0xaf7   : > { %10058 = vmatprep.subr.bf16.mxu0 %v20282_v59  ;;  %10099 = vmatprep.subr.bf16.mxu1 %v20283_v60 }
 0xafa   : > { %10059 = vmatpush1.bf16.msra.mxu0 %v20284_v3  ;;  %10100 = vmatpush1.bf16.msra.mxu1 %v20285_v63 }
 0xafb   : > { %10060 = vmatprep.subr.bf16.mxu0 %v20286_v29  ;;  %10101 = vmatprep.subr.bf16.mxu1 %v20287_v7 }
 0xafe   : > { %10061 = vmatpush1.bf16.msra.mxu0 %v16769_v19  ;;  %10102 = vmatpush1.bf16.msra.mxu1 %v16771_v21 }
 0xaff   : > { %10062 = vmatprep.subr.bf16.mxu0 %v16775_v32  ;;  %10103 = vmatprep.subr.bf16.mxu1 %v20288_v11 }
 0xb00   : > { %v9512_v12 = vpop.f32.mrb[76].mxu0  ;;  %v9553_v49 = vpop.f32.mrb[76].mxu1 }
 0xb01   : > { %v9514_v20 = vpop.f32.mrb[77].mxu0  ;;  %v9555_v23 = vpop.f32.mrb[77].mxu1 }
 0xb02   : > { %v10679_v2 = vcombine.low %v9512_v12, %v9514_v20  ;;  %v10680_v27 = vcombine.low %v9553_v49, %v9555_v23  ;;  %v9516_v56 = vpop.f32.mrb[78].mxu0  ;;  %v9557_v30 = vpop.f32.mrb[78].mxu1  ;;  %10063 = vmatpush1.bf16.msra.mxu0 %v20289_v31  ;;  %10104 = vmatpush1.bf16.msra.mxu1 %v16787_v41 }
 0xb03   : > { %v9517_v35 = vpop.f32.mrb[79].mxu0  ;;  %v9558_v19 = vpop.f32.mrb[79].mxu1  ;;  %10064 = vmatprep.subr.bf16.mxu0 %v16791_v18  ;;  %10105 = vmatprep.subr.bf16.mxu1 %v16793_v62 }
 0xb04   : > { %v10689_v21 = vrot.slane %v10679_v2, %v17100_v4  ;;  %v10696_v32 = vrot.slane %v10680_v27, %v17100_v4 }
 0xb06   : > { %v10711_v36 = vcombine.low %v10689_v21, %v10696_v32  ;;  %10065 = vmatpush1.bf16.msra.mxu0 %v16801_v16  ;;  %10106 = vmatpush1.bf16.msra.mxu1 %v16803_v15 }
 0xb07   : > { %10066 = vmatprep.subr.bf16.mxu0 %v16807_v25  ;;  %10107 = vmatprep.subr.bf16.mxu1 %v16809_v26 }
 0xb08   : > { %v10719_v48 = vrot.slane %v10711_v36, %v17100_v4 }
 0xb0a   : > { %10067 = vmatpush1.bf16.msra.mxu0 %v16813_v33  ;;  %10108 = vmatpush1.bf16.msra.mxu1 %v16815_v39 }
 0xb0d   : > { %10085 = vmatmul.mubr.bf16.vlgmr.msra.gmra.mrb[104].mxu0 %v13530_v22  ;;  %10126 = vmatmul.mubr.bf16.vlgmr.msra.gmra.mrb[104].mxu1 %v13530_v22 }
 0xb20   : > { %v9594_v41 = vpop.f32.mrb[80].mxu0  ;;  %v9635_v18 = vpop.f32.mrb[80].mxu1 }
 0xb21   : > { %v9596_v62 = vpop.f32.mrb[81].mxu0  ;;  %v9637_v8 = vpop.f32.mrb[81].mxu1 }
 0xb22   : > { %v10681_v16 = vcombine.low %v9594_v41, %v9596_v62  ;;  %v10682_v40 = vcombine.low %v9635_v18, %v9637_v8  ;;  %v9598_v15 = vpop.f32.mrb[82].mxu0  ;;  %v9639_v42 = vpop.f32.mrb[82].mxu1 }
 0xb23   : > { %v9599_v25 = vpop.f32.mrb[83].mxu0  ;;  %v9640_v44 = vpop.f32.mrb[83].mxu1 }
 0xb24   : > { %v10703_v26 = vrot.slane %v10681_v16, %v17100_v4  ;;  %v10710_v33 = vrot.slane %v10682_v40, %v17100_v4 }
 0xb26   : > { %v10712_v39 = vcombine.low %v10703_v26, %v10710_v33 }
 0xb28   : > { %v10726_v22 = vrot.slane %v10712_v39, %v17100_v4 }
 0xb2a   : > { %v10727_v24 = vcombine.low %v10719_v48, %v10726_v22 }
 0xb2c   : > { %10897 = vst [vmem:[%s17157_s30 + $0x48] sm:$0xff] %v10727_v24 }
 0xb40   : > { %v9676_v51 = vpop.f32.mrb[84].mxu0  ;;  %v9717_v52 = vpop.f32.mrb[84].mxu1 }
 0xb41   : > { %v9678_v57 = vpop.f32.mrb[85].mxu0  ;;  %v9719_v5 = vpop.f32.mrb[85].mxu1 }
 0xb42   : > { %v10728_v34 = vcombine.low %v9676_v51, %v9678_v57  ;;  %v10729_v9 = vcombine.low %v9717_v52, %v9719_v5  ;;  %v9680_v10 = vpop.f32.mrb[86].mxu0  ;;  %v9721_v43 = vpop.f32.mrb[86].mxu1 }
 0xb43   : > { %v9681_v0 = vpop.f32.mrb[87].mxu0  ;;  %v9722_v37 = vpop.f32.mrb[87].mxu1 }
 0xb44   : > { %v10738_v38 = vrot.slane %v10728_v34, %v17100_v4  ;;  %v10745_v47 = vrot.slane %v10729_v9, %v17100_v4 }
 0xb46   : > { %v10760_v58 = vcombine.low %v10738_v38, %v10745_v47 }
 0xb48   : > { %v10768_v59 = vrot.slane %v10760_v58, %v17100_v4 }
 0xb60   : > { %v9758_v61 = vpop.f32.mrb[88].mxu0  ;;  %v9799_v17 = vpop.f32.mrb[88].mxu1 }
 0xb61   : > { %v9760_v28 = vpop.f32.mrb[89].mxu0  ;;  %v9801_v6 = vpop.f32.mrb[89].mxu1 }
 0xb62   : > { %v10730_v14 = vcombine.low %v9758_v61, %v9760_v28  ;;  %v10731_v13 = vcombine.low %v9799_v17, %v9801_v6  ;;  %v9762_v45 = vpop.f32.mrb[90].mxu0  ;;  %v9803_v46 = vpop.f32.mrb[90].mxu1 }
 0xb63   : > { %v9763_v1 = vpop.f32.mrb[91].mxu0  ;;  %v9804_v53 = vpop.f32.mrb[91].mxu1 }
 0xb64   : > { %v10752_v50 = vrot.slane %v10730_v14, %v17100_v4  ;;  %v10759_v54 = vrot.slane %v10731_v13, %v17100_v4 }
 0xb66   : > { %v10761_v55 = vcombine.low %v10752_v50, %v10759_v54 }
 0xb68   : > { %v10775_v60 = vrot.slane %v10761_v55, %v17100_v4 }
 0xb6a   : > { %v10776_v3 = vcombine.low %v10768_v59, %v10775_v60 }
 0xb6c   : > { %10898 = vst [vmem:[%s17157_s30 + $0x50] sm:$0xff] %v10776_v3 }
 0xb80   : > { %v9840_v63 = vpop.f32.mrb[92].mxu0  ;;  %v9881_v29 = vpop.f32.mrb[92].mxu1 }
 0xb81   : > { %v9842_v7 = vpop.f32.mrb[93].mxu0  ;;  %v9883_v11 = vpop.f32.mrb[93].mxu1 }
 0xb82   : > { %v10777_v12 = vcombine.low %v9840_v63, %v9842_v7  ;;  %v10778_v49 = vcombine.low %v9881_v29, %v9883_v11  ;;  %v9844_v20 = vpop.f32.mrb[94].mxu0  ;;  %v9885_v23 = vpop.f32.mrb[94].mxu1 }
 0xb83   : > { %v9845_v2 = vpop.f32.mrb[95].mxu0  ;;  %v9886_v27 = vpop.f32.mrb[95].mxu1 }
 0xb84   : > { %v10787_v56 = vrot.slane %v10777_v12, %v17100_v4  ;;  %v10794_v30 = vrot.slane %v10778_v49, %v17100_v4 }
 0xb86   : > { %v10809_v31 = vcombine.low %v10787_v56, %v10794_v30 }
 0xb88   : > { %v10817_v25 = vrot.slane %v10809_v31, %v17100_v4 }
 0xba0   : > { %v9922_v35 = vpop.f32.mrb[96].mxu0  ;;  %v9963_v19 = vpop.f32.mrb[96].mxu1 }
 0xba1   : > { %v9924_v21 = vpop.f32.mrb[97].mxu0  ;;  %v9965_v32 = vpop.f32.mrb[97].mxu1 }
 0xba2   : > { %v10779_v36 = vcombine.low %v9922_v35, %v9924_v21  ;;  %v10780_v41 = vcombine.low %v9963_v19, %v9965_v32  ;;  %v9926_v18 = vpop.f32.mrb[98].mxu0  ;;  %v9967_v62 = vpop.f32.mrb[98].mxu1 }
 0xba3   : > { %v9927_v8 = vpop.f32.mrb[99].mxu0  ;;  %v9968_v16 = vpop.f32.mrb[99].mxu1 }
 0xba4   : > { %v10801_v40 = vrot.slane %v10779_v36, %v17100_v4  ;;  %v10808_v15 = vrot.slane %v10780_v41, %v17100_v4 }
 0xba6   : > { %v10810_v42 = vcombine.low %v10801_v40, %v10808_v15 }
 0xba8   : > { %v10824_v44 = vrot.slane %v10810_v42, %v17100_v4 }
 0xbaa   : > { %v10825_v26 = vcombine.low %v10817_v25, %v10824_v44 }
 0xbac   : > { %10899 = vst [vmem:[%s17157_s30 + $0x58] sm:$0xff] %v10825_v26 }
 0xbc0   : > { %v10004_v33 = vpop.f32.mrb[100].mxu0  ;;  %v10045_v39 = vpop.f32.mrb[100].mxu1 }
 0xbc1   : > { %v10006_v48 = vpop.f32.mrb[101].mxu0  ;;  %v10047_v22 = vpop.f32.mrb[101].mxu1 }
 0xbc2   : > { %v10826_v24 = vcombine.low %v10004_v33, %v10006_v48  ;;  %v10827_v51 = vcombine.low %v10045_v39, %v10047_v22  ;;  %v10008_v52 = vpop.f32.mrb[102].mxu0  ;;  %v10049_v57 = vpop.f32.mrb[102].mxu1 }
 0xbc3   : > { %v10009_v5 = vpop.f32.mrb[103].mxu0  ;;  %v10050_v34 = vpop.f32.mrb[103].mxu1 }
 0xbc4   : > { %v10836_v9 = vrot.slane %v10826_v24, %v17100_v4  ;;  %v10843_v10 = vrot.slane %v10827_v51, %v17100_v4 }
 0xbc6   : > { %v10858_v43 = vcombine.low %v10836_v9, %v10843_v10 }
 0xbc8   : > { %v10866_v1 = vrot.slane %v10858_v43, %v17100_v4 }
 0xbe0   : > { %v10086_v0 = vpop.f32.mrb[104].mxu0  ;;  %v10127_v37 = vpop.f32.mrb[104].mxu1 }
 0xbe1   : > { %v10088_v38 = vpop.f32.mrb[105].mxu0  ;;  %v10129_v47 = vpop.f32.mrb[105].mxu1 }
 0xbe2   : > { %v10828_v58 = vcombine.low %v10086_v0, %v10088_v38  ;;  %v10829_v61 = vcombine.low %v10127_v37, %v10129_v47  ;;  %v10090_v17 = vpop.f32.mrb[106].mxu0  ;;  %v10131_v28 = vpop.f32.mrb[106].mxu1 }
 0xbe3   : > { %v10091_v6 = vpop.f32.mrb[107].mxu0  ;;  %v10132_v14 = vpop.f32.mrb[107].mxu1 }
 0xbe4   : > { %v10850_v13 = vrot.slane %v10828_v58, %v17100_v4  ;;  %v10857_v45 = vrot.slane %v10829_v61, %v17100_v4 }
 0xbe6   : > { %v10859_v46 = vcombine.low %v10850_v13, %v10857_v45 }
 0xbe8   : > { %v10873_v53 = vrot.slane %v10859_v46, %v17100_v4 }
 0xbea   : > { %v10874_v50 = vcombine.low %v10866_v1, %v10873_v53 }
 0xbec   : > { %10900 = vst [vmem:[%s17157_s30 + $0x60] sm:$0xff] %v10874_v50 }
 0xbed   : > { %12838 = shalt.err (!%p12835_p10)
}
 0xbee   : > { %s12839_s18 = scalar_lea.hbm %s17860_s24, 1664  ;;  %s12843_s30 = scalar_lea.hbm %s20290_s13, 6656 }
 0xbef   : > { %p12840_p8 = scmp.ne.s32.totalorder %s17860_s24, %s12839_s18  ;;  %p12844_p12 = scmp.lt.u32.totalorder %s17860_s24, %s20290_s13 }
 0xbf0   : > { %p12845_p1 = scmp.lt.u32.totalorder %s12843_s30, %s12839_s18  ;;  %p12847_p6 = scmp.lt.u32.totalorder %s12839_s18, %s17860_s24 }
 0xbf1   : > { %p12841_p11 = pnand %p12840_p8, %p20291_p0 }
 0xbf2   : > { %p12846_p13 = por %p12845_p1, %p12844_p12 }
 0xbf3   : > { %p12842_p9 = pneg %p12841_p11 }
 0xbf4   : > { %p12848_p2 = por %p12847_p6, %p12846_p13 }
 0xbf6   : > { %p12849_p7 = pnand %p12848_p2, %p12842_p9 }
 0xbf8   : > { %12852 = shalt.err (!%p12849_p7)
}
 0xbf9   : > { %12434 = dma.vmem_to_hbm [thread:$0]  (%p20291_p0), %s17862_s25, 1664, %s17860_s24, %s10902_s26  }
 0xbfa PF: > { %p12491_p3 = scmp.ge.s32.totalorder %s12911_s22, 2  ;;  %s10928_s11 = sand.u32 1, %s12899_s19  }
 0xbfb   : > { %p20292_p4 = scmp.ne.s32.totalorder %s18715_s23, 0  ;;  %s10929_s15 = scalar_lea.sflag [#allocation6], %s10928_s11 }
 0xbfd   : > { %p12469_p5 = pnand %p12491_p3, %p20292_p4 }
 0xbff   : > { %12894 = dma.done.wait (!%p12469_p5), %s10929_s15, 1664  }
 0xc00   : > { %12896 = vsyncadd (!%p12469_p5), %s10929_s15, 4294965632  ;;  %p30_p10 = scmp.ge.s32.totalorder %s13241_s28, 6   ;;  %s20293_s19 = smov %s12903_s20 }
 0xc01   : > { %s20294_s20 = smov %s12907_s21  ;;  %s20295_s21 = smov %s13253_s29 }
 0xc02   : > { %s20296_s22 = smov %s13241_s28  ;;  %32 = sbr.rel (!%p30_p10) target bundleno = 15 (0xf), region = 142 }
 0xc09   :  { %10934 = vsyncpa [#allocation5], 1 }
 0xc0a   :  { %10936 = vsyncpa [#allocation5 + $0x1], 1 }
 0xc0b   :  { %10937 = vsyncpa [#allocation8], 1 }
 0xc0c   :  { %10938 = vsyncpa [#allocation11], 1 }
 0xc0d   :  { %10939 = vsyncpa [#allocation14], 1 }
 0xc0e   :  { %10940 = vsyncpa [#allocation17], 1 }
 0xc0f   :  { %10941 = vsyncpa [#allocation20], 1 }
 0xc10   :  { %10943 = vsyncpa [#allocation20 + $0x1], 1 }
 0xc11   :  { %10944 = vsyncpa [#allocation6], 1 }
 0xc12   :  { %10946 = vsyncpa [#allocation6 + $0x1], 1 }

</bundles_post_ra>
